<compile_context>
chip_gen: v5e
topology: v5e:2x2
jax: 0.10.0
libtpu: 0.0.40
codegen_flags: <defaults>
</compile_context>

<pallas_src>
import functools

import jax
import jax.numpy as jnp
from jax.experimental import pallas as pl
from jax.experimental.pallas import tpu as pltpu

C = 50                    # same as `c` in the PyTorch module
N_GSS = 32 * C            # 1600
N_GSP = 32 * 3            # 96
N_FUSED = N_GSS + N_GSP   # 1696
N_PAD = ((N_FUSED + 127) // 128) * 128  # 1792 = 14 * 128 (lane-dense)
TB = 256                  # batch tile (multiple of 8; fills 256-wide MXU on v6e/v7x)


def _leaky_relu(x, slope=0.2):
    return jnp.where(x >= 0, x, slope * x)


def structgen_kernel(z_ref,
                     w1_ref, b1_ref,
                     w2_ref, b2_ref,
                     wf_ref, bf_ref,
                     out_ref):
    """One batch tile: (TB, 96) -> (TB, N_PAD) fused head output."""
    z = z_ref[...]                                                    # (TB, 96)

    # mlp1: Linear(96,256) -> LeakyReLU(0.2) -> Linear(256,256) -> LeakyReLU(0.2)
    h = jnp.dot(z, w1_ref[...], preferred_element_type=jnp.float32) + b1_ref[...]
    h = _leaky_relu(h)
    h = jnp.dot(h, w2_ref[...], preferred_element_type=jnp.float32) + b2_ref[...]
    h = _leaky_relu(h)

    # fused fc1|fc2: single lane-dense (TB, 1792) store
    out_ref[...] = (
        jnp.dot(h, wf_ref[...], preferred_element_type=jnp.float32) + bf_ref[...]
    )


def make_params(key):
    """Deterministic parameter init (same shapes as the PyTorch module)."""
    ks = jax.random.split(key, 8)

    def lin(kw, kb, fan_in, fan_out):
        bound = 1.0 / jnp.sqrt(fan_in)
        w = jax.random.uniform(kw, (fan_in, fan_out), jnp.float32, -bound, bound)
        b = jax.random.uniform(kb, (1, fan_out), jnp.float32, -bound, bound)
        return w, b

    w1, b1 = lin(ks[0], ks[1], 96, 256)
    w2, b2 = lin(ks[2], ks[3], 256, 256)
    w3, b3 = lin(ks[4], ks[5], 256, N_GSS)
    w4, b4 = lin(ks[6], ks[7], 256, N_GSP)
    return (w1, b1, w2, b2, w3, b3, w4, b4)


def _fuse_heads(w3, b3, w4, b4):
    """Pack fc1/fc2 into one (256, N_PAD) weight + (1, N_PAD) bias, zero-padded."""
    wf = jnp.zeros((256, N_PAD), jnp.float32)
    wf = wf.at[:, :N_GSS].set(w3).at[:, N_GSS:N_FUSED].set(w4)
    bf = jnp.zeros((1, N_PAD), jnp.float32)
    bf = bf.at[:, :N_GSS].set(b3).at[:, N_GSS:N_FUSED].set(b4)
    return wf, bf


@functools.partial(jax.jit, static_argnames=("tb",))
def structgen_forward(z, params, tb=TB):
    B = z.shape[0]
    (w1, b1, w2, b2, w3, b3, w4, b4) = params
    wf, bf = _fuse_heads(w3, b3, w4, b4)

    # Pad batch up to a tile multiple (wasted rows are sliced off below).
    b_pad = pl.cdiv(B, tb) * tb
    z_p = z if b_pad == B else jnp.pad(z, ((0, b_pad - B), (0, 0)))

    grid = (b_pad // tb,)

    flops = 2 * b_pad * (96 * 256 + 256 * 256 + 256 * N_PAD)
    bytes_accessed = 4 * (
        z_p.size + w1.size + b1.size + w2.size + b2.size + wf.size + bf.size
        + b_pad * N_PAD
    )

    out_flat = pl.pallas_call(
        structgen_kernel,
        grid=grid,
        in_specs=[
            pl.BlockSpec((tb, 96), lambda i: (i, 0)),        # z tile
            pl.BlockSpec((96, 256), lambda i: (0, 0)),       # w1 (VMEM-resident)
            pl.BlockSpec((1, 256), lambda i: (0, 0)),        # b1
            pl.BlockSpec((256, 256), lambda i: (0, 0)),      # w2
            pl.BlockSpec((1, 256), lambda i: (0, 0)),        # b2
            pl.BlockSpec((256, N_PAD), lambda i: (0, 0)),    # fused fc weight
            pl.BlockSpec((1, N_PAD), lambda i: (0, 0)),      # fused fc bias
        ],
        out_specs=pl.BlockSpec((tb, N_PAD), lambda i: (i, 0)),
        out_shape=jax.ShapeDtypeStruct((b_pad, N_PAD), jnp.float32),
        compiler_params=pltpu.CompilerParams(
            dimension_semantics=("parallel",),   # shard batch tiles across TCs (v7x)
            vmem_limit_bytes=32 << 20,
        ),
        cost_estimate=pl.CostEstimate(
            flops=flops, transcendentals=0, bytes_accessed=bytes_accessed),
    )(z_p, w1, b1, w2, b2, wf, bf)

    # Glue: strip batch/channel padding, split fused heads, reshape.
    out_flat = out_flat[:B]
    gss = out_flat[:, :N_GSS].reshape(B, 32, C)
    gsp = out_flat[:, N_GSS:N_FUSED].reshape(B, 32, 3)

    # z_ = z[:, None, :].repeat(1, 32, 1): pure broadcast, kept out of the kernel
    # (it would dominate HBM store traffic); XLA keeps it lazy/fused downstream.
    zrep = jnp.broadcast_to(z[:, None, :], (B, 32, 96))
    return zrep, gss, gsp


def structgen_reference(z, params):
    """Pure-JAX reference for correctness checking."""
    (w1, b1, w2, b2, w3, b3, w4, b4) = params
    z_ = jnp.broadcast_to(z[:, None, :], (z.shape[0], 32, 96))
    h = _leaky_relu(z @ w1 + b1)
    h = _leaky_relu(h @ w2 + b2)
    gss = (h @ w3 + b3).reshape(-1, 32, C)
    gsp = (h @ w4 + b4).reshape(-1, 32, 3)
    return z_, gss, gsp


if __name__ == "__main__":
    key = jax.random.PRNGKey(0)
    k_z, k_p = jax.random.split(key)

    B = 4
    z = jax.random.normal(k_z, (B, 96), jnp.float32)
    params = make_params(k_p)

    z_rep, gss, gsp = structgen_forward(z, params)
    jax.block_until_ready((z_rep, gss, gsp))

    # sanity check against pure-JAX reference
    z_ref, gss_ref, gsp_ref = structgen_reference(z, params)
    assert z_rep.shape == (B, 32, 96) and gss.shape == (B, 32, C) and gsp.shape == (B, 32, 3)
    assert jnp.allclose(z_rep, z_ref, atol=1e-5)
    assert jnp.allclose(gss, gss_ref, atol=1e-4)
    assert jnp.allclose(gsp, gsp_ref, atol=1e-4)

    print("KERNEL_OK")
</pallas_src>

<mosaic_0001>
module attributes {stable_mosaic.version = 11 : i64} {
  func.func @structgen_kernel(%arg0: i32, %arg1: memref<256x96xf32, #tpu.memory_space<vmem>>, %arg2: memref<96x256xf32, #tpu.memory_space<vmem>>, %arg3: memref<1x256xf32, #tpu.memory_space<vmem>>, %arg4: memref<256x256xf32, #tpu.memory_space<vmem>>, %arg5: memref<1x256xf32, #tpu.memory_space<vmem>>, %arg6: memref<256x1792xf32, #tpu.memory_space<vmem>>, %arg7: memref<1x1792xf32, #tpu.memory_space<vmem>>, %arg8: memref<256x1792xf32, #tpu.memory_space<vmem>>) attributes {dimension_semantics = [#tpu.dimension_semantics<parallel>], iteration_bounds = array<i64: 1>, scalar_prefetch = 0 : i64, scratch_operands = 0 : i64, tpu.core_type = #tpu.core_type<tc>, window_params = [{transform_indices = @transform_0, window_bounds = array<i64: 256, 96>}, {pipeline_mode = #tpu.pipeline_mode<synchronous>, transform_indices = @transform_1, window_bounds = array<i64: 96, 256>}, {pipeline_mode = #tpu.pipeline_mode<synchronous>, transform_indices = @transform_2, window_bounds = array<i64: 1, 256>}, {pipeline_mode = #tpu.pipeline_mode<synchronous>, transform_indices = @transform_3, window_bounds = array<i64: 256, 256>}, {pipeline_mode = #tpu.pipeline_mode<synchronous>, transform_indices = @transform_4, window_bounds = array<i64: 1, 256>}, {pipeline_mode = #tpu.pipeline_mode<synchronous>, transform_indices = @transform_5, window_bounds = array<i64: 256, 1792>}, {pipeline_mode = #tpu.pipeline_mode<synchronous>, transform_indices = @transform_6, window_bounds = array<i64: 1, 1792>}, {transform_indices = @transform_7, window_bounds = array<i64: 256, 1792>}]} {
    %c0 = arith.constant 0 : index
    %c0_0 = arith.constant 0 : index
    %0 = vector.load %arg1[%c0, %c0_0] : memref<256x96xf32, #tpu.memory_space<vmem>>, vector<256x96xf32>
    %c0_1 = arith.constant 0 : index
    %c0_2 = arith.constant 0 : index
    %1 = vector.load %arg2[%c0_1, %c0_2] : memref<96x256xf32, #tpu.memory_space<vmem>>, vector<96x256xf32>
    %cst = arith.constant dense<0.000000e+00> : vector<256x256xf32>
    %2 = tpu.matmul %0, %1, %cst {dimension_numbers = #tpu.dot_dimension_numbers<[1], [0], [0], [1], [0, 0, 1, 1], [], []>} : vector<256x96xf32>, vector<96x256xf32>, vector<256x256xf32> -> vector<256x256xf32>
    %c0_3 = arith.constant 0 : index
    %c0_4 = arith.constant 0 : index
    %3 = vector.load %arg3[%c0_3, %c0_4] : memref<1x256xf32, #tpu.memory_space<vmem>>, vector<1x256xf32>
    %4 = vector.broadcast %3 : vector<1x256xf32> to vector<256x256xf32>
    %5 = arith.addf %2, %4 : vector<256x256xf32>
    %cst_5 = arith.constant 0.000000e+00 : f32
    %6 = vector.broadcast %cst_5 : f32 to vector<256x256xf32>
    %7 = arith.cmpf oge, %5, %6 : vector<256x256xf32>
    %cst_6 = arith.constant 2.000000e-01 : f32
    %8 = vector.broadcast %cst_6 : f32 to vector<256x256xf32>
    %9 = arith.mulf %8, %5 : vector<256x256xf32>
    %10 = arith.select %7, %5, %9 : vector<256x256xi1>, vector<256x256xf32>
    %c0_7 = arith.constant 0 : index
    %c0_8 = arith.constant 0 : index
    %11 = vector.load %arg4[%c0_7, %c0_8] : memref<256x256xf32, #tpu.memory_space<vmem>>, vector<256x256xf32>
    %cst_9 = arith.constant dense<0.000000e+00> : vector<256x256xf32>
    %12 = tpu.matmul %10, %11, %cst_9 {dimension_numbers = #tpu.dot_dimension_numbers<[1], [0], [0], [1], [0, 0, 1, 1], [], []>} : vector<256x256xf32>, vector<256x256xf32>, vector<256x256xf32> -> vector<256x256xf32>
    %c0_10 = arith.constant 0 : index
    %c0_11 = arith.constant 0 : index
    %13 = vector.load %arg5[%c0_10, %c0_11] : memref<1x256xf32, #tpu.memory_space<vmem>>, vector<1x256xf32>
    %14 = vector.broadcast %13 : vector<1x256xf32> to vector<256x256xf32>
    %15 = arith.addf %12, %14 : vector<256x256xf32>
    %cst_12 = arith.constant 0.000000e+00 : f32
    %16 = vector.broadcast %cst_12 : f32 to vector<256x256xf32>
    %17 = arith.cmpf oge, %15, %16 : vector<256x256xf32>
    %cst_13 = arith.constant 2.000000e-01 : f32
    %18 = vector.broadcast %cst_13 : f32 to vector<256x256xf32>
    %19 = arith.mulf %18, %15 : vector<256x256xf32>
    %20 = arith.select %17, %15, %19 : vector<256x256xi1>, vector<256x256xf32>
    %c0_14 = arith.constant 0 : index
    %c0_15 = arith.constant 0 : index
    %21 = vector.load %arg6[%c0_14, %c0_15] : memref<256x1792xf32, #tpu.memory_space<vmem>>, vector<256x1792xf32>
    %cst_16 = arith.constant dense<0.000000e+00> : vector<256x1792xf32>
    %22 = tpu.matmul %20, %21, %cst_16 {dimension_numbers = #tpu.dot_dimension_numbers<[1], [0], [0], [1], [0, 0, 1, 1], [], []>} : vector<256x256xf32>, vector<256x1792xf32>, vector<256x1792xf32> -> vector<256x1792xf32>
    %c0_17 = arith.constant 0 : index
    %c0_18 = arith.constant 0 : index
    %23 = vector.load %arg7[%c0_17, %c0_18] : memref<1x1792xf32, #tpu.memory_space<vmem>>, vector<1x1792xf32>
    %24 = vector.broadcast %23 : vector<1x1792xf32> to vector<256x1792xf32>
    %25 = arith.addf %22, %24 : vector<256x1792xf32>
    %c0_19 = arith.constant 0 : index
    %c0_20 = arith.constant 0 : index
    %26 = vector.load %arg8[%c0_19, %c0_20] : memref<256x1792xf32, #tpu.memory_space<vmem>>, vector<256x1792xf32>
    tpu.vector_store %arg8[%c0_19, %c0_20], %25 {strides = array<i32>} : memref<256x1792xf32, #tpu.memory_space<vmem>>, vector<256x1792xf32>,
    return
  }
  func.func @transform_0(%arg0: i32) -> (i32, i32) {
    %c0_i32 = arith.constant 0 : i32
    %c0_i32_0 = arith.constant 0 : i32
    return %arg0, %c0_i32 : i32, i32
  }
  func.func @transform_1(%arg0: i32) -> (i32, i32) {
    %c0_i32 = arith.constant 0 : i32
    %c0_i32_0 = arith.constant 0 : i32
    %c0_i32_1 = arith.constant 0 : i32
    return %c0_i32, %c0_i32_0 : i32, i32
  }
  func.func @transform_2(%arg0: i32) -> (i32, i32) {
    %c0_i32 = arith.constant 0 : i32
    %c0_i32_0 = arith.constant 0 : i32
    %c0_i32_1 = arith.constant 0 : i32
    return %c0_i32, %c0_i32_0 : i32, i32
  }
  func.func @transform_3(%arg0: i32) -> (i32, i32) {
    %c0_i32 = arith.constant 0 : i32
    %c0_i32_0 = arith.constant 0 : i32
    %c0_i32_1 = arith.constant 0 : i32
    return %c0_i32, %c0_i32_0 : i32, i32
  }
  func.func @transform_4(%arg0: i32) -> (i32, i32) {
    %c0_i32 = arith.constant 0 : i32
    %c0_i32_0 = arith.constant 0 : i32
    %c0_i32_1 = arith.constant 0 : i32
    return %c0_i32, %c0_i32_0 : i32, i32
  }
  func.func @transform_5(%arg0: i32) -> (i32, i32) {
    %c0_i32 = arith.constant 0 : i32
    %c0_i32_0 = arith.constant 0 : i32
    %c0_i32_1 = arith.constant 0 : i32
    return %c0_i32, %c0_i32_0 : i32, i32
  }
  func.func @transform_6(%arg0: i32) -> (i32, i32) {
    %c0_i32 = arith.constant 0 : i32
    %c0_i32_0 = arith.constant 0 : i32
    %c0_i32_1 = arith.constant 0 : i32
    return %c0_i32, %c0_i32_0 : i32, i32
  }
  func.func @transform_7(%arg0: i32) -> (i32, i32) {
    %c0_i32 = arith.constant 0 : i32
    %c0_i32_0 = arith.constant 0 : i32
    return %arg0, %c0_i32 : i32, i32
  }
}

</mosaic_0001>

<bundles_post_ra>
// kernel: structgen_forward.1
= control target key start
LH: loop header
LB: loop body
LE: loop exit
PB: predicated region body
PF: predicated region fallthrough
CT: control target
= control target key end

     0   :  { %vm88_vm0 = vcmask 785408   ;;  %s10850_s1 = inlined_call_operand.vmem [shape: f32[96,256], index: 1, kind: input, shape index: {}]   ;;  %s10851_s0 = inlined_call_operand.vmem [shape: f32[256,96], index: 0, kind: input, shape index: {}]   ;;  %s10852_s3 = inlined_call_operand.vmem [shape: f32[256,256], index: 3, kind: input, shape index: {}]   ;;  %s10853_s5 = inlined_call_operand.vmem [shape: f32[256,1792], index: 5, kind: input, shape index: {}]   ;;  %s10854_s2 = inlined_call_operand.vmem [shape: f32[1,256], index: 2, kind: input, shape index: {}]   ;;  %s10855_s4 = inlined_call_operand.vmem [shape: f32[1,256], index: 4, kind: input, shape index: {}]   ;;  %s10856_s6 = inlined_call_operand.vmem [shape: f32[1,1792], index: 6, kind: input, shape index: {}]   ;;  %s10857_s7 = inlined_call_operand.vmem [shape: f32[256,1792], index: 7, kind: output, shape index: {}]  }
   0x1   :  { %v80_v0 = vld [vmem:[%s10850_s1 + $0xb0] sm:$0xff]  ;;  %v81_v1 = vld [vmem:[%s10850_s1 + $0xb8] sm:$0xff]  ;;  %v78_v2 = vld [vmem:[%s10850_s1 + $0xa0] sm:$0xff] }
   0x2   :  { %189 = vmatpush.msra.mxu0 %v80_v0  ;;  %302 = vmatpush.msra.mxu1 %v81_v1  ;;  %v79_v3 = vld [vmem:[%s10850_s1 + $0xa8] sm:$0xff]  ;;  %v76_v4 = vld [vmem:[%s10850_s1 + $0x90] sm:$0xff]  ;;  %v77_v5 = vld [vmem:[%s10850_s1 + $0x98] sm:$0xff] }
   0x3   :  { %5489 = vmatpush.msra.mxu3 %v81_v1  ;;  %5477 = vmatpush.msra.mxu2 %v80_v0  ;;  %v74_v6 = vld [vmem:[%s10850_s1 + $0x80] sm:$0xff]  ;;  %v75_v7 = vld [vmem:[%s10850_s1 + $0x88] sm:$0xff]  ;;  %v72_v8 = vld [vmem:[%s10850_s1 + $0x70] sm:$0xff] }
   0x4   :  { %190 = vmatpush.msra.mxu0 %v78_v2  ;;  %303 = vmatpush.msra.mxu1 %v79_v3  ;;  %v73_v9 = vld [vmem:[%s10850_s1 + $0x78] sm:$0xff]  ;;  %v70_v10 = vld [vmem:[%s10850_s1 + $0x60] sm:$0xff]  ;;  %v71_v11 = vld [vmem:[%s10850_s1 + $0x68] sm:$0xff] }
   0x5   :  { %5490 = vmatpush.msra.mxu3 %v79_v3  ;;  %5478 = vmatpush.msra.mxu2 %v78_v2  ;;  %v68_v12 = vld [vmem:[%s10850_s1 + $0x50] sm:$0xff]  ;;  %v69_v13 = vld [vmem:[%s10850_s1 + $0x58] sm:$0xff]  ;;  %v66_v14 = vld [vmem:[%s10850_s1 + $0x40] sm:$0xff] }
   0x6   :  { %191 = vmatpush.msra.mxu0 %v76_v4  ;;  %304 = vmatpush.msra.mxu1 %v77_v5  ;;  %v67_v15 = vld [vmem:[%s10850_s1 + $0x48] sm:$0xff]  ;;  %v64_v16 = vld [vmem:[%s10850_s1 + $0x30] sm:$0xff]  ;;  %v65_v17 = vld [vmem:[%s10850_s1 + $0x38] sm:$0xff] }
   0x7   :  { %5491 = vmatpush.msra.mxu3 %v77_v5  ;;  %5479 = vmatpush.msra.mxu2 %v76_v4  ;;  %v62_v18 = vld [vmem:[%s10850_s1 + $0x20] sm:$0xff]  ;;  %v63_v19 = vld [vmem:[%s10850_s1 + $0x28] sm:$0xff]  ;;  %v60_v20 = vld [vmem:[%s10850_s1 + $0x10] sm:$0xff] }
   0x8   :  { %192 = vmatpush.msra.mxu0 %v74_v6  ;;  %305 = vmatpush.msra.mxu1 %v75_v7  ;;  %v61_v21 = vld [vmem:[%s10850_s1 + $0x18] sm:$0xff]  ;;  %v58_v22 = vld [vmem:[%s10850_s1] sm:$0xff]  ;;  %v59_v23 = vld [vmem:[%s10850_s1 + $0x8] sm:$0xff] }
   0x9   :  { %5492 = vmatpush.msra.mxu3 %v75_v7  ;;  %5480 = vmatpush.msra.mxu2 %v74_v6  ;;  %v26_v24 = vld [vmem:[%s10851_s0] sm:$0xff]  ;;  %v43_v26 = vld [vmem:[%s10851_s0 + $0x88] sm:$0xff]  ;;  %v633_v27 = vld [vmem:[%s10852_s3 + $0xf0] sm:$0xff] }
   0xa   :  { %193 = vmatpush.msra.mxu0 %v72_v8  ;;  %306 = vmatpush.msra.mxu1 %v73_v9  ;;  %v5640_v25 = vld [vmem:[%s10851_s0 + $0x80] sm:$0xff]  ;;  %v665_v28 = vld [vmem:[%s10852_s3 + $0x1f0] sm:$0xff]  ;;  %v634_v29 = vld [vmem:[%s10852_s3 + $0xf8] sm:$0xff] }
   0xb   :  { %5493 = vmatpush.msra.mxu3 %v73_v9  ;;  %5481 = vmatpush.msra.mxu2 %v72_v8  ;;  %v666_v30 = vld [vmem:[%s10852_s3 + $0x1f8] sm:$0xff]  ;;  %v631_v31 = vld [vmem:[%s10852_s3 + $0xe0] sm:$0xff]  ;;  %v632_v33 = vld [vmem:[%s10852_s3 + $0xe8] sm:$0xff] }
   0xc   :  { %194 = vmatpush.msra.mxu0 %v70_v10  ;;  %307 = vmatpush.msra.mxu1 %v71_v11  ;;  %v663_v32 = vld [vmem:[%s10852_s3 + $0x1e0] sm:$0xff]  ;;  %v664_v34 = vld [vmem:[%s10852_s3 + $0x1e8] sm:$0xff]  ;;  %v629_v35 = vld [vmem:[%s10852_s3 + $0xd0] sm:$0xff] }
   0xd   :  { %5494 = vmatpush.msra.mxu3 %v71_v11  ;;  %5482 = vmatpush.msra.mxu2 %v70_v10  ;;  %v661_v36 = vld [vmem:[%s10852_s3 + $0x1d0] sm:$0xff]  ;;  %v27_v37 = vld [vmem:[%s10851_s0 + $0x8] sm:$0xff]  ;;  %v627_v38 = vld [vmem:[%s10852_s3 + $0xc0] sm:$0xff] }
   0xe   :  { %195 = vmatpush.msra.mxu0 %v68_v12  ;;  %308 = vmatpush.msra.mxu1 %v69_v13  ;;  %v630_v39 = vld [vmem:[%s10852_s3 + $0xd8] sm:$0xff]  ;;  %v44_v40 = vld [vmem:[%s10851_s0 + $0x90] sm:$0xff]  ;;  %v659_v42 = vld [vmem:[%s10852_s3 + $0x1c0] sm:$0xff] }
   0xf   :  { %5495 = vmatpush.msra.mxu3 %v69_v13  ;;  %5483 = vmatpush.msra.mxu2 %v68_v12  ;;  %v662_v41 = vld [vmem:[%s10852_s3 + $0x1d8] sm:$0xff]  ;;  %v625_v43 = vld [vmem:[%s10852_s3 + $0xb0] sm:$0xff]  ;;  %v628_v44 = vld [vmem:[%s10852_s3 + $0xc8] sm:$0xff] }
  0x10   :  { %196 = vmatpush.msra.mxu0 %v66_v14  ;;  %309 = vmatpush.msra.mxu1 %v67_v15  ;;  %v660_v45 = vld [vmem:[%s10852_s3 + $0x1c8] sm:$0xff]  ;;  %v657_v46 = vld [vmem:[%s10852_s3 + $0x1b0] sm:$0xff]  ;;  %v45_v48 = vld [vmem:[%s10851_s0 + $0x98] sm:$0xff] }
  0x11   :  { %5496 = vmatpush.msra.mxu3 %v67_v15  ;;  %5484 = vmatpush.msra.mxu2 %v66_v14  ;;  %v28_v47 = vld [vmem:[%s10851_s0 + $0x10] sm:$0xff]  ;;  %v623_v49 = vld [vmem:[%s10852_s3 + $0xa0] sm:$0xff]  ;;  %v626_v50 = vld [vmem:[%s10852_s3 + $0xb8] sm:$0xff] }
  0x12   :  { %197 = vmatpush.msra.mxu0 %v64_v16  ;;  %310 = vmatpush.msra.mxu1 %v65_v17  ;;  %v658_v51 = vld [vmem:[%s10852_s3 + $0x1b8] sm:$0xff]  ;;  %v655_v52 = vld [vmem:[%s10852_s3 + $0x1a0] sm:$0xff]  ;;  %v621_v55 = vld [vmem:[%s10852_s3 + $0x90] sm:$0xff] }
  0x13   :  { %5497 = vmatpush.msra.mxu3 %v65_v17  ;;  %5485 = vmatpush.msra.mxu2 %v64_v16  ;;  %v29_v53 = vld [vmem:[%s10851_s0 + $0x18] sm:$0xff]  ;;  %v46_v54 = vld [vmem:[%s10851_s0 + $0xa0] sm:$0xff]  ;;  %v656_v56 = vld [vmem:[%s10852_s3 + $0x1a8] sm:$0xff] }
  0x14   :  { %198 = vmatpush.msra.mxu0 %v62_v18  ;;  %311 = vmatpush.msra.mxu1 %v63_v19  ;;  %v624_v57 = vld [vmem:[%s10852_s3 + $0xa8] sm:$0xff]  ;;  %v653_v58 = vld [vmem:[%s10852_s3 + $0x190] sm:$0xff]  ;;  %v30_v59 = vld [vmem:[%s10851_s0 + $0x20] sm:$0xff] }
  0x15   :  { %5498 = vmatpush.msra.mxu3 %v63_v19  ;;  %5486 = vmatpush.msra.mxu2 %v62_v18  ;;  %v47_v60 = vld [vmem:[%s10851_s0 + $0xa8] sm:$0xff]  ;;  %v619_v61 = vld [vmem:[%s10852_s3 + $0x80] sm:$0xff]  ;;  %v654_v62 = vld [vmem:[%s10852_s3 + $0x198] sm:$0xff] }
  0x16   :  { %199 = vmatpush.msra.mxu0 %v60_v20  ;;  %312 = vmatpush.msra.mxu1 %v61_v21  ;;  %v622_v63 = vld [vmem:[%s10852_s3 + $0x98] sm:$0xff]  ;;  %v651_v0 = vld [vmem:[%s10852_s3 + $0x180] sm:$0xff]  ;;  %v617_v1 = vld [vmem:[%s10852_s3 + $0x70] sm:$0xff] }
  0x17   :  { %5499 = vmatpush.msra.mxu3 %v61_v21  ;;  %5487 = vmatpush.msra.mxu2 %v60_v20  ;;  %v31_v2 = vld [vmem:[%s10851_s0 + $0x28] sm:$0xff]  ;;  %v48_v3 = vld [vmem:[%s10851_s0 + $0xb0] sm:$0xff]  ;;  %v615_v7 = vld [vmem:[%s10852_s3 + $0x60] sm:$0xff] }
  0x18   :  { %200 = vmatpush.msra.mxu0 %v58_v22  ;;  %313 = vmatpush.msra.mxu1 %v59_v23  ;;  %v652_v4 = vld [vmem:[%s10852_s3 + $0x188] sm:$0xff]  ;;  %v649_v5 = vld [vmem:[%s10852_s3 + $0x170] sm:$0xff]  ;;  %v49_v9 = vld [vmem:[%s10851_s0 + $0xb8] sm:$0xff] }
  0x19   :  { %5413 = vmatmul.msk.f32.vlgmr.msra.gmra.mxu0 %vm88_vm0, %v26_v24  ;;  %5445 = vmatmul.msk.f32.vlgmr.msra.gmra.mxu1 %vm88_vm0, %v26_v24  ;;  %v620_v6 = vld [vmem:[%s10852_s3 + $0x88] sm:$0xff]  ;;  %v32_v8 = vld [vmem:[%s10851_s0 + $0x30] sm:$0xff]  ;;  %v650_v10 = vld [vmem:[%s10852_s3 + $0x178] sm:$0xff] }
  0x1a   :  { %5500 = vmatpush.msra.mxu3 %v59_v23  ;;  %5488 = vmatpush.msra.mxu2 %v58_v22  ;;  %v647_v11 = vld [vmem:[%s10852_s3 + $0x160] sm:$0xff]  ;;  %v618_v12 = vld [vmem:[%s10852_s3 + $0x78] sm:$0xff]  ;;  %v613_v13 = vld [vmem:[%s10852_s3 + $0x50] sm:$0xff] }
  0x1b   :  { %5461 = vmatmul.msk.f32.vlgmr.msra.gmra.mxu3 %vm88_vm0, %v5640_v25  ;;  %5430 = vmatmul.msk.f32.vlgmr.msra.gmra.mxu2 %vm88_vm0, %v43_v26  ;;  %v33_v14 = vld [vmem:[%s10851_s0 + $0x38] sm:$0xff]  ;;  %v50_v15 = vld [vmem:[%s10851_s0 + $0xc0] sm:$0xff]  ;;  %v648_v16 = vld [vmem:[%s10852_s3 + $0x168] sm:$0xff] }
  0x1c   :  { %673 = vmatpush.msrb.mxu2 %v633_v27  ;;  %786 = vmatpush.msrb.mxu3 %v665_v28  ;;  %v645_v17 = vld [vmem:[%s10852_s3 + $0x150] sm:$0xff]  ;;  %v611_v18 = vld [vmem:[%s10852_s3 + $0x40] sm:$0xff]  ;;  %v616_v19 = vld [vmem:[%s10852_s3 + $0x68] sm:$0xff] }
  0x1d   :  { %899 = vmatpush.msrb.mxu0 %v634_v29  ;;  %1012 = vmatpush.msrb.mxu1 %v666_v30  ;;  %v34_v20 = vld [vmem:[%s10851_s0 + $0x40] sm:$0xff]  ;;  %v51_v21 = vld [vmem:[%s10851_s0 + $0xc8] sm:$0xff]  ;;  %v646_v22 = vld [vmem:[%s10852_s3 + $0x158] sm:$0xff] }
  0x1e   :  { %674 = vmatpush.msrb.mxu2 %v631_v31  ;;  %787 = vmatpush.msrb.mxu3 %v663_v32  ;;  %v609_v23 = vld [vmem:[%s10852_s3 + $0x30] sm:$0xff]  ;;  %v643_v24 = vld [vmem:[%s10852_s3 + $0x140] sm:$0xff]  ;;  %v35_v27 = vld [vmem:[%s10851_s0 + $0x48] sm:$0xff] }
  0x1f   :  { %900 = vmatpush.msrb.mxu0 %v632_v33  ;;  %1013 = vmatpush.msrb.mxu1 %v664_v34  ;;  %v52_v28 = vld [vmem:[%s10851_s0 + $0xd0] sm:$0xff]  ;;  %v644_v29 = vld [vmem:[%s10852_s3 + $0x148] sm:$0xff]  ;;  %v607_v30 = vld [vmem:[%s10852_s3 + $0x20] sm:$0xff] }
  0x20   :  { %675 = vmatpush.msrb.mxu2 %v629_v35  ;;  %788 = vmatpush.msrb.mxu3 %v661_v36  ;;  %v641_v31 = vld [vmem:[%s10852_s3 + $0x130] sm:$0xff]  ;;  %v612_v32 = vld [vmem:[%s10852_s3 + $0x48] sm:$0xff]  ;;  %v53_v34 = vld [vmem:[%s10851_s0 + $0xd8] sm:$0xff] }
  0x21   :  { %5414 = vmatmul.msk.f32.gmra.mxu0 %vm88_vm0, %v27_v37  ;;  %5446 = vmatmul.msk.f32.gmra.mxu1 %vm88_vm0, %v27_v37  ;;  %v36_v33 = vld [vmem:[%s10851_s0 + $0x50] sm:$0xff]  ;;  %v642_v35 = vld [vmem:[%s10852_s3 + $0x138] sm:$0xff]  ;;  %v639_v37 = vld [vmem:[%s10852_s3 + $0x120] sm:$0xff] }
  0x22   :  { %676 = vmatpush.msrb.mxu2 %v627_v38  ;;  %901 = vmatpush.msrb.mxu0 %v630_v39  ;;  %v605_v36 = vld [vmem:[%s10852_s3 + $0x10] sm:$0xff]  ;;  %v610_v38 = vld [vmem:[%s10852_s3 + $0x38] sm:$0xff] }
  0x23   :  { %5462 = vmatmul.msk.f32.gmra.mxu3 %vm88_vm0, %v43_v26  ;;  %5431 = vmatmul.msk.f32.gmra.mxu2 %vm88_vm0, %v44_v40  ;;  %v614_v26 = vld [vmem:[%s10852_s3 + $0x58] sm:$0xff] }
  0x24   :  { %1014 = vmatpush.msrb.mxu1 %v662_v41  ;;  %789 = vmatpush.msrb.mxu3 %v659_v42  ;;  %v37_v39 = vld [vmem:[%s10851_s0 + $0x58] sm:$0xff]  ;;  %v640_v41 = vld [vmem:[%s10852_s3 + $0x128] sm:$0xff]  ;;  %v603_v42 = vld [vmem:[%s10852_s3] sm:$0xff] }
  0x25   :  { %677 = vmatpush.msrb.mxu2 %v625_v43  ;;  %902 = vmatpush.msrb.mxu0 %v628_v44  ;;  %v38_v43 = vld [vmem:[%s10851_s0 + $0x60] sm:$0xff]  ;;  %v637_v44 = vld [vmem:[%s10852_s3 + $0x110] sm:$0xff] }
  0x26   :  { %1015 = vmatpush.msrb.mxu1 %v660_v45  ;;  %790 = vmatpush.msrb.mxu3 %v657_v46  ;;  %v55_v45 = vld [vmem:[%s10851_s0 + $0xe8] sm:$0xff]  ;;  %v638_v46 = vld [vmem:[%s10852_s3 + $0x118] sm:$0xff] }
  0x27   :  { %678 = vmatpush.msrb.mxu2 %v623_v49  ;;  %903 = vmatpush.msrb.mxu0 %v626_v50  ;;  %v636_v49 = vld [vmem:[%s10852_s3 + $0x108] sm:$0xff]  ;;  %v1527_v50 = vld [vmem:[%s10853_s5 + $0x690] sm:$0xff] }
  0x28   :  { %1016 = vmatpush.msrb.mxu1 %v658_v51  ;;  %791 = vmatpush.msrb.mxu3 %v655_v52  ;;  %v39_v51 = vld [vmem:[%s10851_s0 + $0x68] sm:$0xff]  ;;  %v606_v52 = vld [vmem:[%s10852_s3 + $0x18] sm:$0xff] }
  0x29   :  { %5415 = vmatmul.msk.f32.gmra.mxu0 %vm88_vm0, %v28_v47  ;;  %5447 = vmatmul.msk.f32.gmra.mxu1 %vm88_vm0, %v28_v47  ;;  %v608_v47 = vld [vmem:[%s10852_s3 + $0x28] sm:$0xff] }
  0x2a   :  { %679 = vmatpush.msrb.mxu2 %v621_v55  ;;  %1017 = vmatpush.msrb.mxu1 %v656_v56  ;;  %v40_v55 = vld [vmem:[%s10851_s0 + $0x70] sm:$0xff] }
  0x2b   :  { %5463 = vmatmul.msk.f32.gmra.mxu3 %vm88_vm0, %v44_v40  ;;  %5432 = vmatmul.msk.f32.gmra.mxu2 %vm88_vm0, %v45_v48  ;;  %v54_v40 = vld [vmem:[%s10851_s0 + $0xe0] sm:$0xff]  ;;  %v1751_v56 = vld [vmem:[%s10853_s5 + $0xd90] sm:$0xff] }
  0x2c   :  { %904 = vmatpush.msrb.mxu0 %v624_v57  ;;  %792 = vmatpush.msrb.mxu3 %v653_v58  ;;  %v57_v57 = vld [vmem:[%s10851_s0 + $0xf8] sm:$0xff]  ;;  %v1513_v58 = vld [vmem:[%s10853_s5 + $0x620] sm:$0xff] }
  0x2d   :  { %680 = vmatpush.msrb.mxu2 %v619_v61  ;;  %1018 = vmatpush.msrb.mxu1 %v654_v62  ;;  %v82_v61 = vld [vmem:[%s10854_s2] sm:$0x3]  ;;  %v1528_v62 = vld [vmem:[%s10853_s5 + $0x698] sm:$0xff] }
  0x2e   :  { %905 = vmatpush.msrb.mxu0 %v622_v63  ;;  %793 = vmatpush.msrb.mxu3 %v651_v0  ;;  %v6006_v63 = vperm.slane %v82_v61, 0  ;;  %v6008_v0 = vperm.slane %v82_v61, 1 }
  0x2f   :  { %681 = vmatpush.msrb.mxu2 %v617_v1  ;;  %1019 = vmatpush.msrb.mxu1 %v652_v4 }
  0x30   :  { %794 = vmatpush.msrb.mxu3 %v649_v5  ;;  %906 = vmatpush.msrb.mxu0 %v620_v6  ;;  %v1737_v5 = vld [vmem:[%s10853_s5 + $0xd20] sm:$0xff] }
  0x31   :  { %5416 = vmatmul.msk.f32.gmra.mxu0 %vm88_vm0, %v29_v53  ;;  %5448 = vmatmul.msk.f32.gmra.mxu1 %vm88_vm0, %v29_v53  ;;  %v56_v53 = vld [vmem:[%s10851_s0 + $0xf0] sm:$0xff] }
  0x32   :  { %682 = vmatpush.msrb.mxu2 %v615_v7  ;;  %1020 = vmatpush.msrb.mxu1 %v650_v10  ;;  %v1499_v10 = vld [vmem:[%s10853_s5 + $0x5b0] sm:$0xff] }
  0x33   :  { %5464 = vmatmul.msk.f32.gmra.mxu3 %vm88_vm0, %v45_v48  ;;  %5433 = vmatmul.msk.f32.gmra.mxu2 %vm88_vm0, %v46_v54  ;;  %v635_v48 = vld [vmem:[%s10852_s3 + $0x100] sm:$0xff] }
  0x34   :  { %795 = vmatpush.msrb.mxu3 %v647_v11  ;;  %907 = vmatpush.msrb.mxu0 %v618_v12  ;;  %v1738_v11 = vld [vmem:[%s10853_s5 + $0xd28] sm:$0xff] }
  0x35   :  { %683 = vmatpush.msrb.mxu2 %v613_v13  ;;  %1021 = vmatpush.msrb.mxu1 %v648_v16 }
  0x36   :  { %796 = vmatpush.msrb.mxu3 %v645_v17  ;;  %908 = vmatpush.msrb.mxu0 %v616_v19  ;;  %v1514_v19 = vld [vmem:[%s10853_s5 + $0x628] sm:$0xff] }
  0x37   :  { %684 = vmatpush.msrb.mxu2 %v611_v18  ;;  %1022 = vmatpush.msrb.mxu1 %v646_v22 }
  0x38   :  { %797 = vmatpush.msrb.mxu3 %v643_v24  ;;  %909 = vmatpush.msrb.mxu0 %v614_v26 }
  0x39   :  { %5417 = vmatmul.msk.f32.gmra.mxu0 %vm88_vm0, %v30_v59  ;;  %5449 = vmatmul.msk.f32.gmra.mxu1 %vm88_vm0, %v30_v59  ;;  %v1752_v59 = vld [vmem:[%s10853_s5 + $0xd98] sm:$0xff] }
  0x3a   :  { %685 = vmatpush.msrb.mxu2 %v609_v23  ;;  %1023 = vmatpush.msrb.mxu1 %v644_v29  ;;  %v1723_v29 = vld [vmem:[%s10853_s5 + $0xcb0] sm:$0xff] }
  0x3b   :  { %5465 = vmatmul.msk.f32.gmra.mxu3 %vm88_vm0, %v46_v54  ;;  %5434 = vmatmul.msk.f32.gmra.mxu2 %vm88_vm0, %v47_v60  ;;  %v604_v54 = vld [vmem:[%s10852_s3 + $0x8] sm:$0xff] }
  0x3c   :  { %686 = vmatpush.msrb.mxu2 %v607_v30  ;;  %798 = vmatpush.msrb.mxu3 %v641_v31 }
  0x3d   :  { %910 = vmatpush.msrb.mxu0 %v612_v32  ;;  %1024 = vmatpush.msrb.mxu1 %v642_v35  ;;  %v1724_v35 = vld [vmem:[%s10853_s5 + $0xcb8] sm:$0xff] }
  0x3e   :  { %687 = vmatpush.msrb.mxu2 %v605_v36  ;;  %799 = vmatpush.msrb.mxu3 %v639_v37 }
  0x3f   :  { %911 = vmatpush.msrb.mxu0 %v610_v38  ;;  %1025 = vmatpush.msrb.mxu1 %v640_v41 }
  0x40   :  { %688 = vmatpush.msrb.mxu2 %v603_v42  ;;  %800 = vmatpush.msrb.mxu3 %v637_v44  ;;  %v1500_v44 = vld [vmem:[%s10853_s5 + $0x5b8] sm:$0xff] }
  0x41   :  { %5418 = vmatmul.msk.f32.gmra.mxu0 %vm88_vm0, %v31_v2  ;;  %5450 = vmatmul.msk.f32.gmra.mxu1 %vm88_vm0, %v31_v2 }
  0x42   :  { %912 = vmatpush.msrb.mxu0 %v608_v47  ;;  %1026 = vmatpush.msrb.mxu1 %v638_v46 }
  0x43   :  { %5466 = vmatmul.msk.f32.gmra.mxu3 %vm88_vm0, %v47_v60  ;;  %5435 = vmatmul.msk.f32.gmra.mxu2 %vm88_vm0, %v48_v3  ;;  %v41_v60 = vld [vmem:[%s10851_s0 + $0x78] sm:$0xff] }
  0x44   :  { %801 = vmatpush.msrb.mxu3 %v635_v48  ;;  %1027 = vmatpush.msrb.mxu1 %v636_v49 }
  0x45   :  { %1797 = vmatpush.msra.mxu2 %v1527_v50  ;;  %913 = vmatpush.msrb.mxu0 %v606_v52 }
  0x46   :  { %1910 = vmatpush.msra.mxu3 %v1751_v56  ;;  %2136 = vmatpush.msra.mxu1 %v1752_v59  ;;  %v1710_v59 = vld [vmem:[%s10853_s5 + $0xc48] sm:$0xff] }
  0x47   :  { %914 = vmatpush.msrb.mxu0 %v604_v54  ;;  %1798 = vmatpush.msra.mxu2 %v1513_v58  ;;  %v1471_v58 = vld [vmem:[%s10853_s5 + $0x4d0] sm:$0xff] }
  0x48   :  { %1911 = vmatpush.msra.mxu3 %v1737_v5  ;;  %2137 = vmatpush.msra.mxu1 %v1738_v11 }
  0x49   :  { %5419 = vmatmul.msk.f32.gmra.mxu0 %vm88_vm0, %v32_v8  ;;  %5451 = vmatmul.msk.f32.gmra.mxu1 %vm88_vm0, %v32_v8 }
  0x4a   :  { %2023 = vmatpush.msra.mxu0 %v1528_v62  ;;  %1799 = vmatpush.msra.mxu2 %v1499_v10 }
  0x4b   :  { %5467 = vmatmul.msk.f32.gmra.mxu3 %vm88_vm0, %v48_v3  ;;  %5436 = vmatmul.msk.f32.gmra.mxu2 %vm88_vm0, %v49_v9 }
  0x4c   :  { %2024 = vmatpush.msra.mxu0 %v1514_v19  ;;  %1912 = vmatpush.msra.mxu3 %v1723_v29 }
  0x4d   :  { %2138 = vmatpush.msra.mxu1 %v1724_v35 }
  0x4e   :  { %2025 = vmatpush.msra.mxu0 %v1500_v44 }
  0x4f   :  { %2139 = vmatpush.msra.mxu1 %v1710_v59 }
  0x51   :  { %5420 = vmatmul.msk.f32.gmra.mxu0 %vm88_vm0, %v33_v14  ;;  %5452 = vmatmul.msk.f32.gmra.mxu1 %vm88_vm0, %v33_v14 }
  0x53   :  { %5468 = vmatmul.msk.f32.gmra.mxu3 %vm88_vm0, %v49_v9  ;;  %5437 = vmatmul.msk.f32.gmra.mxu2 %vm88_vm0, %v50_v15 }
  0x59   :  { %5421 = vmatmul.msk.f32.gmra.mxu0 %vm88_vm0, %v34_v20  ;;  %5453 = vmatmul.msk.f32.gmra.mxu1 %vm88_vm0, %v34_v20 }
  0x5b   :  { %5469 = vmatmul.msk.f32.gmra.mxu3 %vm88_vm0, %v50_v15  ;;  %5438 = vmatmul.msk.f32.gmra.mxu2 %vm88_vm0, %v51_v21 }
  0x61   :  { %5422 = vmatmul.msk.f32.gmra.mxu0 %vm88_vm0, %v35_v27  ;;  %5454 = vmatmul.msk.f32.gmra.mxu1 %vm88_vm0, %v35_v27 }
  0x63   :  { %5470 = vmatmul.msk.f32.gmra.mxu3 %vm88_vm0, %v51_v21  ;;  %5439 = vmatmul.msk.f32.gmra.mxu2 %vm88_vm0, %v52_v28 }
  0x69   :  { %5423 = vmatmul.msk.f32.gmra.mxu0 %vm88_vm0, %v36_v33  ;;  %5455 = vmatmul.msk.f32.gmra.mxu1 %vm88_vm0, %v36_v33 }
  0x6b   :  { %5471 = vmatmul.msk.f32.gmra.mxu3 %vm88_vm0, %v52_v28  ;;  %5440 = vmatmul.msk.f32.gmra.mxu2 %vm88_vm0, %v53_v34 }
  0x71   :  { %5424 = vmatmul.msk.f32.gmra.mxu0 %vm88_vm0, %v37_v39  ;;  %5456 = vmatmul.msk.f32.gmra.mxu1 %vm88_vm0, %v37_v39 }
  0x73   :  { %5472 = vmatmul.msk.f32.gmra.mxu3 %vm88_vm0, %v53_v34  ;;  %5441 = vmatmul.msk.f32.gmra.mxu2 %vm88_vm0, %v54_v40  ;;  %v1485_v34 = vld [vmem:[%s10853_s5 + $0x540] sm:$0xff] }
  0x74   :  { %1800 = vmatpush.msra.mxu2 %v1485_v34  ;;  %v1472_v34 = vld [vmem:[%s10853_s5 + $0x4d8] sm:$0xff] }
  0x76   :  { %1801 = vmatpush.msra.mxu2 %v1471_v58 }
  0x79   :  { %5425 = vmatmul.msk.f32.gmra.mxu0 %vm88_vm0, %v38_v43  ;;  %5457 = vmatmul.msk.f32.gmra.mxu1 %vm88_vm0, %v38_v43 }
  0x7b   :  { %5473 = vmatmul.msk.f32.gmra.mxu3 %vm88_vm0, %v54_v40  ;;  %5442 = vmatmul.msk.f32.gmra.mxu2 %vm88_vm0, %v55_v45 }
  0x81   :  { %5426 = vmatmul.msk.f32.gmra.mxu0 %vm88_vm0, %v39_v51  ;;  %5458 = vmatmul.msk.f32.gmra.mxu1 %vm88_vm0, %v39_v51 }
  0x83   :  { %5474 = vmatmul.msk.f32.gmra.mxu3 %vm88_vm0, %v55_v45  ;;  %5443 = vmatmul.msk.f32.gmra.mxu2 %vm88_vm0, %v56_v53 }
  0x89   :  { %5427 = vmatmul.msk.f32.gmra.mxu0 %vm88_vm0, %v40_v55  ;;  %5459 = vmatmul.msk.f32.gmra.mxu1 %vm88_vm0, %v40_v55 }
  0x8b   :  { %5475 = vmatmul.msk.f32.gmra.mxu3 %vm88_vm0, %v56_v53  ;;  %5444 = vmatmul.msk.f32.gmra.mxu2 %vm88_vm0, %v57_v57  ;;  %v1709_v53 = vld [vmem:[%s10853_s5 + $0xc40] sm:$0xff] }
  0x8c   :  { %1913 = vmatpush.msra.mxu3 %v1709_v53  ;;  %v1682_v53 = vld [vmem:[%s10853_s5 + $0xb68] sm:$0xff] }
  0x91   :  { %5428 = vmatmul.msk.f32.gmra.mxu0 %vm88_vm0, %v41_v60  ;;  %5460 = vmatmul.msk.f32.gmra.mxu1 %vm88_vm0, %v41_v60 }
  0x93   :  { %5476 = vmatmul.msk.f32.gmra.mxu3 %vm88_vm0, %v57_v57 }
  0x96   :  { %v202_v1 = vpop.f32.mrf.mxu0  ;;  %v315_v2 = vpop.f32.mrf.mxu1 }
  0x97   :  { %v203_v3 = vadd.f32 %v202_v1, %v6006_v63  ;;  %v316_v4 = vadd.f32 %v315_v2, %v6008_v0 }
  0x99   :  { %5429 = vmatmul.msk.f32.gmra.mxu0 %vm88_vm0, %v5640_v25  ;;  %vm411_vm1 = vcmp.ge.f32.partialorder %v203_v3, 0.0  ;;  %v475_v6 = vmul.f32 0.2, %v203_v3  ;;  %vm412_vm2 = vcmp.ge.f32.partialorder %v316_v4, 0.0  ;;  %v476_v7 = vmul.f32 0.2, %v316_v4 }
  0x9b   :  { %v539_v8 = vsel %vm411_vm1, %v203_v3, %v475_v6  ;;  %v540_v9 = vsel %vm412_vm2, %v316_v4, %v476_v7  ;;  %v1486_v6 = vld [vmem:[%s10853_s5 + $0x548] sm:$0xff] }
  0x9c   :  { %689 = vmatmul.f32.vlgmr.msrb.gmra.mxu2 %v539_v8  ;;  %802 = vmatmul.f32.vlgmr.msrb.gmra.mxu3 %v540_v9 }
  0x9d   :  { %1028 = vmatmul.f32.vlgmr.msrb.gmra.mxu1 %v540_v9  ;;  %2026 = vmatpush.msra.mxu0 %v1486_v6 }
  0x9e   :  { %v205_v12 = vpop.f32.mrf.mxu0  ;;  %v318_v13 = vpop.f32.mrf.mxu1 }
  0x9f   :  { %v206_v25 = vadd.f32 %v205_v12, %v6006_v63  ;;  %v319_v14 = vadd.f32 %v318_v13, %v6008_v0  ;;  %v6025_v15 = vpop.f32.mrf.mxu3  ;;  %v6027_v16 = vpop.f32.mrf.mxu2  ;;  %2027 = vmatpush.msra.mxu0 %v1472_v34  ;;  %v1444_v34 = vld [vmem:[%s10853_s5 + $0x3f8] sm:$0xff] }
  0xa1   :  { %915 = vmatmul.f32.vlgmr.msrb.gmra.mxu0 %v539_v8  ;;  %vm413_vm3 = vcmp.ge.f32.partialorder %v206_v25, 0.0  ;;  %v477_v17 = vmul.f32 0.2, %v206_v25  ;;  %vm414_vm4 = vcmp.ge.f32.partialorder %v319_v14, 0.0  ;;  %v478_v18 = vmul.f32 0.2, %v319_v14 }
  0xa3   :  { %v541_v20 = vsel %vm413_vm3, %v206_v25, %v477_v17  ;;  %v542_v21 = vsel %vm414_vm4, %v319_v14, %v478_v18  ;;  %v1695_v14 = vld [vmem:[%s10853_s5 + $0xbd0] sm:$0xff] }
  0xa4   :  { %692 = vmatmul.f32.gmra.mxu2 %v541_v20  ;;  %805 = vmatmul.f32.gmra.mxu3 %v542_v21 }
  0xa5   :  { %1031 = vmatmul.f32.gmra.mxu1 %v542_v21  ;;  %1914 = vmatpush.msra.mxu3 %v1695_v14  ;;  %v1457_v21 = vld [vmem:[%s10853_s5 + $0x460] sm:$0xff] }
  0xa6   :  { %v208_v22 = vpop.f32.mrf.mxu0  ;;  %v321_v23 = vpop.f32.mrf.mxu1  ;;  %1802 = vmatpush.msra.mxu2 %v1457_v21 }
  0xa7   :  { %v209_v24 = vadd.f32 %v208_v22, %v6006_v63  ;;  %v322_v26 = vadd.f32 %v321_v23, %v6008_v0  ;;  %v6034_v27 = vpop.f32.mrf.mxu3  ;;  %v6036_v28 = vpop.f32.mrf.mxu2  ;;  %v1696_v22 = vld [vmem:[%s10853_s5 + $0xbd8] sm:$0xff] }
  0xa8   :  { %2140 = vmatpush.msra.mxu1 %v1696_v22 }
  0xa9   :  { %918 = vmatmul.f32.gmra.mxu0 %v541_v20  ;;  %vm415_vm5 = vcmp.ge.f32.partialorder %v209_v24, 0.0  ;;  %v479_v30 = vmul.f32 0.2, %v209_v24  ;;  %vm416_vm6 = vcmp.ge.f32.partialorder %v322_v26, 0.0  ;;  %v480_v31 = vmul.f32 0.2, %v322_v26 }
  0xaa   :  { %2141 = vmatpush.msra.mxu1 %v1682_v53 }
  0xab   :  { %v543_v32 = vsel %vm415_vm5, %v209_v24, %v479_v30  ;;  %v544_v33 = vsel %vm416_vm6, %v322_v26, %v480_v31 }
  0xac   :  { %695 = vmatmul.f32.gmra.mxu2 %v543_v32  ;;  %808 = vmatmul.f32.gmra.mxu3 %v544_v33 }
  0xad   :  { %1034 = vmatmul.f32.gmra.mxu1 %v544_v33 }
  0xae   :  { %v211_v36 = vpop.f32.mrf.mxu0  ;;  %v324_v37 = vpop.f32.mrf.mxu1 }
  0xaf   :  { %v212_v38 = vadd.f32 %v211_v36, %v6006_v63  ;;  %v325_v39 = vadd.f32 %v324_v37, %v6008_v0  ;;  %v6049_v40 = vpop.f32.mrf.mxu3  ;;  %v6051_v41 = vpop.f32.mrf.mxu2 }
  0xb1   :  { %921 = vmatmul.f32.gmra.mxu0 %v543_v32  ;;  %vm417_vm7 = vcmp.ge.f32.partialorder %v212_v38, 0.0  ;;  %v481_v42 = vmul.f32 0.2, %v212_v38  ;;  %vm418_vm8 = vcmp.ge.f32.partialorder %v325_v39, 0.0  ;;  %v482_v43 = vmul.f32 0.2, %v325_v39 }
  0xb3   :  { %v545_v45 = vsel %vm417_vm7, %v212_v38, %v481_v42  ;;  %v546_v46 = vsel %vm418_vm8, %v325_v39, %v482_v43 }
  0xb4   :  { %698 = vmatmul.f32.gmra.mxu2 %v545_v45  ;;  %811 = vmatmul.f32.gmra.mxu3 %v546_v46 }
  0xb5   :  { %1037 = vmatmul.f32.gmra.mxu1 %v546_v46 }
  0xb6   :  { %v214_v47 = vpop.f32.mrf.mxu0  ;;  %v327_v48 = vpop.f32.mrf.mxu1 }
  0xb7   :  { %v215_v49 = vadd.f32 %v214_v47, %v6006_v63  ;;  %v328_v50 = vadd.f32 %v327_v48, %v6008_v0  ;;  %v6058_v51 = vpop.f32.mrf.mxu3  ;;  %v6060_v52 = vpop.f32.mrf.mxu2 }
  0xb9   :  { %924 = vmatmul.f32.gmra.mxu0 %v545_v45  ;;  %vm419_vm9 = vcmp.ge.f32.partialorder %v215_v49, 0.0  ;;  %v483_v54 = vmul.f32 0.2, %v215_v49  ;;  %vm420_vm10 = vcmp.ge.f32.partialorder %v328_v50, 0.0  ;;  %v484_v55 = vmul.f32 0.2, %v328_v50 }
  0xba   :  { %v1681_v45 = vld [vmem:[%s10853_s5 + $0xb60] sm:$0xff] }
  0xbb   :  { %v547_v56 = vsel %vm419_vm9, %v215_v49, %v483_v54  ;;  %v548_v57 = vsel %vm420_vm10, %v328_v50, %v484_v55  ;;  %1915 = vmatpush.msra.mxu3 %v1681_v45  ;;  %v1443_v50 = vld [vmem:[%s10853_s5 + $0x3f0] sm:$0xff] }
  0xbc   :  { %701 = vmatmul.f32.gmra.mxu2 %v547_v56  ;;  %814 = vmatmul.f32.gmra.mxu3 %v548_v57 }
  0xbd   :  { %1040 = vmatmul.f32.gmra.mxu1 %v548_v57  ;;  %1803 = vmatpush.msra.mxu2 %v1443_v50 }
  0xbe   :  { %v217_v60 = vpop.f32.mrf.mxu0  ;;  %v330_v61 = vpop.f32.mrf.mxu1 }
  0xbf   :  { %v218_v62 = vadd.f32 %v217_v60, %v6006_v63  ;;  %v331_v1 = vadd.f32 %v330_v61, %v6008_v0  ;;  %v6073_v2 = vpop.f32.mrf.mxu3  ;;  %v6075_v3 = vpop.f32.mrf.mxu2 }
  0xc1   :  { %927 = vmatmul.f32.gmra.mxu0 %v547_v56  ;;  %vm421_vm11 = vcmp.ge.f32.partialorder %v218_v62, 0.0  ;;  %v485_v4 = vmul.f32 0.2, %v218_v62  ;;  %vm422_vm12 = vcmp.ge.f32.partialorder %v331_v1, 0.0  ;;  %v486_v5 = vmul.f32 0.2, %v331_v1 }
  0xc3   :  { %v549_v7 = vsel %vm421_vm11, %v218_v62, %v485_v4  ;;  %v550_v8 = vsel %vm422_vm12, %v331_v1, %v486_v5  ;;  %v1458_v62 = vld [vmem:[%s10853_s5 + $0x468] sm:$0xff] }
  0xc4   :  { %704 = vmatmul.f32.gmra.mxu2 %v549_v7  ;;  %817 = vmatmul.f32.gmra.mxu3 %v550_v8 }
  0xc5   :  { %1043 = vmatmul.f32.gmra.mxu1 %v550_v8  ;;  %2028 = vmatpush.msra.mxu0 %v1458_v62 }
  0xc6   :  { %v220_v9 = vpop.f32.mrf.mxu0  ;;  %v333_v10 = vpop.f32.mrf.mxu1 }
  0xc7   :  { %v221_v11 = vadd.f32 %v220_v9, %v6006_v63  ;;  %v334_v12 = vadd.f32 %v333_v10, %v6008_v0  ;;  %v6082_v13 = vpop.f32.mrf.mxu3  ;;  %v6084_v25 = vpop.f32.mrf.mxu2  ;;  %2029 = vmatpush.msra.mxu0 %v1444_v34  ;;  %v1401_v34 = vld [vmem:[%s10853_s5 + $0x2a0] sm:$0xff] }
  0xc9   :  { %930 = vmatmul.f32.gmra.mxu0 %v549_v7  ;;  %vm423_vm13 = vcmp.ge.f32.partialorder %v221_v11, 0.0  ;;  %v487_v17 = vmul.f32 0.2, %v221_v11  ;;  %vm424_vm14 = vcmp.ge.f32.partialorder %v334_v12, 0.0  ;;  %v488_v18 = vmul.f32 0.2, %v334_v12 }
  0xcb   :  { %v551_v19 = vsel %vm423_vm13, %v221_v11, %v487_v17  ;;  %v552_v20 = vsel %vm424_vm14, %v334_v12, %v488_v18  ;;  %v1667_v11 = vld [vmem:[%s10853_s5 + $0xaf0] sm:$0xff] }
  0xcc   :  { %707 = vmatmul.f32.gmra.mxu2 %v551_v19  ;;  %820 = vmatmul.f32.gmra.mxu3 %v552_v20 }
  0xcd   :  { %1046 = vmatmul.f32.gmra.mxu1 %v552_v20  ;;  %1916 = vmatpush.msra.mxu3 %v1667_v11  ;;  %v1668_v20 = vld [vmem:[%s10853_s5 + $0xaf8] sm:$0xff] }
  0xce   :  { %v223_v23 = vpop.f32.mrf.mxu0  ;;  %v336_v24 = vpop.f32.mrf.mxu1  ;;  %2142 = vmatpush.msra.mxu1 %v1668_v20 }
  0xcf   :  { %v224_v26 = vadd.f32 %v223_v23, %v6006_v63  ;;  %v337_v29 = vadd.f32 %v336_v24, %v6008_v0  ;;  %v6097_v30 = vpop.f32.mrf.mxu3  ;;  %v6099_v31 = vpop.f32.mrf.mxu2 }
  0xd1   :  { %933 = vmatmul.f32.gmra.mxu0 %v551_v19  ;;  %vm425_vm15 = vcmp.ge.f32.partialorder %v224_v26, 0.0  ;;  %v489_v32 = vmul.f32 0.2, %v224_v26  ;;  %vm426_vm0 = vcmp.ge.f32.partialorder %v337_v29, 0.0  ;;  %v490_v33 = vmul.f32 0.2, %v337_v29 }
  0xd2   :  { %v1429_v19 = vld [vmem:[%s10853_s5 + $0x380] sm:$0xff] }
  0xd3   :  { %v553_v35 = vsel %vm425_vm15, %v224_v26, %v489_v32  ;;  %v554_v36 = vsel %vm426_vm0, %v337_v29, %v490_v33  ;;  %1804 = vmatpush.msra.mxu2 %v1429_v19 }
  0xd4   :  { %710 = vmatmul.f32.gmra.mxu2 %v553_v35  ;;  %823 = vmatmul.f32.gmra.mxu3 %v554_v36 }
  0xd5   :  { %1049 = vmatmul.f32.gmra.mxu1 %v554_v36 }
  0xd6   :  { %v226_v37 = vpop.f32.mrf.mxu0  ;;  %v339_v38 = vpop.f32.mrf.mxu1 }
  0xd7   :  { %v227_v39 = vadd.f32 %v226_v37, %v6006_v63  ;;  %v340_v42 = vadd.f32 %v339_v38, %v6008_v0  ;;  %v6106_v43 = vpop.f32.mrf.mxu3  ;;  %v6108_v44 = vpop.f32.mrf.mxu2 }
  0xd9   :  { %936 = vmatmul.f32.gmra.mxu0 %v553_v35  ;;  %vm427_vm1 = vcmp.ge.f32.partialorder %v227_v39, 0.0  ;;  %v491_v46 = vmul.f32 0.2, %v227_v39  ;;  %vm428_vm2 = vcmp.ge.f32.partialorder %v340_v42, 0.0  ;;  %v492_v47 = vmul.f32 0.2, %v340_v42 }
  0xdb   :  { %v555_v48 = vsel %vm427_vm1, %v227_v39, %v491_v46  ;;  %v556_v49 = vsel %vm428_vm2, %v340_v42, %v492_v47  ;;  %v1653_v46 = vld [vmem:[%s10853_s5 + $0xa80] sm:$0xff] }
  0xdc   :  { %713 = vmatmul.f32.gmra.mxu2 %v555_v48  ;;  %826 = vmatmul.f32.gmra.mxu3 %v556_v49 }
  0xdd   :  { %1052 = vmatmul.f32.gmra.mxu1 %v556_v49  ;;  %1917 = vmatpush.msra.mxu3 %v1653_v46  ;;  %v364_v46 = vadd.f32 %v6025_v15, %v6008_v0 }
  0xde   :  { %v229_v54 = vpop.f32.mrf.mxu0  ;;  %v342_v55 = vpop.f32.mrf.mxu1 }
  0xdf   :  { %v230_v56 = vadd.f32 %v229_v54, %v6006_v63  ;;  %v343_v57 = vadd.f32 %v342_v55, %v6008_v0  ;;  %v6121_v58 = vpop.f32.mrf.mxu3  ;;  %v6123_v59 = vpop.f32.mrf.mxu2  ;;  %v1415_v54 = vld [vmem:[%s10853_s5 + $0x310] sm:$0xff]  ;;  %v1654_v55 = vld [vmem:[%s10853_s5 + $0xa88] sm:$0xff]  ;;  %vm444_vm1 = vcmp.ge.f32.partialorder %v364_v46, 0.0 }
  0xe0   :  { %1805 = vmatpush.msra.mxu2 %v1415_v54  ;;  %2143 = vmatpush.msra.mxu1 %v1654_v55 }
  0xe1   :  { %939 = vmatmul.f32.gmra.mxu0 %v555_v48  ;;  %vm429_vm3 = vcmp.ge.f32.partialorder %v230_v56, 0.0  ;;  %v493_v60 = vmul.f32 0.2, %v230_v56  ;;  %vm430_vm4 = vcmp.ge.f32.partialorder %v343_v57, 0.0  ;;  %v494_v61 = vmul.f32 0.2, %v343_v57 }
  0xe2   :  { %1806 = vmatpush.msra.mxu2 %v1401_v34 }
  0xe3   :  { %v557_v1 = vsel %vm429_vm3, %v230_v56, %v493_v60  ;;  %v558_v4 = vsel %vm430_vm4, %v343_v57, %v494_v61 }
  0xe4   :  { %716 = vmatmul.f32.gmra.mxu2 %v557_v1  ;;  %829 = vmatmul.f32.gmra.mxu3 %v558_v4 }
  0xe5   :  { %1055 = vmatmul.f32.gmra.mxu1 %v558_v4 }
  0xe6   :  { %v232_v5 = vpop.f32.mrf.mxu0  ;;  %v345_v6 = vpop.f32.mrf.mxu1 }
  0xe7   :  { %v233_v7 = vadd.f32 %v232_v5, %v6006_v63  ;;  %v346_v8 = vadd.f32 %v345_v6, %v6008_v0  ;;  %v6130_v9 = vpop.f32.mrf.mxu3  ;;  %v6132_v10 = vpop.f32.mrf.mxu2 }
  0xe9   :  { %942 = vmatmul.f32.gmra.mxu0 %v557_v1  ;;  %vm431_vm5 = vcmp.ge.f32.partialorder %v233_v7, 0.0  ;;  %v495_v12 = vmul.f32 0.2, %v233_v7  ;;  %vm432_vm6 = vcmp.ge.f32.partialorder %v346_v8, 0.0  ;;  %v496_v14 = vmul.f32 0.2, %v346_v8 }
  0xeb   :  { %v559_v17 = vsel %vm431_vm5, %v233_v7, %v495_v12  ;;  %v560_v18 = vsel %vm432_vm6, %v346_v8, %v496_v14  ;;  %v1430_v12 = vld [vmem:[%s10853_s5 + $0x388] sm:$0xff] }
  0xec   :  { %719 = vmatmul.f32.gmra.mxu2 %v559_v17  ;;  %832 = vmatmul.f32.gmra.mxu3 %v560_v18 }
  0xed   :  { %1058 = vmatmul.f32.gmra.mxu1 %v560_v18  ;;  %2030 = vmatpush.msra.mxu0 %v1430_v12 }
  0xee   :  { %v235_v21 = vpop.f32.mrf.mxu0  ;;  %v348_v22 = vpop.f32.mrf.mxu1 }
  0xef   :  { %v236_v23 = vadd.f32 %v235_v21, %v6006_v63  ;;  %v349_v24 = vadd.f32 %v348_v22, %v6008_v0  ;;  %v6145_v26 = vpop.f32.mrf.mxu3  ;;  %v6147_v29 = vpop.f32.mrf.mxu2 }
  0xf1   :  { %945 = vmatmul.f32.gmra.mxu0 %v559_v17  ;;  %vm433_vm7 = vcmp.ge.f32.partialorder %v236_v23, 0.0  ;;  %v497_v32 = vmul.f32 0.2, %v236_v23  ;;  %vm434_vm8 = vcmp.ge.f32.partialorder %v349_v24, 0.0  ;;  %v498_v33 = vmul.f32 0.2, %v349_v24 }
  0xf3   :  { %v561_v35 = vsel %vm433_vm7, %v236_v23, %v497_v32  ;;  %v562_v36 = vsel %vm434_vm8, %v349_v24, %v498_v33  ;;  %v1639_v24 = vld [vmem:[%s10853_s5 + $0xa10] sm:$0xff] }
  0xf4   :  { %722 = vmatmul.f32.gmra.mxu2 %v561_v35  ;;  %835 = vmatmul.f32.gmra.mxu3 %v562_v36 }
  0xf5   :  { %1061 = vmatmul.f32.gmra.mxu1 %v562_v36  ;;  %1918 = vmatpush.msra.mxu3 %v1639_v24 }
  0xf6   :  { %v238_v37 = vpop.f32.mrf.mxu0  ;;  %v351_v38 = vpop.f32.mrf.mxu1 }
  0xf7   :  { %v239_v39 = vadd.f32 %v238_v37, %v6006_v63  ;;  %v352_v42 = vadd.f32 %v351_v38, %v6008_v0  ;;  %v6154_v45 = vpop.f32.mrf.mxu3  ;;  %v6159_v49 = vpop.f32.mrf.mxu2 }
  0xf9   :  { %948 = vmatmul.f32.gmra.mxu0 %v561_v35  ;;  %vm435_vm9 = vcmp.ge.f32.partialorder %v239_v39, 0.0  ;;  %v499_v47 = vmul.f32 0.2, %v239_v39  ;;  %vm436_vm10 = vcmp.ge.f32.partialorder %v352_v42, 0.0  ;;  %v500_v48 = vmul.f32 0.2, %v352_v42 }
  0xfa   :  { %v1640_v35 = vld [vmem:[%s10853_s5 + $0xa18] sm:$0xff] }
  0xfb   :  { %v563_v50 = vsel %vm435_vm9, %v239_v39, %v499_v47  ;;  %v564_v53 = vsel %vm436_vm10, %v352_v42, %v500_v48  ;;  %2144 = vmatpush.msra.mxu1 %v1640_v35 }
  0xfc   :  { %725 = vmatmul.f32.gmra.mxu2 %v563_v50  ;;  %838 = vmatmul.f32.gmra.mxu3 %v564_v53 }
  0xfd   :  { %1064 = vmatmul.f32.gmra.mxu1 %v564_v53  ;;  %v1416_v53 = vld [vmem:[%s10853_s5 + $0x318] sm:$0xff] }
  0xfe   :  { %v241_v56 = vpop.f32.mrf.mxu0  ;;  %v354_v57 = vpop.f32.mrf.mxu1  ;;  %2031 = vmatpush.msra.mxu0 %v1416_v53  ;;  %v373_v53 = vadd.f32 %v6058_v51, %v6008_v0 }
  0xff   :  { %v242_v60 = vadd.f32 %v241_v56, %v6006_v63  ;;  %v355_v61 = vadd.f32 %v354_v57, %v6008_v0  ;;  %v6169_v62 = vpop.f32.mrf.mxu3  ;;  %v6171_v7 = vpop.f32.mrf.mxu2  ;;  %v508_v57 = vmul.f32 0.2, %v364_v46 }
 0x100   :  { %vm450_vm8 = vcmp.ge.f32.partialorder %v373_v53, 0.0 }
 0x101   :  { %951 = vmatmul.f32.gmra.mxu0 %v563_v50  ;;  %vm437_vm11 = vcmp.ge.f32.partialorder %v242_v60, 0.0  ;;  %v501_v1 = vmul.f32 0.2, %v242_v60  ;;  %vm438_vm12 = vcmp.ge.f32.partialorder %v355_v61, 0.0  ;;  %v502_v4 = vmul.f32 0.2, %v355_v61 }
 0x103   :  { %v565_v5 = vsel %vm437_vm11, %v242_v60, %v501_v1  ;;  %v566_v6 = vsel %vm438_vm12, %v355_v61, %v502_v4  ;;  %v6208_v60 = vld [vmem:[%s10855_s4] sm:$0x3]  ;;  %v254_v1 = vadd.f32 %v6027_v16, %v6006_v63  ;;  %v367_v4 = vadd.f32 %v6034_v27, %v6008_v0  ;;  %v1387_v16 = vld [vmem:[%s10853_s5 + $0x230] sm:$0xff]  ;;  %v1626_v27 = vld [vmem:[%s10853_s5 + $0x9a8] sm:$0xff] }
 0x104   :  { %728 = vmatmul.f32.gmra.mxu2 %v565_v5  ;;  %841 = vmatmul.f32.gmra.mxu3 %v566_v6 }
 0x105   :  { %1067 = vmatmul.f32.gmra.mxu1 %v566_v6  ;;  %v572_v6 = vsel %vm444_vm1, %v364_v46, %v508_v57  ;;  %1807 = vmatpush.msra.mxu2 %v1387_v16  ;;  %vm445_vm3 = vcmp.ge.f32.partialorder %v254_v1, 0.0  ;;  %vm446_vm4 = vcmp.ge.f32.partialorder %v367_v4, 0.0 }
 0x106   :  { %v244_v8 = vpop.f32.mrf.mxu0  ;;  %v357_v11 = vpop.f32.mrf.mxu1  ;;  %2145 = vmatpush.msra.mxu1 %v1626_v27 }
 0x107   :  { %v245_v14 = vadd.f32 %v244_v8, %v6006_v63  ;;  %v358_v17 = vadd.f32 %v357_v11, %v6008_v0  ;;  %v6178_v18 = vpop.f32.mrf.mxu3  ;;  %v6180_v23 = vpop.f32.mrf.mxu2  ;;  %v6217_v8 = vperm.slane %v6208_v60, 0  ;;  %v1625_v11 = vld [vmem:[%s10853_s5 + $0x9a0] sm:$0xff] }
 0x108   :  { %1919 = vmatpush.msra.mxu3 %v1625_v11  ;;  %v514_v11 = vmul.f32 0.2, %v373_v53 }
 0x109   :  { %954 = vmatmul.f32.gmra.mxu0 %v565_v5  ;;  %vm439_vm13 = vcmp.ge.f32.partialorder %v245_v14, 0.0  ;;  %v503_v19 = vmul.f32 0.2, %v245_v14  ;;  %vm440_vm14 = vcmp.ge.f32.partialorder %v358_v17, 0.0  ;;  %v504_v20 = vmul.f32 0.2, %v358_v17 }
 0x10b   :  { %v567_v21 = vsel %vm439_vm13, %v245_v14, %v503_v19  ;;  %v568_v22 = vsel %vm440_vm14, %v358_v17, %v504_v20  ;;  %v509_v19 = vmul.f32 0.2, %v254_v1  ;;  %v510_v20 = vmul.f32 0.2, %v367_v4 }
 0x10c   :  { %731 = vmatmul.f32.gmra.mxu2 %v567_v21  ;;  %844 = vmatmul.f32.gmra.mxu3 %v568_v22 }
 0x10d   :  { %1070 = vmatmul.f32.gmra.mxu1 %v568_v22  ;;  %v573_v34 = vsel %vm445_vm3, %v254_v1, %v509_v19  ;;  %v574_v35 = vsel %vm446_vm4, %v367_v4, %v510_v20  ;;  %v1373_v4 = vld [vmem:[%s10853_s5 + $0x1c0] sm:$0xff]  ;;  %v376_v19 = vadd.f32 %v6073_v2, %v6008_v0 }
 0x10e   :  { %v247_v32 = vpop.f32.mrf.mxu0  ;;  %v360_v33 = vpop.f32.mrf.mxu1  ;;  %1808 = vmatpush.msra.mxu2 %v1373_v4 }
 0x10f   :  { %v248_v36 = vadd.f32 %v247_v32, %v6006_v63  ;;  %v361_v37 = vadd.f32 %v360_v33, %v6008_v0  ;;  %v6193_v38 = vpop.f32.mrf.mxu3  ;;  %v6200_v54 = vpop.f32.mrf.mxu2  ;;  %v257_v32 = vadd.f32 %v6036_v28, %v6006_v63  ;;  %v370_v33 = vadd.f32 %v6049_v40, %v6008_v0 }
 0x110   :  { %vm452_vm10 = vcmp.ge.f32.partialorder %v376_v19, 0.0 }
 0x111   :  { %957 = vmatmul.f32.gmra.mxu0 %v567_v21  ;;  %vm441_vm15 = vcmp.ge.f32.partialorder %v248_v36, 0.0  ;;  %v505_v39 = vmul.f32 0.2, %v248_v36  ;;  %vm442_vm0 = vcmp.ge.f32.partialorder %v361_v37, 0.0  ;;  %v506_v42 = vmul.f32 0.2, %v361_v37 }
 0x112   :  { %v511_v46 = vmul.f32 0.2, %v257_v32  ;;  %vm447_vm5 = vcmp.ge.f32.partialorder %v257_v32, 0.0  ;;  %vm448_vm6 = vcmp.ge.f32.partialorder %v370_v33, 0.0 }
 0x113   :  { %v569_v47 = vsel %vm441_vm15, %v248_v36, %v505_v39  ;;  %v570_v48 = vsel %vm442_vm0, %v361_v37, %v506_v42  ;;  %v1402_v37 = vld [vmem:[%s10853_s5 + $0x2a8] sm:$0xff] }
 0x114   :  { %734 = vmatmul.f32.gmra.mxu2 %v569_v47  ;;  %847 = vmatmul.f32.gmra.mxu3 %v570_v48 }
 0x115   :  { %1073 = vmatmul.f32.gmra.mxu1 %v570_v48  ;;  %2032 = vmatpush.msra.mxu0 %v1402_v37 }
 0x116   :  { %v250_v50 = vpop.f32.mrf.mxu0 }
 0x117   :  { %v251_v55 = vadd.f32 %v250_v50, %v6006_v63  ;;  %v6203_v56 = vpop.f32.mrf.mxu3  ;;  %v260_v50 = vadd.f32 %v6051_v41, %v6006_v63  ;;  %v1612_v41 = vld [vmem:[%s10853_s5 + $0x938] sm:$0xff] }
 0x118   :  { %2146 = vmatpush.msra.mxu1 %v1612_v41 }
 0x119   :  { %960 = vmatmul.f32.gmra.mxu0 %v569_v47  ;;  %vm443_vm2 = vcmp.ge.f32.partialorder %v251_v55, 0.0  ;;  %v507_v15 = vmul.f32 0.2, %v251_v55  ;;  %v512_v47 = vmul.f32 0.2, %v370_v33  ;;  %vm449_vm7 = vcmp.ge.f32.partialorder %v260_v50, 0.0 }
 0x11a   :  { %v6210_v61 = vpop.f32.mrf.mxu1 }
 0x11b   :  { %v571_v5 = vsel %vm443_vm2, %v251_v55, %v507_v15  ;;  %v575_v55 = vsel %vm447_vm5, %v257_v32, %v511_v46  ;;  %v576_v57 = vsel %vm448_vm6, %v370_v33, %v512_v47  ;;  %v1611_v15 = vld [vmem:[%s10853_s5 + $0x930] sm:$0xff]  ;;  %v1388_v33 = vld [vmem:[%s10853_s5 + $0x238] sm:$0xff]  ;;  %v266_v46 = vadd.f32 %v6075_v3, %v6006_v63  ;;  %v1598_v3 = vld [vmem:[%s10853_s5 + $0x8c8] sm:$0xff] }
 0x11c   :  { %737 = vmatmul.f32.gmra.mxu2 %v571_v5  ;;  %850 = vmatmul.f32.gmra.mxu3 %v572_v6  ;;  %v379_v47 = vadd.f32 %v6082_v13, %v6008_v0 }
 0x11d   :  { %1076 = vmatmul.f32.gmra.mxu1 %v572_v6  ;;  %1920 = vmatpush.msra.mxu3 %v1611_v15  ;;  %v513_v6 = vmul.f32 0.2, %v260_v50  ;;  %v517_v4 = vmul.f32 0.2, %v266_v46  ;;  %vm453_vm11 = vcmp.ge.f32.partialorder %v266_v46, 0.0 }
 0x11e   :  { %v6222_v12 = vpop.f32.mrf.mxu0  ;;  %2033 = vmatpush.msra.mxu0 %v1388_v33  ;;  %v518_v41 = vmul.f32 0.2, %v379_v47  ;;  %2147 = vmatpush.msra.mxu1 %v1598_v3  ;;  %vm454_vm12 = vcmp.ge.f32.partialorder %v379_v47, 0.0 }
 0x11f   :  { %v690_v14 = vpop.f32.mrf.mxu2  ;;  %v803_v17 = vpop.f32.mrf.mxu3  ;;  %v577_v20 = vsel %vm449_vm7, %v260_v50, %v513_v6 }
 0x120   :  { %v691_v21 = vadd.f32 %v690_v14, %v6217_v8 }
 0x121   :  { %963 = vmatmul.f32.gmra.mxu0 %v571_v5 }
 0x122   :  { %v6231_v22 = vadd.f32 %v803_v17, %v691_v21  ;;  %v6233_v24 = vpop.f32.mrf.mxu1  ;;  %v263_v17 = vadd.f32 %v6060_v52, %v6006_v63  ;;  %v578_v21 = vsel %vm450_vm8, %v373_v53, %v514_v11  ;;  %v1597_v53 = vld [vmem:[%s10853_s5 + $0x8c0] sm:$0xff]  ;;  %v269_v11 = vadd.f32 %v6084_v25, %v6006_v63 }
 0x123   :  { %1921 = vmatpush.msra.mxu3 %v1597_v53 }
 0x124   :  { %740 = vmatmul.f32.gmra.mxu2 %v573_v34  ;;  %853 = vmatmul.f32.gmra.mxu3 %v574_v35  ;;  %v515_v37 = vmul.f32 0.2, %v263_v17  ;;  %vm451_vm9 = vcmp.ge.f32.partialorder %v263_v17, 0.0  ;;  %vm455_vm13 = vcmp.ge.f32.partialorder %v269_v11, 0.0 }
 0x125   :  { %1079 = vmatmul.f32.gmra.mxu1 %v574_v35 }
 0x126   :  { %v6239_v36 = vpop.f32.mrf.mxu0 }
 0x127   :  { %v693_v39 = vpop.f32.mrf.mxu2  ;;  %v806_v42 = vpop.f32.mrf.mxu3 }
 0x128   :  { %v694_v28 = vadd.f32 %v693_v39, %v6217_v8  ;;  %v516_v39 = vmul.f32 0.2, %v376_v19 }
 0x129   :  { %966 = vmatmul.f32.gmra.mxu0 %v573_v34 }
 0x12a   :  { %v6245_v40 = vadd.f32 %v806_v42, %v694_v28  ;;  %v6247_v48 = vpop.f32.mrf.mxu1  ;;  %v579_v28 = vsel %vm451_vm9, %v263_v17, %v515_v37  ;;  %v580_v50 = vsel %vm452_vm10, %v376_v19, %v516_v39  ;;  %v581_v17 = vsel %vm453_vm11, %v266_v46, %v517_v4 }
 0x12b   :  { %v582_v19 = vsel %vm454_vm12, %v379_v47, %v518_v41  ;;  %v385_v46 = vadd.f32 %v6106_v43, %v6008_v0 }
 0x12c   :  { %743 = vmatmul.f32.gmra.mxu2 %v575_v55  ;;  %856 = vmatmul.f32.gmra.mxu3 %v576_v57 }
 0x12d   :  { %1082 = vmatmul.f32.gmra.mxu1 %v576_v57  ;;  %v1359_v57 = vld [vmem:[%s10853_s5 + $0x150] sm:$0xff]  ;;  %vm458_vm0 = vcmp.ge.f32.partialorder %v385_v46, 0.0 }
 0x12e   :  { %v6256_v1 = vpop.f32.mrf.mxu0  ;;  %1809 = vmatpush.msra.mxu2 %v1359_v57  ;;  %v1345_v57 = vld [vmem:[%s10853_s5 + $0xe0] sm:$0xff] }
 0x12f   :  { %v696_v51 = vpop.f32.mrf.mxu2  ;;  %v809_v5 = vpop.f32.mrf.mxu3 }
 0x130   :  { %v697_v16 = vadd.f32 %v696_v51, %v6217_v8  ;;  %1810 = vmatpush.msra.mxu2 %v1345_v57  ;;  %v1569_v57 = vld [vmem:[%s10853_s5 + $0x7e0] sm:$0xff] }
 0x131   :  { %969 = vmatmul.f32.gmra.mxu0 %v575_v55 }
 0x132   :  { %v6265_v27 = vadd.f32 %v809_v5, %v697_v16  ;;  %v6267_v14 = vpop.f32.mrf.mxu1  ;;  %v382_v16 = vadd.f32 %v6097_v30, %v6008_v0 }
 0x134   :  { %746 = vmatmul.f32.gmra.mxu2 %v577_v20  ;;  %859 = vmatmul.f32.gmra.mxu3 %v578_v21  ;;  %v520_v37 = vmul.f32 0.2, %v382_v16  ;;  %vm456_vm14 = vcmp.ge.f32.partialorder %v382_v16, 0.0 }
 0x135   :  { %1085 = vmatmul.f32.gmra.mxu1 %v578_v21  ;;  %v1374_v21 = vld [vmem:[%s10853_s5 + $0x1c8] sm:$0xff] }
 0x136   :  { %v6273_v32 = vpop.f32.mrf.mxu0  ;;  %2034 = vmatpush.msra.mxu0 %v1374_v21 }
 0x137   :  { %v699_v34 = vpop.f32.mrf.mxu2  ;;  %v812_v35 = vpop.f32.mrf.mxu3 }
 0x138   :  { %v700_v52 = vadd.f32 %v699_v34, %v6217_v8 }
 0x139   :  { %972 = vmatmul.f32.gmra.mxu0 %v577_v20 }
 0x13a   :  { %v6279_v2 = vadd.f32 %v812_v35, %v700_v52  ;;  %v6281_v42 = vpop.f32.mrf.mxu1  ;;  %v519_v35 = vmul.f32 0.2, %v269_v11  ;;  %v272_v52 = vadd.f32 %v6099_v31, %v6006_v63  ;;  %v1584_v31 = vld [vmem:[%s10853_s5 + $0x858] sm:$0xff] }
 0x13b   :  { %2148 = vmatpush.msra.mxu1 %v1584_v31 }
 0x13c   :  { %749 = vmatmul.f32.gmra.mxu2 %v579_v28  ;;  %862 = vmatmul.f32.gmra.mxu3 %v580_v50  ;;  %v583_v47 = vsel %vm455_vm13, %v269_v11, %v519_v35  ;;  %vm457_vm15 = vcmp.ge.f32.partialorder %v272_v52, 0.0  ;;  %v275_v11 = vadd.f32 %v6108_v44, %v6006_v63 }
 0x13d   :  { %1088 = vmatmul.f32.gmra.mxu1 %v580_v50  ;;  %v1583_v50 = vld [vmem:[%s10853_s5 + $0x850] sm:$0xff] }
 0x13e   :  { %v6290_v55 = vpop.f32.mrf.mxu0  ;;  %1922 = vmatpush.msra.mxu3 %v1583_v50  ;;  %vm459_vm1 = vcmp.ge.f32.partialorder %v275_v11, 0.0 }
 0x13f   :  { %v702_v13 = vpop.f32.mrf.mxu2  ;;  %v815_v15 = vpop.f32.mrf.mxu3 }
 0x140   :  { %v703_v51 = vadd.f32 %v702_v13, %v6217_v8  ;;  %v521_v13 = vmul.f32 0.2, %v272_v52  ;;  %1923 = vmatpush.msra.mxu3 %v1569_v57  ;;  %v397_v57 = vadd.f32 %v6154_v45, %v6008_v0 }
 0x141   :  { %975 = vmatmul.f32.gmra.mxu0 %v579_v28  ;;  %v584_v28 = vsel %vm456_vm14, %v382_v16, %v520_v37  ;;  %v388_v16 = vadd.f32 %v6121_v58, %v6008_v0  ;;  %v523_v37 = vmul.f32 0.2, %v275_v11 }
 0x142   :  { %v6299_v5 = vadd.f32 %v815_v15, %v703_v51  ;;  %v6301_v6 = vpop.f32.mrf.mxu1  ;;  %v522_v15 = vmul.f32 0.2, %v385_v46  ;;  %vm466_vm8 = vcmp.ge.f32.partialorder %v397_v57, 0.0 }
 0x143   :  { %vm460_vm2 = vcmp.ge.f32.partialorder %v388_v16, 0.0 }
 0x144   :  { %752 = vmatmul.f32.gmra.mxu2 %v581_v17  ;;  %865 = vmatmul.f32.gmra.mxu3 %v582_v19 }
 0x145   :  { %1091 = vmatmul.f32.gmra.mxu1 %v582_v19  ;;  %v586_v19 = vsel %vm458_vm0, %v385_v46, %v522_v15  ;;  %v278_v46 = vadd.f32 %v6123_v59, %v6006_v63  ;;  %v1570_v59 = vld [vmem:[%s10853_s5 + $0x7e8] sm:$0xff] }
 0x146   :  { %v6307_v20 = vpop.f32.mrf.mxu0  ;;  %2149 = vmatpush.msra.mxu1 %v1570_v59 }
 0x147   :  { %v705_v33 = vpop.f32.mrf.mxu2  ;;  %v818_v34 = vpop.f32.mrf.mxu3  ;;  %vm461_vm3 = vcmp.ge.f32.partialorder %v278_v46, 0.0 }
 0x148   :  { %v706_v25 = vadd.f32 %v705_v33, %v6217_v8  ;;  %v1360_v33 = vld [vmem:[%s10853_s5 + $0x158] sm:$0xff] }
 0x149   :  { %978 = vmatmul.f32.gmra.mxu0 %v581_v17  ;;  %v585_v17 = vsel %vm457_vm15, %v272_v52, %v521_v13  ;;  %v525_v13 = vmul.f32 0.2, %v278_v46 }
 0x14a   :  { %v6313_v30 = vadd.f32 %v818_v34, %v706_v25  ;;  %v6315_v39 = vpop.f32.mrf.mxu1  ;;  %v524_v25 = vmul.f32 0.2, %v388_v16  ;;  %2035 = vmatpush.msra.mxu0 %v1360_v33 }
 0x14b   :  { %v589_v33 = vsel %vm461_vm3, %v278_v46, %v525_v13  ;;  %v1317_v13 = vld [vmem:[%s10853_s5] sm:$0xff] }
 0x14c   :  { %755 = vmatmul.f32.gmra.mxu2 %v583_v47  ;;  %868 = vmatmul.f32.gmra.mxu3 %v584_v28  ;;  %v588_v50 = vsel %vm460_vm2, %v388_v16, %v524_v25  ;;  %vm1125_vm2 = vcmp.ge.f32.partialorder %v6231_v22, 0.0 }
 0x14d   :  { %1094 = vmatmul.f32.gmra.mxu1 %v584_v28  ;;  %v587_v28 = vsel %vm459_vm1, %v275_v11, %v523_v37  ;;  %v1346_v37 = vld [vmem:[%s10853_s5 + $0xe8] sm:$0xff] }
 0x14e   :  { %v6324_v53 = vpop.f32.mrf.mxu0  ;;  %2036 = vmatpush.msra.mxu0 %v1346_v37  ;;  %v287_v37 = vadd.f32 %v6159_v49, %v6006_v63 }
 0x14f   :  { %v708_v43 = vpop.f32.mrf.mxu2  ;;  %v821_v3 = vpop.f32.mrf.mxu3 }
 0x150   :  { %v709_v4 = vadd.f32 %v708_v43, %v6217_v8  ;;  %v1331_v43 = vld [vmem:[%s10853_s5 + $0x70] sm:$0xff]  ;;  %vm467_vm9 = vcmp.ge.f32.partialorder %v287_v37, 0.0 }
 0x151   :  { %981 = vmatmul.f32.gmra.mxu0 %v583_v47  ;;  %v391_v47 = vadd.f32 %v6130_v9, %v6008_v0  ;;  %1811 = vmatpush.msra.mxu2 %v1331_v43 }
 0x152   :  { %v6333_v41 = vadd.f32 %v821_v3, %v709_v4  ;;  %v6335_v51 = vpop.f32.mrf.mxu1 }
 0x153   :  { %v526_v15 = vmul.f32 0.2, %v391_v47  ;;  %vm462_vm4 = vcmp.ge.f32.partialorder %v391_v47, 0.0  ;;  %1812 = vmatpush.msra.mxu2 %v1317_v13 }
 0x154   :  { %758 = vmatmul.f32.gmra.mxu2 %v585_v17  ;;  %871 = vmatmul.f32.gmra.mxu3 %v586_v19 }
 0x155   :  { %1097 = vmatmul.f32.gmra.mxu1 %v586_v19  ;;  %v394_v19 = vadd.f32 %v6145_v26, %v6008_v0 }
 0x156   :  { %v6341_v21 = vpop.f32.mrf.mxu0 }
 0x157   :  { %v711_v34 = vpop.f32.mrf.mxu2  ;;  %v824_v35 = vpop.f32.mrf.mxu3  ;;  %vm464_vm6 = vcmp.ge.f32.partialorder %v394_v19, 0.0 }
 0x158   :  { %v712_v44 = vadd.f32 %v711_v34, %v6217_v8  ;;  %v590_v34 = vsel %vm462_vm4, %v391_v47, %v526_v15  ;;  %v284_v47 = vadd.f32 %v6147_v29, %v6006_v63  ;;  %v1556_v29 = vld [vmem:[%s10853_s5 + $0x778] sm:$0xff]  ;;  %vm1127_vm4 = vcmp.ge.f32.partialorder %v6245_v40, 0.0 }
 0x159   :  { %984 = vmatmul.f32.gmra.mxu0 %v585_v17  ;;  %v281_v17 = vadd.f32 %v6132_v10, %v6006_v63  ;;  %2150 = vmatpush.msra.mxu1 %v1556_v29  ;;  %v403_v29 = vadd.f32 %v6178_v18, %v6008_v0 }
 0x15a   :  { %v6347_v58 = vadd.f32 %v824_v35, %v712_v44  ;;  %v6349_v52 = vpop.f32.mrf.mxu1  ;;  %vm465_vm7 = vcmp.ge.f32.partialorder %v284_v47, 0.0 }
 0x15b   :  { %vm463_vm5 = vcmp.ge.f32.partialorder %v281_v17, 0.0  ;;  %vm470_vm12 = vcmp.ge.f32.partialorder %v403_v29, 0.0 }
 0x15c   :  { %761 = vmatmul.f32.gmra.mxu2 %v587_v28  ;;  %874 = vmatmul.f32.gmra.mxu3 %v588_v50 }
 0x15d   :  { %1100 = vmatmul.f32.gmra.mxu1 %v588_v50  ;;  %v528_v50 = vmul.f32 0.2, %v394_v19 }
 0x15e   :  { %v6358_v31 = vpop.f32.mrf.mxu0 }
 0x15f   :  { %v714_v9 = vpop.f32.mrf.mxu2  ;;  %v827_v3 = vpop.f32.mrf.mxu3  ;;  %v592_v59 = vsel %vm464_vm6, %v394_v19, %v528_v50  ;;  %vm1129_vm6 = vcmp.ge.f32.partialorder %v6265_v27, 0.0 }
 0x160   :  { %v715_v4 = vadd.f32 %v714_v9, %v6217_v8  ;;  %v1555_v9 = vld [vmem:[%s10853_s5 + $0x770] sm:$0xff] }
 0x161   :  { %987 = vmatmul.f32.gmra.mxu0 %v587_v28  ;;  %v527_v28 = vmul.f32 0.2, %v281_v17  ;;  %1924 = vmatpush.msra.mxu3 %v1555_v9  ;;  %v531_v9 = vmul.f32 0.2, %v287_v37 }
 0x162   :  { %v6367_v11 = vadd.f32 %v827_v3, %v715_v4  ;;  %v6369_v16 = vpop.f32.mrf.mxu1  ;;  %v529_v4 = vmul.f32 0.2, %v284_v47 }
 0x163   :  { %v591_v43 = vsel %vm463_vm5, %v281_v17, %v527_v28  ;;  %v530_v17 = vmul.f32 0.2, %v397_v57 }
 0x164   :  { %764 = vmatmul.f32.gmra.mxu2 %v589_v33  ;;  %877 = vmatmul.f32.gmra.mxu3 %v590_v34 }
 0x165   :  { %1103 = vmatmul.f32.gmra.mxu1 %v590_v34  ;;  %v594_v28 = vsel %vm466_vm8, %v397_v57, %v530_v17  ;;  %v290_v57 = vadd.f32 %v6171_v7, %v6006_v63  ;;  %v1542_v17 = vld [vmem:[%s10853_s5 + $0x708] sm:$0xff]  ;;  %v1529_v7 = vld [vmem:[%s10853_s5 + $0x6a0] sm:$0xff]  ;;  %vm1131_vm8 = vcmp.ge.f32.partialorder %v6279_v2, 0.0 }
 0x166   :  { %v6375_v35 = vpop.f32.mrf.mxu0  ;;  %2151 = vmatpush.msra.mxu1 %v1542_v17  ;;  %2249 = vmatpush.msrb.mxu2 %v1529_v7 }
 0x167   :  { %v717_v25 = vpop.f32.mrf.mxu2  ;;  %v830_v44 = vpop.f32.mrf.mxu3  ;;  %vm469_vm11 = vcmp.ge.f32.partialorder %v290_v57, 0.0 }
 0x168   :  { %v718_v10 = vadd.f32 %v717_v25, %v6217_v8  ;;  %v400_v25 = vadd.f32 %v6169_v62, %v6008_v0 }
 0x169   :  { %990 = vmatmul.f32.gmra.mxu0 %v589_v33 }
 0x16a   :  { %v6381_v26 = vadd.f32 %v830_v44, %v718_v10  ;;  %v6383_v46 = vpop.f32.mrf.mxu1  ;;  %v593_v44 = vsel %vm465_vm7, %v284_v47, %v529_v4  ;;  %v1332_v10 = vld [vmem:[%s10853_s5 + $0x78] sm:$0xff]  ;;  %v532_v13 = vmul.f32 0.2, %v400_v25  ;;  %vm468_vm10 = vcmp.ge.f32.partialorder %v400_v25, 0.0  ;;  %v1541_v4 = vld [vmem:[%s10853_s5 + $0x700] sm:$0xff] }
 0x16b   :  { %2037 = vmatpush.msra.mxu0 %v1332_v10  ;;  %1925 = vmatpush.msra.mxu3 %v1541_v4  ;;  %v1318_v10 = vld [vmem:[%s10853_s5 + $0x8] sm:$0xff] }
 0x16c   :  { %767 = vmatmul.f32.gmra.mxu2 %v591_v43  ;;  %880 = vmatmul.f32.gmra.mxu3 %v592_v59 }
 0x16d   :  { %1106 = vmatmul.f32.gmra.mxu1 %v592_v59  ;;  %2038 = vmatpush.msra.mxu0 %v1318_v10 }
 0x16e   :  { %v6392_v3 = vpop.f32.mrf.mxu0 }
 0x16f   :  { %v720_v45 = vpop.f32.mrf.mxu2  ;;  %v833_v15 = vpop.f32.mrf.mxu3 }
 0x170   :  { %v721_v19 = vadd.f32 %v720_v45, %v6217_v8  ;;  %v595_v45 = vsel %vm467_vm9, %v287_v37, %v531_v9  ;;  %v293_v9 = vadd.f32 %v6180_v23, %v6006_v63  ;;  %v6450_v23 = vperm.slane %v6208_v60, 1  ;;  %v1753_v60 = vld [vmem:[%s10853_s5 + $0xda0] sm:$0xff] }
 0x171   :  { %993 = vmatmul.f32.gmra.mxu0 %v591_v43  ;;  %2362 = vmatpush.msrb.mxu3 %v1753_v60 }
 0x172   :  { %v6401_v33 = vadd.f32 %v833_v15, %v721_v19  ;;  %v6403_v34 = vpop.f32.mrf.mxu1  ;;  %v596_v15 = vsel %vm468_vm10, %v400_v25, %v532_v13  ;;  %v533_v25 = vmul.f32 0.2, %v290_v57  ;;  %v406_v13 = vadd.f32 %v6193_v38, %v6008_v0 }
 0x173   :  { %v535_v7 = vmul.f32 0.2, %v293_v9  ;;  %vm471_vm13 = vcmp.ge.f32.partialorder %v293_v9, 0.0  ;;  %vm1133_vm10 = vcmp.ge.f32.partialorder %v6299_v5, 0.0 }
 0x174   :  { %770 = vmatmul.f32.gmra.mxu2 %v593_v44  ;;  %883 = vmatmul.f32.gmra.mxu3 %v594_v28  ;;  %vm472_vm14 = vcmp.ge.f32.partialorder %v406_v13, 0.0 }
 0x175   :  { %1109 = vmatmul.f32.gmra.mxu1 %v594_v28 }
 0x176   :  { %v6409_v50 = vpop.f32.mrf.mxu0 }
 0x177   :  { %v723_v43 = vpop.f32.mrf.mxu2  ;;  %v836_v59 = vpop.f32.mrf.mxu3 }
 0x178   :  { %v724_v49 = vadd.f32 %v723_v43, %v6217_v8 }
 0x179   :  { %996 = vmatmul.f32.gmra.mxu0 %v593_v44  ;;  %v534_v44 = vmul.f32 0.2, %v403_v29 }
 0x17a   :  { %v6415_v62 = vadd.f32 %v836_v59, %v724_v49  ;;  %v6417_v47 = vpop.f32.mrf.mxu1  ;;  %v597_v49 = vsel %vm469_vm11, %v290_v57, %v533_v25  ;;  %v409_v25 = vadd.f32 %v6203_v56, %v6008_v0  ;;  %v917_v0 = vadd.f32 %v6222_v12, %v6450_v23 }
 0x17c   :  { %773 = vmatmul.f32.gmra.mxu2 %v595_v45  ;;  %886 = vmatmul.f32.gmra.mxu3 %v596_v15  ;;  %vm474_vm0 = vcmp.ge.f32.partialorder %v409_v25, 0.0 }
 0x17d   :  { %1112 = vmatmul.f32.gmra.mxu1 %v596_v15  ;;  %v598_v15 = vsel %vm470_vm12, %v403_v29, %v534_v44  ;;  %v296_v29 = vadd.f32 %v6200_v54, %v6006_v63  ;;  %v599_v44 = vsel %vm471_vm13, %v293_v9, %v535_v7  ;;  %v1754_v63 = vld [vmem:[%s10853_s5 + $0xda8] sm:$0xff]  ;;  %v1030_v7 = vadd.f32 %v6210_v61, %v917_v0 }
 0x17e   :  { %v6429_v19 = vpop.f32.mrf.mxu0  ;;  %2588 = vmatpush.msrb.mxu1 %v1754_v63  ;;  %vm1135_vm12 = vcmp.ge.f32.partialorder %v6313_v30, 0.0 }
 0x17f   :  { %v726_v18 = vpop.f32.mrf.mxu2  ;;  %v839_v37 = vpop.f32.mrf.mxu3  ;;  %v537_v9 = vmul.f32 0.2, %v296_v29  ;;  %vm473_vm15 = vcmp.ge.f32.partialorder %v296_v29, 0.0  ;;  %v1190_v60 = vmul.f32 0.2, %v1030_v7  ;;  %vm1126_vm1 = vcmp.ge.f32.partialorder %v1030_v7, 0.0 }
 0x180   :  { %v727_v28 = vadd.f32 %v726_v18, %v6217_v8  ;;  %v536_v18 = vmul.f32 0.2, %v406_v13 }
 0x181   :  { %999 = vmatmul.f32.gmra.mxu0 %v595_v45  ;;  %v6493_v0 = vsel %vm1126_vm1, %v1030_v7, %v1190_v60  ;;  %v1191_v7 = vmul.f32 0.2, %v6245_v40 }
 0x182   :  { %v6438_v43 = vadd.f32 %v839_v37, %v727_v28  ;;  %v6440_v59 = vpop.f32.mrf.mxu1  ;;  %v600_v28 = vsel %vm472_vm14, %v406_v13, %v536_v18  ;;  %v538_v13 = vmul.f32 0.2, %v409_v25  ;;  %v601_v18 = vsel %vm473_vm15, %v296_v29, %v537_v9  ;;  %v1739_v9 = vld [vmem:[%s10853_s5 + $0xd30] sm:$0xff] }
 0x183   :  { %2363 = vmatpush.msrb.mxu3 %v1739_v9  ;;  %v1516_v9 = vld [vmem:[%s10853_s5 + $0x638] sm:$0xff]  ;;  %vm1137_vm14 = vcmp.ge.f32.partialorder %v6333_v41, 0.0 }
 0x184   :  { %776 = vmatmul.f32.gmra.mxu2 %v597_v49  ;;  %889 = vmatmul.f32.gmra.mxu3 %v598_v15 }
 0x185   :  { %1115 = vmatmul.f32.gmra.mxu1 %v598_v15 }
 0x186   :  { %v6446_v4 = vpop.f32.mrf.mxu0 }
 0x187   :  { %v729_v17 = vpop.f32.mrf.mxu2  ;;  %v842_v45 = vpop.f32.mrf.mxu3 }
 0x188   :  { %v730_v37 = vadd.f32 %v729_v17, %v6217_v8 }
 0x189   :  { %1002 = vmatmul.f32.gmra.mxu0 %v597_v49  ;;  %v1515_v49 = vld [vmem:[%s10853_s5 + $0x630] sm:$0xff] }
 0x18a   :  { %v6452_v38 = vadd.f32 %v842_v45, %v730_v37  ;;  %v6454_v57 = vpop.f32.mrf.mxu1  ;;  %2250 = vmatpush.msrb.mxu2 %v1515_v49  ;;  %v602_v37 = vsel %vm474_vm0, %v409_v25, %v538_v13  ;;  %v920_v49 = vadd.f32 %v6239_v36, %v6450_v23  ;;  %vm1139_vm0 = vcmp.ge.f32.partialorder %v6347_v58, 0.0 }
 0x18c   :  { %779 = vmatmul.f32.gmra.mxu2 %v599_v44  ;;  %892 = vmatmul.f32.gmra.mxu3 %v600_v28  ;;  %v1033_v36 = vadd.f32 %v6233_v24, %v920_v49  ;;  %v1740_v24 = vld [vmem:[%s10853_s5 + $0xd38] sm:$0xff] }
 0x18d   :  { %1118 = vmatmul.f32.gmra.mxu1 %v600_v28  ;;  %v1530_v28 = vld [vmem:[%s10853_s5 + $0x6a8] sm:$0xff] }
 0x18e   :  { %v6463_v10 = vpop.f32.mrf.mxu0  ;;  %2475 = vmatpush.msrb.mxu0 %v1530_v28  ;;  %2589 = vmatpush.msrb.mxu1 %v1740_v24  ;;  %vm1128_vm3 = vcmp.ge.f32.partialorder %v1033_v36, 0.0 }
 0x18f   :  { %v732_v54 = vpop.f32.mrf.mxu2  ;;  %v845_v56 = vpop.f32.mrf.mxu3 }
 0x190   :  { %v733_v15 = vadd.f32 %v732_v54, %v6217_v8  ;;  %2476 = vmatpush.msrb.mxu0 %v1516_v9 }
 0x191   :  { %1005 = vmatmul.f32.gmra.mxu0 %v599_v44  ;;  %v1189_v44 = vmul.f32 0.2, %v6231_v22 }
 0x192   :  { %v6474_v17 = vadd.f32 %v845_v56, %v733_v15  ;;  %v6476_v45 = vpop.f32.mrf.mxu1  ;;  %v1192_v15 = vmul.f32 0.2, %v1033_v36 }
 0x193   :  { %v6496_v56 = vsel %vm1125_vm2, %v6231_v22, %v1189_v44  ;;  %v1501_v22 = vld [vmem:[%s10853_s5 + $0x5c0] sm:$0xff]  ;;  %vm1141_vm2 = vcmp.ge.f32.partialorder %v6367_v11, 0.0 }
 0x194   :  { %782 = vmatmul.f32.gmra.mxu2 %v601_v18  ;;  %895 = vmatmul.f32.gmra.mxu3 %v602_v37 }
 0x195   :  { %1121 = vmatmul.f32.gmra.mxu1 %v602_v37  ;;  %2251 = vmatpush.msrb.mxu2 %v1501_v22 }
 0x196   :  { %v6479_v12 = vpop.f32.mrf.mxu0 }
 0x197   :  { %v735_v63 = vpop.f32.mrf.mxu2  ;;  %v848_v54 = vpop.f32.mrf.mxu3 }
 0x198   :  { %v736_v61 = vadd.f32 %v735_v63, %v6217_v8  ;;  %v6523_v63 = vsel %vm1128_vm3, %v1033_v36, %v1192_v15  ;;  %v1193_v36 = vmul.f32 0.2, %v6265_v27 }
 0x199   :  { %1008 = vmatmul.f32.gmra.mxu0 %v601_v18  ;;  %v923_v18 = vadd.f32 %v6256_v1, %v6450_v23  ;;  %11009 = vst [vmem:[#allocation2_spill] sm:$0xff] %v6523_v63 }
 0x19a   :  { %v6489_v29 = vadd.f32 %v848_v54, %v736_v61  ;;  %v6491_v25 = vpop.f32.mrf.mxu1  ;;  %v6526_v54 = vsel %vm1127_vm4, %v6245_v40, %v1191_v7  ;;  %v926_v40 = vadd.f32 %v6273_v32, %v6450_v23  ;;  %vm1143_vm4 = vcmp.ge.f32.partialorder %v6381_v26, 0.0 }
 0x19b   :  { %11010 = vst [vmem:[#allocation3_spill] sm:$0xff] %v6526_v54  ;;  %v1036_v1 = vadd.f32 %v6247_v48, %v923_v18 }
 0x19c   :  { %1813 = vmatmul.f32.vlgmr.msra.gmra.mxu2 %v6496_v56  ;;  %1926 = vmatmul.f32.vlgmr.msra.gmra.mxu3 %v6493_v0  ;;  %v1039_v32 = vadd.f32 %v6267_v14, %v926_v40  ;;  %v1726_v14 = vld [vmem:[%s10853_s5 + $0xcc8] sm:$0xff] }
 0x19d   :  { %2152 = vmatmul.f32.vlgmr.msra.gmra.mxu1 %v6493_v0  ;;  %v1194_v22 = vmul.f32 0.2, %v1036_v1  ;;  %vm1130_vm5 = vcmp.ge.f32.partialorder %v1036_v1, 0.0 }
 0x19e   :  { %v6505_v13 = vpop.f32.mrf.mxu0  ;;  %2590 = vmatpush.msrb.mxu1 %v1726_v14  ;;  %vm1132_vm7 = vcmp.ge.f32.partialorder %v1039_v32, 0.0  ;;  %v1502_v14 = vld [vmem:[%s10853_s5 + $0x5c8] sm:$0xff] }
 0x19f   :  { %v738_v37 = vpop.f32.mrf.mxu2  ;;  %v851_v28 = vpop.f32.mrf.mxu3  ;;  %2477 = vmatpush.msrb.mxu0 %v1502_v14  ;;  %v1711_v14 = vld [vmem:[%s10853_s5 + $0xc50] sm:$0xff] }
 0x1a0   :  { %v739_v60 = vadd.f32 %v738_v37, %v6217_v8  ;;  %v6547_v37 = vsel %vm1130_vm5, %v1036_v1, %v1194_v22  ;;  %v1196_v1 = vmul.f32 0.2, %v1039_v32  ;;  %v1195_v22 = vmul.f32 0.2, %v6279_v2 }
 0x1a1   :  { %2039 = vmatmul.f32.vlgmr.msra.gmra.mxu0 %v6496_v56  ;;  %11011 = vst [vmem:[#allocation4_spill] sm:$0xff] %v6547_v37 }
 0x1a2   :  { %v6519_v44 = vadd.f32 %v851_v28, %v739_v60  ;;  %v6521_v49 = vpop.f32.mrf.mxu1  ;;  %v6550_v28 = vsel %vm1129_vm6, %v6265_v27, %v1193_v36  ;;  %v1725_v60 = vld [vmem:[%s10853_s5 + $0xcc0] sm:$0xff]  ;;  %v1487_v27 = vld [vmem:[%s10853_s5 + $0x550] sm:$0xff]  ;;  %v929_v36 = vadd.f32 %v6290_v55, %v6450_v23  ;;  %vm1145_vm6 = vcmp.ge.f32.partialorder %v6401_v33, 0.0 }
 0x1a3   :  { %11012 = vst [vmem:[#allocation5_spill] sm:$0xff] %v6550_v28  ;;  %2364 = vmatpush.msrb.mxu3 %v1725_v60  ;;  %2252 = vmatpush.msrb.mxu2 %v1487_v27 }
 0x1a4   :  { %1816 = vmatmul.f32.gmra.mxu2 %v6526_v54  ;;  %1929 = vmatmul.f32.gmra.mxu3 %v6523_v63  ;;  %v1042_v55 = vadd.f32 %v6281_v42, %v929_v36 }
 0x1a5   :  { %2155 = vmatmul.f32.gmra.mxu1 %v6523_v63  ;;  %v6580_v63 = vsel %vm1131_vm8, %v6279_v2, %v1195_v22  ;;  %v932_v2 = vadd.f32 %v6307_v20, %v6450_v23  ;;  %2365 = vmatpush.msrb.mxu3 %v1711_v14  ;;  %vm1147_vm8 = vcmp.ge.f32.partialorder %v6415_v62, 0.0 }
 0x1a6   :  { %v6532_v61 = vpop.f32.mrf.mxu0  ;;  %11014 = vst [vmem:[#allocation7_spill] sm:$0xff] %v6580_v63  ;;  %vm1134_vm9 = vcmp.ge.f32.partialorder %v1042_v55, 0.0 }
 0x1a7   :  { %v741_v24 = vpop.f32.mrf.mxu2  ;;  %v854_v48 = vpop.f32.mrf.mxu3  ;;  %v1045_v20 = vadd.f32 %v6301_v6, %v932_v2  ;;  %v1712_v6 = vld [vmem:[%s10853_s5 + $0xc58] sm:$0xff] }
 0x1a8   :  { %v742_v15 = vadd.f32 %v741_v24, %v6217_v8  ;;  %2591 = vmatpush.msrb.mxu1 %v1712_v6  ;;  %v1488_v6 = vld [vmem:[%s10853_s5 + $0x558] sm:$0xff] }
 0x1a9   :  { %2042 = vmatmul.f32.gmra.mxu0 %v6526_v54  ;;  %vm1136_vm11 = vcmp.ge.f32.partialorder %v1045_v20, 0.0 }
 0x1aa   :  { %v6543_v7 = vadd.f32 %v854_v48, %v742_v15  ;;  %v6545_v18 = vpop.f32.mrf.mxu1  ;;  %2478 = vmatpush.msrb.mxu0 %v1488_v6  ;;  %v1697_v6 = vld [vmem:[%s10853_s5 + $0xbe0] sm:$0xff] }
 0x1ab   :  { %2366 = vmatpush.msrb.mxu3 %v1697_v6 }
 0x1ac   :  { %1819 = vmatmul.f32.gmra.mxu2 %v6550_v28  ;;  %1932 = vmatmul.f32.gmra.mxu3 %v6547_v37 }
 0x1ad   :  { %2158 = vmatmul.f32.gmra.mxu1 %v6547_v37  ;;  %v6577_v37 = vsel %vm1132_vm7, %v1039_v32, %v1196_v1  ;;  %v1197_v32 = vmul.f32 0.2, %v6299_v5 }
 0x1ae   :  { %v6559_v9 = vpop.f32.mrf.mxu0  ;;  %11013 = vst [vmem:[#allocation6_spill] sm:$0xff] %v6577_v37 }
 0x1af   :  { %v744_v40 = vpop.f32.mrf.mxu2  ;;  %v857_v24 = vpop.f32.mrf.mxu3 }
 0x1b0   :  { %v745_v48 = vadd.f32 %v744_v40, %v6217_v8  ;;  %v1198_v40 = vmul.f32 0.2, %v1042_v55 }
 0x1b1   :  { %2045 = vmatmul.f32.gmra.mxu0 %v6550_v28 }
 0x1b2   :  { %v6573_v15 = vadd.f32 %v857_v24, %v745_v48  ;;  %v6575_v60 = vpop.f32.mrf.mxu1  ;;  %v6601_v48 = vsel %vm1134_vm9, %v1042_v55, %v1198_v40  ;;  %v1200_v55 = vmul.f32 0.2, %v1045_v20  ;;  %v1199_v40 = vmul.f32 0.2, %v6313_v30 }
 0x1b3   :  { %11015 = vst [vmem:[#allocation8_spill] sm:$0xff] %v6601_v48 }
 0x1b4   :  { %1822 = vmatmul.f32.gmra.mxu2 %v6580_v63  ;;  %1935 = vmatmul.f32.gmra.mxu3 %v6577_v37  ;;  %v6634_v28 = vsel %vm1135_vm12, %v6313_v30, %v1199_v40  ;;  %v938_v30 = vadd.f32 %v6341_v21, %v6450_v23  ;;  %vm1151_vm12 = vcmp.ge.f32.partialorder %v6452_v38, 0.0 }
 0x1b5   :  { %2161 = vmatmul.f32.gmra.mxu1 %v6577_v37  ;;  %v6604_v37 = vsel %vm1133_vm10, %v6299_v5, %v1197_v32  ;;  %v1473_v5 = vld [vmem:[%s10853_s5 + $0x4e0] sm:$0xff]  ;;  %v935_v32 = vadd.f32 %v6324_v53, %v6450_v23  ;;  %11018 = vst [vmem:[#allocation11_spill] sm:$0xff] %v6634_v28  ;;  %vm1149_vm10 = vcmp.ge.f32.partialorder %v6438_v43, 0.0 }
 0x1b6   :  { %v6586_v27 = vpop.f32.mrf.mxu0  ;;  %11016 = vst [vmem:[#allocation9_spill] sm:$0xff] %v6604_v37  ;;  %2253 = vmatpush.msrb.mxu2 %v1473_v5  ;;  %v1051_v21 = vadd.f32 %v6335_v51, %v938_v30  ;;  %v1698_v51 = vld [vmem:[%s10853_s5 + $0xbe8] sm:$0xff] }
 0x1b7   :  { %v747_v1 = vpop.f32.mrf.mxu2  ;;  %v860_v42 = vpop.f32.mrf.mxu3  ;;  %v1048_v53 = vadd.f32 %v6315_v39, %v935_v32  ;;  %2592 = vmatpush.msrb.mxu1 %v1698_v51  ;;  %v1474_v51 = vld [vmem:[%s10853_s5 + $0x4e8] sm:$0xff] }
 0x1b8   :  { %v748_v22 = vadd.f32 %v747_v1, %v6217_v8  ;;  %vm1140_vm15 = vcmp.ge.f32.partialorder %v1051_v21, 0.0  ;;  %2479 = vmatpush.msrb.mxu0 %v1474_v51  ;;  %v1683_v51 = vld [vmem:[%s10853_s5 + $0xb70] sm:$0xff] }
 0x1b9   :  { %2048 = vmatmul.f32.gmra.mxu0 %v6580_v63  ;;  %v6631_v63 = vsel %vm1136_vm11, %v1045_v20, %v1200_v55  ;;  %v1201_v20 = vmul.f32 0.2, %v6333_v41  ;;  %vm1138_vm13 = vcmp.ge.f32.partialorder %v1048_v53, 0.0  ;;  %2367 = vmatpush.msrb.mxu3 %v1683_v51 }
 0x1ba   :  { %v6597_v36 = vadd.f32 %v860_v42, %v748_v22  ;;  %v6599_v24 = vpop.f32.mrf.mxu1  ;;  %11017 = vst [vmem:[#allocation10_spill] sm:$0xff] %v6631_v63 }
 0x1bc   :  { %1825 = vmatmul.f32.gmra.mxu2 %v6604_v37  ;;  %1938 = vmatmul.f32.gmra.mxu3 %v6601_v48 }
 0x1bd   :  { %2164 = vmatmul.f32.gmra.mxu1 %v6601_v48 }
 0x1be   :  { %v6613_v1 = vpop.f32.mrf.mxu0 }
 0x1bf   :  { %v750_v2 = vpop.f32.mrf.mxu2  ;;  %v863_v42 = vpop.f32.mrf.mxu3 }
 0x1c0   :  { %v751_v22 = vadd.f32 %v750_v2, %v6217_v8  ;;  %v1202_v2 = vmul.f32 0.2, %v1048_v53 }
 0x1c1   :  { %2051 = vmatmul.f32.gmra.mxu0 %v6604_v37 }
 0x1c2   :  { %v6627_v14 = vadd.f32 %v863_v42, %v751_v22  ;;  %v6629_v48 = vpop.f32.mrf.mxu1  ;;  %v6655_v22 = vsel %vm1138_vm13, %v1048_v53, %v1202_v2  ;;  %v1204_v53 = vmul.f32 0.2, %v1051_v21  ;;  %v1203_v2 = vmul.f32 0.2, %v6347_v58 }
 0x1c3   :  { %11019 = vst [vmem:[#allocation12_spill] sm:$0xff] %v6655_v22 }
 0x1c4   :  { %1828 = vmatmul.f32.gmra.mxu2 %v6634_v28  ;;  %1941 = vmatmul.f32.gmra.mxu3 %v6631_v63  ;;  %v6688_v37 = vsel %vm1139_vm0, %v6347_v58, %v1203_v2  ;;  %v944_v58 = vadd.f32 %v6375_v35, %v6450_v23  ;;  %vm1155_vm0 = vcmp.ge.f32.partialorder %v6489_v29, 0.0 }
 0x1c5   :  { %2167 = vmatmul.f32.gmra.mxu1 %v6631_v63  ;;  %v6658_v63 = vsel %vm1137_vm14, %v6333_v41, %v1201_v20  ;;  %v1459_v41 = vld [vmem:[%s10853_s5 + $0x470] sm:$0xff]  ;;  %v941_v20 = vadd.f32 %v6358_v31, %v6450_v23  ;;  %11022 = vst [vmem:[#allocation15_spill] sm:$0xff] %v6688_v37  ;;  %vm1153_vm14 = vcmp.ge.f32.partialorder %v6474_v17, 0.0 }
 0x1c6   :  { %v6640_v5 = vpop.f32.mrf.mxu0  ;;  %11020 = vst [vmem:[#allocation13_spill] sm:$0xff] %v6658_v63  ;;  %2254 = vmatpush.msrb.mxu2 %v1459_v41  ;;  %v1057_v35 = vadd.f32 %v6369_v16, %v944_v58  ;;  %v1684_v16 = vld [vmem:[%s10853_s5 + $0xb78] sm:$0xff] }
 0x1c7   :  { %v753_v55 = vpop.f32.mrf.mxu2  ;;  %v866_v39 = vpop.f32.mrf.mxu3  ;;  %v1054_v31 = vadd.f32 %v6349_v52, %v941_v20  ;;  %2593 = vmatpush.msrb.mxu1 %v1684_v16  ;;  %v1460_v16 = vld [vmem:[%s10853_s5 + $0x478] sm:$0xff] }
 0x1c8   :  { %v754_v40 = vadd.f32 %v753_v55, %v6217_v8  ;;  %vm1144_vm3 = vcmp.ge.f32.partialorder %v1057_v35, 0.0  ;;  %2480 = vmatpush.msrb.mxu0 %v1460_v16  ;;  %v1669_v16 = vld [vmem:[%s10853_s5 + $0xb00] sm:$0xff] }
 0x1c9   :  { %2054 = vmatmul.f32.gmra.mxu0 %v6634_v28  ;;  %v6685_v28 = vsel %vm1140_vm15, %v1051_v21, %v1204_v53  ;;  %v1205_v21 = vmul.f32 0.2, %v6367_v11  ;;  %vm1142_vm1 = vcmp.ge.f32.partialorder %v1054_v31, 0.0  ;;  %2368 = vmatpush.msrb.mxu3 %v1669_v16 }
 0x1ca   :  { %v6651_v32 = vadd.f32 %v866_v39, %v754_v40  ;;  %v6653_v42 = vpop.f32.mrf.mxu1  ;;  %11021 = vst [vmem:[#allocation14_spill] sm:$0xff] %v6685_v28 }
 0x1cc   :  { %1831 = vmatmul.f32.gmra.mxu2 %v6658_v63  ;;  %1944 = vmatmul.f32.gmra.mxu3 %v6655_v22 }
 0x1cd   :  { %2170 = vmatmul.f32.gmra.mxu1 %v6655_v22 }
 0x1ce   :  { %v6667_v55 = vpop.f32.mrf.mxu0 }
 0x1cf   :  { %v756_v30 = vpop.f32.mrf.mxu2  ;;  %v869_v39 = vpop.f32.mrf.mxu3 }
 0x1d0   :  { %v757_v40 = vadd.f32 %v756_v30, %v6217_v8  ;;  %v1206_v30 = vmul.f32 0.2, %v1054_v31 }
 0x1d1   :  { %2057 = vmatmul.f32.gmra.mxu0 %v6658_v63 }
 0x1d2   :  { %v6681_v6 = vadd.f32 %v869_v39, %v757_v40  ;;  %v6683_v22 = vpop.f32.mrf.mxu1  ;;  %v6709_v40 = vsel %vm1142_vm1, %v1054_v31, %v1206_v30  ;;  %v1208_v31 = vmul.f32 0.2, %v1057_v35  ;;  %v1207_v30 = vmul.f32 0.2, %v6381_v26 }
 0x1d3   :  { %11023 = vst [vmem:[#allocation16_spill] sm:$0xff] %v6709_v40 }
 0x1d4   :  { %1834 = vmatmul.f32.gmra.mxu2 %v6688_v37  ;;  %1947 = vmatmul.f32.gmra.mxu3 %v6685_v28  ;;  %v6742_v63 = vsel %vm1143_vm4, %v6381_v26, %v1207_v30  ;;  %v950_v26 = vadd.f32 %v6409_v50, %v6450_v23  ;;  %vm1159_vm4 = vcmp.ge.f32.partialorder %v6543_v7, 0.0 }
 0x1d5   :  { %2173 = vmatmul.f32.gmra.mxu1 %v6685_v28  ;;  %v6712_v28 = vsel %vm1141_vm2, %v6367_v11, %v1205_v21  ;;  %v1445_v11 = vld [vmem:[%s10853_s5 + $0x400] sm:$0xff]  ;;  %v947_v21 = vadd.f32 %v6392_v3, %v6450_v23  ;;  %11026 = vst [vmem:[#allocation19_spill] sm:$0xff] %v6742_v63  ;;  %vm1157_vm2 = vcmp.ge.f32.partialorder %v6519_v44, 0.0 }
 0x1d6   :  { %v6694_v41 = vpop.f32.mrf.mxu0  ;;  %11024 = vst [vmem:[#allocation17_spill] sm:$0xff] %v6712_v28  ;;  %2255 = vmatpush.msrb.mxu2 %v1445_v11  ;;  %v1063_v50 = vadd.f32 %v6403_v34, %v950_v26  ;;  %v1670_v34 = vld [vmem:[%s10853_s5 + $0xb08] sm:$0xff] }
 0x1d7   :  { %v759_v53 = vpop.f32.mrf.mxu2  ;;  %v872_v52 = vpop.f32.mrf.mxu3  ;;  %v1060_v3 = vadd.f32 %v6383_v46, %v947_v21  ;;  %2594 = vmatpush.msrb.mxu1 %v1670_v34  ;;  %v1446_v34 = vld [vmem:[%s10853_s5 + $0x408] sm:$0xff] }
 0x1d8   :  { %v760_v2 = vadd.f32 %v759_v53, %v6217_v8  ;;  %vm1148_vm7 = vcmp.ge.f32.partialorder %v1063_v50, 0.0  ;;  %2481 = vmatpush.msrb.mxu0 %v1446_v34  ;;  %v1655_v34 = vld [vmem:[%s10853_s5 + $0xa90] sm:$0xff] }
 0x1d9   :  { %2060 = vmatmul.f32.gmra.mxu0 %v6688_v37  ;;  %v6739_v37 = vsel %vm1144_vm3, %v1057_v35, %v1208_v31  ;;  %v1209_v35 = vmul.f32 0.2, %v6401_v33  ;;  %vm1146_vm5 = vcmp.ge.f32.partialorder %v1060_v3, 0.0  ;;  %2369 = vmatpush.msrb.mxu3 %v1655_v34 }
 0x1da   :  { %v6705_v20 = vadd.f32 %v872_v52, %v760_v2  ;;  %v6707_v39 = vpop.f32.mrf.mxu1  ;;  %11025 = vst [vmem:[#allocation18_spill] sm:$0xff] %v6739_v37 }
 0x1dc   :  { %1837 = vmatmul.f32.gmra.mxu2 %v6712_v28  ;;  %1950 = vmatmul.f32.gmra.mxu3 %v6709_v40 }
 0x1dd   :  { %2176 = vmatmul.f32.gmra.mxu1 %v6709_v40 }
 0x1de   :  { %v6721_v53 = vpop.f32.mrf.mxu0 }
 0x1df   :  { %v762_v58 = vpop.f32.mrf.mxu2  ;;  %v875_v52 = vpop.f32.mrf.mxu3 }
 0x1e0   :  { %v763_v2 = vadd.f32 %v762_v58, %v6217_v8  ;;  %v1210_v58 = vmul.f32 0.2, %v1060_v3 }
 0x1e1   :  { %2063 = vmatmul.f32.gmra.mxu0 %v6712_v28 }
 0x1e2   :  { %v6735_v51 = vadd.f32 %v875_v52, %v763_v2  ;;  %v6737_v40 = vpop.f32.mrf.mxu1  ;;  %v6763_v2 = vsel %vm1146_vm5, %v1060_v3, %v1210_v58  ;;  %v1212_v3 = vmul.f32 0.2, %v1063_v50  ;;  %v1211_v58 = vmul.f32 0.2, %v6415_v62 }
 0x1e3   :  { %11027 = vst [vmem:[#allocation20_spill] sm:$0xff] %v6763_v2 }
 0x1e4   :  { %1840 = vmatmul.f32.gmra.mxu2 %v6742_v63  ;;  %1953 = vmatmul.f32.gmra.mxu3 %v6739_v37  ;;  %v6796_v28 = vsel %vm1147_vm8, %v6415_v62, %v1211_v58  ;;  %v956_v62 = vadd.f32 %v6446_v4, %v6450_v23  ;;  %vm1163_vm8 = vcmp.ge.f32.partialorder %v6597_v36, 0.0 }
 0x1e5   :  { %2179 = vmatmul.f32.gmra.mxu1 %v6739_v37  ;;  %v6766_v37 = vsel %vm1145_vm6, %v6401_v33, %v1209_v35  ;;  %v1431_v33 = vld [vmem:[%s10853_s5 + $0x390] sm:$0xff]  ;;  %v953_v35 = vadd.f32 %v6429_v19, %v6450_v23  ;;  %11030 = vst [vmem:[#allocation23_spill] sm:$0xff] %v6796_v28  ;;  %vm1161_vm6 = vcmp.ge.f32.partialorder %v6573_v15, 0.0 }
 0x1e6   :  { %v6748_v11 = vpop.f32.mrf.mxu0  ;;  %11028 = vst [vmem:[#allocation21_spill] sm:$0xff] %v6766_v37  ;;  %2256 = vmatpush.msrb.mxu2 %v1431_v33  ;;  %v1069_v4 = vadd.f32 %v6440_v59, %v956_v62  ;;  %v1656_v59 = vld [vmem:[%s10853_s5 + $0xa98] sm:$0xff] }
 0x1e7   :  { %v765_v31 = vpop.f32.mrf.mxu2  ;;  %v878_v46 = vpop.f32.mrf.mxu3  ;;  %v1066_v19 = vadd.f32 %v6417_v47, %v953_v35  ;;  %2595 = vmatpush.msrb.mxu1 %v1656_v59 }
 0x1e8   :  { %v766_v30 = vadd.f32 %v765_v31, %v6217_v8  ;;  %vm1152_vm11 = vcmp.ge.f32.partialorder %v1069_v4, 0.0 }
 0x1e9   :  { %2066 = vmatmul.f32.gmra.mxu0 %v6742_v63  ;;  %v6793_v63 = vsel %vm1148_vm7, %v1063_v50, %v1212_v3  ;;  %v1213_v50 = vmul.f32 0.2, %v6438_v43  ;;  %vm1150_vm9 = vcmp.ge.f32.partialorder %v1066_v19, 0.0 }
 0x1ea   :  { %v6759_v21 = vadd.f32 %v878_v46, %v766_v30  ;;  %v6761_v52 = vpop.f32.mrf.mxu1  ;;  %11029 = vst [vmem:[#allocation22_spill] sm:$0xff] %v6793_v63 }
 0x1ec   :  { %1843 = vmatmul.f32.gmra.mxu2 %v6766_v37  ;;  %1956 = vmatmul.f32.gmra.mxu3 %v6763_v2 }
 0x1ed   :  { %2182 = vmatmul.f32.gmra.mxu1 %v6763_v2 }
 0x1ee   :  { %v6775_v31 = vpop.f32.mrf.mxu0 }
 0x1ef   :  { %v768_v26 = vpop.f32.mrf.mxu2  ;;  %v881_v46 = vpop.f32.mrf.mxu3 }
 0x1f0   :  { %v769_v30 = vadd.f32 %v768_v26, %v6217_v8  ;;  %v1214_v26 = vmul.f32 0.2, %v1066_v19 }
 0x1f1   :  { %2069 = vmatmul.f32.gmra.mxu0 %v6766_v37 }
 0x1f2   :  { %v6789_v16 = vadd.f32 %v881_v46, %v769_v30  ;;  %v6791_v2 = vpop.f32.mrf.mxu1  ;;  %v6817_v30 = vsel %vm1150_vm9, %v1066_v19, %v1214_v26  ;;  %v1216_v19 = vmul.f32 0.2, %v1069_v4  ;;  %v1215_v26 = vmul.f32 0.2, %v6452_v38 }
 0x1f3   :  { %11031 = vst [vmem:[#allocation24_spill] sm:$0xff] %v6817_v30 }
 0x1f4   :  { %1846 = vmatmul.f32.gmra.mxu2 %v6796_v28  ;;  %1959 = vmatmul.f32.gmra.mxu3 %v6793_v63  ;;  %v6850_v37 = vsel %vm1151_vm12, %v6452_v38, %v1215_v26  ;;  %v962_v38 = vadd.f32 %v6479_v12, %v6450_v23  ;;  %vm1167_vm12 = vcmp.ge.f32.partialorder %v6651_v32, 0.0 }
 0x1f5   :  { %2185 = vmatmul.f32.gmra.mxu1 %v6793_v63  ;;  %v6820_v63 = vsel %vm1149_vm10, %v6438_v43, %v1213_v50  ;;  %v1417_v43 = vld [vmem:[%s10853_s5 + $0x320] sm:$0xff]  ;;  %v959_v50 = vadd.f32 %v6463_v10, %v6450_v23  ;;  %11034 = vst [vmem:[#allocation27_spill] sm:$0xff] %v6850_v37  ;;  %vm1165_vm10 = vcmp.ge.f32.partialorder %v6627_v14, 0.0 }
 0x1f6   :  { %v6802_v33 = vpop.f32.mrf.mxu0  ;;  %11032 = vst [vmem:[#allocation25_spill] sm:$0xff] %v6820_v63  ;;  %2257 = vmatpush.msrb.mxu2 %v1417_v43  ;;  %v1432_v43 = vld [vmem:[%s10853_s5 + $0x398] sm:$0xff]  ;;  %v1075_v12 = vadd.f32 %v6476_v45, %v962_v38  ;;  %v965_v38 = vadd.f32 %v6505_v13, %v6450_v23 }
 0x1f7   :  { %v771_v3 = vpop.f32.mrf.mxu2  ;;  %v884_v47 = vpop.f32.mrf.mxu3  ;;  %v1072_v10 = vadd.f32 %v6454_v57, %v959_v50  ;;  %2482 = vmatpush.msrb.mxu0 %v1432_v43 }
 0x1f8   :  { %v772_v58 = vadd.f32 %v771_v3, %v6217_v8  ;;  %vm1156_vm15 = vcmp.ge.f32.partialorder %v1075_v12, 0.0  ;;  %v1078_v13 = vadd.f32 %v6491_v25, %v965_v38 }
 0x1f9   :  { %2072 = vmatmul.f32.gmra.mxu0 %v6796_v28  ;;  %v6847_v28 = vsel %vm1152_vm11, %v1069_v4, %v1216_v19  ;;  %v1218_v4 = vmul.f32 0.2, %v1072_v10  ;;  %v1217_v19 = vmul.f32 0.2, %v6474_v17  ;;  %vm1154_vm13 = vcmp.ge.f32.partialorder %v1072_v10, 0.0 }
 0x1fa   :  { %v6813_v35 = vadd.f32 %v884_v47, %v772_v58  ;;  %v6815_v46 = vpop.f32.mrf.mxu1  ;;  %11033 = vst [vmem:[#allocation26_spill] sm:$0xff] %v6847_v28  ;;  %vm1158_vm1 = vcmp.ge.f32.partialorder %v1078_v13, 0.0 }
 0x1fb   :  { %v6874_v43 = vsel %vm1153_vm14, %v6474_v17, %v1217_v19  ;;  %v1642_v17 = vld [vmem:[%s10853_s5 + $0xa28] sm:$0xff]  ;;  %v1219_v19 = vmul.f32 0.2, %v6489_v29  ;;  %vm1169_vm14 = vcmp.ge.f32.partialorder %v6681_v6, 0.0 }
 0x1fc   :  { %1849 = vmatmul.f32.gmra.mxu2 %v6820_v63  ;;  %1962 = vmatmul.f32.gmra.mxu3 %v6817_v30  ;;  %11036 = vst [vmem:[#allocation29_spill] sm:$0xff] %v6874_v43 }
 0x1fd   :  { %2188 = vmatmul.f32.gmra.mxu1 %v6817_v30 }
 0x1fe   :  { %v6829_v3 = vpop.f32.mrf.mxu0  ;;  %2596 = vmatpush.msrb.mxu1 %v1642_v17  ;;  %v6904_v17 = vsel %vm1155_vm0, %v6489_v29, %v1219_v19  ;;  %v968_v29 = vadd.f32 %v6532_v61, %v6450_v23  ;;  %vm1171_vm0 = vcmp.ge.f32.partialorder %v6705_v20, 0.0 }
 0x1ff   :  { %v774_v62 = vpop.f32.mrf.mxu2  ;;  %v887_v47 = vpop.f32.mrf.mxu3  ;;  %11038 = vst [vmem:[#allocation31_spill] sm:$0xff] %v6904_v17 }
 0x200   :  { %v775_v58 = vadd.f32 %v774_v62, %v6217_v8 }
 0x201   :  { %2075 = vmatmul.f32.gmra.mxu0 %v6820_v63 }
 0x202   :  { %v6843_v34 = vadd.f32 %v887_v47, %v775_v58  ;;  %v6845_v30 = vpop.f32.mrf.mxu1  ;;  %v6871_v58 = vsel %vm1154_vm13, %v1072_v10, %v1218_v4  ;;  %v1403_v10 = vld [vmem:[%s10853_s5 + $0x2b0] sm:$0xff]  ;;  %v1220_v4 = vmul.f32 0.2, %v1075_v12 }
 0x203   :  { %11035 = vst [vmem:[#allocation28_spill] sm:$0xff] %v6871_v58  ;;  %2258 = vmatpush.msrb.mxu2 %v1403_v10 }
 0x204   :  { %1852 = vmatmul.f32.gmra.mxu2 %v6850_v37  ;;  %1965 = vmatmul.f32.gmra.mxu3 %v6847_v28  ;;  %v6901_v10 = vsel %vm1156_vm15, %v1075_v12, %v1220_v4  ;;  %v1222_v12 = vmul.f32 0.2, %v1078_v13  ;;  %v1221_v4 = vmul.f32 0.2, %v6519_v44 }
 0x205   :  { %2191 = vmatmul.f32.gmra.mxu1 %v6847_v28  ;;  %v1641_v28 = vld [vmem:[%s10853_s5 + $0xa20] sm:$0xff]  ;;  %11037 = vst [vmem:[#allocation30_spill] sm:$0xff] %v6901_v10 }
 0x206   :  { %v6859_v59 = vpop.f32.mrf.mxu0  ;;  %2370 = vmatpush.msrb.mxu3 %v1641_v28  ;;  %v6929_v61 = vsel %vm1157_vm2, %v6519_v44, %v1221_v4  ;;  %v1389_v44 = vld [vmem:[%s10853_s5 + $0x240] sm:$0xff]  ;;  %v1223_v4 = vmul.f32 0.2, %v6543_v7  ;;  %vm1173_vm2 = vcmp.ge.f32.partialorder %v6735_v51, 0.0 }
 0x207   :  { %v777_v57 = vpop.f32.mrf.mxu2  ;;  %v890_v26 = vpop.f32.mrf.mxu3  ;;  %2259 = vmatpush.msrb.mxu2 %v1389_v44 }
 0x208   :  { %v778_v50 = vadd.f32 %v777_v57, %v6217_v8  ;;  %v6958_v54 = vsel %vm1159_vm4, %v6543_v7, %v1223_v4  ;;  %vm1175_vm4 = vcmp.ge.f32.partialorder %v6759_v21, 0.0 }
 0x209   :  { %2078 = vmatmul.f32.gmra.mxu0 %v6850_v37  ;;  %v1081_v37 = vadd.f32 %v6521_v49, %v968_v29  ;;  %v1628_v49 = vld [vmem:[%s10853_s5 + $0x9b8] sm:$0xff]  ;;  %v971_v29 = vadd.f32 %v6559_v9, %v6450_v23 }
 0x20a   :  { %v6867_v62 = vadd.f32 %v890_v26, %v778_v50  ;;  %v6869_v47 = vpop.f32.mrf.mxu1  ;;  %2597 = vmatpush.msrb.mxu1 %v1628_v49 }
 0x20b   :  { %vm1160_vm3 = vcmp.ge.f32.partialorder %v1081_v37, 0.0  ;;  %v1084_v9 = vadd.f32 %v6545_v18, %v971_v29 }
 0x20c   :  { %1855 = vmatmul.f32.gmra.mxu2 %v6874_v43  ;;  %1968 = vmatmul.f32.gmra.mxu3 %v6871_v58 }
 0x20d   :  { %2194 = vmatmul.f32.gmra.mxu1 %v6871_v58  ;;  %v1226_v18 = vmul.f32 0.2, %v1084_v9  ;;  %vm1162_vm5 = vcmp.ge.f32.partialorder %v1084_v9, 0.0 }
 0x20e   :  { %v6889_v45 = vpop.f32.mrf.mxu0 }
 0x20f   :  { %v780_v57 = vpop.f32.mrf.mxu2  ;;  %v893_v28 = vpop.f32.mrf.mxu3 }
 0x210   :  { %v781_v26 = vadd.f32 %v780_v57, %v6217_v8  ;;  %v1418_v57 = vld [vmem:[%s10853_s5 + $0x328] sm:$0xff] }
 0x211   :  { %2081 = vmatmul.f32.gmra.mxu0 %v6874_v43  ;;  %v6926_v43 = vsel %vm1158_vm1, %v1078_v13, %v1222_v12  ;;  %v1224_v12 = vmul.f32 0.2, %v1081_v37 }
 0x212   :  { %v6897_v50 = vadd.f32 %v893_v28, %v781_v26  ;;  %v6899_v58 = vpop.f32.mrf.mxu1  ;;  %2483 = vmatpush.msrb.mxu0 %v1418_v57  ;;  %v1765_v26 = vld [vmem:[%s10856_s6] sm:$0xff]  ;;  %11039 = vst [vmem:[#allocation32_spill] sm:$0xff] %v6926_v43 }
 0x213   :  { %v6932_v63 = vperm.slane %v1765_v26, 1 }
 0x214   :  { %1858 = vmatmul.f32.gmra.mxu2 %v6904_v17  ;;  %1971 = vmatmul.f32.gmra.mxu3 %v6901_v10 }
 0x215   :  { %2197 = vmatmul.f32.gmra.mxu1 %v6901_v10 }
 0x216   :  { %v6913_v28 = vpop.f32.mrf.mxu0 }
 0x217   :  { %v783_v25 = vpop.f32.mrf.mxu2  ;;  %v896_v19 = vpop.f32.mrf.mxu3 }
 0x218   :  { %v784_v38 = vadd.f32 %v783_v25, %v6217_v8  ;;  %v1627_v8 = vld [vmem:[%s10853_s5 + $0x9b0] sm:$0xff]  ;;  %v6939_v25 = vperm.slane %v1765_v26, 0 }
 0x219   :  { %2084 = vmatmul.f32.gmra.mxu0 %v6904_v17  ;;  %2371 = vmatpush.msrb.mxu3 %v1627_v8  ;;  %v6955_v17 = vsel %vm1160_vm3, %v1081_v37, %v1224_v12  ;;  %v1404_v37 = vld [vmem:[%s10853_s5 + $0x2b8] sm:$0xff] }
 0x21a   :  { %v6924_v57 = vadd.f32 %v896_v19, %v784_v38  ;;  %v2153_v10 = vpop.f32.mrf.mxu1  ;;  %2484 = vmatpush.msrb.mxu0 %v1404_v37  ;;  %v1613_v37 = vld [vmem:[%s10853_s5 + $0x940] sm:$0xff] }
 0x21b   :  { %2372 = vmatpush.msrb.mxu3 %v1613_v37 }
 0x21c   :  { %1861 = vmatmul.f32.gmra.mxu2 %v6929_v61  ;;  %1974 = vmatmul.f32.gmra.mxu3 %v6926_v43 }
 0x21d   :  { %2200 = vmatmul.f32.gmra.mxu1 %v6926_v43 }
 0x21e   :  { %v2040_v13 = vpop.f32.mrf.mxu0 }
 0x21f   :  { %v2041_v19 = vadd.f32 %v2040_v13, %v6932_v63  ;;  %v1814_v38 = vpop.f32.mrf.mxu2  ;;  %v1927_v26 = vpop.f32.mrf.mxu3 }
 0x220   :  { %v1815_v8 = vadd.f32 %v1814_v38, %v6939_v25 }
 0x221   :  { %v2154_v43 = vadd.f32 %v2153_v10, %v2041_v19  ;;  %2087 = vmatmul.f32.gmra.mxu0 %v6929_v61  ;;  %v1225_v10 = vmul.f32 0.2, %v6573_v15 }
 0x222   :  { %v1928_v44 = vadd.f32 %v1927_v26, %v1815_v8  ;;  %v2156_v49 = vpop.f32.mrf.mxu1  ;;  %v6980_v8 = vsel %vm1162_vm5, %v1084_v9, %v1226_v18  ;;  %v977_v18 = vadd.f32 %v6613_v1, %v6450_v23 }
 0x223   :  { %4962 = vst [vmem:[%s10857_s7 + $0x8] sm:$0xff] %v2154_v43  ;;  %v974_v43 = vadd.f32 %v6586_v27, %v6450_v23 }
 0x224   :  { %4961 = vst [vmem:[%s10857_s7] sm:$0xff] %v1928_v44  ;;  %1864 = vmatmul.f32.gmra.mxu2 %v6958_v54  ;;  %1977 = vmatmul.f32.gmra.mxu3 %v6955_v17  ;;  %v6983_v44 = vsel %vm1161_vm6, %v6573_v15, %v1225_v10  ;;  %v1375_v15 = vld [vmem:[%s10853_s5 + $0x1d0] sm:$0xff]  ;;  %v1090_v1 = vadd.f32 %v6599_v24, %v977_v18  ;;  %vm1177_vm6 = vcmp.ge.f32.partialorder %v6789_v16, 0.0 }
 0x225   :  { %2203 = vmatmul.f32.gmra.mxu1 %v6955_v17  ;;  %11040 = vst [vmem:[#allocation33_spill] sm:$0xff] %v6980_v8  ;;  %v1087_v27 = vadd.f32 %v6575_v60, %v974_v43  ;;  %v1614_v60 = vld [vmem:[%s10853_s5 + $0x948] sm:$0xff]  ;;  %2260 = vmatpush.msrb.mxu2 %v1375_v15  ;;  %v980_v15 = vadd.f32 %v6640_v5, %v6450_v23 }
 0x226   :  { %v2043_v7 = vpop.f32.mrf.mxu0  ;;  %2598 = vmatpush.msrb.mxu1 %v1614_v60  ;;  %v1230_v24 = vmul.f32 0.2, %v1090_v1  ;;  %vm1166_vm9 = vcmp.ge.f32.partialorder %v1090_v1, 0.0 }
 0x227   :  { %v2044_v13 = vadd.f32 %v2043_v7, %v6932_v63  ;;  %v1817_v12 = vpop.f32.mrf.mxu2  ;;  %v1930_v4 = vpop.f32.mrf.mxu3  ;;  %v1228_v9 = vmul.f32 0.2, %v1087_v27  ;;  %v1227_v7 = vmul.f32 0.2, %v6597_v36  ;;  %vm1164_vm7 = vcmp.ge.f32.partialorder %v1087_v27, 0.0 }
 0x228   :  { %v1818_v29 = vadd.f32 %v1817_v12, %v6939_v25  ;;  %v1093_v5 = vadd.f32 %v6629_v48, %v980_v15  ;;  %v1361_v48 = vld [vmem:[%s10853_s5 + $0x160] sm:$0xff] }
 0x229   :  { %v2157_v19 = vadd.f32 %v2156_v49, %v2044_v13  ;;  %2090 = vmatmul.f32.gmra.mxu0 %v6958_v54  ;;  %v7014_v37 = vsel %vm1163_vm8, %v6597_v36, %v1227_v7  ;;  %2261 = vmatpush.msrb.mxu2 %v1361_v48  ;;  %vm1179_vm8 = vcmp.ge.f32.partialorder %v6813_v35, 0.0 }
 0x22a   :  { %v1931_v38 = vadd.f32 %v1930_v4, %v1818_v29  ;;  %v2159_v26 = vpop.f32.mrf.mxu1  ;;  %vm1168_vm11 = vcmp.ge.f32.partialorder %v1093_v5, 0.0 }
 0x22b   :  { %4976 = vst [vmem:[%s10857_s7 + $0x78] sm:$0xff] %v2157_v19 }
 0x22c   :  { %4975 = vst [vmem:[%s10857_s7 + $0x70] sm:$0xff] %v1931_v38  ;;  %1867 = vmatmul.f32.gmra.mxu2 %v6983_v44  ;;  %1980 = vmatmul.f32.gmra.mxu3 %v6980_v8  ;;  %v7011_v38 = vsel %vm1164_vm7, %v1087_v27, %v1228_v9  ;;  %v1229_v27 = vmul.f32 0.2, %v6627_v14 }
 0x22d   :  { %2206 = vmatmul.f32.gmra.mxu1 %v6980_v8 }
 0x22e   :  { %v2046_v49 = vpop.f32.mrf.mxu0 }
 0x22f   :  { %v2047_v10 = vadd.f32 %v2046_v49, %v6932_v63  ;;  %v1820_v43 = vpop.f32.mrf.mxu2  ;;  %v1933_v13 = vpop.f32.mrf.mxu3 }
 0x230   :  { %v1821_v12 = vadd.f32 %v1820_v43, %v6939_v25 }
 0x231   :  { %v2160_v4 = vadd.f32 %v2159_v26, %v2047_v10  ;;  %2093 = vmatmul.f32.gmra.mxu0 %v6983_v44  ;;  %v1390_v26 = vld [vmem:[%s10853_s5 + $0x248] sm:$0xff] }
 0x232   :  { %v1934_v29 = vadd.f32 %v1933_v13, %v1821_v12  ;;  %v2162_v19 = vpop.f32.mrf.mxu1  ;;  %2485 = vmatpush.msrb.mxu0 %v1390_v26  ;;  %v7036_v13 = vsel %vm1166_vm9, %v1090_v1, %v1230_v24  ;;  %v7039_v12 = vsel %vm1165_vm10, %v6627_v14, %v1229_v27  ;;  %v1600_v14 = vld [vmem:[%s10853_s5 + $0x8d8] sm:$0xff]  ;;  %v1231_v1 = vmul.f32 0.2, %v6651_v32 }
 0x233   :  { %4990 = vst [vmem:[%s10857_s7 + $0xe8] sm:$0xff] %v2160_v4  ;;  %v1599_v4 = vld [vmem:[%s10853_s5 + $0x8d0] sm:$0xff]  ;;  %2599 = vmatpush.msrb.mxu1 %v1600_v14  ;;  %v983_v26 = vadd.f32 %v6667_v55, %v6450_v23  ;;  %vm1181_vm10 = vcmp.ge.f32.partialorder %v6843_v34, 0.0 }
 0x234   :  { %4989 = vst [vmem:[%s10857_s7 + $0xe0] sm:$0xff] %v1934_v29  ;;  %1870 = vmatmul.f32.gmra.mxu2 %v7014_v37  ;;  %1983 = vmatmul.f32.gmra.mxu3 %v7011_v38 }
 0x235   :  { %2209 = vmatmul.f32.gmra.mxu1 %v7011_v38  ;;  %11041 = vst [vmem:[#allocation34_spill] sm:$0xff] %v7036_v13  ;;  %2373 = vmatpush.msrb.mxu3 %v1599_v4  ;;  %v1096_v55 = vadd.f32 %v6653_v42, %v983_v26 }
 0x236   :  { %v2049_v36 = vpop.f32.mrf.mxu0 }
 0x237   :  { %v2050_v60 = vadd.f32 %v2049_v36, %v6932_v63  ;;  %v1823_v49 = vpop.f32.mrf.mxu2  ;;  %v1936_v9 = vpop.f32.mrf.mxu3  ;;  %v1234_v42 = vmul.f32 0.2, %v1096_v55  ;;  %vm1170_vm13 = vcmp.ge.f32.partialorder %v1096_v55, 0.0 }
 0x238   :  { %v1824_v7 = vadd.f32 %v1823_v49, %v6939_v25 }
 0x239   :  { %v2163_v18 = vadd.f32 %v2162_v19, %v2050_v60  ;;  %2096 = vmatmul.f32.gmra.mxu0 %v7014_v37  ;;  %v1232_v19 = vmul.f32 0.2, %v1093_v5 }
 0x23a   :  { %v1937_v10 = vadd.f32 %v1936_v9, %v1824_v7  ;;  %v2165_v43 = vpop.f32.mrf.mxu1 }
 0x23b   :  { %5004 = vst [vmem:[%s10857_s7 + $0x158] sm:$0xff] %v2163_v18  ;;  %v7067_v7 = vsel %vm1168_vm11, %v1093_v5, %v1232_v19  ;;  %v7070_v18 = vsel %vm1167_vm12, %v6651_v32, %v1231_v1  ;;  %v986_v5 = vadd.f32 %v6694_v41, %v6450_v23  ;;  %vm1183_vm12 = vcmp.ge.f32.partialorder %v6867_v62, 0.0 }
 0x23c   :  { %5003 = vst [vmem:[%s10857_s7 + $0x150] sm:$0xff] %v1937_v10  ;;  %1873 = vmatmul.f32.gmra.mxu2 %v7039_v12  ;;  %1986 = vmatmul.f32.gmra.mxu3 %v7036_v13  ;;  %v1376_v10 = vld [vmem:[%s10853_s5 + $0x1d8] sm:$0xff] }
 0x23d   :  { %2212 = vmatmul.f32.gmra.mxu1 %v7036_v13  ;;  %2486 = vmatpush.msrb.mxu0 %v1376_v10  ;;  %v1099_v41 = vadd.f32 %v6683_v22, %v986_v5  ;;  %v1347_v22 = vld [vmem:[%s10853_s5 + $0xf0] sm:$0xff] }
 0x23e   :  { %v2052_v29 = vpop.f32.mrf.mxu0  ;;  %2262 = vmatpush.msrb.mxu2 %v1347_v22 }
 0x23f   :  { %v2053_v36 = vadd.f32 %v2052_v29, %v6932_v63  ;;  %v1826_v24 = vpop.f32.mrf.mxu2  ;;  %v1939_v27 = vpop.f32.mrf.mxu3  ;;  %vm1172_vm15 = vcmp.ge.f32.partialorder %v1099_v41, 0.0 }
 0x240   :  { %v1827_v15 = vadd.f32 %v1826_v24, %v6939_v25 }
 0x241   :  { %v2166_v60 = vadd.f32 %v2165_v43, %v2053_v36  ;;  %2099 = vmatmul.f32.gmra.mxu0 %v7039_v12  ;;  %v1233_v43 = vmul.f32 0.2, %v6681_v6  ;;  %v7092_v36 = vsel %vm1170_vm13, %v1096_v55, %v1234_v42 }
 0x242   :  { %v1940_v49 = vadd.f32 %v1939_v27, %v1827_v15  ;;  %v2168_v9 = vpop.f32.mrf.mxu1  ;;  %11042 = vst [vmem:[#allocation35_spill] sm:$0xff] %v7092_v36  ;;  %v1585_v27 = vld [vmem:[%s10853_s5 + $0x860] sm:$0xff] }
 0x243   :  { %5018 = vst [vmem:[%s10857_s7 + $0x1c8] sm:$0xff] %v2166_v60  ;;  %v7095_v24 = vsel %vm1169_vm14, %v6681_v6, %v1233_v43  ;;  %2374 = vmatpush.msrb.mxu3 %v1585_v27  ;;  %v1586_v6 = vld [vmem:[%s10853_s5 + $0x868] sm:$0xff]  ;;  %v1236_v60 = vmul.f32 0.2, %v1099_v41  ;;  %vm1185_vm14 = vcmp.ge.f32.partialorder %v6897_v50, 0.0 }
 0x244   :  { %5017 = vst [vmem:[%s10857_s7 + $0x1c0] sm:$0xff] %v1940_v49  ;;  %1876 = vmatmul.f32.gmra.mxu2 %v7070_v18  ;;  %1989 = vmatmul.f32.gmra.mxu3 %v7067_v7  ;;  %v1235_v49 = vmul.f32 0.2, %v6705_v20 }
 0x245   :  { %2215 = vmatmul.f32.gmra.mxu1 %v7067_v7 }
 0x246   :  { %v2055_v32 = vpop.f32.mrf.mxu0  ;;  %2600 = vmatpush.msrb.mxu1 %v1586_v6 }
 0x247   :  { %v2056_v4 = vadd.f32 %v2055_v32, %v6932_v63  ;;  %v1829_v48 = vpop.f32.mrf.mxu2  ;;  %v1942_v14 = vpop.f32.mrf.mxu3 }
 0x248   :  { %v1830_v29 = vadd.f32 %v1829_v48, %v6939_v25  ;;  %v7123_v48 = vsel %vm1172_vm15, %v1099_v41, %v1236_v60 }
 0x249   :  { %v2169_v19 = vadd.f32 %v2168_v9, %v2056_v4  ;;  %2102 = vmatmul.f32.gmra.mxu0 %v7070_v18  ;;  %v989_v9 = vadd.f32 %v6721_v53, %v6450_v23 }
 0x24a   :  { %v1943_v1 = vadd.f32 %v1942_v14, %v1830_v29  ;;  %v2171_v26 = vpop.f32.mrf.mxu1  ;;  %v7126_v14 = vsel %vm1171_vm0, %v6705_v20, %v1235_v49  ;;  %v1362_v29 = vld [vmem:[%s10853_s5 + $0x168] sm:$0xff]  ;;  %vm1187_vm0 = vcmp.ge.f32.partialorder %v6924_v57, 0.0 }
 0x24b   :  { %5032 = vst [vmem:[%s10857_s7 + $0x238] sm:$0xff] %v2169_v19  ;;  %v1102_v53 = vadd.f32 %v6707_v39, %v989_v9  ;;  %2487 = vmatpush.msrb.mxu0 %v1362_v29  ;;  %v1237_v19 = vmul.f32 0.2, %v6735_v51 }
 0x24c   :  { %5031 = vst [vmem:[%s10857_s7 + $0x230] sm:$0xff] %v1943_v1  ;;  %1879 = vmatmul.f32.gmra.mxu2 %v7095_v24  ;;  %1992 = vmatmul.f32.gmra.mxu3 %v7092_v36  ;;  %v992_v1 = vadd.f32 %v6748_v11, %v6450_v23 }
 0x24d   :  { %2218 = vmatmul.f32.gmra.mxu1 %v7092_v36  ;;  %v1238_v39 = vmul.f32 0.2, %v1102_v53  ;;  %vm1174_vm1 = vcmp.ge.f32.partialorder %v1102_v53, 0.0  ;;  %v7151_v9 = vsel %vm1173_vm2, %v6735_v51, %v1237_v19  ;;  %v1572_v51 = vld [vmem:[%s10853_s5 + $0x7f8] sm:$0xff] }
 0x24e   :  { %v2058_v15 = vpop.f32.mrf.mxu0  ;;  %v1105_v11 = vadd.f32 %v6737_v40, %v992_v1  ;;  %v1333_v40 = vld [vmem:[%s10853_s5 + $0x80] sm:$0xff]  ;;  %2601 = vmatpush.msrb.mxu1 %v1572_v51 }
 0x24f   :  { %v2059_v55 = vadd.f32 %v2058_v15, %v6932_v63  ;;  %v1832_v10 = vpop.f32.mrf.mxu2  ;;  %v1945_v32 = vpop.f32.mrf.mxu3  ;;  %v7148_v49 = vsel %vm1174_vm1, %v1102_v53, %v1238_v39  ;;  %2263 = vmatpush.msrb.mxu2 %v1333_v40 }
 0x250   :  { %v1833_v42 = vadd.f32 %v1832_v10, %v6939_v25  ;;  %11043 = vst [vmem:[#allocation36_spill] sm:$0xff] %v7148_v49  ;;  %vm1176_vm3 = vcmp.ge.f32.partialorder %v1105_v11, 0.0 }
 0x251   :  { %v2172_v43 = vadd.f32 %v2171_v26, %v2059_v55  ;;  %2105 = vmatmul.f32.gmra.mxu0 %v7095_v24  ;;  %v1571_v55 = vld [vmem:[%s10853_s5 + $0x7f0] sm:$0xff] }
 0x252   :  { %v1946_v5 = vadd.f32 %v1945_v32, %v1833_v42  ;;  %v2174_v4 = vpop.f32.mrf.mxu1  ;;  %2375 = vmatpush.msrb.mxu3 %v1571_v55  ;;  %v1240_v32 = vmul.f32 0.2, %v1105_v11  ;;  %v1239_v42 = vmul.f32 0.2, %v6759_v21 }
 0x253   :  { %5046 = vst [vmem:[%s10857_s7 + $0x2a8] sm:$0xff] %v2172_v43  ;;  %v995_v43 = vadd.f32 %v6775_v31, %v6450_v23 }
 0x254   :  { %5045 = vst [vmem:[%s10857_s7 + $0x2a0] sm:$0xff] %v1946_v5  ;;  %1882 = vmatmul.f32.gmra.mxu2 %v7126_v14  ;;  %1995 = vmatmul.f32.gmra.mxu3 %v7123_v48  ;;  %v7179_v1 = vsel %vm1176_vm3, %v1105_v11, %v1240_v32 }
 0x255   :  { %2221 = vmatmul.f32.gmra.mxu1 %v7123_v48  ;;  %11044 = vst [vmem:[#allocation37_spill] sm:$0xff] %v7179_v1  ;;  %v1108_v31 = vadd.f32 %v6761_v52, %v995_v43 }
 0x256   :  { %v2061_v20 = vpop.f32.mrf.mxu0 }
 0x257   :  { %v2062_v26 = vadd.f32 %v2061_v20, %v6932_v63  ;;  %v1835_v41 = vpop.f32.mrf.mxu2  ;;  %v1948_v27 = vpop.f32.mrf.mxu3  ;;  %v1242_v52 = vmul.f32 0.2, %v1108_v31  ;;  %vm1178_vm5 = vcmp.ge.f32.partialorder %v1108_v31, 0.0 }
 0x258   :  { %v1836_v22 = vadd.f32 %v1835_v41, %v6939_v25  ;;  %v1348_v41 = vld [vmem:[%s10853_s5 + $0xf8] sm:$0xff] }
 0x259   :  { %v2175_v6 = vadd.f32 %v2174_v4, %v2062_v26  ;;  %2108 = vmatmul.f32.gmra.mxu0 %v7126_v14  ;;  %v7182_v26 = vsel %vm1175_vm4, %v6759_v21, %v1239_v42  ;;  %v1557_v42 = vld [vmem:[%s10853_s5 + $0x780] sm:$0xff] }
 0x25a   :  { %v1949_v15 = vadd.f32 %v1948_v27, %v1836_v22  ;;  %v2177_v60 = vpop.f32.mrf.mxu1  ;;  %2488 = vmatpush.msrb.mxu0 %v1348_v41  ;;  %v1241_v27 = vmul.f32 0.2, %v6789_v16  ;;  %v998_v22 = vadd.f32 %v6802_v33, %v6450_v23  ;;  %2376 = vmatpush.msrb.mxu3 %v1557_v42 }
 0x25b   :  { %5060 = vst [vmem:[%s10857_s7 + $0x318] sm:$0xff] %v2175_v6 }
 0x25c   :  { %5059 = vst [vmem:[%s10857_s7 + $0x310] sm:$0xff] %v1949_v15  ;;  %1885 = vmatmul.f32.gmra.mxu2 %v7151_v9  ;;  %1998 = vmatmul.f32.gmra.mxu3 %v7148_v49  ;;  %v7207_v32 = vsel %vm1177_vm6, %v6789_v16, %v1241_v27  ;;  %v1111_v33 = vadd.f32 %v6791_v2, %v998_v22  ;;  %v1319_v2 = vld [vmem:[%s10853_s5 + $0x10] sm:$0xff]  ;;  %v1558_v16 = vld [vmem:[%s10853_s5 + $0x788] sm:$0xff] }
 0x25d   :  { %2224 = vmatmul.f32.gmra.mxu1 %v7148_v49  ;;  %2264 = vmatpush.msrb.mxu2 %v1319_v2  ;;  %v1334_v22 = vld [vmem:[%s10853_s5 + $0x88] sm:$0xff] }
 0x25e   :  { %v2064_v10 = vpop.f32.mrf.mxu0  ;;  %2602 = vmatpush.msrb.mxu1 %v1558_v16  ;;  %vm1180_vm7 = vcmp.ge.f32.partialorder %v1111_v33, 0.0  ;;  %2489 = vmatpush.msrb.mxu0 %v1334_v22 }
 0x25f   :  { %v2065_v5 = vadd.f32 %v2064_v10, %v6932_v63  ;;  %v1838_v4 = vpop.f32.mrf.mxu2  ;;  %v1951_v53 = vpop.f32.mrf.mxu3  ;;  %v7204_v10 = vsel %vm1178_vm5, %v1108_v31, %v1242_v52 }
 0x260   :  { %v1839_v29 = vadd.f32 %v1838_v4, %v6939_v25  ;;  %11045 = vst [vmem:[#allocation38_spill] sm:$0xff] %v7204_v10  ;;  %v1243_v4 = vmul.f32 0.2, %v6813_v35 }
 0x261   :  { %v2178_v20 = vadd.f32 %v2177_v60, %v2065_v5  ;;  %2111 = vmatmul.f32.gmra.mxu0 %v7151_v9  ;;  %v1244_v5 = vmul.f32 0.2, %v1111_v33 }
 0x262   :  { %v1952_v39 = vadd.f32 %v1951_v53, %v1839_v29  ;;  %v2180_v19 = vpop.f32.mrf.mxu1  ;;  %v1001_v53 = vadd.f32 %v6829_v3, %v6450_v23  ;;  %v7238_v27 = vsel %vm1179_vm8, %v6813_v35, %v1243_v4 }
 0x263   :  { %5074 = vst [vmem:[%s10857_s7 + $0x388] sm:$0xff] %v2178_v20  ;;  %v7235_v52 = vsel %vm1180_vm7, %v1111_v33, %v1244_v5  ;;  %v1544_v5 = vld [vmem:[%s10853_s5 + $0x718] sm:$0xff] }
 0x264   :  { %5073 = vst [vmem:[%s10857_s7 + $0x380] sm:$0xff] %v1952_v39  ;;  %1888 = vmatmul.f32.gmra.mxu2 %v7182_v26  ;;  %2001 = vmatmul.f32.gmra.mxu3 %v7179_v1  ;;  %v1114_v3 = vadd.f32 %v6815_v46, %v1001_v53  ;;  %v1247_v53 = vmul.f32 0.2, %v6867_v62 }
 0x265   :  { %2227 = vmatmul.f32.gmra.mxu1 %v7179_v1  ;;  %11046 = vst [vmem:[#allocation39_spill] sm:$0xff] %v7235_v52 }
 0x266   :  { %v2067_v21 = vpop.f32.mrf.mxu0  ;;  %11047 = vst [vmem:[#allocation40_spill] sm:$0xff] %v7238_v27  ;;  %v1246_v46 = vmul.f32 0.2, %v1114_v3  ;;  %vm1182_vm9 = vcmp.ge.f32.partialorder %v1114_v3, 0.0  ;;  %2603 = vmatpush.msrb.mxu1 %v1544_v5 }
 0x267   :  { %v2068_v6 = vadd.f32 %v2067_v21, %v6932_v63  ;;  %v1841_v15 = vpop.f32.mrf.mxu2  ;;  %v1954_v60 = vpop.f32.mrf.mxu3 }
 0x268   :  { %v1842_v11 = vadd.f32 %v1841_v15, %v6939_v25  ;;  %v1004_v15 = vadd.f32 %v6859_v59, %v6450_v23  ;;  %v7260_v2 = vsel %vm1182_vm9, %v1114_v3, %v1246_v46 }
 0x269   :  { %v2181_v55 = vadd.f32 %v2180_v19, %v2068_v6  ;;  %2114 = vmatmul.f32.gmra.mxu0 %v7182_v26  ;;  %v1245_v6 = vmul.f32 0.2, %v6843_v34  ;;  %11048 = vst [vmem:[#allocation41_spill] sm:$0xff] %v7260_v2 }
 0x26a   :  { %v1955_v40 = vadd.f32 %v1954_v60, %v1842_v11  ;;  %v2183_v51 = vpop.f32.mrf.mxu1  ;;  %v1117_v59 = vadd.f32 %v6845_v30, %v1004_v15  ;;  %v1531_v30 = vld [vmem:[%s10853_s5 + $0x6b0] sm:$0xff] }
 0x26b   :  { %5088 = vst [vmem:[%s10857_s7 + $0x3f8] sm:$0xff] %v2181_v55  ;;  %v7263_v16 = vsel %vm1181_vm10, %v6843_v34, %v1245_v6  ;;  %2701 = vmatpush.msra.mxu2 %v1531_v30 }
 0x26c   :  { %5087 = vst [vmem:[%s10857_s7 + $0x3f0] sm:$0xff] %v1955_v40  ;;  %1891 = vmatmul.f32.gmra.mxu2 %v7207_v32  ;;  %2004 = vmatmul.f32.gmra.mxu3 %v7204_v10  ;;  %v1248_v4 = vmul.f32 0.2, %v1117_v59  ;;  %vm1184_vm11 = vcmp.ge.f32.partialorder %v1117_v59, 0.0 }
 0x26d   :  { %2230 = vmatmul.f32.gmra.mxu1 %v7204_v10 }
 0x26e   :  { %v2070_v43 = vpop.f32.mrf.mxu0 }
 0x26f   :  { %v2071_v29 = vadd.f32 %v2070_v43, %v6932_v63  ;;  %v1844_v20 = vpop.f32.mrf.mxu2  ;;  %v1957_v39 = vpop.f32.mrf.mxu3  ;;  %v1543_v43 = vld [vmem:[%s10853_s5 + $0x710] sm:$0xff] }
 0x270   :  { %v1845_v19 = vadd.f32 %v1844_v20, %v6939_v25  ;;  %2377 = vmatpush.msrb.mxu3 %v1543_v43 }
 0x271   :  { %v2184_v31 = vadd.f32 %v2183_v51, %v2071_v29  ;;  %2117 = vmatmul.f32.gmra.mxu0 %v7207_v32  ;;  %v1007_v29 = vadd.f32 %v6889_v45, %v6450_v23  ;;  %v7294_v45 = vsel %vm1184_vm11, %v1117_v59, %v1248_v4 }
 0x272   :  { %v1958_v41 = vadd.f32 %v1957_v39, %v1845_v19  ;;  %v2186_v21 = vpop.f32.mrf.mxu1 }
 0x273   :  { %5102 = vst [vmem:[%s10857_s7 + $0x468] sm:$0xff] %v2184_v31  ;;  %v1120_v46 = vadd.f32 %v6869_v47, %v1007_v29  ;;  %v1010_v47 = vadd.f32 %v6913_v28, %v6450_v23  ;;  %v1755_v28 = vld [vmem:[%s10853_s5 + $0xdb0] sm:$0xff] }
 0x274   :  { %5101 = vst [vmem:[%s10857_s7 + $0x460] sm:$0xff] %v1958_v41  ;;  %1894 = vmatmul.f32.gmra.mxu2 %v7238_v27  ;;  %2007 = vmatmul.f32.gmra.mxu3 %v7235_v52  ;;  %v1320_v41 = vld [vmem:[%s10853_s5 + $0x18] sm:$0xff] }
 0x275   :  { %2233 = vmatmul.f32.gmra.mxu1 %v7235_v52  ;;  %2490 = vmatpush.msrb.mxu0 %v1320_v41  ;;  %v1250_v15 = vmul.f32 0.2, %v1120_v46  ;;  %vm1186_vm13 = vcmp.ge.f32.partialorder %v1120_v46, 0.0  ;;  %v1123_v23 = vadd.f32 %v6899_v58, %v1010_v47  ;;  %v1517_v58 = vld [vmem:[%s10853_s5 + $0x640] sm:$0xff] }
 0x276   :  { %v2073_v35 = vpop.f32.mrf.mxu0  ;;  %2814 = vmatpush.msra.mxu3 %v1755_v28  ;;  %2702 = vmatpush.msra.mxu2 %v1517_v58 }
 0x277   :  { %v2074_v60 = vadd.f32 %v2073_v35, %v6932_v63  ;;  %v1847_v11 = vpop.f32.mrf.mxu2  ;;  %v1960_v55 = vpop.f32.mrf.mxu3  ;;  %v7297_v35 = vsel %vm1183_vm12, %v6867_v62, %v1247_v53  ;;  %v1249_v62 = vmul.f32 0.2, %v6897_v50  ;;  %v7316_v59 = vsel %vm1186_vm13, %v1120_v46, %v1250_v15 }
 0x278   :  { %v1848_v40 = vadd.f32 %v1847_v11, %v6939_v25  ;;  %v1252_v30 = vmul.f32 0.2, %v1123_v23  ;;  %vm1188_vm15 = vcmp.ge.f32.partialorder %v1123_v23, 0.0 }
 0x279   :  { %v2187_v51 = vadd.f32 %v2186_v21, %v2074_v60  ;;  %2120 = vmatmul.f32.gmra.mxu0 %v7238_v27  ;;  %v7319_v43 = vsel %vm1185_vm14, %v6897_v50, %v1249_v62  ;;  %v1756_v50 = vld [vmem:[%s10853_s5 + $0xdb8] sm:$0xff] }
 0x27a   :  { %v1961_v33 = vadd.f32 %v1960_v55, %v1848_v40  ;;  %v2189_v42 = vpop.f32.mrf.mxu1  ;;  %3040 = vmatpush.msra.mxu1 %v1756_v50  ;;  %v7345_v41 = vsel %vm1188_vm15, %v1123_v23, %v1252_v30  ;;  %v11049_v30 = vld [vmem:[#allocation3_spill] sm:$0xff] }
 0x27b   :  { %5116 = vst [vmem:[%s10857_s7 + $0x4d8] sm:$0xff] %v2187_v51 }
 0x27c   :  { %5115 = vst [vmem:[%s10857_s7 + $0x4d0] sm:$0xff] %v1961_v33  ;;  %1897 = vmatmul.f32.gmra.mxu2 %v7263_v16  ;;  %2010 = vmatmul.f32.gmra.mxu3 %v7260_v2 }
 0x27d   :  { %2236 = vmatmul.f32.gmra.mxu1 %v7260_v2 }
 0x27e   :  { %v2076_v34 = vpop.f32.mrf.mxu0 }
 0x27f   :  { %v2077_v20 = vadd.f32 %v2076_v34, %v6932_v63  ;;  %v1850_v39 = vpop.f32.mrf.mxu2  ;;  %v1963_v19 = vpop.f32.mrf.mxu3  ;;  %v1251_v34 = vmul.f32 0.2, %v6924_v57 }
 0x280   :  { %v1851_v31 = vadd.f32 %v1850_v39, %v6939_v25 }
 0x281   :  { %v2190_v21 = vadd.f32 %v2189_v42, %v2077_v20  ;;  %2123 = vmatmul.f32.gmra.mxu0 %v7263_v16 }
 0x282   :  { %v1964_v3 = vadd.f32 %v1963_v19, %v1851_v31  ;;  %v2192_v22 = vpop.f32.mrf.mxu1 }
 0x283   :  { %5130 = vst [vmem:[%s10857_s7 + $0x548] sm:$0xff] %v2190_v21  ;;  %v7348_v21 = vsel %vm1187_vm0, %v6924_v57, %v1251_v34  ;;  %v11050_v34 = vld [vmem:[#allocation2_spill] sm:$0xff] }
 0x284   :  { %5129 = vst [vmem:[%s10857_s7 + $0x540] sm:$0xff] %v1964_v3  ;;  %1900 = vmatmul.f32.gmra.mxu2 %v7297_v35  ;;  %2013 = vmatmul.f32.gmra.mxu3 %v7294_v45  ;;  %v1532_v3 = vld [vmem:[%s10853_s5 + $0x6b8] sm:$0xff] }
 0x285   :  { %2239 = vmatmul.f32.gmra.mxu1 %v7294_v45  ;;  %2927 = vmatpush.msra.mxu0 %v1532_v3 }
 0x286   :  { %v2079_v6 = vpop.f32.mrf.mxu0 }
 0x287   :  { %v2080_v60 = vadd.f32 %v2079_v6, %v6932_v63  ;;  %v1853_v11 = vpop.f32.mrf.mxu2  ;;  %v1966_v55 = vpop.f32.mrf.mxu3 }
 0x288   :  { %v1854_v40 = vadd.f32 %v1853_v11, %v6939_v25  ;;  %v1741_v11 = vld [vmem:[%s10853_s5 + $0xd40] sm:$0xff] }
 0x289   :  { %v2193_v51 = vadd.f32 %v2192_v22, %v2080_v60  ;;  %2126 = vmatmul.f32.gmra.mxu0 %v7297_v35  ;;  %2815 = vmatpush.msra.mxu3 %v1741_v11 }
 0x28a   :  { %v1967_v33 = vadd.f32 %v1966_v55, %v1854_v40  ;;  %v2195_v42 = vpop.f32.mrf.mxu1  ;;  %v1503_v55 = vld [vmem:[%s10853_s5 + $0x5d0] sm:$0xff]  ;;  %v1742_v40 = vld [vmem:[%s10853_s5 + $0xd48] sm:$0xff] }
 0x28b   :  { %5144 = vst [vmem:[%s10857_s7 + $0x5b8] sm:$0xff] %v2193_v51  ;;  %2703 = vmatpush.msra.mxu2 %v1503_v55  ;;  %3041 = vmatpush.msra.mxu1 %v1742_v40 }
 0x28c   :  { %5143 = vst [vmem:[%s10857_s7 + $0x5b0] sm:$0xff] %v1967_v33  ;;  %1903 = vmatmul.f32.gmra.mxu2 %v7319_v43  ;;  %2016 = vmatmul.f32.gmra.mxu3 %v7316_v59 }
 0x28d   :  { %2242 = vmatmul.f32.gmra.mxu1 %v7316_v59 }
 0x28e   :  { %v2082_v5 = vpop.f32.mrf.mxu0 }
 0x28f   :  { %v2083_v4 = vadd.f32 %v2082_v5, %v6932_v63  ;;  %v1856_v53 = vpop.f32.mrf.mxu2  ;;  %v1969_v29 = vpop.f32.mrf.mxu3 }
 0x290   :  { %v1857_v20 = vadd.f32 %v1856_v53, %v6939_v25 }
 0x291   :  { %v2196_v39 = vadd.f32 %v2195_v42, %v2083_v4  ;;  %2129 = vmatmul.f32.gmra.mxu0 %v7319_v43  ;;  %v1518_v4 = vld [vmem:[%s10853_s5 + $0x648] sm:$0xff] }
 0x292   :  { %v1970_v19 = vadd.f32 %v1969_v29, %v1857_v20  ;;  %v2198_v31 = vpop.f32.mrf.mxu1  ;;  %2928 = vmatpush.msra.mxu0 %v1518_v4 }
 0x293   :  { %5158 = vst [vmem:[%s10857_s7 + $0x628] sm:$0xff] %v2196_v39 }
 0x294   :  { %5157 = vst [vmem:[%s10857_s7 + $0x620] sm:$0xff] %v1970_v19  ;;  %1906 = vmatmul.f32.gmra.mxu2 %v7348_v21  ;;  %2019 = vmatmul.f32.gmra.mxu3 %v7345_v41 }
 0x295   :  { %2245 = vmatmul.f32.gmra.mxu1 %v7345_v41 }
 0x296   :  { %v2085_v57 = vpop.f32.mrf.mxu0 }
 0x297   :  { %v2086_v22 = vadd.f32 %v2085_v57, %v6932_v63  ;;  %v1859_v46 = vpop.f32.mrf.mxu2  ;;  %v1972_v6 = vpop.f32.mrf.mxu3 }
 0x298   :  { %v1860_v15 = vadd.f32 %v1859_v46, %v6939_v25  ;;  %v11051_v46 = vld [vmem:[#allocation5_spill] sm:$0xff] }
 0x299   :  { %v2199_v62 = vadd.f32 %v2198_v31, %v2086_v22  ;;  %2132 = vmatmul.f32.gmra.mxu0 %v7348_v21  ;;  %v1727_v22 = vld [vmem:[%s10853_s5 + $0xcd0] sm:$0xff] }
 0x29a   :  { %v1973_v47 = vadd.f32 %v1972_v6, %v1860_v15  ;;  %v2201_v60 = vpop.f32.mrf.mxu1  ;;  %v11052_v6 = vld [vmem:[#allocation4_spill] sm:$0xff]  ;;  %2816 = vmatpush.msra.mxu3 %v1727_v22  ;;  %v1489_v15 = vld [vmem:[%s10853_s5 + $0x560] sm:$0xff] }
 0x29b   :  { %5172 = vst [vmem:[%s10857_s7 + $0x698] sm:$0xff] %v2199_v62  ;;  %v1728_v62 = vld [vmem:[%s10853_s5 + $0xcd8] sm:$0xff]  ;;  %2704 = vmatpush.msra.mxu2 %v1489_v15  ;;  %v1475_v22 = vld [vmem:[%s10853_s5 + $0x4f0] sm:$0xff]  ;;  %v1714_v15 = vld [vmem:[%s10853_s5 + $0xc68] sm:$0xff] }
 0x29c   :  { %5171 = vst [vmem:[%s10857_s7 + $0x690] sm:$0xff] %v1973_v47  ;;  %2265 = vmatmul.f32.vlgmr.msrb.gmra.mxu2 %v6496_v56  ;;  %2378 = vmatmul.f32.vlgmr.msrb.gmra.mxu3 %v6493_v0 }
 0x29d   :  { %2604 = vmatmul.f32.vlgmr.msrb.gmra.mxu1 %v6493_v0  ;;  %2705 = vmatpush.msra.mxu2 %v1475_v22  ;;  %v1699_v22 = vld [vmem:[%s10853_s5 + $0xbf0] sm:$0xff] }
 0x29e   :  { %v2088_v51 = vpop.f32.mrf.mxu0  ;;  %3042 = vmatpush.msra.mxu1 %v1728_v62 }
 0x29f   :  { %v2089_v33 = vadd.f32 %v2088_v51, %v6932_v63  ;;  %v1862_v42 = vpop.f32.mrf.mxu2  ;;  %v1975_v23 = vpop.f32.mrf.mxu3 }
 0x2a0   :  { %v1863_v28 = vadd.f32 %v1862_v42, %v6939_v25  ;;  %3043 = vmatpush.msra.mxu1 %v1714_v15  ;;  %v11059_v15 = vld [vmem:[#allocation13_spill] sm:$0xff] }
 0x2a1   :  { %v2202_v58 = vadd.f32 %v2201_v60, %v2089_v33  ;;  %2491 = vmatmul.f32.vlgmr.msrb.gmra.mxu0 %v6496_v56 }
 0x2a2   :  { %v1976_v50 = vadd.f32 %v1975_v23, %v1863_v28  ;;  %v2204_v5 = vpop.f32.mrf.mxu1  ;;  %v11053_v23 = vld [vmem:[#allocation7_spill] sm:$0xff]  ;;  %v11054_v28 = vld [vmem:[#allocation6_spill] sm:$0xff] }
 0x2a3   :  { %5186 = vst [vmem:[%s10857_s7 + $0x708] sm:$0xff] %v2202_v58  ;;  %v1504_v58 = vld [vmem:[%s10853_s5 + $0x5d8] sm:$0xff] }
 0x2a4   :  { %5185 = vst [vmem:[%s10857_s7 + $0x700] sm:$0xff] %v1976_v50  ;;  %2268 = vmatmul.f32.gmra.mxu2 %v11049_v30  ;;  %2381 = vmatmul.f32.gmra.mxu3 %v11050_v34 }
 0x2a5   :  { %2607 = vmatmul.f32.gmra.mxu1 %v11050_v34  ;;  %2929 = vmatpush.msra.mxu0 %v1504_v58  ;;  %v11058_v58 = vld [vmem:[#allocation10_spill] sm:$0xff] }
 0x2a6   :  { %v2091_v53 = vpop.f32.mrf.mxu0 }
 0x2a7   :  { %v2092_v29 = vadd.f32 %v2091_v53, %v6932_v63  ;;  %v1865_v20 = vpop.f32.mrf.mxu2  ;;  %v1978_v39 = vpop.f32.mrf.mxu3 }
 0x2a8   :  { %v1866_v19 = vadd.f32 %v1865_v20, %v6939_v25 }
 0x2a9   :  { %v2205_v31 = vadd.f32 %v2204_v5, %v2092_v29  ;;  %2494 = vmatmul.f32.gmra.mxu0 %v11049_v30 }
 0x2aa   :  { %v1979_v3 = vadd.f32 %v1978_v39, %v1866_v19  ;;  %v2207_v57 = vpop.f32.mrf.mxu1 }
 0x2ab   :  { %5200 = vst [vmem:[%s10857_s7 + $0x778] sm:$0xff] %v2205_v31  ;;  %v1713_v31 = vld [vmem:[%s10853_s5 + $0xc60] sm:$0xff] }
 0x2ac   :  { %5199 = vst [vmem:[%s10857_s7 + $0x770] sm:$0xff] %v1979_v3  ;;  %2271 = vmatmul.f32.gmra.mxu2 %v11051_v46  ;;  %2384 = vmatmul.f32.gmra.mxu3 %v11052_v6  ;;  %v11055_v3 = vld [vmem:[#allocation9_spill] sm:$0xff] }
 0x2ad   :  { %2610 = vmatmul.f32.gmra.mxu1 %v11052_v6  ;;  %2817 = vmatpush.msra.mxu3 %v1713_v31 }
 0x2ae   :  { %v2094_v47 = vpop.f32.mrf.mxu0 }
 0x2af   :  { %v2095_v60 = vadd.f32 %v2094_v47, %v6932_v63  ;;  %v1868_v11 = vpop.f32.mrf.mxu2  ;;  %v1981_v55 = vpop.f32.mrf.mxu3  ;;  %2818 = vmatpush.msra.mxu3 %v1699_v22 }
 0x2b0   :  { %v1869_v40 = vadd.f32 %v1868_v11, %v6939_v25 }
 0x2b1   :  { %v2208_v51 = vadd.f32 %v2207_v57, %v2095_v60  ;;  %2497 = vmatmul.f32.gmra.mxu0 %v11051_v46  ;;  %v11056_v57 = vld [vmem:[#allocation8_spill] sm:$0xff] }
 0x2b2   :  { %v1982_v33 = vadd.f32 %v1981_v55, %v1869_v40  ;;  %v2210_v42 = vpop.f32.mrf.mxu1 }
 0x2b3   :  { %5214 = vst [vmem:[%s10857_s7 + $0x7e8] sm:$0xff] %v2208_v51 }
 0x2b4   :  { %5213 = vst [vmem:[%s10857_s7 + $0x7e0] sm:$0xff] %v1982_v33  ;;  %2274 = vmatmul.f32.gmra.mxu2 %v11053_v23  ;;  %2387 = vmatmul.f32.gmra.mxu3 %v11054_v28 }
 0x2b5   :  { %2613 = vmatmul.f32.gmra.mxu1 %v11054_v28 }
 0x2b6   :  { %v2097_v50 = vpop.f32.mrf.mxu0 }
 0x2b7   :  { %v2098_v5 = vadd.f32 %v2097_v50, %v6932_v63  ;;  %v1871_v4 = vpop.f32.mrf.mxu2  ;;  %v1984_v53 = vpop.f32.mrf.mxu3  ;;  %v1490_v50 = vld [vmem:[%s10853_s5 + $0x568] sm:$0xff] }
 0x2b8   :  { %v1872_v29 = vadd.f32 %v1871_v4, %v6939_v25  ;;  %2930 = vmatpush.msra.mxu0 %v1490_v50 }
 0x2b9   :  { %v2211_v20 = vadd.f32 %v2210_v42, %v2098_v5  ;;  %2500 = vmatmul.f32.gmra.mxu0 %v11053_v23  ;;  %v11057_v42 = vld [vmem:[#allocation11_spill] sm:$0xff] }
 0x2ba   :  { %v1985_v39 = vadd.f32 %v1984_v53, %v1872_v29  ;;  %v2213_v19 = vpop.f32.mrf.mxu1 }
 0x2bb   :  { %5228 = vst [vmem:[%s10857_s7 + $0x858] sm:$0xff] %v2211_v20 }
 0x2bc   :  { %5227 = vst [vmem:[%s10857_s7 + $0x850] sm:$0xff] %v1985_v39  ;;  %2277 = vmatmul.f32.gmra.mxu2 %v11055_v3  ;;  %2390 = vmatmul.f32.gmra.mxu3 %v11056_v57 }
 0x2bd   :  { %2616 = vmatmul.f32.gmra.mxu1 %v11056_v57 }
 0x2be   :  { %v2100_v62 = vpop.f32.mrf.mxu0 }
 0x2bf   :  { %v2101_v47 = vadd.f32 %v2100_v62, %v6932_v63  ;;  %v1874_v60 = vpop.f32.mrf.mxu2  ;;  %v1987_v11 = vpop.f32.mrf.mxu3  ;;  %v11060_v62 = vld [vmem:[#allocation12_spill] sm:$0xff] }
 0x2c0   :  { %v1875_v55 = vadd.f32 %v1874_v60, %v6939_v25  ;;  %v1700_v60 = vld [vmem:[%s10853_s5 + $0xbf8] sm:$0xff] }
 0x2c1   :  { %v2214_v40 = vadd.f32 %v2213_v19, %v2101_v47  ;;  %2503 = vmatmul.f32.gmra.mxu0 %v11055_v3  ;;  %v1461_v47 = vld [vmem:[%s10853_s5 + $0x480] sm:$0xff]  ;;  %3044 = vmatpush.msra.mxu1 %v1700_v60 }
 0x2c2   :  { %v1988_v51 = vadd.f32 %v1987_v11, %v1875_v55  ;;  %v2216_v33 = vpop.f32.mrf.mxu1  ;;  %2706 = vmatpush.msra.mxu2 %v1461_v47 }
 0x2c3   :  { %5242 = vst [vmem:[%s10857_s7 + $0x8c8] sm:$0xff] %v2214_v40 }
 0x2c4   :  { %5241 = vst [vmem:[%s10857_s7 + $0x8c0] sm:$0xff] %v1988_v51  ;;  %2280 = vmatmul.f32.gmra.mxu2 %v11057_v42  ;;  %2393 = vmatmul.f32.gmra.mxu3 %v11058_v58 }
 0x2c5   :  { %2619 = vmatmul.f32.gmra.mxu1 %v11058_v58 }
 0x2c6   :  { %v2103_v5 = vpop.f32.mrf.mxu0 }
 0x2c7   :  { %v2104_v4 = vadd.f32 %v2103_v5, %v6932_v63  ;;  %v1877_v53 = vpop.f32.mrf.mxu2  ;;  %v1990_v29 = vpop.f32.mrf.mxu3 }
 0x2c8   :  { %v1878_v20 = vadd.f32 %v1877_v53, %v6939_v25  ;;  %v11061_v53 = vld [vmem:[#allocation15_spill] sm:$0xff] }
 0x2c9   :  { %v2217_v39 = vadd.f32 %v2216_v33, %v2104_v4  ;;  %2506 = vmatmul.f32.gmra.mxu0 %v11057_v42 }
 0x2ca   :  { %v1991_v19 = vadd.f32 %v1990_v29, %v1878_v20  ;;  %v2219_v31 = vpop.f32.mrf.mxu1  ;;  %v11062_v29 = vld [vmem:[#allocation14_spill] sm:$0xff]  ;;  %v1476_v20 = vld [vmem:[%s10853_s5 + $0x4f8] sm:$0xff] }
 0x2cb   :  { %5256 = vst [vmem:[%s10857_s7 + $0x938] sm:$0xff] %v2217_v39  ;;  %2931 = vmatpush.msra.mxu0 %v1476_v20 }
 0x2cc   :  { %5255 = vst [vmem:[%s10857_s7 + $0x930] sm:$0xff] %v1991_v19  ;;  %2283 = vmatmul.f32.gmra.mxu2 %v11059_v15  ;;  %2396 = vmatmul.f32.gmra.mxu3 %v11060_v62 }
 0x2cd   :  { %2622 = vmatmul.f32.gmra.mxu1 %v11060_v62 }
 0x2ce   :  { %v2106_v11 = vpop.f32.mrf.mxu0 }
 0x2cf   :  { %v2107_v55 = vadd.f32 %v2106_v11, %v6932_v63  ;;  %v1880_v40 = vpop.f32.mrf.mxu2  ;;  %v1993_v51 = vpop.f32.mrf.mxu3 }
 0x2d0   :  { %v1881_v33 = vadd.f32 %v1880_v40, %v6939_v25  ;;  %v1685_v40 = vld [vmem:[%s10853_s5 + $0xb80] sm:$0xff] }
 0x2d1   :  { %v2220_v50 = vadd.f32 %v2219_v31, %v2107_v55  ;;  %2509 = vmatmul.f32.gmra.mxu0 %v11059_v15  ;;  %2819 = vmatpush.msra.mxu3 %v1685_v40  ;;  %v11066_v40 = vld [vmem:[#allocation18_spill] sm:$0xff] }
 0x2d2   :  { %v1994_v5 = vadd.f32 %v1993_v51, %v1881_v33  ;;  %v2222_v4 = vpop.f32.mrf.mxu1  ;;  %v11063_v51 = vld [vmem:[#allocation17_spill] sm:$0xff]  ;;  %v11064_v33 = vld [vmem:[#allocation16_spill] sm:$0xff] }
 0x2d3   :  { %5270 = vst [vmem:[%s10857_s7 + $0x9a8] sm:$0xff] %v2220_v50  ;;  %v1447_v50 = vld [vmem:[%s10853_s5 + $0x410] sm:$0xff] }
 0x2d4   :  { %5269 = vst [vmem:[%s10857_s7 + $0x9a0] sm:$0xff] %v1994_v5  ;;  %2286 = vmatmul.f32.gmra.mxu2 %v11061_v53  ;;  %2399 = vmatmul.f32.gmra.mxu3 %v11062_v29  ;;  %v1686_v5 = vld [vmem:[%s10853_s5 + $0xb88] sm:$0xff] }
 0x2d5   :  { %2625 = vmatmul.f32.gmra.mxu1 %v11062_v29  ;;  %2707 = vmatpush.msra.mxu2 %v1447_v50 }
 0x2d6   :  { %v2109_v39 = vpop.f32.mrf.mxu0  ;;  %3045 = vmatpush.msra.mxu1 %v1686_v5 }
 0x2d7   :  { %v2110_v19 = vadd.f32 %v2109_v39, %v6932_v63  ;;  %v1883_v31 = vpop.f32.mrf.mxu2  ;;  %v1996_v22 = vpop.f32.mrf.mxu3 }
 0x2d8   :  { %v1884_v47 = vadd.f32 %v1883_v31, %v6939_v25 }
 0x2d9   :  { %v2223_v60 = vadd.f32 %v2222_v4, %v2110_v19  ;;  %2512 = vmatmul.f32.gmra.mxu0 %v11061_v53 }
 0x2da   :  { %v1997_v11 = vadd.f32 %v1996_v22, %v1884_v47  ;;  %v2225_v55 = vpop.f32.mrf.mxu1 }
 0x2db   :  { %5284 = vst [vmem:[%s10857_s7 + $0xa18] sm:$0xff] %v2223_v60 }
 0x2dc   :  { %5283 = vst [vmem:[%s10857_s7 + $0xa10] sm:$0xff] %v1997_v11  ;;  %2289 = vmatmul.f32.gmra.mxu2 %v11063_v51  ;;  %2402 = vmatmul.f32.gmra.mxu3 %v11064_v33  ;;  %v11065_v11 = vld [vmem:[#allocation19_spill] sm:$0xff] }
 0x2dd   :  { %2628 = vmatmul.f32.gmra.mxu1 %v11064_v33 }
 0x2de   :  { %v2112_v4 = vpop.f32.mrf.mxu0 }
 0x2df   :  { %v2113_v20 = vadd.f32 %v2112_v4, %v6932_v63  ;;  %v1886_v39 = vpop.f32.mrf.mxu2  ;;  %v1999_v19 = vpop.f32.mrf.mxu3 }
 0x2e0   :  { %v1887_v31 = vadd.f32 %v1886_v39, %v6939_v25 }
 0x2e1   :  { %v2226_v22 = vadd.f32 %v2225_v55, %v2113_v20  ;;  %2515 = vmatmul.f32.gmra.mxu0 %v11063_v51  ;;  %v1462_v55 = vld [vmem:[%s10853_s5 + $0x488] sm:$0xff] }
 0x2e2   :  { %v2000_v47 = vadd.f32 %v1999_v19, %v1887_v31  ;;  %v2228_v60 = vpop.f32.mrf.mxu1  ;;  %2932 = vmatpush.msra.mxu0 %v1462_v55  ;;  %v11067_v55 = vld [vmem:[#allocation21_spill] sm:$0xff] }
 0x2e3   :  { %5298 = vst [vmem:[%s10857_s7 + $0xa88] sm:$0xff] %v2226_v22 }
 0x2e4   :  { %5297 = vst [vmem:[%s10857_s7 + $0xa80] sm:$0xff] %v2000_v47  ;;  %2292 = vmatmul.f32.gmra.mxu2 %v11065_v11  ;;  %2405 = vmatmul.f32.gmra.mxu3 %v11066_v40  ;;  %v1671_v47 = vld [vmem:[%s10853_s5 + $0xb10] sm:$0xff] }
 0x2e5   :  { %2631 = vmatmul.f32.gmra.mxu1 %v11066_v40  ;;  %2820 = vmatpush.msra.mxu3 %v1671_v47 }
 0x2e6   :  { %v2115_v50 = vpop.f32.mrf.mxu0 }
 0x2e7   :  { %v2116_v5 = vadd.f32 %v2115_v50, %v6932_v63  ;;  %v1889_v4 = vpop.f32.mrf.mxu2  ;;  %v2002_v20 = vpop.f32.mrf.mxu3  ;;  %v11068_v50 = vld [vmem:[#allocation20_spill] sm:$0xff] }
 0x2e8   :  { %v1890_v39 = vadd.f32 %v1889_v4, %v6939_v25 }
 0x2e9   :  { %v2229_v19 = vadd.f32 %v2228_v60, %v2116_v5  ;;  %2518 = vmatmul.f32.gmra.mxu0 %v11065_v11  ;;  %v1433_v60 = vld [vmem:[%s10853_s5 + $0x3a0] sm:$0xff]  ;;  %v1672_v5 = vld [vmem:[%s10853_s5 + $0xb18] sm:$0xff] }
 0x2ea   :  { %v2003_v31 = vadd.f32 %v2002_v20, %v1890_v39  ;;  %v2231_v22 = vpop.f32.mrf.mxu1  ;;  %2708 = vmatpush.msra.mxu2 %v1433_v60  ;;  %3046 = vmatpush.msra.mxu1 %v1672_v5  ;;  %v11069_v60 = vld [vmem:[#allocation23_spill] sm:$0xff]  ;;  %v11070_v5 = vld [vmem:[#allocation22_spill] sm:$0xff] }
 0x2eb   :  { %5312 = vst [vmem:[%s10857_s7 + $0xaf8] sm:$0xff] %v2229_v19 }
 0x2ec   :  { %5311 = vst [vmem:[%s10857_s7 + $0xaf0] sm:$0xff] %v2003_v31  ;;  %2295 = vmatmul.f32.gmra.mxu2 %v11067_v55  ;;  %2408 = vmatmul.f32.gmra.mxu3 %v11068_v50 }
 0x2ed   :  { %2634 = vmatmul.f32.gmra.mxu1 %v11068_v50 }
 0x2ee   :  { %v2118_v4 = vpop.f32.mrf.mxu0 }
 0x2ef   :  { %v2119_v20 = vadd.f32 %v2118_v4, %v6932_v63  ;;  %v1892_v39 = vpop.f32.mrf.mxu2  ;;  %v2005_v19 = vpop.f32.mrf.mxu3 }
 0x2f0   :  { %v1893_v31 = vadd.f32 %v1892_v39, %v6939_v25 }
 0x2f1   :  { %v2232_v40 = vadd.f32 %v2231_v22, %v2119_v20  ;;  %2521 = vmatmul.f32.gmra.mxu0 %v11067_v55  ;;  %v1448_v22 = vld [vmem:[%s10853_s5 + $0x418] sm:$0xff] }
 0x2f2   :  { %v2006_v47 = vadd.f32 %v2005_v19, %v1893_v31  ;;  %v2234_v50 = vpop.f32.mrf.mxu1  ;;  %2933 = vmatpush.msra.mxu0 %v1448_v22  ;;  %v1657_v22 = vld [vmem:[%s10853_s5 + $0xaa0] sm:$0xff] }
 0x2f3   :  { %5326 = vst [vmem:[%s10857_s7 + $0xb68] sm:$0xff] %v2232_v40  ;;  %2821 = vmatpush.msra.mxu3 %v1657_v22 }
 0x2f4   :  { %5325 = vst [vmem:[%s10857_s7 + $0xb60] sm:$0xff] %v2006_v47  ;;  %2298 = vmatmul.f32.gmra.mxu2 %v11069_v60  ;;  %2411 = vmatmul.f32.gmra.mxu3 %v11070_v5 }
 0x2f5   :  { %2637 = vmatmul.f32.gmra.mxu1 %v11070_v5 }
 0x2f6   :  { %v2121_v4 = vpop.f32.mrf.mxu0 }
 0x2f7   :  { %v2122_v20 = vadd.f32 %v2121_v4, %v6932_v63  ;;  %v1895_v39 = vpop.f32.mrf.mxu2  ;;  %v2008_v40 = vpop.f32.mrf.mxu3  ;;  %v11071_v4 = vld [vmem:[#allocation25_spill] sm:$0xff] }
 0x2f8   :  { %v1896_v19 = vadd.f32 %v1895_v39, %v6939_v25  ;;  %v11072_v39 = vld [vmem:[#allocation24_spill] sm:$0xff] }
 0x2f9   :  { %v2235_v31 = vadd.f32 %v2234_v50, %v2122_v20  ;;  %2524 = vmatmul.f32.gmra.mxu0 %v11069_v60  ;;  %v1419_v50 = vld [vmem:[%s10853_s5 + $0x330] sm:$0xff]  ;;  %v1658_v20 = vld [vmem:[%s10853_s5 + $0xaa8] sm:$0xff] }
 0x2fa   :  { %v2009_v47 = vadd.f32 %v2008_v40, %v1896_v19  ;;  %v2237_v55 = vpop.f32.mrf.mxu1  ;;  %2709 = vmatpush.msra.mxu2 %v1419_v50  ;;  %3047 = vmatpush.msra.mxu1 %v1658_v20  ;;  %v11073_v50 = vld [vmem:[#allocation27_spill] sm:$0xff]  ;;  %v11074_v20 = vld [vmem:[#allocation26_spill] sm:$0xff] }
 0x2fb   :  { %5340 = vst [vmem:[%s10857_s7 + $0xbd8] sm:$0xff] %v2235_v31 }
 0x2fc   :  { %5339 = vst [vmem:[%s10857_s7 + $0xbd0] sm:$0xff] %v2009_v47  ;;  %2301 = vmatmul.f32.gmra.mxu2 %v11071_v4  ;;  %2414 = vmatmul.f32.gmra.mxu3 %v11072_v39 }
 0x2fd   :  { %2640 = vmatmul.f32.gmra.mxu1 %v11072_v39 }
 0x2fe   :  { %v2124_v40 = vpop.f32.mrf.mxu0 }
 0x2ff   :  { %v2125_v19 = vadd.f32 %v2124_v40, %v6932_v63  ;;  %v1898_v31 = vpop.f32.mrf.mxu2  ;;  %v2011_v47 = vpop.f32.mrf.mxu3 }
 0x300   :  { %v1899_v5 = vadd.f32 %v1898_v31, %v6939_v25 }
 0x301   :  { %v2238_v60 = vadd.f32 %v2237_v55, %v2125_v19  ;;  %2527 = vmatmul.f32.gmra.mxu0 %v11071_v4  ;;  %v1434_v55 = vld [vmem:[%s10853_s5 + $0x3a8] sm:$0xff] }
 0x302   :  { %v2012_v22 = vadd.f32 %v2011_v47, %v1899_v5  ;;  %v2240_v39 = vpop.f32.mrf.mxu1  ;;  %2934 = vmatpush.msra.mxu0 %v1434_v55  ;;  %v1643_v55 = vld [vmem:[%s10853_s5 + $0xa30] sm:$0xff] }
 0x303   :  { %5354 = vst [vmem:[%s10857_s7 + $0xc48] sm:$0xff] %v2238_v60  ;;  %2822 = vmatpush.msra.mxu3 %v1643_v55 }
 0x304   :  { %5353 = vst [vmem:[%s10857_s7 + $0xc40] sm:$0xff] %v2012_v22  ;;  %2304 = vmatmul.f32.gmra.mxu2 %v11073_v50  ;;  %2417 = vmatmul.f32.gmra.mxu3 %v11074_v20 }
 0x305   :  { %2643 = vmatmul.f32.gmra.mxu1 %v11074_v20 }
 0x306   :  { %v2127_v5 = vpop.f32.mrf.mxu0 }
 0x307   :  { %v2128_v40 = vadd.f32 %v2127_v5, %v6932_v63  ;;  %v1901_v19 = vpop.f32.mrf.mxu2  ;;  %v2014_v60 = vpop.f32.mrf.mxu3  ;;  %v11075_v5 = vld [vmem:[#allocation29_spill] sm:$0xff] }
 0x308   :  { %v1902_v31 = vadd.f32 %v1901_v19, %v6939_v25  ;;  %v11076_v19 = vld [vmem:[#allocation28_spill] sm:$0xff] }
 0x309   :  { %v2241_v47 = vadd.f32 %v2240_v39, %v2128_v40  ;;  %2530 = vmatmul.f32.gmra.mxu0 %v11073_v50  ;;  %v1405_v39 = vld [vmem:[%s10853_s5 + $0x2c0] sm:$0xff]  ;;  %v1644_v40 = vld [vmem:[%s10853_s5 + $0xa38] sm:$0xff] }
 0x30a   :  { %v2015_v22 = vadd.f32 %v2014_v60, %v1902_v31  ;;  %v2243_v4 = vpop.f32.mrf.mxu1  ;;  %2710 = vmatpush.msra.mxu2 %v1405_v39  ;;  %3048 = vmatpush.msra.mxu1 %v1644_v40  ;;  %v11077_v39 = vld [vmem:[#allocation31_spill] sm:$0xff]  ;;  %v11078_v40 = vld [vmem:[#allocation30_spill] sm:$0xff] }
 0x30b   :  { %5368 = vst [vmem:[%s10857_s7 + $0xcb8] sm:$0xff] %v2241_v47 }
 0x30c   :  { %5367 = vst [vmem:[%s10857_s7 + $0xcb0] sm:$0xff] %v2015_v22  ;;  %2307 = vmatmul.f32.gmra.mxu2 %v11075_v5  ;;  %2420 = vmatmul.f32.gmra.mxu3 %v11076_v19 }
 0x30d   :  { %2646 = vmatmul.f32.gmra.mxu1 %v11076_v19 }
 0x30e   :  { %v2130_v60 = vpop.f32.mrf.mxu0 }
 0x30f   :  { %v2131_v31 = vadd.f32 %v2130_v60, %v6932_v63  ;;  %v1904_v47 = vpop.f32.mrf.mxu2  ;;  %v2017_v22 = vpop.f32.mrf.mxu3 }
 0x310   :  { %v1905_v20 = vadd.f32 %v1904_v47, %v6939_v25 }
 0x311   :  { %v2244_v50 = vadd.f32 %v2243_v4, %v2131_v31  ;;  %2533 = vmatmul.f32.gmra.mxu0 %v11075_v5  ;;  %v1420_v4 = vld [vmem:[%s10853_s5 + $0x338] sm:$0xff] }
 0x312   :  { %v2018_v55 = vadd.f32 %v2017_v22, %v1905_v20  ;;  %v2246_v19 = vpop.f32.mrf.mxu1  ;;  %2935 = vmatpush.msra.mxu0 %v1420_v4  ;;  %v5517_v4 = vld [vmem:[%s10856_s6] sm:$0xff] }
 0x313   :  { %5382 = vst [vmem:[%s10857_s7 + $0xd28] sm:$0xff] %v2244_v50 }
 0x314   :  { %5381 = vst [vmem:[%s10857_s7 + $0xd20] sm:$0xff] %v2018_v55  ;;  %2310 = vmatmul.f32.gmra.mxu2 %v11077_v39  ;;  %2423 = vmatmul.f32.gmra.mxu3 %v11078_v40 }
 0x315   :  { %2649 = vmatmul.f32.gmra.mxu1 %v11078_v40  ;;  %v7659_v40 = vperm.slane %v5517_v4, 3 }
 0x316   :  { %v2133_v20 = vpop.f32.mrf.mxu0 }
 0x317   :  { %v2134_v60 = vadd.f32 %v2133_v20, %v6932_v63  ;;  %v1907_v31 = vpop.f32.mrf.mxu2  ;;  %v2020_v50 = vpop.f32.mrf.mxu3  ;;  %v1629_v63 = vld [vmem:[%s10853_s5 + $0x9c0] sm:$0xff]  ;;  %v1391_v20 = vld [vmem:[%s10853_s5 + $0x250] sm:$0xff] }
 0x318   :  { %v1908_v47 = vadd.f32 %v1907_v31, %v6939_v25  ;;  %v11079_v25 = vld [vmem:[#allocation32_spill] sm:$0xff]  ;;  %2823 = vmatpush.msra.mxu3 %v1629_v63  ;;  %2711 = vmatpush.msra.mxu2 %v1391_v20 }
 0x319   :  { %v2247_v22 = vadd.f32 %v2246_v19, %v2134_v60  ;;  %2536 = vmatmul.f32.gmra.mxu0 %v11077_v39  ;;  %v7669_v19 = vperm.slane %v5517_v4, 2  ;;  %v1630_v60 = vld [vmem:[%s10853_s5 + $0x9c8] sm:$0xff] }
 0x31a   :  { %v2021_v55 = vadd.f32 %v2020_v50, %v1908_v47  ;;  %v2605_v5 = vpop.f32.mrf.mxu1  ;;  %3049 = vmatpush.msra.mxu1 %v1630_v60 }
 0x31b   :  { %5396 = vst [vmem:[%s10857_s7 + $0xd98] sm:$0xff] %v2247_v22 }
 0x31c   :  { %5395 = vst [vmem:[%s10857_s7 + $0xd90] sm:$0xff] %v2021_v55  ;;  %2313 = vmatmul.f32.gmra.mxu2 %v6929_v61  ;;  %2426 = vmatmul.f32.gmra.mxu3 %v11079_v25 }
 0x31d   :  { %2652 = vmatmul.f32.gmra.mxu1 %v11079_v25 }
 0x31e   :  { %v2492_v31 = vpop.f32.mrf.mxu0 }
 0x31f   :  { %v2493_v50 = vadd.f32 %v2492_v31, %v7659_v40  ;;  %v2266_v47 = vpop.f32.mrf.mxu2  ;;  %v2379_v22 = vpop.f32.mrf.mxu3 }
 0x320   :  { %v2267_v55 = vadd.f32 %v2266_v47, %v7669_v19 }
 0x321   :  { %v2606_v4 = vadd.f32 %v2605_v5, %v2493_v50  ;;  %2539 = vmatmul.f32.gmra.mxu0 %v6929_v61  ;;  %v1406_v5 = vld [vmem:[%s10853_s5 + $0x2c8] sm:$0xff] }
 0x322   :  { %v2380_v63 = vadd.f32 %v2379_v22, %v2267_v55  ;;  %v2608_v25 = vpop.f32.mrf.mxu1  ;;  %2936 = vmatpush.msra.mxu0 %v1406_v5  ;;  %v1616_v5 = vld [vmem:[%s10853_s5 + $0x958] sm:$0xff] }
 0x323   :  { %4964 = vst [vmem:[%s10857_s7 + $0x18] sm:$0xff] %v2606_v4  ;;  %3050 = vmatpush.msra.mxu1 %v1616_v5 }
 0x324   :  { %4963 = vst [vmem:[%s10857_s7 + $0x10] sm:$0xff] %v2380_v63  ;;  %2316 = vmatmul.f32.gmra.mxu2 %v6958_v54  ;;  %2429 = vmatmul.f32.gmra.mxu3 %v6955_v17  ;;  %v1615_v63 = vld [vmem:[%s10853_s5 + $0x950] sm:$0xff] }
 0x325   :  { %2655 = vmatmul.f32.gmra.mxu1 %v6955_v17  ;;  %2824 = vmatpush.msra.mxu3 %v1615_v63 }
 0x326   :  { %v2495_v20 = vpop.f32.mrf.mxu0 }
 0x327   :  { %v2496_v60 = vadd.f32 %v2495_v20, %v7659_v40  ;;  %v2269_v31 = vpop.f32.mrf.mxu2  ;;  %v2382_v50 = vpop.f32.mrf.mxu3 }
 0x328   :  { %v2270_v47 = vadd.f32 %v2269_v31, %v7669_v19 }
 0x329   :  { %v2609_v22 = vadd.f32 %v2608_v25, %v2496_v60  ;;  %2542 = vmatmul.f32.gmra.mxu0 %v6958_v54  ;;  %v1377_v25 = vld [vmem:[%s10853_s5 + $0x1e0] sm:$0xff] }
 0x32a   :  { %v2383_v55 = vadd.f32 %v2382_v50, %v2270_v47  ;;  %v2611_v4 = vpop.f32.mrf.mxu1  ;;  %2712 = vmatpush.msra.mxu2 %v1377_v25 }
 0x32b   :  { %4978 = vst [vmem:[%s10857_s7 + $0x88] sm:$0xff] %v2609_v22 }
 0x32c   :  { %4977 = vst [vmem:[%s10857_s7 + $0x80] sm:$0xff] %v2383_v55  ;;  %2319 = vmatmul.f32.gmra.mxu2 %v6983_v44  ;;  %2432 = vmatmul.f32.gmra.mxu3 %v6980_v8 }
 0x32d   :  { %2658 = vmatmul.f32.gmra.mxu1 %v6980_v8 }
 0x32e   :  { %v2498_v20 = vpop.f32.mrf.mxu0 }
 0x32f   :  { %v2499_v60 = vadd.f32 %v2498_v20, %v7659_v40  ;;  %v2272_v31 = vpop.f32.mrf.mxu2  ;;  %v2385_v50 = vpop.f32.mrf.mxu3 }
 0x330   :  { %v2273_v47 = vadd.f32 %v2272_v31, %v7669_v19 }
 0x331   :  { %v2612_v22 = vadd.f32 %v2611_v4, %v2499_v60  ;;  %2545 = vmatmul.f32.gmra.mxu0 %v6983_v44  ;;  %v1392_v4 = vld [vmem:[%s10853_s5 + $0x258] sm:$0xff] }
 0x332   :  { %v2386_v55 = vadd.f32 %v2385_v50, %v2273_v47  ;;  %v2614_v63 = vpop.f32.mrf.mxu1  ;;  %2937 = vmatpush.msra.mxu0 %v1392_v4  ;;  %v1602_v4 = vld [vmem:[%s10853_s5 + $0x8e8] sm:$0xff] }
 0x333   :  { %4992 = vst [vmem:[%s10857_s7 + $0xf8] sm:$0xff] %v2612_v22  ;;  %3051 = vmatpush.msra.mxu1 %v1602_v4 }
 0x334   :  { %4991 = vst [vmem:[%s10857_s7 + $0xf0] sm:$0xff] %v2386_v55  ;;  %2322 = vmatmul.f32.gmra.mxu2 %v7014_v37  ;;  %2435 = vmatmul.f32.gmra.mxu3 %v7011_v38  ;;  %v1601_v55 = vld [vmem:[%s10853_s5 + $0x8e0] sm:$0xff] }
 0x335   :  { %2661 = vmatmul.f32.gmra.mxu1 %v7011_v38  ;;  %2825 = vmatpush.msra.mxu3 %v1601_v55 }
 0x336   :  { %v2501_v25 = vpop.f32.mrf.mxu0 }
 0x337   :  { %v2502_v5 = vadd.f32 %v2501_v25, %v7659_v40  ;;  %v2275_v20 = vpop.f32.mrf.mxu2  ;;  %v2388_v60 = vpop.f32.mrf.mxu3 }
 0x338   :  { %v2276_v31 = vadd.f32 %v2275_v20, %v7669_v19 }
 0x339   :  { %v2615_v50 = vadd.f32 %v2614_v63, %v2502_v5  ;;  %2548 = vmatmul.f32.gmra.mxu0 %v7014_v37  ;;  %v1363_v63 = vld [vmem:[%s10853_s5 + $0x170] sm:$0xff] }
 0x33a   :  { %v2389_v47 = vadd.f32 %v2388_v60, %v2276_v31  ;;  %v2617_v22 = vpop.f32.mrf.mxu1  ;;  %2713 = vmatpush.msra.mxu2 %v1363_v63 }
 0x33b   :  { %5006 = vst [vmem:[%s10857_s7 + $0x168] sm:$0xff] %v2615_v50 }
 0x33c   :  { %5005 = vst [vmem:[%s10857_s7 + $0x160] sm:$0xff] %v2389_v47  ;;  %2325 = vmatmul.f32.gmra.mxu2 %v7039_v12  ;;  %2438 = vmatmul.f32.gmra.mxu3 %v7036_v13 }
 0x33d   :  { %2664 = vmatmul.f32.gmra.mxu1 %v7036_v13 }
 0x33e   :  { %v2504_v25 = vpop.f32.mrf.mxu0 }
 0x33f   :  { %v2505_v5 = vadd.f32 %v2504_v25, %v7659_v40  ;;  %v2278_v20 = vpop.f32.mrf.mxu2  ;;  %v2391_v60 = vpop.f32.mrf.mxu3 }
 0x340   :  { %v2279_v31 = vadd.f32 %v2278_v20, %v7669_v19 }
 0x341   :  { %v2618_v50 = vadd.f32 %v2617_v22, %v2505_v5  ;;  %2551 = vmatmul.f32.gmra.mxu0 %v7039_v12  ;;  %v1378_v22 = vld [vmem:[%s10853_s5 + $0x1e8] sm:$0xff] }
 0x342   :  { %v2392_v47 = vadd.f32 %v2391_v60, %v2279_v31  ;;  %v2620_v55 = vpop.f32.mrf.mxu1  ;;  %2938 = vmatpush.msra.mxu0 %v1378_v22  ;;  %v1588_v22 = vld [vmem:[%s10853_s5 + $0x878] sm:$0xff] }
 0x343   :  { %5020 = vst [vmem:[%s10857_s7 + $0x1d8] sm:$0xff] %v2618_v50  ;;  %3052 = vmatpush.msra.mxu1 %v1588_v22 }
 0x344   :  { %5019 = vst [vmem:[%s10857_s7 + $0x1d0] sm:$0xff] %v2392_v47  ;;  %2328 = vmatmul.f32.gmra.mxu2 %v7070_v18  ;;  %2441 = vmatmul.f32.gmra.mxu3 %v7067_v7  ;;  %v1587_v47 = vld [vmem:[%s10853_s5 + $0x870] sm:$0xff] }
 0x345   :  { %2667 = vmatmul.f32.gmra.mxu1 %v7067_v7  ;;  %2826 = vmatpush.msra.mxu3 %v1587_v47 }
 0x346   :  { %v2507_v63 = vpop.f32.mrf.mxu0 }
 0x347   :  { %v2508_v4 = vadd.f32 %v2507_v63, %v7659_v40  ;;  %v2281_v25 = vpop.f32.mrf.mxu2  ;;  %v2394_v5 = vpop.f32.mrf.mxu3 }
 0x348   :  { %v2282_v20 = vadd.f32 %v2281_v25, %v7669_v19 }
 0x349   :  { %v2621_v60 = vadd.f32 %v2620_v55, %v2508_v4  ;;  %2554 = vmatmul.f32.gmra.mxu0 %v7070_v18  ;;  %v1349_v55 = vld [vmem:[%s10853_s5 + $0x100] sm:$0xff] }
 0x34a   :  { %v2395_v31 = vadd.f32 %v2394_v5, %v2282_v20  ;;  %v2623_v50 = vpop.f32.mrf.mxu1  ;;  %2714 = vmatpush.msra.mxu2 %v1349_v55 }
 0x34b   :  { %5034 = vst [vmem:[%s10857_s7 + $0x248] sm:$0xff] %v2621_v60 }
 0x34c   :  { %5033 = vst [vmem:[%s10857_s7 + $0x240] sm:$0xff] %v2395_v31  ;;  %2331 = vmatmul.f32.gmra.mxu2 %v7095_v24  ;;  %2444 = vmatmul.f32.gmra.mxu3 %v7092_v36 }
 0x34d   :  { %2670 = vmatmul.f32.gmra.mxu1 %v7092_v36 }
 0x34e   :  { %v2510_v63 = vpop.f32.mrf.mxu0 }
 0x34f   :  { %v2511_v4 = vadd.f32 %v2510_v63, %v7659_v40  ;;  %v2284_v25 = vpop.f32.mrf.mxu2  ;;  %v2397_v5 = vpop.f32.mrf.mxu3 }
 0x350   :  { %v2285_v20 = vadd.f32 %v2284_v25, %v7669_v19 }
 0x351   :  { %v2624_v60 = vadd.f32 %v2623_v50, %v2511_v4  ;;  %2557 = vmatmul.f32.gmra.mxu0 %v7095_v24  ;;  %v1364_v50 = vld [vmem:[%s10853_s5 + $0x178] sm:$0xff] }
 0x352   :  { %v2398_v31 = vadd.f32 %v2397_v5, %v2285_v20  ;;  %v2626_v47 = vpop.f32.mrf.mxu1  ;;  %2939 = vmatpush.msra.mxu0 %v1364_v50  ;;  %v1574_v50 = vld [vmem:[%s10853_s5 + $0x808] sm:$0xff] }
 0x353   :  { %5048 = vst [vmem:[%s10857_s7 + $0x2b8] sm:$0xff] %v2624_v60  ;;  %3053 = vmatpush.msra.mxu1 %v1574_v50 }
 0x354   :  { %5047 = vst [vmem:[%s10857_s7 + $0x2b0] sm:$0xff] %v2398_v31  ;;  %2334 = vmatmul.f32.gmra.mxu2 %v7126_v14  ;;  %2447 = vmatmul.f32.gmra.mxu3 %v7123_v48  ;;  %v1573_v31 = vld [vmem:[%s10853_s5 + $0x800] sm:$0xff] }
 0x355   :  { %2673 = vmatmul.f32.gmra.mxu1 %v7123_v48  ;;  %2827 = vmatpush.msra.mxu3 %v1573_v31 }
 0x356   :  { %v2513_v55 = vpop.f32.mrf.mxu0 }
 0x357   :  { %v2514_v22 = vadd.f32 %v2513_v55, %v7659_v40  ;;  %v2287_v63 = vpop.f32.mrf.mxu2  ;;  %v2400_v4 = vpop.f32.mrf.mxu3 }
 0x358   :  { %v2288_v25 = vadd.f32 %v2287_v63, %v7669_v19 }
 0x359   :  { %v2627_v5 = vadd.f32 %v2626_v47, %v2514_v22  ;;  %2560 = vmatmul.f32.gmra.mxu0 %v7126_v14  ;;  %v1335_v47 = vld [vmem:[%s10853_s5 + $0x90] sm:$0xff] }
 0x35a   :  { %v2401_v20 = vadd.f32 %v2400_v4, %v2288_v25  ;;  %v2629_v60 = vpop.f32.mrf.mxu1  ;;  %2715 = vmatpush.msra.mxu2 %v1335_v47 }
 0x35b   :  { %5062 = vst [vmem:[%s10857_s7 + $0x328] sm:$0xff] %v2627_v5 }
 0x35c   :  { %5061 = vst [vmem:[%s10857_s7 + $0x320] sm:$0xff] %v2401_v20  ;;  %2337 = vmatmul.f32.gmra.mxu2 %v7151_v9  ;;  %2450 = vmatmul.f32.gmra.mxu3 %v7148_v49 }
 0x35d   :  { %2676 = vmatmul.f32.gmra.mxu1 %v7148_v49 }
 0x35e   :  { %v2516_v55 = vpop.f32.mrf.mxu0 }
 0x35f   :  { %v2517_v22 = vadd.f32 %v2516_v55, %v7659_v40  ;;  %v2290_v63 = vpop.f32.mrf.mxu2  ;;  %v2403_v4 = vpop.f32.mrf.mxu3 }
 0x360   :  { %v2291_v25 = vadd.f32 %v2290_v63, %v7669_v19 }
 0x361   :  { %v2630_v5 = vadd.f32 %v2629_v60, %v2517_v22  ;;  %2563 = vmatmul.f32.gmra.mxu0 %v7151_v9  ;;  %v1350_v60 = vld [vmem:[%s10853_s5 + $0x108] sm:$0xff] }
 0x362   :  { %v2404_v20 = vadd.f32 %v2403_v4, %v2291_v25  ;;  %v2632_v31 = vpop.f32.mrf.mxu1  ;;  %2940 = vmatpush.msra.mxu0 %v1350_v60  ;;  %v1560_v60 = vld [vmem:[%s10853_s5 + $0x798] sm:$0xff] }
 0x363   :  { %5076 = vst [vmem:[%s10857_s7 + $0x398] sm:$0xff] %v2630_v5  ;;  %3054 = vmatpush.msra.mxu1 %v1560_v60 }
 0x364   :  { %5075 = vst [vmem:[%s10857_s7 + $0x390] sm:$0xff] %v2404_v20  ;;  %2340 = vmatmul.f32.gmra.mxu2 %v7182_v26  ;;  %2453 = vmatmul.f32.gmra.mxu3 %v7179_v1  ;;  %v1559_v20 = vld [vmem:[%s10853_s5 + $0x790] sm:$0xff] }
 0x365   :  { %2679 = vmatmul.f32.gmra.mxu1 %v7179_v1  ;;  %2828 = vmatpush.msra.mxu3 %v1559_v20 }
 0x366   :  { %v2519_v47 = vpop.f32.mrf.mxu0 }
 0x367   :  { %v2520_v50 = vadd.f32 %v2519_v47, %v7659_v40  ;;  %v2293_v55 = vpop.f32.mrf.mxu2  ;;  %v2406_v22 = vpop.f32.mrf.mxu3 }
 0x368   :  { %v2294_v63 = vadd.f32 %v2293_v55, %v7669_v19 }
 0x369   :  { %v2633_v4 = vadd.f32 %v2632_v31, %v2520_v50  ;;  %2566 = vmatmul.f32.gmra.mxu0 %v7182_v26  ;;  %v1321_v31 = vld [vmem:[%s10853_s5 + $0x20] sm:$0xff] }
 0x36a   :  { %v2407_v25 = vadd.f32 %v2406_v22, %v2294_v63  ;;  %v2635_v5 = vpop.f32.mrf.mxu1  ;;  %2716 = vmatpush.msra.mxu2 %v1321_v31 }
 0x36b   :  { %5090 = vst [vmem:[%s10857_s7 + $0x408] sm:$0xff] %v2633_v4 }
 0x36c   :  { %5089 = vst [vmem:[%s10857_s7 + $0x400] sm:$0xff] %v2407_v25  ;;  %2343 = vmatmul.f32.gmra.mxu2 %v7207_v32  ;;  %2456 = vmatmul.f32.gmra.mxu3 %v7204_v10 }
 0x36d   :  { %2682 = vmatmul.f32.gmra.mxu1 %v7204_v10 }
 0x36e   :  { %v2522_v47 = vpop.f32.mrf.mxu0 }
 0x36f   :  { %v2523_v50 = vadd.f32 %v2522_v47, %v7659_v40  ;;  %v2296_v55 = vpop.f32.mrf.mxu2  ;;  %v2409_v22 = vpop.f32.mrf.mxu3 }
 0x370   :  { %v2297_v63 = vadd.f32 %v2296_v55, %v7669_v19 }
 0x371   :  { %v2636_v4 = vadd.f32 %v2635_v5, %v2523_v50  ;;  %2569 = vmatmul.f32.gmra.mxu0 %v7207_v32  ;;  %v1336_v5 = vld [vmem:[%s10853_s5 + $0x98] sm:$0xff] }
 0x372   :  { %v2410_v25 = vadd.f32 %v2409_v22, %v2297_v63  ;;  %v2638_v20 = vpop.f32.mrf.mxu1  ;;  %2941 = vmatpush.msra.mxu0 %v1336_v5  ;;  %v1546_v5 = vld [vmem:[%s10853_s5 + $0x728] sm:$0xff] }
 0x373   :  { %5104 = vst [vmem:[%s10857_s7 + $0x478] sm:$0xff] %v2636_v4  ;;  %3055 = vmatpush.msra.mxu1 %v1546_v5 }
 0x374   :  { %5103 = vst [vmem:[%s10857_s7 + $0x470] sm:$0xff] %v2410_v25  ;;  %2346 = vmatmul.f32.gmra.mxu2 %v7238_v27  ;;  %2459 = vmatmul.f32.gmra.mxu3 %v7235_v52  ;;  %v1545_v25 = vld [vmem:[%s10853_s5 + $0x720] sm:$0xff] }
 0x375   :  { %2685 = vmatmul.f32.gmra.mxu1 %v7235_v52  ;;  %2829 = vmatpush.msra.mxu3 %v1545_v25 }
 0x376   :  { %v2525_v31 = vpop.f32.mrf.mxu0 }
 0x377   :  { %v2526_v60 = vadd.f32 %v2525_v31, %v7659_v40  ;;  %v2299_v47 = vpop.f32.mrf.mxu2  ;;  %v2412_v50 = vpop.f32.mrf.mxu3 }
 0x378   :  { %v2300_v55 = vadd.f32 %v2299_v47, %v7669_v19 }
 0x379   :  { %v2639_v22 = vadd.f32 %v2638_v20, %v2526_v60  ;;  %2572 = vmatmul.f32.gmra.mxu0 %v7238_v27  ;;  %v1533_v20 = vld [vmem:[%s10853_s5 + $0x6c0] sm:$0xff] }
 0x37a   :  { %v2413_v63 = vadd.f32 %v2412_v50, %v2300_v55  ;;  %v2641_v4 = vpop.f32.mrf.mxu1  ;;  %3153 = vmatpush.msrb.mxu2 %v1533_v20 }
 0x37b   :  { %5118 = vst [vmem:[%s10857_s7 + $0x4e8] sm:$0xff] %v2639_v22  ;;  %v1322_v22 = vld [vmem:[%s10853_s5 + $0x28] sm:$0xff] }
 0x37c   :  { %5117 = vst [vmem:[%s10857_s7 + $0x4e0] sm:$0xff] %v2413_v63  ;;  %2349 = vmatmul.f32.gmra.mxu2 %v7263_v16  ;;  %2462 = vmatmul.f32.gmra.mxu3 %v7260_v2 }
 0x37d   :  { %2688 = vmatmul.f32.gmra.mxu1 %v7260_v2  ;;  %2942 = vmatpush.msra.mxu0 %v1322_v22  ;;  %v1757_v22 = vld [vmem:[%s10853_s5 + $0xdc0] sm:$0xff] }
 0x37e   :  { %v2528_v31 = vpop.f32.mrf.mxu0  ;;  %3266 = vmatpush.msrb.mxu3 %v1757_v22 }
 0x37f   :  { %v2529_v60 = vadd.f32 %v2528_v31, %v7659_v40  ;;  %v2302_v47 = vpop.f32.mrf.mxu2  ;;  %v2415_v50 = vpop.f32.mrf.mxu3 }
 0x380   :  { %v2303_v55 = vadd.f32 %v2302_v47, %v7669_v19 }
 0x381   :  { %v2642_v63 = vadd.f32 %v2641_v4, %v2529_v60  ;;  %2575 = vmatmul.f32.gmra.mxu0 %v7263_v16 }
 0x382   :  { %v2416_v25 = vadd.f32 %v2415_v50, %v2303_v55  ;;  %v2644_v2 = vpop.f32.mrf.mxu1 }
 0x383   :  { %5132 = vst [vmem:[%s10857_s7 + $0x558] sm:$0xff] %v2642_v63  ;;  %v1758_v63 = vld [vmem:[%s10853_s5 + $0xdc8] sm:$0xff] }
 0x384   :  { %5131 = vst [vmem:[%s10857_s7 + $0x550] sm:$0xff] %v2416_v25  ;;  %2352 = vmatmul.f32.gmra.mxu2 %v7297_v35  ;;  %2465 = vmatmul.f32.gmra.mxu3 %v7294_v45 }
 0x385   :  { %2691 = vmatmul.f32.gmra.mxu1 %v7294_v45 }
 0x386   :  { %v2531_v4 = vpop.f32.mrf.mxu0  ;;  %3492 = vmatpush.msrb.mxu1 %v1758_v63 }
 0x387   :  { %v2532_v5 = vadd.f32 %v2531_v4, %v7659_v40  ;;  %v2305_v20 = vpop.f32.mrf.mxu2  ;;  %v2418_v31 = vpop.f32.mrf.mxu3 }
 0x388   :  { %v2306_v60 = vadd.f32 %v2305_v20, %v7669_v19 }
 0x389   :  { %v2645_v47 = vadd.f32 %v2644_v2, %v2532_v5  ;;  %2578 = vmatmul.f32.gmra.mxu0 %v7297_v35  ;;  %v1519_v2 = vld [vmem:[%s10853_s5 + $0x650] sm:$0xff] }
 0x38a   :  { %v2419_v50 = vadd.f32 %v2418_v31, %v2306_v60  ;;  %v2647_v55 = vpop.f32.mrf.mxu1  ;;  %3154 = vmatpush.msrb.mxu2 %v1519_v2 }
 0x38b   :  { %5146 = vst [vmem:[%s10857_s7 + $0x5c8] sm:$0xff] %v2645_v47 }
 0x38c   :  { %5145 = vst [vmem:[%s10857_s7 + $0x5c0] sm:$0xff] %v2419_v50  ;;  %2355 = vmatmul.f32.gmra.mxu2 %v7319_v43  ;;  %2468 = vmatmul.f32.gmra.mxu3 %v7316_v59 }
 0x38d   :  { %2694 = vmatmul.f32.gmra.mxu1 %v7316_v59 }
 0x38e   :  { %v2534_v25 = vpop.f32.mrf.mxu0 }
 0x38f   :  { %v2535_v4 = vadd.f32 %v2534_v25, %v7659_v40  ;;  %v2308_v5 = vpop.f32.mrf.mxu2  ;;  %v2421_v20 = vpop.f32.mrf.mxu3 }
 0x390   :  { %v2309_v31 = vadd.f32 %v2308_v5, %v7669_v19 }
 0x391   :  { %v2648_v60 = vadd.f32 %v2647_v55, %v2535_v4  ;;  %2581 = vmatmul.f32.gmra.mxu0 %v7319_v43  ;;  %v1534_v55 = vld [vmem:[%s10853_s5 + $0x6c8] sm:$0xff] }
 0x392   :  { %v2422_v47 = vadd.f32 %v2421_v20, %v2309_v31  ;;  %v2650_v50 = vpop.f32.mrf.mxu1  ;;  %3379 = vmatpush.msrb.mxu0 %v1534_v55 }
 0x393   :  { %5160 = vst [vmem:[%s10857_s7 + $0x638] sm:$0xff] %v2648_v60  ;;  %v1743_v60 = vld [vmem:[%s10853_s5 + $0xd50] sm:$0xff] }
 0x394   :  { %5159 = vst [vmem:[%s10857_s7 + $0x630] sm:$0xff] %v2422_v47  ;;  %2358 = vmatmul.f32.gmra.mxu2 %v7348_v21  ;;  %2471 = vmatmul.f32.gmra.mxu3 %v7345_v41  ;;  %v1505_v47 = vld [vmem:[%s10853_s5 + $0x5e0] sm:$0xff] }
 0x395   :  { %2697 = vmatmul.f32.gmra.mxu1 %v7345_v41  ;;  %3267 = vmatpush.msrb.mxu3 %v1743_v60 }
 0x396   :  { %v2537_v22 = vpop.f32.mrf.mxu0  ;;  %3155 = vmatpush.msrb.mxu2 %v1505_v47 }
 0x397   :  { %v2538_v2 = vadd.f32 %v2537_v22, %v7659_v40  ;;  %v2311_v63 = vpop.f32.mrf.mxu2  ;;  %v2424_v25 = vpop.f32.mrf.mxu3 }
 0x398   :  { %v2312_v4 = vadd.f32 %v2311_v63, %v7669_v19 }
 0x399   :  { %v2651_v5 = vadd.f32 %v2650_v50, %v2538_v2  ;;  %2584 = vmatmul.f32.gmra.mxu0 %v7348_v21  ;;  %v1744_v50 = vld [vmem:[%s10853_s5 + $0xd58] sm:$0xff] }
 0x39a   :  { %v2425_v20 = vadd.f32 %v2424_v25, %v2312_v4  ;;  %v2653_v31 = vpop.f32.mrf.mxu1  ;;  %3493 = vmatpush.msrb.mxu1 %v1744_v50 }
 0x39b   :  { %5174 = vst [vmem:[%s10857_s7 + $0x6a8] sm:$0xff] %v2651_v5 }
 0x39c   :  { %5173 = vst [vmem:[%s10857_s7 + $0x6a0] sm:$0xff] %v2425_v20  ;;  %2717 = vmatmul.f32.vlgmr.msra.gmra.mxu2 %v6496_v56  ;;  %2830 = vmatmul.f32.vlgmr.msra.gmra.mxu3 %v6493_v0 }
 0x39d   :  { %3056 = vmatmul.f32.vlgmr.msra.gmra.mxu1 %v6493_v0 }
 0x39e   :  { %v2540_v55 = vpop.f32.mrf.mxu0 }
 0x39f   :  { %v2541_v22 = vadd.f32 %v2540_v55, %v7659_v40  ;;  %v2314_v2 = vpop.f32.mrf.mxu2  ;;  %v2427_v63 = vpop.f32.mrf.mxu3 }
 0x3a0   :  { %v2315_v25 = vadd.f32 %v2314_v2, %v7669_v19 }
 0x3a1   :  { %v2654_v4 = vadd.f32 %v2653_v31, %v2541_v22  ;;  %2943 = vmatmul.f32.vlgmr.msra.gmra.mxu0 %v6496_v56  ;;  %v1520_v31 = vld [vmem:[%s10853_s5 + $0x658] sm:$0xff] }
 0x3a2   :  { %v2428_v5 = vadd.f32 %v2427_v63, %v2315_v25  ;;  %v2656_v20 = vpop.f32.mrf.mxu1  ;;  %3380 = vmatpush.msrb.mxu0 %v1520_v31 }
 0x3a3   :  { %5188 = vst [vmem:[%s10857_s7 + $0x718] sm:$0xff] %v2654_v4  ;;  %v1729_v4 = vld [vmem:[%s10853_s5 + $0xce0] sm:$0xff] }
 0x3a4   :  { %5187 = vst [vmem:[%s10857_s7 + $0x710] sm:$0xff] %v2428_v5  ;;  %2720 = vmatmul.f32.gmra.mxu2 %v11049_v30  ;;  %2833 = vmatmul.f32.gmra.mxu3 %v11050_v34  ;;  %v1491_v5 = vld [vmem:[%s10853_s5 + $0x570] sm:$0xff] }
 0x3a5   :  { %3059 = vmatmul.f32.gmra.mxu1 %v11050_v34  ;;  %3268 = vmatpush.msrb.mxu3 %v1729_v4 }
 0x3a6   :  { %v2543_v60 = vpop.f32.mrf.mxu0  ;;  %3156 = vmatpush.msrb.mxu2 %v1491_v5 }
 0x3a7   :  { %v2544_v47 = vadd.f32 %v2543_v60, %v7659_v40  ;;  %v2317_v50 = vpop.f32.mrf.mxu2  ;;  %v2430_v55 = vpop.f32.mrf.mxu3 }
 0x3a8   :  { %v2318_v22 = vadd.f32 %v2317_v50, %v7669_v19 }
 0x3a9   :  { %v2657_v2 = vadd.f32 %v2656_v20, %v2544_v47  ;;  %2946 = vmatmul.f32.gmra.mxu0 %v11049_v30  ;;  %v1730_v20 = vld [vmem:[%s10853_s5 + $0xce8] sm:$0xff] }
 0x3aa   :  { %v2431_v63 = vadd.f32 %v2430_v55, %v2318_v22  ;;  %v2659_v25 = vpop.f32.mrf.mxu1  ;;  %3494 = vmatpush.msrb.mxu1 %v1730_v20 }
 0x3ab   :  { %5202 = vst [vmem:[%s10857_s7 + $0x788] sm:$0xff] %v2657_v2 }
 0x3ac   :  { %5201 = vst [vmem:[%s10857_s7 + $0x780] sm:$0xff] %v2431_v63  ;;  %2723 = vmatmul.f32.gmra.mxu2 %v11051_v46  ;;  %2836 = vmatmul.f32.gmra.mxu3 %v11052_v6 }
 0x3ad   :  { %3062 = vmatmul.f32.gmra.mxu1 %v11052_v6 }
 0x3ae   :  { %v2546_v31 = vpop.f32.mrf.mxu0 }
 0x3af   :  { %v2547_v60 = vadd.f32 %v2546_v31, %v7659_v40  ;;  %v2320_v47 = vpop.f32.mrf.mxu2  ;;  %v2433_v50 = vpop.f32.mrf.mxu3 }
 0x3b0   :  { %v2321_v55 = vadd.f32 %v2320_v47, %v7669_v19 }
 0x3b1   :  { %v2660_v22 = vadd.f32 %v2659_v25, %v2547_v60  ;;  %2949 = vmatmul.f32.gmra.mxu0 %v11051_v46  ;;  %v1506_v25 = vld [vmem:[%s10853_s5 + $0x5e8] sm:$0xff] }
 0x3b2   :  { %v2434_v2 = vadd.f32 %v2433_v50, %v2321_v55  ;;  %v2662_v63 = vpop.f32.mrf.mxu1  ;;  %3381 = vmatpush.msrb.mxu0 %v1506_v25 }
 0x3b3   :  { %5216 = vst [vmem:[%s10857_s7 + $0x7f8] sm:$0xff] %v2660_v22  ;;  %v1715_v22 = vld [vmem:[%s10853_s5 + $0xc70] sm:$0xff] }
 0x3b4   :  { %5215 = vst [vmem:[%s10857_s7 + $0x7f0] sm:$0xff] %v2434_v2  ;;  %2726 = vmatmul.f32.gmra.mxu2 %v11053_v23  ;;  %2839 = vmatmul.f32.gmra.mxu3 %v11054_v28  ;;  %v1477_v2 = vld [vmem:[%s10853_s5 + $0x500] sm:$0xff] }
 0x3b5   :  { %3065 = vmatmul.f32.gmra.mxu1 %v11054_v28  ;;  %3269 = vmatpush.msrb.mxu3 %v1715_v22 }
 0x3b6   :  { %v2549_v4 = vpop.f32.mrf.mxu0  ;;  %3157 = vmatpush.msrb.mxu2 %v1477_v2 }
 0x3b7   :  { %v2550_v5 = vadd.f32 %v2549_v4, %v7659_v40  ;;  %v2323_v20 = vpop.f32.mrf.mxu2  ;;  %v2436_v31 = vpop.f32.mrf.mxu3 }
 0x3b8   :  { %v2324_v60 = vadd.f32 %v2323_v20, %v7669_v19 }
 0x3b9   :  { %v2663_v47 = vadd.f32 %v2662_v63, %v2550_v5  ;;  %2952 = vmatmul.f32.gmra.mxu0 %v11053_v23  ;;  %v1716_v63 = vld [vmem:[%s10853_s5 + $0xc78] sm:$0xff] }
 0x3ba   :  { %v2437_v50 = vadd.f32 %v2436_v31, %v2324_v60  ;;  %v2665_v55 = vpop.f32.mrf.mxu1  ;;  %3495 = vmatpush.msrb.mxu1 %v1716_v63 }
 0x3bb   :  { %5230 = vst [vmem:[%s10857_s7 + $0x868] sm:$0xff] %v2663_v47 }
 0x3bc   :  { %5229 = vst [vmem:[%s10857_s7 + $0x860] sm:$0xff] %v2437_v50  ;;  %2729 = vmatmul.f32.gmra.mxu2 %v11055_v3  ;;  %2842 = vmatmul.f32.gmra.mxu3 %v11056_v57 }
 0x3bd   :  { %3068 = vmatmul.f32.gmra.mxu1 %v11056_v57 }
 0x3be   :  { %v2552_v25 = vpop.f32.mrf.mxu0 }
 0x3bf   :  { %v2553_v4 = vadd.f32 %v2552_v25, %v7659_v40  ;;  %v2326_v5 = vpop.f32.mrf.mxu2  ;;  %v2439_v20 = vpop.f32.mrf.mxu3 }
 0x3c0   :  { %v2327_v31 = vadd.f32 %v2326_v5, %v7669_v19 }
 0x3c1   :  { %v2666_v60 = vadd.f32 %v2665_v55, %v2553_v4  ;;  %2955 = vmatmul.f32.gmra.mxu0 %v11055_v3  ;;  %v1492_v55 = vld [vmem:[%s10853_s5 + $0x578] sm:$0xff] }
 0x3c2   :  { %v2440_v47 = vadd.f32 %v2439_v20, %v2327_v31  ;;  %v2668_v50 = vpop.f32.mrf.mxu1  ;;  %3382 = vmatpush.msrb.mxu0 %v1492_v55 }
 0x3c3   :  { %5244 = vst [vmem:[%s10857_s7 + $0x8d8] sm:$0xff] %v2666_v60  ;;  %v1701_v60 = vld [vmem:[%s10853_s5 + $0xc00] sm:$0xff] }
 0x3c4   :  { %5243 = vst [vmem:[%s10857_s7 + $0x8d0] sm:$0xff] %v2440_v47  ;;  %2732 = vmatmul.f32.gmra.mxu2 %v11057_v42  ;;  %2845 = vmatmul.f32.gmra.mxu3 %v11058_v58  ;;  %v1463_v47 = vld [vmem:[%s10853_s5 + $0x490] sm:$0xff] }
 0x3c5   :  { %3071 = vmatmul.f32.gmra.mxu1 %v11058_v58  ;;  %3270 = vmatpush.msrb.mxu3 %v1701_v60 }
 0x3c6   :  { %v2555_v22 = vpop.f32.mrf.mxu0  ;;  %3158 = vmatpush.msrb.mxu2 %v1463_v47 }
 0x3c7   :  { %v2556_v2 = vadd.f32 %v2555_v22, %v7659_v40  ;;  %v2329_v63 = vpop.f32.mrf.mxu2  ;;  %v2442_v25 = vpop.f32.mrf.mxu3 }
 0x3c8   :  { %v2330_v4 = vadd.f32 %v2329_v63, %v7669_v19 }
 0x3c9   :  { %v2669_v5 = vadd.f32 %v2668_v50, %v2556_v2  ;;  %2958 = vmatmul.f32.gmra.mxu0 %v11057_v42  ;;  %v1702_v50 = vld [vmem:[%s10853_s5 + $0xc08] sm:$0xff] }
 0x3ca   :  { %v2443_v20 = vadd.f32 %v2442_v25, %v2330_v4  ;;  %v2671_v31 = vpop.f32.mrf.mxu1  ;;  %3496 = vmatpush.msrb.mxu1 %v1702_v50 }
 0x3cb   :  { %5258 = vst [vmem:[%s10857_s7 + $0x948] sm:$0xff] %v2669_v5 }
 0x3cc   :  { %5257 = vst [vmem:[%s10857_s7 + $0x940] sm:$0xff] %v2443_v20  ;;  %2735 = vmatmul.f32.gmra.mxu2 %v11059_v15  ;;  %2848 = vmatmul.f32.gmra.mxu3 %v11060_v62 }
 0x3cd   :  { %3074 = vmatmul.f32.gmra.mxu1 %v11060_v62 }
 0x3ce   :  { %v2558_v55 = vpop.f32.mrf.mxu0 }
 0x3cf   :  { %v2559_v22 = vadd.f32 %v2558_v55, %v7659_v40  ;;  %v2332_v2 = vpop.f32.mrf.mxu2  ;;  %v2445_v63 = vpop.f32.mrf.mxu3 }
 0x3d0   :  { %v2333_v25 = vadd.f32 %v2332_v2, %v7669_v19 }
 0x3d1   :  { %v2672_v4 = vadd.f32 %v2671_v31, %v2559_v22  ;;  %2961 = vmatmul.f32.gmra.mxu0 %v11059_v15  ;;  %v1478_v31 = vld [vmem:[%s10853_s5 + $0x508] sm:$0xff] }
 0x3d2   :  { %v2446_v5 = vadd.f32 %v2445_v63, %v2333_v25  ;;  %v2674_v20 = vpop.f32.mrf.mxu1  ;;  %3383 = vmatpush.msrb.mxu0 %v1478_v31 }
 0x3d3   :  { %5272 = vst [vmem:[%s10857_s7 + $0x9b8] sm:$0xff] %v2672_v4  ;;  %v1687_v4 = vld [vmem:[%s10853_s5 + $0xb90] sm:$0xff] }
 0x3d4   :  { %5271 = vst [vmem:[%s10857_s7 + $0x9b0] sm:$0xff] %v2446_v5  ;;  %2738 = vmatmul.f32.gmra.mxu2 %v11061_v53  ;;  %2851 = vmatmul.f32.gmra.mxu3 %v11062_v29  ;;  %v1449_v5 = vld [vmem:[%s10853_s5 + $0x420] sm:$0xff] }
 0x3d5   :  { %3077 = vmatmul.f32.gmra.mxu1 %v11062_v29  ;;  %3271 = vmatpush.msrb.mxu3 %v1687_v4  ;;  %v11080_v4 = vld [vmem:[#allocation18_spill] sm:$0xff] }
 0x3d6   :  { %v2561_v60 = vpop.f32.mrf.mxu0  ;;  %3159 = vmatpush.msrb.mxu2 %v1449_v5 }
 0x3d7   :  { %v2562_v47 = vadd.f32 %v2561_v60, %v7659_v40  ;;  %v2335_v50 = vpop.f32.mrf.mxu2  ;;  %v2448_v55 = vpop.f32.mrf.mxu3 }
 0x3d8   :  { %v2336_v22 = vadd.f32 %v2335_v50, %v7669_v19 }
 0x3d9   :  { %v2675_v2 = vadd.f32 %v2674_v20, %v2562_v47  ;;  %2964 = vmatmul.f32.gmra.mxu0 %v11061_v53  ;;  %v1688_v20 = vld [vmem:[%s10853_s5 + $0xb98] sm:$0xff] }
 0x3da   :  { %v2449_v63 = vadd.f32 %v2448_v55, %v2336_v22  ;;  %v2677_v25 = vpop.f32.mrf.mxu1  ;;  %3497 = vmatpush.msrb.mxu1 %v1688_v20 }
 0x3db   :  { %5286 = vst [vmem:[%s10857_s7 + $0xa28] sm:$0xff] %v2675_v2 }
 0x3dc   :  { %5285 = vst [vmem:[%s10857_s7 + $0xa20] sm:$0xff] %v2449_v63  ;;  %2741 = vmatmul.f32.gmra.mxu2 %v11063_v51  ;;  %2854 = vmatmul.f32.gmra.mxu3 %v11064_v33 }
 0x3dd   :  { %3080 = vmatmul.f32.gmra.mxu1 %v11064_v33 }
 0x3de   :  { %v2564_v31 = vpop.f32.mrf.mxu0 }
 0x3df   :  { %v2565_v60 = vadd.f32 %v2564_v31, %v7659_v40  ;;  %v2338_v47 = vpop.f32.mrf.mxu2  ;;  %v2451_v50 = vpop.f32.mrf.mxu3 }
 0x3e0   :  { %v2339_v55 = vadd.f32 %v2338_v47, %v7669_v19 }
 0x3e1   :  { %v2678_v22 = vadd.f32 %v2677_v25, %v2565_v60  ;;  %2967 = vmatmul.f32.gmra.mxu0 %v11063_v51  ;;  %v1464_v25 = vld [vmem:[%s10853_s5 + $0x498] sm:$0xff] }
 0x3e2   :  { %v2452_v2 = vadd.f32 %v2451_v50, %v2339_v55  ;;  %v2680_v63 = vpop.f32.mrf.mxu1  ;;  %3384 = vmatpush.msrb.mxu0 %v1464_v25  ;;  %v11081_v25 = vld [vmem:[#allocation21_spill] sm:$0xff] }
 0x3e3   :  { %5300 = vst [vmem:[%s10857_s7 + $0xa98] sm:$0xff] %v2678_v22 }
 0x3e4   :  { %5299 = vst [vmem:[%s10857_s7 + $0xa90] sm:$0xff] %v2452_v2  ;;  %2744 = vmatmul.f32.gmra.mxu2 %v11065_v11  ;;  %2857 = vmatmul.f32.gmra.mxu3 %v11080_v4  ;;  %v1673_v2 = vld [vmem:[%s10853_s5 + $0xb20] sm:$0xff] }
 0x3e5   :  { %3083 = vmatmul.f32.gmra.mxu1 %v11080_v4  ;;  %3272 = vmatpush.msrb.mxu3 %v1673_v2 }
 0x3e6   :  { %v2567_v5 = vpop.f32.mrf.mxu0 }
 0x3e7   :  { %v2568_v20 = vadd.f32 %v2567_v5, %v7659_v40  ;;  %v2341_v31 = vpop.f32.mrf.mxu2  ;;  %v2454_v60 = vpop.f32.mrf.mxu3  ;;  %v11082_v5 = vld [vmem:[#allocation20_spill] sm:$0xff] }
 0x3e8   :  { %v2342_v47 = vadd.f32 %v2341_v31, %v7669_v19 }
 0x3e9   :  { %v2681_v50 = vadd.f32 %v2680_v63, %v2568_v20  ;;  %2970 = vmatmul.f32.gmra.mxu0 %v11065_v11  ;;  %v1435_v63 = vld [vmem:[%s10853_s5 + $0x3b0] sm:$0xff]  ;;  %v1674_v20 = vld [vmem:[%s10853_s5 + $0xb28] sm:$0xff] }
 0x3ea   :  { %v2455_v55 = vadd.f32 %v2454_v60, %v2342_v47  ;;  %v2683_v22 = vpop.f32.mrf.mxu1  ;;  %3160 = vmatpush.msrb.mxu2 %v1435_v63  ;;  %3498 = vmatpush.msrb.mxu1 %v1674_v20  ;;  %v11083_v63 = vld [vmem:[#allocation23_spill] sm:$0xff]  ;;  %v11084_v20 = vld [vmem:[#allocation22_spill] sm:$0xff] }
 0x3eb   :  { %5314 = vst [vmem:[%s10857_s7 + $0xb08] sm:$0xff] %v2681_v50 }
 0x3ec   :  { %5313 = vst [vmem:[%s10857_s7 + $0xb00] sm:$0xff] %v2455_v55  ;;  %2747 = vmatmul.f32.gmra.mxu2 %v11081_v25  ;;  %2860 = vmatmul.f32.gmra.mxu3 %v11082_v5 }
 0x3ed   :  { %3086 = vmatmul.f32.gmra.mxu1 %v11082_v5 }
 0x3ee   :  { %v2570_v31 = vpop.f32.mrf.mxu0 }
 0x3ef   :  { %v2571_v60 = vadd.f32 %v2570_v31, %v7659_v40  ;;  %v2344_v47 = vpop.f32.mrf.mxu2  ;;  %v2457_v50 = vpop.f32.mrf.mxu3 }
 0x3f0   :  { %v2345_v55 = vadd.f32 %v2344_v47, %v7669_v19 }
 0x3f1   :  { %v2684_v4 = vadd.f32 %v2683_v22, %v2571_v60  ;;  %2973 = vmatmul.f32.gmra.mxu0 %v11081_v25  ;;  %v1450_v22 = vld [vmem:[%s10853_s5 + $0x428] sm:$0xff] }
 0x3f2   :  { %v2458_v2 = vadd.f32 %v2457_v50, %v2345_v55  ;;  %v2686_v5 = vpop.f32.mrf.mxu1  ;;  %3385 = vmatpush.msrb.mxu0 %v1450_v22  ;;  %v1659_v22 = vld [vmem:[%s10853_s5 + $0xab0] sm:$0xff] }
 0x3f3   :  { %5328 = vst [vmem:[%s10857_s7 + $0xb78] sm:$0xff] %v2684_v4  ;;  %3273 = vmatpush.msrb.mxu3 %v1659_v22 }
 0x3f4   :  { %5327 = vst [vmem:[%s10857_s7 + $0xb70] sm:$0xff] %v2458_v2  ;;  %2750 = vmatmul.f32.gmra.mxu2 %v11083_v63  ;;  %2863 = vmatmul.f32.gmra.mxu3 %v11084_v20 }
 0x3f5   :  { %3089 = vmatmul.f32.gmra.mxu1 %v11084_v20 }
 0x3f6   :  { %v2573_v31 = vpop.f32.mrf.mxu0 }
 0x3f7   :  { %v2574_v60 = vadd.f32 %v2573_v31, %v7659_v40  ;;  %v2347_v47 = vpop.f32.mrf.mxu2  ;;  %v2460_v4 = vpop.f32.mrf.mxu3  ;;  %v11085_v31 = vld [vmem:[#allocation25_spill] sm:$0xff] }
 0x3f8   :  { %v2348_v50 = vadd.f32 %v2347_v47, %v7669_v19  ;;  %v11086_v47 = vld [vmem:[#allocation24_spill] sm:$0xff] }
 0x3f9   :  { %v2687_v55 = vadd.f32 %v2686_v5, %v2574_v60  ;;  %2976 = vmatmul.f32.gmra.mxu0 %v11083_v63  ;;  %v1421_v5 = vld [vmem:[%s10853_s5 + $0x340] sm:$0xff]  ;;  %v1660_v60 = vld [vmem:[%s10853_s5 + $0xab8] sm:$0xff] }
 0x3fa   :  { %v2461_v2 = vadd.f32 %v2460_v4, %v2348_v50  ;;  %v2689_v25 = vpop.f32.mrf.mxu1  ;;  %3161 = vmatpush.msrb.mxu2 %v1421_v5  ;;  %3499 = vmatpush.msrb.mxu1 %v1660_v60  ;;  %v11087_v5 = vld [vmem:[#allocation27_spill] sm:$0xff]  ;;  %v11088_v60 = vld [vmem:[#allocation26_spill] sm:$0xff] }
 0x3fb   :  { %5342 = vst [vmem:[%s10857_s7 + $0xbe8] sm:$0xff] %v2687_v55 }
 0x3fc   :  { %5341 = vst [vmem:[%s10857_s7 + $0xbe0] sm:$0xff] %v2461_v2  ;;  %2753 = vmatmul.f32.gmra.mxu2 %v11085_v31  ;;  %2866 = vmatmul.f32.gmra.mxu3 %v11086_v47 }
 0x3fd   :  { %3092 = vmatmul.f32.gmra.mxu1 %v11086_v47 }
 0x3fe   :  { %v2576_v4 = vpop.f32.mrf.mxu0 }
 0x3ff   :  { %v2577_v50 = vadd.f32 %v2576_v4, %v7659_v40  ;;  %v2350_v55 = vpop.f32.mrf.mxu2  ;;  %v2463_v2 = vpop.f32.mrf.mxu3 }
 0x400   :  { %v2351_v20 = vadd.f32 %v2350_v55, %v7669_v19 }
 0x401   :  { %v2690_v63 = vadd.f32 %v2689_v25, %v2577_v50  ;;  %2979 = vmatmul.f32.gmra.mxu0 %v11085_v31  ;;  %v1436_v25 = vld [vmem:[%s10853_s5 + $0x3b8] sm:$0xff] }
 0x402   :  { %v2464_v22 = vadd.f32 %v2463_v2, %v2351_v20  ;;  %v2692_v47 = vpop.f32.mrf.mxu1  ;;  %3386 = vmatpush.msrb.mxu0 %v1436_v25  ;;  %v1645_v25 = vld [vmem:[%s10853_s5 + $0xa40] sm:$0xff] }
 0x403   :  { %5356 = vst [vmem:[%s10857_s7 + $0xc58] sm:$0xff] %v2690_v63  ;;  %3274 = vmatpush.msrb.mxu3 %v1645_v25 }
 0x404   :  { %5355 = vst [vmem:[%s10857_s7 + $0xc50] sm:$0xff] %v2464_v22  ;;  %2756 = vmatmul.f32.gmra.mxu2 %v11087_v5  ;;  %2869 = vmatmul.f32.gmra.mxu3 %v11088_v60 }
 0x405   :  { %3095 = vmatmul.f32.gmra.mxu1 %v11088_v60 }
 0x406   :  { %v2579_v20 = vpop.f32.mrf.mxu0 }
 0x407   :  { %v2580_v4 = vadd.f32 %v2579_v20, %v7659_v40  ;;  %v2353_v50 = vpop.f32.mrf.mxu2  ;;  %v2466_v63 = vpop.f32.mrf.mxu3  ;;  %v11089_v20 = vld [vmem:[#allocation29_spill] sm:$0xff] }
 0x408   :  { %v2354_v55 = vadd.f32 %v2353_v50, %v7669_v19  ;;  %v11090_v50 = vld [vmem:[#allocation28_spill] sm:$0xff] }
 0x409   :  { %v2693_v2 = vadd.f32 %v2692_v47, %v2580_v4  ;;  %2982 = vmatmul.f32.gmra.mxu0 %v11087_v5  ;;  %v1407_v47 = vld [vmem:[%s10853_s5 + $0x2d0] sm:$0xff]  ;;  %v1646_v4 = vld [vmem:[%s10853_s5 + $0xa48] sm:$0xff] }
 0x40a   :  { %v2467_v22 = vadd.f32 %v2466_v63, %v2354_v55  ;;  %v2695_v31 = vpop.f32.mrf.mxu1  ;;  %3162 = vmatpush.msrb.mxu2 %v1407_v47  ;;  %3500 = vmatpush.msrb.mxu1 %v1646_v4  ;;  %v11091_v47 = vld [vmem:[#allocation30_spill] sm:$0xff] }
 0x40b   :  { %5370 = vst [vmem:[%s10857_s7 + $0xcc8] sm:$0xff] %v2693_v2 }
 0x40c   :  { %5369 = vst [vmem:[%s10857_s7 + $0xcc0] sm:$0xff] %v2467_v22  ;;  %2759 = vmatmul.f32.gmra.mxu2 %v11089_v20  ;;  %2872 = vmatmul.f32.gmra.mxu3 %v11090_v50 }
 0x40d   :  { %3098 = vmatmul.f32.gmra.mxu1 %v11090_v50 }
 0x40e   :  { %v2582_v63 = vpop.f32.mrf.mxu0 }
 0x40f   :  { %v2583_v55 = vadd.f32 %v2582_v63, %v7659_v40  ;;  %v2356_v2 = vpop.f32.mrf.mxu2  ;;  %v2469_v22 = vpop.f32.mrf.mxu3 }
 0x410   :  { %v2357_v60 = vadd.f32 %v2356_v2, %v7669_v19 }
 0x411   :  { %v2696_v5 = vadd.f32 %v2695_v31, %v2583_v55  ;;  %2985 = vmatmul.f32.gmra.mxu0 %v11089_v20  ;;  %v1422_v31 = vld [vmem:[%s10853_s5 + $0x348] sm:$0xff] }
 0x412   :  { %v2470_v25 = vadd.f32 %v2469_v22, %v2357_v60  ;;  %v2698_v50 = vpop.f32.mrf.mxu1  ;;  %3387 = vmatpush.msrb.mxu0 %v1422_v31  ;;  %v5518_v31 = vld [vmem:[%s10856_s6] sm:$0xff] }
 0x413   :  { %5384 = vst [vmem:[%s10857_s7 + $0xd38] sm:$0xff] %v2696_v5 }
 0x414   :  { %5383 = vst [vmem:[%s10857_s7 + $0xd30] sm:$0xff] %v2470_v25  ;;  %2762 = vmatmul.f32.gmra.mxu2 %v11077_v39  ;;  %2875 = vmatmul.f32.gmra.mxu3 %v11091_v47 }
 0x415   :  { %3101 = vmatmul.f32.gmra.mxu1 %v11091_v47  ;;  %v8242_v47 = vperm.slane %v5518_v31, 5 }
 0x416   :  { %v2585_v60 = vpop.f32.mrf.mxu0 }
 0x417   :  { %v2586_v4 = vadd.f32 %v2585_v60, %v7659_v40  ;;  %v2359_v63 = vpop.f32.mrf.mxu2  ;;  %v2472_v5 = vpop.f32.mrf.mxu3  ;;  %v1631_v40 = vld [vmem:[%s10853_s5 + $0x9d0] sm:$0xff]  ;;  %v1393_v60 = vld [vmem:[%s10853_s5 + $0x260] sm:$0xff] }
 0x418   :  { %v2360_v55 = vadd.f32 %v2359_v63, %v7669_v19  ;;  %v11092_v19 = vld [vmem:[#allocation32_spill] sm:$0xff]  ;;  %3275 = vmatpush.msrb.mxu3 %v1631_v40  ;;  %3163 = vmatpush.msrb.mxu2 %v1393_v60 }
 0x419   :  { %v2699_v2 = vadd.f32 %v2698_v50, %v2586_v4  ;;  %2988 = vmatmul.f32.gmra.mxu0 %v11077_v39  ;;  %v8252_v50 = vperm.slane %v5518_v31, 4  ;;  %v1632_v4 = vld [vmem:[%s10853_s5 + $0x9d8] sm:$0xff] }
 0x41a   :  { %v2473_v22 = vadd.f32 %v2472_v5, %v2360_v55  ;;  %v3057_v25 = vpop.f32.mrf.mxu1  ;;  %3501 = vmatpush.msrb.mxu1 %v1632_v4 }
 0x41b   :  { %5398 = vst [vmem:[%s10857_s7 + $0xda8] sm:$0xff] %v2699_v2 }
 0x41c   :  { %5397 = vst [vmem:[%s10857_s7 + $0xda0] sm:$0xff] %v2473_v22  ;;  %2765 = vmatmul.f32.gmra.mxu2 %v6929_v61  ;;  %2878 = vmatmul.f32.gmra.mxu3 %v11092_v19 }
 0x41d   :  { %3104 = vmatmul.f32.gmra.mxu1 %v11092_v19 }
 0x41e   :  { %v2944_v63 = vpop.f32.mrf.mxu0 }
 0x41f   :  { %v2945_v5 = vadd.f32 %v2944_v63, %v8242_v47  ;;  %v2718_v55 = vpop.f32.mrf.mxu2  ;;  %v2831_v2 = vpop.f32.mrf.mxu3 }
 0x420   :  { %v2719_v22 = vadd.f32 %v2718_v55, %v8252_v50 }
 0x421   :  { %v3058_v31 = vadd.f32 %v3057_v25, %v2945_v5  ;;  %2991 = vmatmul.f32.gmra.mxu0 %v6929_v61  ;;  %v1408_v25 = vld [vmem:[%s10853_s5 + $0x2d8] sm:$0xff] }
 0x422   :  { %v2832_v40 = vadd.f32 %v2831_v2, %v2719_v22  ;;  %v3060_v19 = vpop.f32.mrf.mxu1  ;;  %3388 = vmatpush.msrb.mxu0 %v1408_v25  ;;  %v1618_v25 = vld [vmem:[%s10853_s5 + $0x968] sm:$0xff] }
 0x423   :  { %4966 = vst [vmem:[%s10857_s7 + $0x28] sm:$0xff] %v3058_v31  ;;  %3502 = vmatpush.msrb.mxu1 %v1618_v25 }
 0x424   :  { %4965 = vst [vmem:[%s10857_s7 + $0x20] sm:$0xff] %v2832_v40  ;;  %2768 = vmatmul.f32.gmra.mxu2 %v6958_v54  ;;  %2881 = vmatmul.f32.gmra.mxu3 %v6955_v17  ;;  %v1617_v40 = vld [vmem:[%s10853_s5 + $0x960] sm:$0xff] }
 0x425   :  { %3107 = vmatmul.f32.gmra.mxu1 %v6955_v17  ;;  %3276 = vmatpush.msrb.mxu3 %v1617_v40 }
 0x426   :  { %v2947_v60 = vpop.f32.mrf.mxu0 }
 0x427   :  { %v2948_v4 = vadd.f32 %v2947_v60, %v8242_v47  ;;  %v2721_v63 = vpop.f32.mrf.mxu2  ;;  %v2834_v5 = vpop.f32.mrf.mxu3 }
 0x428   :  { %v2722_v55 = vadd.f32 %v2721_v63, %v8252_v50 }
 0x429   :  { %v3061_v2 = vadd.f32 %v3060_v19, %v2948_v4  ;;  %2994 = vmatmul.f32.gmra.mxu0 %v6958_v54  ;;  %v1379_v19 = vld [vmem:[%s10853_s5 + $0x1f0] sm:$0xff] }
 0x42a   :  { %v2835_v22 = vadd.f32 %v2834_v5, %v2722_v55  ;;  %v3063_v31 = vpop.f32.mrf.mxu1  ;;  %3164 = vmatpush.msrb.mxu2 %v1379_v19 }
 0x42b   :  { %4980 = vst [vmem:[%s10857_s7 + $0x98] sm:$0xff] %v3061_v2 }
 0x42c   :  { %4979 = vst [vmem:[%s10857_s7 + $0x90] sm:$0xff] %v2835_v22  ;;  %2771 = vmatmul.f32.gmra.mxu2 %v6983_v44  ;;  %2884 = vmatmul.f32.gmra.mxu3 %v6980_v8 }
 0x42d   :  { %3110 = vmatmul.f32.gmra.mxu1 %v6980_v8 }
 0x42e   :  { %v2950_v60 = vpop.f32.mrf.mxu0 }
 0x42f   :  { %v2951_v4 = vadd.f32 %v2950_v60, %v8242_v47  ;;  %v2724_v63 = vpop.f32.mrf.mxu2  ;;  %v2837_v5 = vpop.f32.mrf.mxu3 }
 0x430   :  { %v2725_v55 = vadd.f32 %v2724_v63, %v8252_v50 }
 0x431   :  { %v3064_v2 = vadd.f32 %v3063_v31, %v2951_v4  ;;  %2997 = vmatmul.f32.gmra.mxu0 %v6983_v44  ;;  %v1394_v31 = vld [vmem:[%s10853_s5 + $0x268] sm:$0xff] }
 0x432   :  { %v2838_v22 = vadd.f32 %v2837_v5, %v2725_v55  ;;  %v3066_v40 = vpop.f32.mrf.mxu1  ;;  %3389 = vmatpush.msrb.mxu0 %v1394_v31  ;;  %v1604_v31 = vld [vmem:[%s10853_s5 + $0x8f8] sm:$0xff] }
 0x433   :  { %4994 = vst [vmem:[%s10857_s7 + $0x108] sm:$0xff] %v3064_v2  ;;  %3503 = vmatpush.msrb.mxu1 %v1604_v31 }
 0x434   :  { %4993 = vst [vmem:[%s10857_s7 + $0x100] sm:$0xff] %v2838_v22  ;;  %2774 = vmatmul.f32.gmra.mxu2 %v7014_v37  ;;  %2887 = vmatmul.f32.gmra.mxu3 %v7011_v38  ;;  %v1603_v22 = vld [vmem:[%s10853_s5 + $0x8f0] sm:$0xff] }
 0x435   :  { %3113 = vmatmul.f32.gmra.mxu1 %v7011_v38  ;;  %3277 = vmatpush.msrb.mxu3 %v1603_v22 }
 0x436   :  { %v2953_v19 = vpop.f32.mrf.mxu0 }
 0x437   :  { %v2954_v25 = vadd.f32 %v2953_v19, %v8242_v47  ;;  %v2727_v60 = vpop.f32.mrf.mxu2  ;;  %v2840_v4 = vpop.f32.mrf.mxu3 }
 0x438   :  { %v2728_v63 = vadd.f32 %v2727_v60, %v8252_v50 }
 0x439   :  { %v3067_v5 = vadd.f32 %v3066_v40, %v2954_v25  ;;  %3000 = vmatmul.f32.gmra.mxu0 %v7014_v37  ;;  %v1365_v40 = vld [vmem:[%s10853_s5 + $0x180] sm:$0xff] }
 0x43a   :  { %v2841_v55 = vadd.f32 %v2840_v4, %v2728_v63  ;;  %v3069_v2 = vpop.f32.mrf.mxu1  ;;  %3165 = vmatpush.msrb.mxu2 %v1365_v40 }
 0x43b   :  { %5008 = vst [vmem:[%s10857_s7 + $0x178] sm:$0xff] %v3067_v5 }
 0x43c   :  { %5007 = vst [vmem:[%s10857_s7 + $0x170] sm:$0xff] %v2841_v55  ;;  %2777 = vmatmul.f32.gmra.mxu2 %v7039_v12  ;;  %2890 = vmatmul.f32.gmra.mxu3 %v7036_v13 }
 0x43d   :  { %3116 = vmatmul.f32.gmra.mxu1 %v7036_v13 }
 0x43e   :  { %v2956_v19 = vpop.f32.mrf.mxu0 }
 0x43f   :  { %v2957_v25 = vadd.f32 %v2956_v19, %v8242_v47  ;;  %v2730_v60 = vpop.f32.mrf.mxu2  ;;  %v2843_v4 = vpop.f32.mrf.mxu3 }
 0x440   :  { %v2731_v63 = vadd.f32 %v2730_v60, %v8252_v50 }
 0x441   :  { %v3070_v5 = vadd.f32 %v3069_v2, %v2957_v25  ;;  %3003 = vmatmul.f32.gmra.mxu0 %v7039_v12  ;;  %v1380_v2 = vld [vmem:[%s10853_s5 + $0x1f8] sm:$0xff] }
 0x442   :  { %v2844_v55 = vadd.f32 %v2843_v4, %v2731_v63  ;;  %v3072_v22 = vpop.f32.mrf.mxu1  ;;  %3390 = vmatpush.msrb.mxu0 %v1380_v2  ;;  %v1590_v2 = vld [vmem:[%s10853_s5 + $0x888] sm:$0xff] }
 0x443   :  { %5022 = vst [vmem:[%s10857_s7 + $0x1e8] sm:$0xff] %v3070_v5  ;;  %3504 = vmatpush.msrb.mxu1 %v1590_v2 }
 0x444   :  { %5021 = vst [vmem:[%s10857_s7 + $0x1e0] sm:$0xff] %v2844_v55  ;;  %2780 = vmatmul.f32.gmra.mxu2 %v7070_v18  ;;  %2893 = vmatmul.f32.gmra.mxu3 %v7067_v7  ;;  %v1589_v55 = vld [vmem:[%s10853_s5 + $0x880] sm:$0xff] }
 0x445   :  { %3119 = vmatmul.f32.gmra.mxu1 %v7067_v7  ;;  %3278 = vmatpush.msrb.mxu3 %v1589_v55 }
 0x446   :  { %v2959_v40 = vpop.f32.mrf.mxu0 }
 0x447   :  { %v2960_v31 = vadd.f32 %v2959_v40, %v8242_v47  ;;  %v2733_v19 = vpop.f32.mrf.mxu2  ;;  %v2846_v25 = vpop.f32.mrf.mxu3 }
 0x448   :  { %v2734_v60 = vadd.f32 %v2733_v19, %v8252_v50 }
 0x449   :  { %v3073_v4 = vadd.f32 %v3072_v22, %v2960_v31  ;;  %3006 = vmatmul.f32.gmra.mxu0 %v7070_v18  ;;  %v1351_v22 = vld [vmem:[%s10853_s5 + $0x110] sm:$0xff] }
 0x44a   :  { %v2847_v63 = vadd.f32 %v2846_v25, %v2734_v60  ;;  %v3075_v5 = vpop.f32.mrf.mxu1  ;;  %3166 = vmatpush.msrb.mxu2 %v1351_v22 }
 0x44b   :  { %5036 = vst [vmem:[%s10857_s7 + $0x258] sm:$0xff] %v3073_v4 }
 0x44c   :  { %5035 = vst [vmem:[%s10857_s7 + $0x250] sm:$0xff] %v2847_v63  ;;  %2783 = vmatmul.f32.gmra.mxu2 %v7095_v24  ;;  %2896 = vmatmul.f32.gmra.mxu3 %v7092_v36 }
 0x44d   :  { %3122 = vmatmul.f32.gmra.mxu1 %v7092_v36 }
 0x44e   :  { %v2962_v40 = vpop.f32.mrf.mxu0 }
 0x44f   :  { %v2963_v31 = vadd.f32 %v2962_v40, %v8242_v47  ;;  %v2736_v19 = vpop.f32.mrf.mxu2  ;;  %v2849_v25 = vpop.f32.mrf.mxu3 }
 0x450   :  { %v2737_v60 = vadd.f32 %v2736_v19, %v8252_v50 }
 0x451   :  { %v3076_v4 = vadd.f32 %v3075_v5, %v2963_v31  ;;  %3009 = vmatmul.f32.gmra.mxu0 %v7095_v24  ;;  %v1366_v5 = vld [vmem:[%s10853_s5 + $0x188] sm:$0xff] }
 0x452   :  { %v2850_v63 = vadd.f32 %v2849_v25, %v2737_v60  ;;  %v3078_v55 = vpop.f32.mrf.mxu1  ;;  %3391 = vmatpush.msrb.mxu0 %v1366_v5  ;;  %v1576_v5 = vld [vmem:[%s10853_s5 + $0x818] sm:$0xff] }
 0x453   :  { %5050 = vst [vmem:[%s10857_s7 + $0x2c8] sm:$0xff] %v3076_v4  ;;  %3505 = vmatpush.msrb.mxu1 %v1576_v5 }
 0x454   :  { %5049 = vst [vmem:[%s10857_s7 + $0x2c0] sm:$0xff] %v2850_v63  ;;  %2786 = vmatmul.f32.gmra.mxu2 %v7126_v14  ;;  %2899 = vmatmul.f32.gmra.mxu3 %v7123_v48  ;;  %v1575_v63 = vld [vmem:[%s10853_s5 + $0x810] sm:$0xff] }
 0x455   :  { %3125 = vmatmul.f32.gmra.mxu1 %v7123_v48  ;;  %3279 = vmatpush.msrb.mxu3 %v1575_v63 }
 0x456   :  { %v2965_v22 = vpop.f32.mrf.mxu0 }
 0x457   :  { %v2966_v2 = vadd.f32 %v2965_v22, %v8242_v47  ;;  %v2739_v40 = vpop.f32.mrf.mxu2  ;;  %v2852_v31 = vpop.f32.mrf.mxu3 }
 0x458   :  { %v2740_v19 = vadd.f32 %v2739_v40, %v8252_v50 }
 0x459   :  { %v3079_v25 = vadd.f32 %v3078_v55, %v2966_v2  ;;  %3012 = vmatmul.f32.gmra.mxu0 %v7126_v14  ;;  %v1337_v55 = vld [vmem:[%s10853_s5 + $0xa0] sm:$0xff] }
 0x45a   :  { %v2853_v60 = vadd.f32 %v2852_v31, %v2740_v19  ;;  %v3081_v4 = vpop.f32.mrf.mxu1  ;;  %3167 = vmatpush.msrb.mxu2 %v1337_v55 }
 0x45b   :  { %5064 = vst [vmem:[%s10857_s7 + $0x338] sm:$0xff] %v3079_v25 }
 0x45c   :  { %5063 = vst [vmem:[%s10857_s7 + $0x330] sm:$0xff] %v2853_v60  ;;  %2789 = vmatmul.f32.gmra.mxu2 %v7151_v9  ;;  %2902 = vmatmul.f32.gmra.mxu3 %v7148_v49 }
 0x45d   :  { %3128 = vmatmul.f32.gmra.mxu1 %v7148_v49 }
 0x45e   :  { %v2968_v22 = vpop.f32.mrf.mxu0 }
 0x45f   :  { %v2969_v2 = vadd.f32 %v2968_v22, %v8242_v47  ;;  %v2742_v40 = vpop.f32.mrf.mxu2  ;;  %v2855_v31 = vpop.f32.mrf.mxu3 }
 0x460   :  { %v2743_v19 = vadd.f32 %v2742_v40, %v8252_v50 }
 0x461   :  { %v3082_v25 = vadd.f32 %v3081_v4, %v2969_v2  ;;  %3015 = vmatmul.f32.gmra.mxu0 %v7151_v9  ;;  %v1352_v4 = vld [vmem:[%s10853_s5 + $0x118] sm:$0xff] }
 0x462   :  { %v2856_v60 = vadd.f32 %v2855_v31, %v2743_v19  ;;  %v3084_v63 = vpop.f32.mrf.mxu1  ;;  %3392 = vmatpush.msrb.mxu0 %v1352_v4  ;;  %v1562_v4 = vld [vmem:[%s10853_s5 + $0x7a8] sm:$0xff] }
 0x463   :  { %5078 = vst [vmem:[%s10857_s7 + $0x3a8] sm:$0xff] %v3082_v25  ;;  %3506 = vmatpush.msrb.mxu1 %v1562_v4 }
 0x464   :  { %5077 = vst [vmem:[%s10857_s7 + $0x3a0] sm:$0xff] %v2856_v60  ;;  %2792 = vmatmul.f32.gmra.mxu2 %v7182_v26  ;;  %2905 = vmatmul.f32.gmra.mxu3 %v7179_v1  ;;  %v1561_v60 = vld [vmem:[%s10853_s5 + $0x7a0] sm:$0xff] }
 0x465   :  { %3131 = vmatmul.f32.gmra.mxu1 %v7179_v1  ;;  %3280 = vmatpush.msrb.mxu3 %v1561_v60 }
 0x466   :  { %v2971_v55 = vpop.f32.mrf.mxu0 }
 0x467   :  { %v2972_v5 = vadd.f32 %v2971_v55, %v8242_v47  ;;  %v2745_v22 = vpop.f32.mrf.mxu2  ;;  %v2858_v2 = vpop.f32.mrf.mxu3 }
 0x468   :  { %v2746_v40 = vadd.f32 %v2745_v22, %v8252_v50 }
 0x469   :  { %v3085_v31 = vadd.f32 %v3084_v63, %v2972_v5  ;;  %3018 = vmatmul.f32.gmra.mxu0 %v7182_v26  ;;  %v1323_v63 = vld [vmem:[%s10853_s5 + $0x30] sm:$0xff] }
 0x46a   :  { %v2859_v19 = vadd.f32 %v2858_v2, %v2746_v40  ;;  %v3087_v25 = vpop.f32.mrf.mxu1  ;;  %3168 = vmatpush.msrb.mxu2 %v1323_v63 }
 0x46b   :  { %5092 = vst [vmem:[%s10857_s7 + $0x418] sm:$0xff] %v3085_v31 }
 0x46c   :  { %5091 = vst [vmem:[%s10857_s7 + $0x410] sm:$0xff] %v2859_v19  ;;  %2795 = vmatmul.f32.gmra.mxu2 %v7207_v32  ;;  %2908 = vmatmul.f32.gmra.mxu3 %v7204_v10 }
 0x46d   :  { %3134 = vmatmul.f32.gmra.mxu1 %v7204_v10 }
 0x46e   :  { %v2974_v55 = vpop.f32.mrf.mxu0 }
 0x46f   :  { %v2975_v5 = vadd.f32 %v2974_v55, %v8242_v47  ;;  %v2748_v22 = vpop.f32.mrf.mxu2  ;;  %v2861_v2 = vpop.f32.mrf.mxu3 }
 0x470   :  { %v2749_v40 = vadd.f32 %v2748_v22, %v8252_v50 }
 0x471   :  { %v3088_v31 = vadd.f32 %v3087_v25, %v2975_v5  ;;  %3021 = vmatmul.f32.gmra.mxu0 %v7207_v32  ;;  %v1338_v25 = vld [vmem:[%s10853_s5 + $0xa8] sm:$0xff] }
 0x472   :  { %v2862_v19 = vadd.f32 %v2861_v2, %v2749_v40  ;;  %v3090_v60 = vpop.f32.mrf.mxu1  ;;  %3393 = vmatpush.msrb.mxu0 %v1338_v25  ;;  %v1548_v25 = vld [vmem:[%s10853_s5 + $0x738] sm:$0xff] }
 0x473   :  { %5106 = vst [vmem:[%s10857_s7 + $0x488] sm:$0xff] %v3088_v31  ;;  %3507 = vmatpush.msrb.mxu1 %v1548_v25 }
 0x474   :  { %5105 = vst [vmem:[%s10857_s7 + $0x480] sm:$0xff] %v2862_v19  ;;  %2798 = vmatmul.f32.gmra.mxu2 %v7238_v27  ;;  %2911 = vmatmul.f32.gmra.mxu3 %v7235_v52  ;;  %v1547_v19 = vld [vmem:[%s10853_s5 + $0x730] sm:$0xff] }
 0x475   :  { %3137 = vmatmul.f32.gmra.mxu1 %v7235_v52  ;;  %3281 = vmatpush.msrb.mxu3 %v1547_v19 }
 0x476   :  { %v2977_v63 = vpop.f32.mrf.mxu0 }
 0x477   :  { %v2978_v4 = vadd.f32 %v2977_v63, %v8242_v47  ;;  %v2751_v55 = vpop.f32.mrf.mxu2  ;;  %v2864_v5 = vpop.f32.mrf.mxu3  ;;  %v1535_v63 = vld [vmem:[%s10853_s5 + $0x6d0] sm:$0xff] }
 0x478   :  { %v2752_v22 = vadd.f32 %v2751_v55, %v8252_v50  ;;  %3605 = vmatpush.msra.mxu2 %v1535_v63 }
 0x479   :  { %v3091_v2 = vadd.f32 %v3090_v60, %v2978_v4  ;;  %3024 = vmatmul.f32.gmra.mxu0 %v7238_v27  ;;  %v11093_v60 = vld [vmem:[#allocation41_spill] sm:$0xff] }
 0x47a   :  { %v2865_v40 = vadd.f32 %v2864_v5, %v2752_v22  ;;  %v3093_v31 = vpop.f32.mrf.mxu1 }
 0x47b   :  { %5120 = vst [vmem:[%s10857_s7 + $0x4f8] sm:$0xff] %v3091_v2 }
 0x47c   :  { %5119 = vst [vmem:[%s10857_s7 + $0x4f0] sm:$0xff] %v2865_v40  ;;  %2801 = vmatmul.f32.gmra.mxu2 %v7263_v16  ;;  %2914 = vmatmul.f32.gmra.mxu3 %v11093_v60  ;;  %v1324_v40 = vld [vmem:[%s10853_s5 + $0x38] sm:$0xff] }
 0x47d   :  { %3140 = vmatmul.f32.gmra.mxu1 %v11093_v60  ;;  %3394 = vmatpush.msrb.mxu0 %v1324_v40  ;;  %v1760_v40 = vld [vmem:[%s10853_s5 + $0xdd8] sm:$0xff] }
 0x47e   :  { %v2980_v4 = vpop.f32.mrf.mxu0  ;;  %3944 = vmatpush.msra.mxu1 %v1760_v40 }
 0x47f   :  { %v2981_v55 = vadd.f32 %v2980_v4, %v8242_v47  ;;  %v2754_v5 = vpop.f32.mrf.mxu2  ;;  %v2867_v22 = vpop.f32.mrf.mxu3 }
 0x480   :  { %v2755_v2 = vadd.f32 %v2754_v5, %v8252_v50 }
 0x481   :  { %v3094_v52 = vadd.f32 %v3093_v31, %v2981_v55  ;;  %3027 = vmatmul.f32.gmra.mxu0 %v7263_v16 }
 0x482   :  { %v2868_v19 = vadd.f32 %v2867_v22, %v2755_v2  ;;  %v3096_v60 = vpop.f32.mrf.mxu1  ;;  %v1759_v2 = vld [vmem:[%s10853_s5 + $0xdd0] sm:$0xff] }
 0x483   :  { %5134 = vst [vmem:[%s10857_s7 + $0x568] sm:$0xff] %v3094_v52  ;;  %3718 = vmatpush.msra.mxu3 %v1759_v2 }
 0x484   :  { %5133 = vst [vmem:[%s10857_s7 + $0x560] sm:$0xff] %v2868_v19  ;;  %2804 = vmatmul.f32.gmra.mxu2 %v7297_v35  ;;  %2917 = vmatmul.f32.gmra.mxu3 %v7294_v45 }
 0x485   :  { %3143 = vmatmul.f32.gmra.mxu1 %v7294_v45 }
 0x486   :  { %v2983_v31 = vpop.f32.mrf.mxu0 }
 0x487   :  { %v2984_v25 = vadd.f32 %v2983_v31, %v8242_v47  ;;  %v2757_v63 = vpop.f32.mrf.mxu2  ;;  %v2870_v4 = vpop.f32.mrf.mxu3 }
 0x488   :  { %v2758_v55 = vadd.f32 %v2757_v63, %v8252_v50 }
 0x489   :  { %v3097_v5 = vadd.f32 %v3096_v60, %v2984_v25  ;;  %3030 = vmatmul.f32.gmra.mxu0 %v7297_v35  ;;  %v1521_v60 = vld [vmem:[%s10853_s5 + $0x660] sm:$0xff] }
 0x48a   :  { %v2871_v52 = vadd.f32 %v2870_v4, %v2758_v55  ;;  %v3099_v22 = vpop.f32.mrf.mxu1  ;;  %3606 = vmatpush.msra.mxu2 %v1521_v60 }
 0x48b   :  { %5148 = vst [vmem:[%s10857_s7 + $0x5d8] sm:$0xff] %v3097_v5 }
 0x48c   :  { %5147 = vst [vmem:[%s10857_s7 + $0x5d0] sm:$0xff] %v2871_v52  ;;  %2807 = vmatmul.f32.gmra.mxu2 %v7319_v43  ;;  %2920 = vmatmul.f32.gmra.mxu3 %v7316_v59 }
 0x48d   :  { %3146 = vmatmul.f32.gmra.mxu1 %v7316_v59 }
 0x48e   :  { %v2986_v19 = vpop.f32.mrf.mxu0 }
 0x48f   :  { %v2987_v31 = vadd.f32 %v2986_v19, %v8242_v47  ;;  %v2760_v25 = vpop.f32.mrf.mxu2  ;;  %v2873_v63 = vpop.f32.mrf.mxu3 }
 0x490   :  { %v2761_v4 = vadd.f32 %v2760_v25, %v8252_v50 }
 0x491   :  { %v3100_v55 = vadd.f32 %v3099_v22, %v2987_v31  ;;  %3033 = vmatmul.f32.gmra.mxu0 %v7319_v43  ;;  %v1536_v22 = vld [vmem:[%s10853_s5 + $0x6d8] sm:$0xff] }
 0x492   :  { %v2874_v5 = vadd.f32 %v2873_v63, %v2761_v4  ;;  %v3102_v52 = vpop.f32.mrf.mxu1  ;;  %3831 = vmatpush.msra.mxu0 %v1536_v22 }
 0x493   :  { %5162 = vst [vmem:[%s10857_s7 + $0x648] sm:$0xff] %v3100_v55  ;;  %v1745_v55 = vld [vmem:[%s10853_s5 + $0xd60] sm:$0xff] }
 0x494   :  { %5161 = vst [vmem:[%s10857_s7 + $0x640] sm:$0xff] %v2874_v5  ;;  %2810 = vmatmul.f32.gmra.mxu2 %v7348_v21  ;;  %2923 = vmatmul.f32.gmra.mxu3 %v7345_v41  ;;  %v1507_v5 = vld [vmem:[%s10853_s5 + $0x5f0] sm:$0xff] }
 0x495   :  { %3149 = vmatmul.f32.gmra.mxu1 %v7345_v41  ;;  %3719 = vmatpush.msra.mxu3 %v1745_v55 }
 0x496   :  { %v2989_v2 = vpop.f32.mrf.mxu0  ;;  %3607 = vmatpush.msra.mxu2 %v1507_v5 }
 0x497   :  { %v2990_v60 = vadd.f32 %v2989_v2, %v8242_v47  ;;  %v2763_v40 = vpop.f32.mrf.mxu2  ;;  %v2876_v19 = vpop.f32.mrf.mxu3 }
 0x498   :  { %v2764_v31 = vadd.f32 %v2763_v40, %v8252_v50 }
 0x499   :  { %v3103_v25 = vadd.f32 %v3102_v52, %v2990_v60  ;;  %3036 = vmatmul.f32.gmra.mxu0 %v7348_v21  ;;  %v1746_v52 = vld [vmem:[%s10853_s5 + $0xd68] sm:$0xff] }
 0x49a   :  { %v2877_v63 = vadd.f32 %v2876_v19, %v2764_v31  ;;  %v3105_v4 = vpop.f32.mrf.mxu1  ;;  %3945 = vmatpush.msra.mxu1 %v1746_v52 }
 0x49b   :  { %5176 = vst [vmem:[%s10857_s7 + $0x6b8] sm:$0xff] %v3103_v25 }
 0x49c   :  { %5175 = vst [vmem:[%s10857_s7 + $0x6b0] sm:$0xff] %v2877_v63  ;;  %3169 = vmatmul.f32.vlgmr.msrb.gmra.mxu2 %v6496_v56  ;;  %3282 = vmatmul.f32.vlgmr.msrb.gmra.mxu3 %v6493_v0 }
 0x49d   :  { %3508 = vmatmul.f32.vlgmr.msrb.gmra.mxu1 %v6493_v0 }
 0x49e   :  { %v2992_v22 = vpop.f32.mrf.mxu0 }
 0x49f   :  { %v2993_v2 = vadd.f32 %v2992_v22, %v8242_v47  ;;  %v2766_v60 = vpop.f32.mrf.mxu2  ;;  %v2879_v40 = vpop.f32.mrf.mxu3 }
 0x4a0   :  { %v2767_v19 = vadd.f32 %v2766_v60, %v8252_v50 }
 0x4a1   :  { %v3106_v31 = vadd.f32 %v3105_v4, %v2993_v2  ;;  %3395 = vmatmul.f32.vlgmr.msrb.gmra.mxu0 %v6496_v56  ;;  %v1522_v4 = vld [vmem:[%s10853_s5 + $0x668] sm:$0xff] }
 0x4a2   :  { %v2880_v25 = vadd.f32 %v2879_v40, %v2767_v19  ;;  %v3108_v63 = vpop.f32.mrf.mxu1  ;;  %3832 = vmatpush.msra.mxu0 %v1522_v4 }
 0x4a3   :  { %5190 = vst [vmem:[%s10857_s7 + $0x728] sm:$0xff] %v3106_v31  ;;  %v1731_v31 = vld [vmem:[%s10853_s5 + $0xcf0] sm:$0xff] }
 0x4a4   :  { %5189 = vst [vmem:[%s10857_s7 + $0x720] sm:$0xff] %v2880_v25  ;;  %3172 = vmatmul.f32.gmra.mxu2 %v11049_v30  ;;  %3285 = vmatmul.f32.gmra.mxu3 %v11050_v34  ;;  %v1493_v25 = vld [vmem:[%s10853_s5 + $0x580] sm:$0xff] }
 0x4a5   :  { %3511 = vmatmul.f32.gmra.mxu1 %v11050_v34  ;;  %3720 = vmatpush.msra.mxu3 %v1731_v31 }
 0x4a6   :  { %v2995_v55 = vpop.f32.mrf.mxu0  ;;  %3608 = vmatpush.msra.mxu2 %v1493_v25 }
 0x4a7   :  { %v2996_v5 = vadd.f32 %v2995_v55, %v8242_v47  ;;  %v2769_v52 = vpop.f32.mrf.mxu2  ;;  %v2882_v22 = vpop.f32.mrf.mxu3 }
 0x4a8   :  { %v2770_v2 = vadd.f32 %v2769_v52, %v8252_v50 }
 0x4a9   :  { %v3109_v60 = vadd.f32 %v3108_v63, %v2996_v5  ;;  %3398 = vmatmul.f32.gmra.mxu0 %v11049_v30  ;;  %v1732_v63 = vld [vmem:[%s10853_s5 + $0xcf8] sm:$0xff] }
 0x4aa   :  { %v2883_v40 = vadd.f32 %v2882_v22, %v2770_v2  ;;  %v3111_v19 = vpop.f32.mrf.mxu1  ;;  %3946 = vmatpush.msra.mxu1 %v1732_v63 }
 0x4ab   :  { %5204 = vst [vmem:[%s10857_s7 + $0x798] sm:$0xff] %v3109_v60 }
 0x4ac   :  { %5203 = vst [vmem:[%s10857_s7 + $0x790] sm:$0xff] %v2883_v40  ;;  %3175 = vmatmul.f32.gmra.mxu2 %v11051_v46  ;;  %3288 = vmatmul.f32.gmra.mxu3 %v11052_v6 }
 0x4ad   :  { %3514 = vmatmul.f32.gmra.mxu1 %v11052_v6 }
 0x4ae   :  { %v2998_v4 = vpop.f32.mrf.mxu0 }
 0x4af   :  { %v2999_v55 = vadd.f32 %v2998_v4, %v8242_v47  ;;  %v2772_v5 = vpop.f32.mrf.mxu2  ;;  %v2885_v52 = vpop.f32.mrf.mxu3 }
 0x4b0   :  { %v2773_v22 = vadd.f32 %v2772_v5, %v8252_v50 }
 0x4b1   :  { %v3112_v2 = vadd.f32 %v3111_v19, %v2999_v55  ;;  %3401 = vmatmul.f32.gmra.mxu0 %v11051_v46  ;;  %v1508_v19 = vld [vmem:[%s10853_s5 + $0x5f8] sm:$0xff] }
 0x4b2   :  { %v2886_v60 = vadd.f32 %v2885_v52, %v2773_v22  ;;  %v3114_v40 = vpop.f32.mrf.mxu1  ;;  %3833 = vmatpush.msra.mxu0 %v1508_v19 }
 0x4b3   :  { %5218 = vst [vmem:[%s10857_s7 + $0x808] sm:$0xff] %v3112_v2  ;;  %v1717_v2 = vld [vmem:[%s10853_s5 + $0xc80] sm:$0xff] }
 0x4b4   :  { %5217 = vst [vmem:[%s10857_s7 + $0x800] sm:$0xff] %v2886_v60  ;;  %3178 = vmatmul.f32.gmra.mxu2 %v11053_v23  ;;  %3291 = vmatmul.f32.gmra.mxu3 %v11054_v28  ;;  %v1479_v60 = vld [vmem:[%s10853_s5 + $0x510] sm:$0xff] }
 0x4b5   :  { %3517 = vmatmul.f32.gmra.mxu1 %v11054_v28  ;;  %3721 = vmatpush.msra.mxu3 %v1717_v2 }
 0x4b6   :  { %v3001_v31 = vpop.f32.mrf.mxu0  ;;  %3609 = vmatpush.msra.mxu2 %v1479_v60 }
 0x4b7   :  { %v3002_v25 = vadd.f32 %v3001_v31, %v8242_v47  ;;  %v2775_v63 = vpop.f32.mrf.mxu2  ;;  %v2888_v4 = vpop.f32.mrf.mxu3 }
 0x4b8   :  { %v2776_v55 = vadd.f32 %v2775_v63, %v8252_v50 }
 0x4b9   :  { %v3115_v5 = vadd.f32 %v3114_v40, %v3002_v25  ;;  %3404 = vmatmul.f32.gmra.mxu0 %v11053_v23  ;;  %v1718_v40 = vld [vmem:[%s10853_s5 + $0xc88] sm:$0xff] }
 0x4ba   :  { %v2889_v52 = vadd.f32 %v2888_v4, %v2776_v55  ;;  %v3117_v22 = vpop.f32.mrf.mxu1  ;;  %3947 = vmatpush.msra.mxu1 %v1718_v40 }
 0x4bb   :  { %5232 = vst [vmem:[%s10857_s7 + $0x878] sm:$0xff] %v3115_v5 }
 0x4bc   :  { %5231 = vst [vmem:[%s10857_s7 + $0x870] sm:$0xff] %v2889_v52  ;;  %3181 = vmatmul.f32.gmra.mxu2 %v11055_v3  ;;  %3294 = vmatmul.f32.gmra.mxu3 %v11056_v57 }
 0x4bd   :  { %3520 = vmatmul.f32.gmra.mxu1 %v11056_v57 }
 0x4be   :  { %v3004_v19 = vpop.f32.mrf.mxu0 }
 0x4bf   :  { %v3005_v31 = vadd.f32 %v3004_v19, %v8242_v47  ;;  %v2778_v25 = vpop.f32.mrf.mxu2  ;;  %v2891_v63 = vpop.f32.mrf.mxu3 }
 0x4c0   :  { %v2779_v4 = vadd.f32 %v2778_v25, %v8252_v50 }
 0x4c1   :  { %v3118_v55 = vadd.f32 %v3117_v22, %v3005_v31  ;;  %3407 = vmatmul.f32.gmra.mxu0 %v11055_v3  ;;  %v1494_v22 = vld [vmem:[%s10853_s5 + $0x588] sm:$0xff] }
 0x4c2   :  { %v2892_v5 = vadd.f32 %v2891_v63, %v2779_v4  ;;  %v3120_v52 = vpop.f32.mrf.mxu1  ;;  %3834 = vmatpush.msra.mxu0 %v1494_v22 }
 0x4c3   :  { %5246 = vst [vmem:[%s10857_s7 + $0x8e8] sm:$0xff] %v3118_v55  ;;  %v1703_v55 = vld [vmem:[%s10853_s5 + $0xc10] sm:$0xff] }
 0x4c4   :  { %5245 = vst [vmem:[%s10857_s7 + $0x8e0] sm:$0xff] %v2892_v5  ;;  %3184 = vmatmul.f32.gmra.mxu2 %v11057_v42  ;;  %3297 = vmatmul.f32.gmra.mxu3 %v11058_v58  ;;  %v1465_v5 = vld [vmem:[%s10853_s5 + $0x4a0] sm:$0xff] }
 0x4c5   :  { %3523 = vmatmul.f32.gmra.mxu1 %v11058_v58  ;;  %3722 = vmatpush.msra.mxu3 %v1703_v55 }
 0x4c6   :  { %v3007_v2 = vpop.f32.mrf.mxu0  ;;  %3610 = vmatpush.msra.mxu2 %v1465_v5 }
 0x4c7   :  { %v3008_v60 = vadd.f32 %v3007_v2, %v8242_v47  ;;  %v2781_v40 = vpop.f32.mrf.mxu2  ;;  %v2894_v19 = vpop.f32.mrf.mxu3 }
 0x4c8   :  { %v2782_v31 = vadd.f32 %v2781_v40, %v8252_v50 }
 0x4c9   :  { %v3121_v25 = vadd.f32 %v3120_v52, %v3008_v60  ;;  %3410 = vmatmul.f32.gmra.mxu0 %v11057_v42  ;;  %v1704_v52 = vld [vmem:[%s10853_s5 + $0xc18] sm:$0xff] }
 0x4ca   :  { %v2895_v63 = vadd.f32 %v2894_v19, %v2782_v31  ;;  %v3123_v4 = vpop.f32.mrf.mxu1  ;;  %3948 = vmatpush.msra.mxu1 %v1704_v52 }
 0x4cb   :  { %5260 = vst [vmem:[%s10857_s7 + $0x958] sm:$0xff] %v3121_v25 }
 0x4cc   :  { %5259 = vst [vmem:[%s10857_s7 + $0x950] sm:$0xff] %v2895_v63  ;;  %3187 = vmatmul.f32.gmra.mxu2 %v11059_v15  ;;  %3300 = vmatmul.f32.gmra.mxu3 %v11060_v62 }
 0x4cd   :  { %3526 = vmatmul.f32.gmra.mxu1 %v11060_v62 }
 0x4ce   :  { %v3010_v22 = vpop.f32.mrf.mxu0 }
 0x4cf   :  { %v3011_v2 = vadd.f32 %v3010_v22, %v8242_v47  ;;  %v2784_v60 = vpop.f32.mrf.mxu2  ;;  %v2897_v40 = vpop.f32.mrf.mxu3 }
 0x4d0   :  { %v2785_v19 = vadd.f32 %v2784_v60, %v8252_v50 }
 0x4d1   :  { %v3124_v31 = vadd.f32 %v3123_v4, %v3011_v2  ;;  %3413 = vmatmul.f32.gmra.mxu0 %v11059_v15  ;;  %v1480_v4 = vld [vmem:[%s10853_s5 + $0x518] sm:$0xff] }
 0x4d2   :  { %v2898_v25 = vadd.f32 %v2897_v40, %v2785_v19  ;;  %v3126_v63 = vpop.f32.mrf.mxu1  ;;  %3835 = vmatpush.msra.mxu0 %v1480_v4 }
 0x4d3   :  { %5274 = vst [vmem:[%s10857_s7 + $0x9c8] sm:$0xff] %v3124_v31  ;;  %v1689_v31 = vld [vmem:[%s10853_s5 + $0xba0] sm:$0xff] }
 0x4d4   :  { %5273 = vst [vmem:[%s10857_s7 + $0x9c0] sm:$0xff] %v2898_v25  ;;  %3190 = vmatmul.f32.gmra.mxu2 %v11061_v53  ;;  %3303 = vmatmul.f32.gmra.mxu3 %v11062_v29  ;;  %v1451_v25 = vld [vmem:[%s10853_s5 + $0x430] sm:$0xff] }
 0x4d5   :  { %3529 = vmatmul.f32.gmra.mxu1 %v11062_v29  ;;  %3723 = vmatpush.msra.mxu3 %v1689_v31  ;;  %v11094_v31 = vld [vmem:[#allocation18_spill] sm:$0xff] }
 0x4d6   :  { %v3013_v55 = vpop.f32.mrf.mxu0  ;;  %3611 = vmatpush.msra.mxu2 %v1451_v25 }
 0x4d7   :  { %v3014_v5 = vadd.f32 %v3013_v55, %v8242_v47  ;;  %v2787_v52 = vpop.f32.mrf.mxu2  ;;  %v2900_v22 = vpop.f32.mrf.mxu3 }
 0x4d8   :  { %v2788_v2 = vadd.f32 %v2787_v52, %v8252_v50 }
 0x4d9   :  { %v3127_v60 = vadd.f32 %v3126_v63, %v3014_v5  ;;  %3416 = vmatmul.f32.gmra.mxu0 %v11061_v53  ;;  %v1690_v63 = vld [vmem:[%s10853_s5 + $0xba8] sm:$0xff] }
 0x4da   :  { %v2901_v40 = vadd.f32 %v2900_v22, %v2788_v2  ;;  %v3129_v19 = vpop.f32.mrf.mxu1  ;;  %3949 = vmatpush.msra.mxu1 %v1690_v63 }
 0x4db   :  { %5288 = vst [vmem:[%s10857_s7 + $0xa38] sm:$0xff] %v3127_v60 }
 0x4dc   :  { %5287 = vst [vmem:[%s10857_s7 + $0xa30] sm:$0xff] %v2901_v40  ;;  %3193 = vmatmul.f32.gmra.mxu2 %v11063_v51  ;;  %3306 = vmatmul.f32.gmra.mxu3 %v11064_v33 }
 0x4dd   :  { %3532 = vmatmul.f32.gmra.mxu1 %v11064_v33 }
 0x4de   :  { %v3016_v4 = vpop.f32.mrf.mxu0 }
 0x4df   :  { %v3017_v55 = vadd.f32 %v3016_v4, %v8242_v47  ;;  %v2790_v5 = vpop.f32.mrf.mxu2  ;;  %v2903_v52 = vpop.f32.mrf.mxu3 }
 0x4e0   :  { %v2791_v22 = vadd.f32 %v2790_v5, %v8252_v50 }
 0x4e1   :  { %v3130_v2 = vadd.f32 %v3129_v19, %v3017_v55  ;;  %3419 = vmatmul.f32.gmra.mxu0 %v11063_v51  ;;  %v1466_v19 = vld [vmem:[%s10853_s5 + $0x4a8] sm:$0xff] }
 0x4e2   :  { %v2904_v60 = vadd.f32 %v2903_v52, %v2791_v22  ;;  %v3132_v40 = vpop.f32.mrf.mxu1  ;;  %3836 = vmatpush.msra.mxu0 %v1466_v19  ;;  %v11095_v19 = vld [vmem:[#allocation21_spill] sm:$0xff] }
 0x4e3   :  { %5302 = vst [vmem:[%s10857_s7 + $0xaa8] sm:$0xff] %v3130_v2 }
 0x4e4   :  { %5301 = vst [vmem:[%s10857_s7 + $0xaa0] sm:$0xff] %v2904_v60  ;;  %3196 = vmatmul.f32.gmra.mxu2 %v11065_v11  ;;  %3309 = vmatmul.f32.gmra.mxu3 %v11094_v31  ;;  %v1675_v60 = vld [vmem:[%s10853_s5 + $0xb30] sm:$0xff] }
 0x4e5   :  { %3535 = vmatmul.f32.gmra.mxu1 %v11094_v31  ;;  %3724 = vmatpush.msra.mxu3 %v1675_v60 }
 0x4e6   :  { %v3019_v25 = vpop.f32.mrf.mxu0 }
 0x4e7   :  { %v3020_v63 = vadd.f32 %v3019_v25, %v8242_v47  ;;  %v2793_v4 = vpop.f32.mrf.mxu2  ;;  %v2906_v55 = vpop.f32.mrf.mxu3  ;;  %v11096_v25 = vld [vmem:[#allocation20_spill] sm:$0xff] }
 0x4e8   :  { %v2794_v5 = vadd.f32 %v2793_v4, %v8252_v50 }
 0x4e9   :  { %v3133_v52 = vadd.f32 %v3132_v40, %v3020_v63  ;;  %3422 = vmatmul.f32.gmra.mxu0 %v11065_v11  ;;  %v1437_v40 = vld [vmem:[%s10853_s5 + $0x3c0] sm:$0xff]  ;;  %v1676_v63 = vld [vmem:[%s10853_s5 + $0xb38] sm:$0xff] }
 0x4ea   :  { %v2907_v22 = vadd.f32 %v2906_v55, %v2794_v5  ;;  %v3135_v2 = vpop.f32.mrf.mxu1  ;;  %3612 = vmatpush.msra.mxu2 %v1437_v40  ;;  %3950 = vmatpush.msra.mxu1 %v1676_v63  ;;  %v11097_v40 = vld [vmem:[#allocation23_spill] sm:$0xff]  ;;  %v11098_v63 = vld [vmem:[#allocation22_spill] sm:$0xff] }
 0x4eb   :  { %5316 = vst [vmem:[%s10857_s7 + $0xb18] sm:$0xff] %v3133_v52 }
 0x4ec   :  { %5315 = vst [vmem:[%s10857_s7 + $0xb10] sm:$0xff] %v2907_v22  ;;  %3199 = vmatmul.f32.gmra.mxu2 %v11095_v19  ;;  %3312 = vmatmul.f32.gmra.mxu3 %v11096_v25 }
 0x4ed   :  { %3538 = vmatmul.f32.gmra.mxu1 %v11096_v25 }
 0x4ee   :  { %v3022_v4 = vpop.f32.mrf.mxu0 }
 0x4ef   :  { %v3023_v55 = vadd.f32 %v3022_v4, %v8242_v47  ;;  %v2796_v5 = vpop.f32.mrf.mxu2  ;;  %v2909_v52 = vpop.f32.mrf.mxu3 }
 0x4f0   :  { %v2797_v22 = vadd.f32 %v2796_v5, %v8252_v50 }
 0x4f1   :  { %v3136_v31 = vadd.f32 %v3135_v2, %v3023_v55  ;;  %3425 = vmatmul.f32.gmra.mxu0 %v11095_v19  ;;  %v1452_v2 = vld [vmem:[%s10853_s5 + $0x438] sm:$0xff] }
 0x4f2   :  { %v2910_v60 = vadd.f32 %v2909_v52, %v2797_v22  ;;  %v3138_v25 = vpop.f32.mrf.mxu1  ;;  %3837 = vmatpush.msra.mxu0 %v1452_v2  ;;  %v1661_v2 = vld [vmem:[%s10853_s5 + $0xac0] sm:$0xff] }
 0x4f3   :  { %5330 = vst [vmem:[%s10857_s7 + $0xb88] sm:$0xff] %v3136_v31  ;;  %3725 = vmatpush.msra.mxu3 %v1661_v2 }
 0x4f4   :  { %5329 = vst [vmem:[%s10857_s7 + $0xb80] sm:$0xff] %v2910_v60  ;;  %3202 = vmatmul.f32.gmra.mxu2 %v11097_v40  ;;  %3315 = vmatmul.f32.gmra.mxu3 %v11098_v63 }
 0x4f5   :  { %3541 = vmatmul.f32.gmra.mxu1 %v11098_v63 }
 0x4f6   :  { %v3025_v4 = vpop.f32.mrf.mxu0 }
 0x4f7   :  { %v3026_v55 = vadd.f32 %v3025_v4, %v8242_v47  ;;  %v2799_v5 = vpop.f32.mrf.mxu2  ;;  %v2912_v31 = vpop.f32.mrf.mxu3  ;;  %v11099_v4 = vld [vmem:[#allocation25_spill] sm:$0xff] }
 0x4f8   :  { %v2800_v52 = vadd.f32 %v2799_v5, %v8252_v50  ;;  %v11100_v5 = vld [vmem:[#allocation24_spill] sm:$0xff] }
 0x4f9   :  { %v3139_v22 = vadd.f32 %v3138_v25, %v3026_v55  ;;  %3428 = vmatmul.f32.gmra.mxu0 %v11097_v40  ;;  %v1423_v25 = vld [vmem:[%s10853_s5 + $0x350] sm:$0xff]  ;;  %v1662_v55 = vld [vmem:[%s10853_s5 + $0xac8] sm:$0xff] }
 0x4fa   :  { %v2913_v60 = vadd.f32 %v2912_v31, %v2800_v52  ;;  %v3141_v19 = vpop.f32.mrf.mxu1  ;;  %3613 = vmatpush.msra.mxu2 %v1423_v25  ;;  %3951 = vmatpush.msra.mxu1 %v1662_v55  ;;  %v11101_v25 = vld [vmem:[#allocation27_spill] sm:$0xff]  ;;  %v11102_v55 = vld [vmem:[#allocation26_spill] sm:$0xff] }
 0x4fb   :  { %5344 = vst [vmem:[%s10857_s7 + $0xbf8] sm:$0xff] %v3139_v22 }
 0x4fc   :  { %5343 = vst [vmem:[%s10857_s7 + $0xbf0] sm:$0xff] %v2913_v60  ;;  %3205 = vmatmul.f32.gmra.mxu2 %v11099_v4  ;;  %3318 = vmatmul.f32.gmra.mxu3 %v11100_v5 }
 0x4fd   :  { %3544 = vmatmul.f32.gmra.mxu1 %v11100_v5 }
 0x4fe   :  { %v3028_v31 = vpop.f32.mrf.mxu0 }
 0x4ff   :  { %v3029_v52 = vadd.f32 %v3028_v31, %v8242_v47  ;;  %v2802_v22 = vpop.f32.mrf.mxu2  ;;  %v2915_v60 = vpop.f32.mrf.mxu3 }
 0x500   :  { %v2803_v63 = vadd.f32 %v2802_v22, %v8252_v50 }
 0x501   :  { %v3142_v40 = vadd.f32 %v3141_v19, %v3029_v52  ;;  %3431 = vmatmul.f32.gmra.mxu0 %v11099_v4  ;;  %v1438_v19 = vld [vmem:[%s10853_s5 + $0x3c8] sm:$0xff] }
 0x502   :  { %v2916_v2 = vadd.f32 %v2915_v60, %v2803_v63  ;;  %v3144_v5 = vpop.f32.mrf.mxu1  ;;  %3838 = vmatpush.msra.mxu0 %v1438_v19  ;;  %v1647_v19 = vld [vmem:[%s10853_s5 + $0xa50] sm:$0xff] }
 0x503   :  { %5358 = vst [vmem:[%s10857_s7 + $0xc68] sm:$0xff] %v3142_v40  ;;  %3726 = vmatpush.msra.mxu3 %v1647_v19 }
 0x504   :  { %5357 = vst [vmem:[%s10857_s7 + $0xc60] sm:$0xff] %v2916_v2  ;;  %3208 = vmatmul.f32.gmra.mxu2 %v11101_v25  ;;  %3321 = vmatmul.f32.gmra.mxu3 %v11102_v55 }
 0x505   :  { %3547 = vmatmul.f32.gmra.mxu1 %v11102_v55 }
 0x506   :  { %v3031_v63 = vpop.f32.mrf.mxu0 }
 0x507   :  { %v3032_v31 = vadd.f32 %v3031_v63, %v8242_v47  ;;  %v2805_v52 = vpop.f32.mrf.mxu2  ;;  %v2918_v40 = vpop.f32.mrf.mxu3  ;;  %v11103_v63 = vld [vmem:[#allocation28_spill] sm:$0xff] }
 0x508   :  { %v2806_v22 = vadd.f32 %v2805_v52, %v8252_v50 }
 0x509   :  { %v3145_v60 = vadd.f32 %v3144_v5, %v3032_v31  ;;  %3434 = vmatmul.f32.gmra.mxu0 %v11101_v25  ;;  %v1409_v5 = vld [vmem:[%s10853_s5 + $0x2e0] sm:$0xff]  ;;  %v1648_v31 = vld [vmem:[%s10853_s5 + $0xa58] sm:$0xff] }
 0x50a   :  { %v2919_v2 = vadd.f32 %v2918_v40, %v2806_v22  ;;  %v3147_v4 = vpop.f32.mrf.mxu1  ;;  %3614 = vmatpush.msra.mxu2 %v1409_v5  ;;  %3952 = vmatpush.msra.mxu1 %v1648_v31  ;;  %v11104_v5 = vld [vmem:[#allocation30_spill] sm:$0xff] }
 0x50b   :  { %5372 = vst [vmem:[%s10857_s7 + $0xcd8] sm:$0xff] %v3145_v60 }
 0x50c   :  { %5371 = vst [vmem:[%s10857_s7 + $0xcd0] sm:$0xff] %v2919_v2  ;;  %3211 = vmatmul.f32.gmra.mxu2 %v11089_v20  ;;  %3324 = vmatmul.f32.gmra.mxu3 %v11103_v63 }
 0x50d   :  { %3550 = vmatmul.f32.gmra.mxu1 %v11103_v63 }
 0x50e   :  { %v3034_v52 = vpop.f32.mrf.mxu0 }
 0x50f   :  { %v3035_v40 = vadd.f32 %v3034_v52, %v8242_v47  ;;  %v2808_v22 = vpop.f32.mrf.mxu2  ;;  %v2921_v60 = vpop.f32.mrf.mxu3 }
 0x510   :  { %v2809_v2 = vadd.f32 %v2808_v22, %v8252_v50 }
 0x511   :  { %v3148_v55 = vadd.f32 %v3147_v4, %v3035_v40  ;;  %3437 = vmatmul.f32.gmra.mxu0 %v11089_v20  ;;  %v1424_v4 = vld [vmem:[%s10853_s5 + $0x358] sm:$0xff] }
 0x512   :  { %v2922_v19 = vadd.f32 %v2921_v60, %v2809_v2  ;;  %v3150_v63 = vpop.f32.mrf.mxu1  ;;  %3839 = vmatpush.msra.mxu0 %v1424_v4  ;;  %v5519_v4 = vld [vmem:[%s10856_s6] sm:$0xff] }
 0x513   :  { %5386 = vst [vmem:[%s10857_s7 + $0xd48] sm:$0xff] %v3148_v55 }
 0x514   :  { %5385 = vst [vmem:[%s10857_s7 + $0xd40] sm:$0xff] %v2922_v19  ;;  %3214 = vmatmul.f32.gmra.mxu2 %v11077_v39  ;;  %3327 = vmatmul.f32.gmra.mxu3 %v11104_v5 }
 0x515   :  { %3553 = vmatmul.f32.gmra.mxu1 %v11104_v5  ;;  %v8825_v5 = vperm.slane %v5519_v4, 7 }
 0x516   :  { %v3037_v31 = vpop.f32.mrf.mxu0 }
 0x517   :  { %v3038_v52 = vadd.f32 %v3037_v31, %v8242_v47  ;;  %v2811_v40 = vpop.f32.mrf.mxu2  ;;  %v2924_v55 = vpop.f32.mrf.mxu3  ;;  %v1633_v47 = vld [vmem:[%s10853_s5 + $0x9e0] sm:$0xff]  ;;  %v1395_v31 = vld [vmem:[%s10853_s5 + $0x270] sm:$0xff] }
 0x518   :  { %v2812_v22 = vadd.f32 %v2811_v40, %v8252_v50  ;;  %v11105_v50 = vld [vmem:[#allocation32_spill] sm:$0xff]  ;;  %3727 = vmatpush.msra.mxu3 %v1633_v47  ;;  %3615 = vmatpush.msra.mxu2 %v1395_v31 }
 0x519   :  { %v3151_v60 = vadd.f32 %v3150_v63, %v3038_v52  ;;  %3440 = vmatmul.f32.gmra.mxu0 %v11077_v39  ;;  %v8835_v63 = vperm.slane %v5519_v4, 6  ;;  %v1634_v52 = vld [vmem:[%s10853_s5 + $0x9e8] sm:$0xff] }
 0x51a   :  { %v2925_v2 = vadd.f32 %v2924_v55, %v2812_v22  ;;  %v3509_v19 = vpop.f32.mrf.mxu1  ;;  %3953 = vmatpush.msra.mxu1 %v1634_v52 }
 0x51b   :  { %5400 = vst [vmem:[%s10857_s7 + $0xdb8] sm:$0xff] %v3151_v60 }
 0x51c   :  { %5399 = vst [vmem:[%s10857_s7 + $0xdb0] sm:$0xff] %v2925_v2  ;;  %3217 = vmatmul.f32.gmra.mxu2 %v6929_v61  ;;  %3330 = vmatmul.f32.gmra.mxu3 %v11105_v50 }
 0x51d   :  { %3556 = vmatmul.f32.gmra.mxu1 %v11105_v50 }
 0x51e   :  { %v3396_v40 = vpop.f32.mrf.mxu0 }
 0x51f   :  { %v3397_v55 = vadd.f32 %v3396_v40, %v8825_v5  ;;  %v3170_v22 = vpop.f32.mrf.mxu2  ;;  %v3283_v60 = vpop.f32.mrf.mxu3 }
 0x520   :  { %v3171_v2 = vadd.f32 %v3170_v22, %v8835_v63 }
 0x521   :  { %v3510_v4 = vadd.f32 %v3509_v19, %v3397_v55  ;;  %3443 = vmatmul.f32.gmra.mxu0 %v6929_v61  ;;  %v1410_v19 = vld [vmem:[%s10853_s5 + $0x2e8] sm:$0xff] }
 0x522   :  { %v3284_v47 = vadd.f32 %v3283_v60, %v3171_v2  ;;  %v3512_v50 = vpop.f32.mrf.mxu1  ;;  %3840 = vmatpush.msra.mxu0 %v1410_v19  ;;  %v1620_v19 = vld [vmem:[%s10853_s5 + $0x978] sm:$0xff] }
 0x523   :  { %4968 = vst [vmem:[%s10857_s7 + $0x38] sm:$0xff] %v3510_v4  ;;  %3954 = vmatpush.msra.mxu1 %v1620_v19 }
 0x524   :  { %4967 = vst [vmem:[%s10857_s7 + $0x30] sm:$0xff] %v3284_v47  ;;  %3220 = vmatmul.f32.gmra.mxu2 %v6958_v54  ;;  %3333 = vmatmul.f32.gmra.mxu3 %v6955_v17  ;;  %v1619_v47 = vld [vmem:[%s10853_s5 + $0x970] sm:$0xff] }
 0x525   :  { %3559 = vmatmul.f32.gmra.mxu1 %v6955_v17  ;;  %3728 = vmatpush.msra.mxu3 %v1619_v47 }
 0x526   :  { %v3399_v31 = vpop.f32.mrf.mxu0 }
 0x527   :  { %v3400_v52 = vadd.f32 %v3399_v31, %v8825_v5  ;;  %v3173_v40 = vpop.f32.mrf.mxu2  ;;  %v3286_v55 = vpop.f32.mrf.mxu3 }
 0x528   :  { %v3174_v22 = vadd.f32 %v3173_v40, %v8835_v63 }
 0x529   :  { %v3513_v60 = vadd.f32 %v3512_v50, %v3400_v52  ;;  %3446 = vmatmul.f32.gmra.mxu0 %v6958_v54  ;;  %v1381_v50 = vld [vmem:[%s10853_s5 + $0x200] sm:$0xff] }
 0x52a   :  { %v3287_v2 = vadd.f32 %v3286_v55, %v3174_v22  ;;  %v3515_v4 = vpop.f32.mrf.mxu1  ;;  %3616 = vmatpush.msra.mxu2 %v1381_v50 }
 0x52b   :  { %4982 = vst [vmem:[%s10857_s7 + $0xa8] sm:$0xff] %v3513_v60 }
 0x52c   :  { %4981 = vst [vmem:[%s10857_s7 + $0xa0] sm:$0xff] %v3287_v2  ;;  %3223 = vmatmul.f32.gmra.mxu2 %v6983_v44  ;;  %3336 = vmatmul.f32.gmra.mxu3 %v6980_v8 }
 0x52d   :  { %3562 = vmatmul.f32.gmra.mxu1 %v6980_v8 }
 0x52e   :  { %v3402_v31 = vpop.f32.mrf.mxu0 }
 0x52f   :  { %v3403_v52 = vadd.f32 %v3402_v31, %v8825_v5  ;;  %v3176_v40 = vpop.f32.mrf.mxu2  ;;  %v3289_v55 = vpop.f32.mrf.mxu3 }
 0x530   :  { %v3177_v22 = vadd.f32 %v3176_v40, %v8835_v63 }
 0x531   :  { %v3516_v60 = vadd.f32 %v3515_v4, %v3403_v52  ;;  %3449 = vmatmul.f32.gmra.mxu0 %v6983_v44  ;;  %v1396_v4 = vld [vmem:[%s10853_s5 + $0x278] sm:$0xff] }
 0x532   :  { %v3290_v2 = vadd.f32 %v3289_v55, %v3177_v22  ;;  %v3518_v47 = vpop.f32.mrf.mxu1  ;;  %3841 = vmatpush.msra.mxu0 %v1396_v4  ;;  %v1606_v4 = vld [vmem:[%s10853_s5 + $0x908] sm:$0xff] }
 0x533   :  { %4996 = vst [vmem:[%s10857_s7 + $0x118] sm:$0xff] %v3516_v60  ;;  %3955 = vmatpush.msra.mxu1 %v1606_v4 }
 0x534   :  { %4995 = vst [vmem:[%s10857_s7 + $0x110] sm:$0xff] %v3290_v2  ;;  %3226 = vmatmul.f32.gmra.mxu2 %v7014_v37  ;;  %3339 = vmatmul.f32.gmra.mxu3 %v7011_v38  ;;  %v1605_v2 = vld [vmem:[%s10853_s5 + $0x900] sm:$0xff] }
 0x535   :  { %3565 = vmatmul.f32.gmra.mxu1 %v7011_v38  ;;  %3729 = vmatpush.msra.mxu3 %v1605_v2 }
 0x536   :  { %v3405_v50 = vpop.f32.mrf.mxu0 }
 0x537   :  { %v3406_v19 = vadd.f32 %v3405_v50, %v8825_v5  ;;  %v3179_v31 = vpop.f32.mrf.mxu2  ;;  %v3292_v52 = vpop.f32.mrf.mxu3 }
 0x538   :  { %v3180_v40 = vadd.f32 %v3179_v31, %v8835_v63 }
 0x539   :  { %v3519_v55 = vadd.f32 %v3518_v47, %v3406_v19  ;;  %3452 = vmatmul.f32.gmra.mxu0 %v7014_v37  ;;  %v1367_v47 = vld [vmem:[%s10853_s5 + $0x190] sm:$0xff] }
 0x53a   :  { %v3293_v22 = vadd.f32 %v3292_v52, %v3180_v40  ;;  %v3521_v60 = vpop.f32.mrf.mxu1  ;;  %3617 = vmatpush.msra.mxu2 %v1367_v47 }
 0x53b   :  { %5010 = vst [vmem:[%s10857_s7 + $0x188] sm:$0xff] %v3519_v55 }
 0x53c   :  { %5009 = vst [vmem:[%s10857_s7 + $0x180] sm:$0xff] %v3293_v22  ;;  %3229 = vmatmul.f32.gmra.mxu2 %v7039_v12  ;;  %3342 = vmatmul.f32.gmra.mxu3 %v7036_v13 }
 0x53d   :  { %3568 = vmatmul.f32.gmra.mxu1 %v7036_v13 }
 0x53e   :  { %v3408_v50 = vpop.f32.mrf.mxu0 }
 0x53f   :  { %v3409_v19 = vadd.f32 %v3408_v50, %v8825_v5  ;;  %v3182_v31 = vpop.f32.mrf.mxu2  ;;  %v3295_v52 = vpop.f32.mrf.mxu3 }
 0x540   :  { %v3183_v40 = vadd.f32 %v3182_v31, %v8835_v63 }
 0x541   :  { %v3522_v55 = vadd.f32 %v3521_v60, %v3409_v19  ;;  %3455 = vmatmul.f32.gmra.mxu0 %v7039_v12  ;;  %v1382_v60 = vld [vmem:[%s10853_s5 + $0x208] sm:$0xff] }
 0x542   :  { %v3296_v22 = vadd.f32 %v3295_v52, %v3183_v40  ;;  %v3524_v2 = vpop.f32.mrf.mxu1  ;;  %3842 = vmatpush.msra.mxu0 %v1382_v60  ;;  %v1592_v60 = vld [vmem:[%s10853_s5 + $0x898] sm:$0xff] }
 0x543   :  { %5024 = vst [vmem:[%s10857_s7 + $0x1f8] sm:$0xff] %v3522_v55  ;;  %3956 = vmatpush.msra.mxu1 %v1592_v60 }
 0x544   :  { %5023 = vst [vmem:[%s10857_s7 + $0x1f0] sm:$0xff] %v3296_v22  ;;  %3232 = vmatmul.f32.gmra.mxu2 %v7070_v18  ;;  %3345 = vmatmul.f32.gmra.mxu3 %v7067_v7  ;;  %v1591_v22 = vld [vmem:[%s10853_s5 + $0x890] sm:$0xff] }
 0x545   :  { %3571 = vmatmul.f32.gmra.mxu1 %v7067_v7  ;;  %3730 = vmatpush.msra.mxu3 %v1591_v22 }
 0x546   :  { %v3411_v47 = vpop.f32.mrf.mxu0 }
 0x547   :  { %v3412_v4 = vadd.f32 %v3411_v47, %v8825_v5  ;;  %v3185_v50 = vpop.f32.mrf.mxu2  ;;  %v3298_v19 = vpop.f32.mrf.mxu3 }
 0x548   :  { %v3186_v31 = vadd.f32 %v3185_v50, %v8835_v63 }
 0x549   :  { %v3525_v52 = vadd.f32 %v3524_v2, %v3412_v4  ;;  %3458 = vmatmul.f32.gmra.mxu0 %v7070_v18  ;;  %v1353_v2 = vld [vmem:[%s10853_s5 + $0x120] sm:$0xff] }
 0x54a   :  { %v3299_v40 = vadd.f32 %v3298_v19, %v3186_v31  ;;  %v3527_v55 = vpop.f32.mrf.mxu1  ;;  %3618 = vmatpush.msra.mxu2 %v1353_v2 }
 0x54b   :  { %5038 = vst [vmem:[%s10857_s7 + $0x268] sm:$0xff] %v3525_v52 }
 0x54c   :  { %5037 = vst [vmem:[%s10857_s7 + $0x260] sm:$0xff] %v3299_v40  ;;  %3235 = vmatmul.f32.gmra.mxu2 %v7095_v24  ;;  %3348 = vmatmul.f32.gmra.mxu3 %v7092_v36 }
 0x54d   :  { %3574 = vmatmul.f32.gmra.mxu1 %v7092_v36 }
 0x54e   :  { %v3414_v47 = vpop.f32.mrf.mxu0 }
 0x54f   :  { %v3415_v4 = vadd.f32 %v3414_v47, %v8825_v5  ;;  %v3188_v50 = vpop.f32.mrf.mxu2  ;;  %v3301_v19 = vpop.f32.mrf.mxu3 }
 0x550   :  { %v3189_v31 = vadd.f32 %v3188_v50, %v8835_v63 }
 0x551   :  { %v3528_v52 = vadd.f32 %v3527_v55, %v3415_v4  ;;  %3461 = vmatmul.f32.gmra.mxu0 %v7095_v24  ;;  %v1368_v55 = vld [vmem:[%s10853_s5 + $0x198] sm:$0xff] }
 0x552   :  { %v3302_v40 = vadd.f32 %v3301_v19, %v3189_v31  ;;  %v3530_v22 = vpop.f32.mrf.mxu1  ;;  %3843 = vmatpush.msra.mxu0 %v1368_v55  ;;  %v1578_v55 = vld [vmem:[%s10853_s5 + $0x828] sm:$0xff] }
 0x553   :  { %5052 = vst [vmem:[%s10857_s7 + $0x2d8] sm:$0xff] %v3528_v52  ;;  %3957 = vmatpush.msra.mxu1 %v1578_v55 }
 0x554   :  { %5051 = vst [vmem:[%s10857_s7 + $0x2d0] sm:$0xff] %v3302_v40  ;;  %3238 = vmatmul.f32.gmra.mxu2 %v7126_v14  ;;  %3351 = vmatmul.f32.gmra.mxu3 %v7123_v48  ;;  %v1577_v40 = vld [vmem:[%s10853_s5 + $0x820] sm:$0xff] }
 0x555   :  { %3577 = vmatmul.f32.gmra.mxu1 %v7123_v48  ;;  %3731 = vmatpush.msra.mxu3 %v1577_v40 }
 0x556   :  { %v3417_v2 = vpop.f32.mrf.mxu0 }
 0x557   :  { %v3418_v60 = vadd.f32 %v3417_v2, %v8825_v5  ;;  %v3191_v47 = vpop.f32.mrf.mxu2  ;;  %v3304_v4 = vpop.f32.mrf.mxu3 }
 0x558   :  { %v3192_v50 = vadd.f32 %v3191_v47, %v8835_v63 }
 0x559   :  { %v3531_v19 = vadd.f32 %v3530_v22, %v3418_v60  ;;  %3464 = vmatmul.f32.gmra.mxu0 %v7126_v14  ;;  %v1339_v22 = vld [vmem:[%s10853_s5 + $0xb0] sm:$0xff] }
 0x55a   :  { %v3305_v31 = vadd.f32 %v3304_v4, %v3192_v50  ;;  %v3533_v52 = vpop.f32.mrf.mxu1  ;;  %3619 = vmatpush.msra.mxu2 %v1339_v22 }
 0x55b   :  { %5066 = vst [vmem:[%s10857_s7 + $0x348] sm:$0xff] %v3531_v19 }
 0x55c   :  { %5065 = vst [vmem:[%s10857_s7 + $0x340] sm:$0xff] %v3305_v31  ;;  %3241 = vmatmul.f32.gmra.mxu2 %v7151_v9  ;;  %3354 = vmatmul.f32.gmra.mxu3 %v7148_v49 }
 0x55d   :  { %3580 = vmatmul.f32.gmra.mxu1 %v7148_v49 }
 0x55e   :  { %v3420_v2 = vpop.f32.mrf.mxu0 }
 0x55f   :  { %v3421_v60 = vadd.f32 %v3420_v2, %v8825_v5  ;;  %v3194_v47 = vpop.f32.mrf.mxu2  ;;  %v3307_v4 = vpop.f32.mrf.mxu3 }
 0x560   :  { %v3195_v50 = vadd.f32 %v3194_v47, %v8835_v63 }
 0x561   :  { %v3534_v19 = vadd.f32 %v3533_v52, %v3421_v60  ;;  %3467 = vmatmul.f32.gmra.mxu0 %v7151_v9  ;;  %v1354_v52 = vld [vmem:[%s10853_s5 + $0x128] sm:$0xff] }
 0x562   :  { %v3308_v31 = vadd.f32 %v3307_v4, %v3195_v50  ;;  %v3536_v40 = vpop.f32.mrf.mxu1  ;;  %3844 = vmatpush.msra.mxu0 %v1354_v52  ;;  %v1564_v52 = vld [vmem:[%s10853_s5 + $0x7b8] sm:$0xff] }
 0x563   :  { %5080 = vst [vmem:[%s10857_s7 + $0x3b8] sm:$0xff] %v3534_v19  ;;  %3958 = vmatpush.msra.mxu1 %v1564_v52 }
 0x564   :  { %5079 = vst [vmem:[%s10857_s7 + $0x3b0] sm:$0xff] %v3308_v31  ;;  %3244 = vmatmul.f32.gmra.mxu2 %v7182_v26  ;;  %3357 = vmatmul.f32.gmra.mxu3 %v7179_v1  ;;  %v1563_v31 = vld [vmem:[%s10853_s5 + $0x7b0] sm:$0xff] }
 0x565   :  { %3583 = vmatmul.f32.gmra.mxu1 %v7179_v1  ;;  %3732 = vmatpush.msra.mxu3 %v1563_v31 }
 0x566   :  { %v3423_v22 = vpop.f32.mrf.mxu0 }
 0x567   :  { %v3424_v55 = vadd.f32 %v3423_v22, %v8825_v5  ;;  %v3197_v2 = vpop.f32.mrf.mxu2  ;;  %v3310_v60 = vpop.f32.mrf.mxu3 }
 0x568   :  { %v3198_v47 = vadd.f32 %v3197_v2, %v8835_v63 }
 0x569   :  { %v3537_v4 = vadd.f32 %v3536_v40, %v3424_v55  ;;  %3470 = vmatmul.f32.gmra.mxu0 %v7182_v26  ;;  %v1325_v40 = vld [vmem:[%s10853_s5 + $0x40] sm:$0xff] }
 0x56a   :  { %v3311_v50 = vadd.f32 %v3310_v60, %v3198_v47  ;;  %v3539_v19 = vpop.f32.mrf.mxu1  ;;  %3620 = vmatpush.msra.mxu2 %v1325_v40  ;;  %v11106_v40 = vld [vmem:[#allocation39_spill] sm:$0xff] }
 0x56b   :  { %5094 = vst [vmem:[%s10857_s7 + $0x428] sm:$0xff] %v3537_v4 }
 0x56c   :  { %5093 = vst [vmem:[%s10857_s7 + $0x420] sm:$0xff] %v3311_v50  ;;  %3247 = vmatmul.f32.gmra.mxu2 %v7207_v32  ;;  %3360 = vmatmul.f32.gmra.mxu3 %v7204_v10 }
 0x56d   :  { %3586 = vmatmul.f32.gmra.mxu1 %v7204_v10 }
 0x56e   :  { %v3426_v22 = vpop.f32.mrf.mxu0 }
 0x56f   :  { %v3427_v55 = vadd.f32 %v3426_v22, %v8825_v5  ;;  %v3200_v2 = vpop.f32.mrf.mxu2  ;;  %v3313_v60 = vpop.f32.mrf.mxu3 }
 0x570   :  { %v3201_v47 = vadd.f32 %v3200_v2, %v8835_v63 }
 0x571   :  { %v3540_v4 = vadd.f32 %v3539_v19, %v3427_v55  ;;  %3473 = vmatmul.f32.gmra.mxu0 %v7207_v32  ;;  %v1340_v19 = vld [vmem:[%s10853_s5 + $0xb8] sm:$0xff] }
 0x572   :  { %v3314_v50 = vadd.f32 %v3313_v60, %v3201_v47  ;;  %v3542_v31 = vpop.f32.mrf.mxu1  ;;  %3845 = vmatpush.msra.mxu0 %v1340_v19  ;;  %v1549_v19 = vld [vmem:[%s10853_s5 + $0x740] sm:$0xff] }
 0x573   :  { %5108 = vst [vmem:[%s10857_s7 + $0x498] sm:$0xff] %v3540_v4  ;;  %3733 = vmatpush.msra.mxu3 %v1549_v19 }
 0x574   :  { %5107 = vst [vmem:[%s10857_s7 + $0x490] sm:$0xff] %v3314_v50  ;;  %3250 = vmatmul.f32.gmra.mxu2 %v7238_v27  ;;  %3363 = vmatmul.f32.gmra.mxu3 %v11106_v40 }
 0x575   :  { %3589 = vmatmul.f32.gmra.mxu1 %v11106_v40  ;;  %v1326_v40 = vld [vmem:[%s10853_s5 + $0x48] sm:$0xff] }
 0x576   :  { %v3429_v52 = vpop.f32.mrf.mxu0  ;;  %3846 = vmatpush.msra.mxu0 %v1326_v40 }
 0x577   :  { %v3430_v22 = vadd.f32 %v3429_v52, %v8825_v5  ;;  %v3203_v55 = vpop.f32.mrf.mxu2  ;;  %v3316_v2 = vpop.f32.mrf.mxu3  ;;  %v1550_v52 = vld [vmem:[%s10853_s5 + $0x748] sm:$0xff] }
 0x578   :  { %v3204_v60 = vadd.f32 %v3203_v55, %v8835_v63  ;;  %3959 = vmatpush.msra.mxu1 %v1550_v52 }
 0x579   :  { %v3543_v47 = vadd.f32 %v3542_v31, %v3430_v22  ;;  %3476 = vmatmul.f32.gmra.mxu0 %v7238_v27  ;;  %v11107_v31 = vld [vmem:[#allocation41_spill] sm:$0xff]  ;;  %v1537_v22 = vld [vmem:[%s10853_s5 + $0x6e0] sm:$0xff] }
 0x57a   :  { %v3317_v4 = vadd.f32 %v3316_v2, %v3204_v60  ;;  %v3545_v50 = vpop.f32.mrf.mxu1  ;;  %4057 = vmatpush.msrb.mxu2 %v1537_v22 }
 0x57b   :  { %5122 = vst [vmem:[%s10857_s7 + $0x508] sm:$0xff] %v3543_v47 }
 0x57c   :  { %5121 = vst [vmem:[%s10857_s7 + $0x500] sm:$0xff] %v3317_v4  ;;  %3253 = vmatmul.f32.gmra.mxu2 %v7263_v16  ;;  %3366 = vmatmul.f32.gmra.mxu3 %v11107_v31 }
 0x57d   :  { %3592 = vmatmul.f32.gmra.mxu1 %v11107_v31 }
 0x57e   :  { %v3432_v55 = vpop.f32.mrf.mxu0 }
 0x57f   :  { %v3433_v2 = vadd.f32 %v3432_v55, %v8825_v5  ;;  %v3206_v60 = vpop.f32.mrf.mxu2  ;;  %v3319_v47 = vpop.f32.mrf.mxu3 }
 0x580   :  { %v3207_v4 = vadd.f32 %v3206_v60, %v8835_v63 }
 0x581   :  { %v3546_v27 = vadd.f32 %v3545_v50, %v3433_v2  ;;  %3479 = vmatmul.f32.gmra.mxu0 %v7263_v16 }
 0x582   :  { %v3320_v19 = vadd.f32 %v3319_v47, %v3207_v4  ;;  %v3548_v31 = vpop.f32.mrf.mxu1  ;;  %v1761_v47 = vld [vmem:[%s10853_s5 + $0xde0] sm:$0xff]  ;;  %v1762_v4 = vld [vmem:[%s10853_s5 + $0xde8] sm:$0xff] }
 0x583   :  { %5136 = vst [vmem:[%s10857_s7 + $0x578] sm:$0xff] %v3546_v27  ;;  %4170 = vmatpush.msrb.mxu3 %v1761_v47  ;;  %4396 = vmatpush.msrb.mxu1 %v1762_v4 }
 0x584   :  { %5135 = vst [vmem:[%s10857_s7 + $0x570] sm:$0xff] %v3320_v19  ;;  %3256 = vmatmul.f32.gmra.mxu2 %v7297_v35  ;;  %3369 = vmatmul.f32.gmra.mxu3 %v7294_v45 }
 0x585   :  { %3595 = vmatmul.f32.gmra.mxu1 %v7294_v45 }
 0x586   :  { %v3435_v50 = vpop.f32.mrf.mxu0 }
 0x587   :  { %v3436_v52 = vadd.f32 %v3435_v50, %v8825_v5  ;;  %v3209_v22 = vpop.f32.mrf.mxu2  ;;  %v3322_v55 = vpop.f32.mrf.mxu3 }
 0x588   :  { %v3210_v40 = vadd.f32 %v3209_v22, %v8835_v63 }
 0x589   :  { %v3549_v2 = vadd.f32 %v3548_v31, %v3436_v52  ;;  %3482 = vmatmul.f32.gmra.mxu0 %v7297_v35  ;;  %v1523_v31 = vld [vmem:[%s10853_s5 + $0x670] sm:$0xff] }
 0x58a   :  { %v3323_v27 = vadd.f32 %v3322_v55, %v3210_v40  ;;  %v3551_v60 = vpop.f32.mrf.mxu1  ;;  %4058 = vmatpush.msrb.mxu2 %v1523_v31 }
 0x58b   :  { %5150 = vst [vmem:[%s10857_s7 + $0x5e8] sm:$0xff] %v3549_v2 }
 0x58c   :  { %5149 = vst [vmem:[%s10857_s7 + $0x5e0] sm:$0xff] %v3323_v27  ;;  %3259 = vmatmul.f32.gmra.mxu2 %v7319_v43  ;;  %3372 = vmatmul.f32.gmra.mxu3 %v7316_v59 }
 0x58d   :  { %3598 = vmatmul.f32.gmra.mxu1 %v7316_v59 }
 0x58e   :  { %v3438_v19 = vpop.f32.mrf.mxu0 }
 0x58f   :  { %v3439_v50 = vadd.f32 %v3438_v19, %v8825_v5  ;;  %v3212_v52 = vpop.f32.mrf.mxu2  ;;  %v3325_v22 = vpop.f32.mrf.mxu3 }
 0x590   :  { %v3213_v55 = vadd.f32 %v3212_v52, %v8835_v63 }
 0x591   :  { %v3552_v40 = vadd.f32 %v3551_v60, %v3439_v50  ;;  %3485 = vmatmul.f32.gmra.mxu0 %v7319_v43  ;;  %v1538_v60 = vld [vmem:[%s10853_s5 + $0x6e8] sm:$0xff] }
 0x592   :  { %v3326_v2 = vadd.f32 %v3325_v22, %v3213_v55  ;;  %v3554_v27 = vpop.f32.mrf.mxu1  ;;  %4283 = vmatpush.msrb.mxu0 %v1538_v60 }
 0x593   :  { %5164 = vst [vmem:[%s10857_s7 + $0x658] sm:$0xff] %v3552_v40  ;;  %v1747_v40 = vld [vmem:[%s10853_s5 + $0xd70] sm:$0xff] }
 0x594   :  { %5163 = vst [vmem:[%s10857_s7 + $0x650] sm:$0xff] %v3326_v2  ;;  %3262 = vmatmul.f32.gmra.mxu2 %v7348_v21  ;;  %3375 = vmatmul.f32.gmra.mxu3 %v7345_v41  ;;  %v1509_v2 = vld [vmem:[%s10853_s5 + $0x600] sm:$0xff] }
 0x595   :  { %3601 = vmatmul.f32.gmra.mxu1 %v7345_v41  ;;  %4171 = vmatpush.msrb.mxu3 %v1747_v40 }
 0x596   :  { %v3441_v47 = vpop.f32.mrf.mxu0  ;;  %4059 = vmatpush.msrb.mxu2 %v1509_v2 }
 0x597   :  { %v3442_v31 = vadd.f32 %v3441_v47, %v8825_v5  ;;  %v3215_v4 = vpop.f32.mrf.mxu2  ;;  %v3328_v19 = vpop.f32.mrf.mxu3 }
 0x598   :  { %v3216_v50 = vadd.f32 %v3215_v4, %v8835_v63 }
 0x599   :  { %v3555_v52 = vadd.f32 %v3554_v27, %v3442_v31  ;;  %3488 = vmatmul.f32.gmra.mxu0 %v7348_v21  ;;  %v1748_v27 = vld [vmem:[%s10853_s5 + $0xd78] sm:$0xff] }
 0x59a   :  { %v3329_v22 = vadd.f32 %v3328_v19, %v3216_v50  ;;  %v3557_v55 = vpop.f32.mrf.mxu1  ;;  %4397 = vmatpush.msrb.mxu1 %v1748_v27 }
 0x59b   :  { %5178 = vst [vmem:[%s10857_s7 + $0x6c8] sm:$0xff] %v3555_v52 }
 0x59c   :  { %5177 = vst [vmem:[%s10857_s7 + $0x6c0] sm:$0xff] %v3329_v22  ;;  %3621 = vmatmul.f32.vlgmr.msra.gmra.mxu2 %v6496_v56  ;;  %3734 = vmatmul.f32.vlgmr.msra.gmra.mxu3 %v6493_v0 }
 0x59d   :  { %3960 = vmatmul.f32.vlgmr.msra.gmra.mxu1 %v6493_v0 }
 0x59e   :  { %v3444_v60 = vpop.f32.mrf.mxu0 }
 0x59f   :  { %v3445_v47 = vadd.f32 %v3444_v60, %v8825_v5  ;;  %v3218_v31 = vpop.f32.mrf.mxu2  ;;  %v3331_v4 = vpop.f32.mrf.mxu3 }
 0x5a0   :  { %v3219_v19 = vadd.f32 %v3218_v31, %v8835_v63 }
 0x5a1   :  { %v3558_v50 = vadd.f32 %v3557_v55, %v3445_v47  ;;  %3847 = vmatmul.f32.vlgmr.msra.gmra.mxu0 %v6496_v56  ;;  %v1524_v55 = vld [vmem:[%s10853_s5 + $0x678] sm:$0xff] }
 0x5a2   :  { %v3332_v52 = vadd.f32 %v3331_v4, %v3219_v19  ;;  %v3560_v22 = vpop.f32.mrf.mxu1  ;;  %4284 = vmatpush.msrb.mxu0 %v1524_v55 }
 0x5a3   :  { %5192 = vst [vmem:[%s10857_s7 + $0x738] sm:$0xff] %v3558_v50  ;;  %v1733_v50 = vld [vmem:[%s10853_s5 + $0xd00] sm:$0xff] }
 0x5a4   :  { %5191 = vst [vmem:[%s10857_s7 + $0x730] sm:$0xff] %v3332_v52  ;;  %3624 = vmatmul.f32.gmra.mxu2 %v11049_v30  ;;  %3737 = vmatmul.f32.gmra.mxu3 %v11050_v34  ;;  %v1495_v52 = vld [vmem:[%s10853_s5 + $0x590] sm:$0xff] }
 0x5a5   :  { %3963 = vmatmul.f32.gmra.mxu1 %v11050_v34  ;;  %4172 = vmatpush.msrb.mxu3 %v1733_v50 }
 0x5a6   :  { %v3447_v40 = vpop.f32.mrf.mxu0  ;;  %4060 = vmatpush.msrb.mxu2 %v1495_v52 }
 0x5a7   :  { %v3448_v2 = vadd.f32 %v3447_v40, %v8825_v5  ;;  %v3221_v27 = vpop.f32.mrf.mxu2  ;;  %v3334_v60 = vpop.f32.mrf.mxu3 }
 0x5a8   :  { %v3222_v47 = vadd.f32 %v3221_v27, %v8835_v63 }
 0x5a9   :  { %v3561_v31 = vadd.f32 %v3560_v22, %v3448_v2  ;;  %3850 = vmatmul.f32.gmra.mxu0 %v11049_v30  ;;  %v1734_v22 = vld [vmem:[%s10853_s5 + $0xd08] sm:$0xff] }
 0x5aa   :  { %v3335_v4 = vadd.f32 %v3334_v60, %v3222_v47  ;;  %v3563_v19 = vpop.f32.mrf.mxu1  ;;  %4398 = vmatpush.msrb.mxu1 %v1734_v22 }
 0x5ab   :  { %5206 = vst [vmem:[%s10857_s7 + $0x7a8] sm:$0xff] %v3561_v31 }
 0x5ac   :  { %5205 = vst [vmem:[%s10857_s7 + $0x7a0] sm:$0xff] %v3335_v4  ;;  %3627 = vmatmul.f32.gmra.mxu2 %v11051_v46  ;;  %3740 = vmatmul.f32.gmra.mxu3 %v11052_v6 }
 0x5ad   :  { %3966 = vmatmul.f32.gmra.mxu1 %v11052_v6 }
 0x5ae   :  { %v3450_v55 = vpop.f32.mrf.mxu0 }
 0x5af   :  { %v3451_v40 = vadd.f32 %v3450_v55, %v8825_v5  ;;  %v3224_v2 = vpop.f32.mrf.mxu2  ;;  %v3337_v27 = vpop.f32.mrf.mxu3 }
 0x5b0   :  { %v3225_v60 = vadd.f32 %v3224_v2, %v8835_v63 }
 0x5b1   :  { %v3564_v47 = vadd.f32 %v3563_v19, %v3451_v40  ;;  %3853 = vmatmul.f32.gmra.mxu0 %v11051_v46  ;;  %v1510_v19 = vld [vmem:[%s10853_s5 + $0x608] sm:$0xff] }
 0x5b2   :  { %v3338_v31 = vadd.f32 %v3337_v27, %v3225_v60  ;;  %v3566_v4 = vpop.f32.mrf.mxu1  ;;  %4285 = vmatpush.msrb.mxu0 %v1510_v19 }
 0x5b3   :  { %5220 = vst [vmem:[%s10857_s7 + $0x818] sm:$0xff] %v3564_v47  ;;  %v1719_v47 = vld [vmem:[%s10853_s5 + $0xc90] sm:$0xff] }
 0x5b4   :  { %5219 = vst [vmem:[%s10857_s7 + $0x810] sm:$0xff] %v3338_v31  ;;  %3630 = vmatmul.f32.gmra.mxu2 %v11053_v23  ;;  %3743 = vmatmul.f32.gmra.mxu3 %v11054_v28  ;;  %v1481_v31 = vld [vmem:[%s10853_s5 + $0x520] sm:$0xff] }
 0x5b5   :  { %3969 = vmatmul.f32.gmra.mxu1 %v11054_v28  ;;  %4173 = vmatpush.msrb.mxu3 %v1719_v47 }
 0x5b6   :  { %v3453_v50 = vpop.f32.mrf.mxu0  ;;  %4061 = vmatpush.msrb.mxu2 %v1481_v31 }
 0x5b7   :  { %v3454_v52 = vadd.f32 %v3453_v50, %v8825_v5  ;;  %v3227_v22 = vpop.f32.mrf.mxu2  ;;  %v3340_v55 = vpop.f32.mrf.mxu3 }
 0x5b8   :  { %v3228_v40 = vadd.f32 %v3227_v22, %v8835_v63 }
 0x5b9   :  { %v3567_v2 = vadd.f32 %v3566_v4, %v3454_v52  ;;  %3856 = vmatmul.f32.gmra.mxu0 %v11053_v23  ;;  %v1720_v4 = vld [vmem:[%s10853_s5 + $0xc98] sm:$0xff] }
 0x5ba   :  { %v3341_v27 = vadd.f32 %v3340_v55, %v3228_v40  ;;  %v3569_v60 = vpop.f32.mrf.mxu1  ;;  %4399 = vmatpush.msrb.mxu1 %v1720_v4 }
 0x5bb   :  { %5234 = vst [vmem:[%s10857_s7 + $0x888] sm:$0xff] %v3567_v2 }
 0x5bc   :  { %5233 = vst [vmem:[%s10857_s7 + $0x880] sm:$0xff] %v3341_v27  ;;  %3633 = vmatmul.f32.gmra.mxu2 %v11055_v3  ;;  %3746 = vmatmul.f32.gmra.mxu3 %v11056_v57 }
 0x5bd   :  { %3972 = vmatmul.f32.gmra.mxu1 %v11056_v57 }
 0x5be   :  { %v3456_v19 = vpop.f32.mrf.mxu0 }
 0x5bf   :  { %v3457_v50 = vadd.f32 %v3456_v19, %v8825_v5  ;;  %v3230_v52 = vpop.f32.mrf.mxu2  ;;  %v3343_v22 = vpop.f32.mrf.mxu3 }
 0x5c0   :  { %v3231_v55 = vadd.f32 %v3230_v52, %v8835_v63 }
 0x5c1   :  { %v3570_v40 = vadd.f32 %v3569_v60, %v3457_v50  ;;  %3859 = vmatmul.f32.gmra.mxu0 %v11055_v3  ;;  %v1496_v60 = vld [vmem:[%s10853_s5 + $0x598] sm:$0xff] }
 0x5c2   :  { %v3344_v2 = vadd.f32 %v3343_v22, %v3231_v55  ;;  %v3572_v27 = vpop.f32.mrf.mxu1  ;;  %4286 = vmatpush.msrb.mxu0 %v1496_v60 }
 0x5c3   :  { %5248 = vst [vmem:[%s10857_s7 + $0x8f8] sm:$0xff] %v3570_v40  ;;  %v1705_v40 = vld [vmem:[%s10853_s5 + $0xc20] sm:$0xff] }
 0x5c4   :  { %5247 = vst [vmem:[%s10857_s7 + $0x8f0] sm:$0xff] %v3344_v2  ;;  %3636 = vmatmul.f32.gmra.mxu2 %v11057_v42  ;;  %3749 = vmatmul.f32.gmra.mxu3 %v11058_v58  ;;  %v1467_v2 = vld [vmem:[%s10853_s5 + $0x4b0] sm:$0xff] }
 0x5c5   :  { %3975 = vmatmul.f32.gmra.mxu1 %v11058_v58  ;;  %4174 = vmatpush.msrb.mxu3 %v1705_v40 }
 0x5c6   :  { %v3459_v47 = vpop.f32.mrf.mxu0  ;;  %4062 = vmatpush.msrb.mxu2 %v1467_v2 }
 0x5c7   :  { %v3460_v31 = vadd.f32 %v3459_v47, %v8825_v5  ;;  %v3233_v4 = vpop.f32.mrf.mxu2  ;;  %v3346_v19 = vpop.f32.mrf.mxu3 }
 0x5c8   :  { %v3234_v50 = vadd.f32 %v3233_v4, %v8835_v63 }
 0x5c9   :  { %v3573_v52 = vadd.f32 %v3572_v27, %v3460_v31  ;;  %3862 = vmatmul.f32.gmra.mxu0 %v11057_v42  ;;  %v1706_v27 = vld [vmem:[%s10853_s5 + $0xc28] sm:$0xff] }
 0x5ca   :  { %v3347_v22 = vadd.f32 %v3346_v19, %v3234_v50  ;;  %v3575_v55 = vpop.f32.mrf.mxu1  ;;  %4400 = vmatpush.msrb.mxu1 %v1706_v27 }
 0x5cb   :  { %5262 = vst [vmem:[%s10857_s7 + $0x968] sm:$0xff] %v3573_v52 }
 0x5cc   :  { %5261 = vst [vmem:[%s10857_s7 + $0x960] sm:$0xff] %v3347_v22  ;;  %3639 = vmatmul.f32.gmra.mxu2 %v11059_v15  ;;  %3752 = vmatmul.f32.gmra.mxu3 %v11060_v62 }
 0x5cd   :  { %3978 = vmatmul.f32.gmra.mxu1 %v11060_v62 }
 0x5ce   :  { %v3462_v60 = vpop.f32.mrf.mxu0 }
 0x5cf   :  { %v3463_v47 = vadd.f32 %v3462_v60, %v8825_v5  ;;  %v3236_v31 = vpop.f32.mrf.mxu2  ;;  %v3349_v4 = vpop.f32.mrf.mxu3 }
 0x5d0   :  { %v3237_v19 = vadd.f32 %v3236_v31, %v8835_v63 }
 0x5d1   :  { %v3576_v50 = vadd.f32 %v3575_v55, %v3463_v47  ;;  %3865 = vmatmul.f32.gmra.mxu0 %v11059_v15  ;;  %v1482_v55 = vld [vmem:[%s10853_s5 + $0x528] sm:$0xff] }
 0x5d2   :  { %v3350_v52 = vadd.f32 %v3349_v4, %v3237_v19  ;;  %v3578_v22 = vpop.f32.mrf.mxu1  ;;  %4287 = vmatpush.msrb.mxu0 %v1482_v55 }
 0x5d3   :  { %5276 = vst [vmem:[%s10857_s7 + $0x9d8] sm:$0xff] %v3576_v50  ;;  %v1691_v50 = vld [vmem:[%s10853_s5 + $0xbb0] sm:$0xff] }
 0x5d4   :  { %5275 = vst [vmem:[%s10857_s7 + $0x9d0] sm:$0xff] %v3350_v52  ;;  %3642 = vmatmul.f32.gmra.mxu2 %v11061_v53  ;;  %3755 = vmatmul.f32.gmra.mxu3 %v11062_v29  ;;  %v1453_v52 = vld [vmem:[%s10853_s5 + $0x440] sm:$0xff] }
 0x5d5   :  { %3981 = vmatmul.f32.gmra.mxu1 %v11062_v29  ;;  %4175 = vmatpush.msrb.mxu3 %v1691_v50  ;;  %v11108_v50 = vld [vmem:[#allocation18_spill] sm:$0xff] }
 0x5d6   :  { %v3465_v40 = vpop.f32.mrf.mxu0  ;;  %4063 = vmatpush.msrb.mxu2 %v1453_v52 }
 0x5d7   :  { %v3466_v2 = vadd.f32 %v3465_v40, %v8825_v5  ;;  %v3239_v27 = vpop.f32.mrf.mxu2  ;;  %v3352_v60 = vpop.f32.mrf.mxu3 }
 0x5d8   :  { %v3240_v47 = vadd.f32 %v3239_v27, %v8835_v63 }
 0x5d9   :  { %v3579_v31 = vadd.f32 %v3578_v22, %v3466_v2  ;;  %3868 = vmatmul.f32.gmra.mxu0 %v11061_v53  ;;  %v1692_v22 = vld [vmem:[%s10853_s5 + $0xbb8] sm:$0xff] }
 0x5da   :  { %v3353_v4 = vadd.f32 %v3352_v60, %v3240_v47  ;;  %v3581_v19 = vpop.f32.mrf.mxu1  ;;  %4401 = vmatpush.msrb.mxu1 %v1692_v22 }
 0x5db   :  { %5290 = vst [vmem:[%s10857_s7 + $0xa48] sm:$0xff] %v3579_v31 }
 0x5dc   :  { %5289 = vst [vmem:[%s10857_s7 + $0xa40] sm:$0xff] %v3353_v4  ;;  %3645 = vmatmul.f32.gmra.mxu2 %v11063_v51  ;;  %3758 = vmatmul.f32.gmra.mxu3 %v11064_v33 }
 0x5dd   :  { %3984 = vmatmul.f32.gmra.mxu1 %v11064_v33 }
 0x5de   :  { %v3468_v55 = vpop.f32.mrf.mxu0 }
 0x5df   :  { %v3469_v40 = vadd.f32 %v3468_v55, %v8825_v5  ;;  %v3242_v2 = vpop.f32.mrf.mxu2  ;;  %v3355_v27 = vpop.f32.mrf.mxu3 }
 0x5e0   :  { %v3243_v60 = vadd.f32 %v3242_v2, %v8835_v63 }
 0x5e1   :  { %v3582_v47 = vadd.f32 %v3581_v19, %v3469_v40  ;;  %3871 = vmatmul.f32.gmra.mxu0 %v11063_v51  ;;  %v1468_v19 = vld [vmem:[%s10853_s5 + $0x4b8] sm:$0xff] }
 0x5e2   :  { %v3356_v31 = vadd.f32 %v3355_v27, %v3243_v60  ;;  %v3584_v4 = vpop.f32.mrf.mxu1  ;;  %4288 = vmatpush.msrb.mxu0 %v1468_v19  ;;  %v11109_v19 = vld [vmem:[#allocation21_spill] sm:$0xff] }
 0x5e3   :  { %5304 = vst [vmem:[%s10857_s7 + $0xab8] sm:$0xff] %v3582_v47 }
 0x5e4   :  { %5303 = vst [vmem:[%s10857_s7 + $0xab0] sm:$0xff] %v3356_v31  ;;  %3648 = vmatmul.f32.gmra.mxu2 %v11065_v11  ;;  %3761 = vmatmul.f32.gmra.mxu3 %v11108_v50  ;;  %v1677_v31 = vld [vmem:[%s10853_s5 + $0xb40] sm:$0xff] }
 0x5e5   :  { %3987 = vmatmul.f32.gmra.mxu1 %v11108_v50  ;;  %4176 = vmatpush.msrb.mxu3 %v1677_v31 }
 0x5e6   :  { %v3471_v52 = vpop.f32.mrf.mxu0 }
 0x5e7   :  { %v3472_v22 = vadd.f32 %v3471_v52, %v8825_v5  ;;  %v3245_v55 = vpop.f32.mrf.mxu2  ;;  %v3358_v40 = vpop.f32.mrf.mxu3  ;;  %v11110_v52 = vld [vmem:[#allocation20_spill] sm:$0xff] }
 0x5e8   :  { %v3246_v2 = vadd.f32 %v3245_v55, %v8835_v63 }
 0x5e9   :  { %v3585_v27 = vadd.f32 %v3584_v4, %v3472_v22  ;;  %3874 = vmatmul.f32.gmra.mxu0 %v11065_v11  ;;  %v1439_v4 = vld [vmem:[%s10853_s5 + $0x3d0] sm:$0xff]  ;;  %v1678_v22 = vld [vmem:[%s10853_s5 + $0xb48] sm:$0xff] }
 0x5ea   :  { %v3359_v60 = vadd.f32 %v3358_v40, %v3246_v2  ;;  %v3587_v47 = vpop.f32.mrf.mxu1  ;;  %4064 = vmatpush.msrb.mxu2 %v1439_v4  ;;  %4402 = vmatpush.msrb.mxu1 %v1678_v22  ;;  %v11111_v4 = vld [vmem:[#allocation23_spill] sm:$0xff]  ;;  %v11112_v22 = vld [vmem:[#allocation22_spill] sm:$0xff] }
 0x5eb   :  { %5318 = vst [vmem:[%s10857_s7 + $0xb28] sm:$0xff] %v3585_v27 }
 0x5ec   :  { %5317 = vst [vmem:[%s10857_s7 + $0xb20] sm:$0xff] %v3359_v60  ;;  %3651 = vmatmul.f32.gmra.mxu2 %v11109_v19  ;;  %3764 = vmatmul.f32.gmra.mxu3 %v11110_v52 }
 0x5ed   :  { %3990 = vmatmul.f32.gmra.mxu1 %v11110_v52 }
 0x5ee   :  { %v3474_v55 = vpop.f32.mrf.mxu0 }
 0x5ef   :  { %v3475_v40 = vadd.f32 %v3474_v55, %v8825_v5  ;;  %v3248_v2 = vpop.f32.mrf.mxu2  ;;  %v3361_v27 = vpop.f32.mrf.mxu3 }
 0x5f0   :  { %v3249_v60 = vadd.f32 %v3248_v2, %v8835_v63 }
 0x5f1   :  { %v3588_v50 = vadd.f32 %v3587_v47, %v3475_v40  ;;  %3877 = vmatmul.f32.gmra.mxu0 %v11109_v19  ;;  %v1454_v47 = vld [vmem:[%s10853_s5 + $0x448] sm:$0xff] }
 0x5f2   :  { %v3362_v31 = vadd.f32 %v3361_v27, %v3249_v60  ;;  %v3590_v52 = vpop.f32.mrf.mxu1  ;;  %4289 = vmatpush.msrb.mxu0 %v1454_v47  ;;  %v1663_v47 = vld [vmem:[%s10853_s5 + $0xad0] sm:$0xff] }
 0x5f3   :  { %5332 = vst [vmem:[%s10857_s7 + $0xb98] sm:$0xff] %v3588_v50  ;;  %4177 = vmatpush.msrb.mxu3 %v1663_v47 }
 0x5f4   :  { %5331 = vst [vmem:[%s10857_s7 + $0xb90] sm:$0xff] %v3362_v31  ;;  %3654 = vmatmul.f32.gmra.mxu2 %v11111_v4  ;;  %3767 = vmatmul.f32.gmra.mxu3 %v11112_v22 }
 0x5f5   :  { %3993 = vmatmul.f32.gmra.mxu1 %v11112_v22 }
 0x5f6   :  { %v3477_v55 = vpop.f32.mrf.mxu0 }
 0x5f7   :  { %v3478_v40 = vadd.f32 %v3477_v55, %v8825_v5  ;;  %v3251_v2 = vpop.f32.mrf.mxu2  ;;  %v3364_v50 = vpop.f32.mrf.mxu3  ;;  %v11113_v55 = vld [vmem:[#allocation25_spill] sm:$0xff] }
 0x5f8   :  { %v3252_v27 = vadd.f32 %v3251_v2, %v8835_v63  ;;  %v11114_v2 = vld [vmem:[#allocation24_spill] sm:$0xff] }
 0x5f9   :  { %v3591_v60 = vadd.f32 %v3590_v52, %v3478_v40  ;;  %3880 = vmatmul.f32.gmra.mxu0 %v11111_v4  ;;  %v1425_v52 = vld [vmem:[%s10853_s5 + $0x360] sm:$0xff]  ;;  %v1664_v40 = vld [vmem:[%s10853_s5 + $0xad8] sm:$0xff] }
 0x5fa   :  { %v3365_v31 = vadd.f32 %v3364_v50, %v3252_v27  ;;  %v3593_v19 = vpop.f32.mrf.mxu1  ;;  %4065 = vmatpush.msrb.mxu2 %v1425_v52  ;;  %4403 = vmatpush.msrb.mxu1 %v1664_v40  ;;  %v11115_v52 = vld [vmem:[#allocation26_spill] sm:$0xff] }
 0x5fb   :  { %5346 = vst [vmem:[%s10857_s7 + $0xc08] sm:$0xff] %v3591_v60 }
 0x5fc   :  { %5345 = vst [vmem:[%s10857_s7 + $0xc00] sm:$0xff] %v3365_v31  ;;  %3657 = vmatmul.f32.gmra.mxu2 %v11113_v55  ;;  %3770 = vmatmul.f32.gmra.mxu3 %v11114_v2 }
 0x5fd   :  { %3996 = vmatmul.f32.gmra.mxu1 %v11114_v2 }
 0x5fe   :  { %v3480_v50 = vpop.f32.mrf.mxu0 }
 0x5ff   :  { %v3481_v27 = vadd.f32 %v3480_v50, %v8825_v5  ;;  %v3254_v60 = vpop.f32.mrf.mxu2  ;;  %v3367_v31 = vpop.f32.mrf.mxu3 }
 0x600   :  { %v3255_v22 = vadd.f32 %v3254_v60, %v8835_v63 }
 0x601   :  { %v3594_v4 = vadd.f32 %v3593_v19, %v3481_v27  ;;  %3883 = vmatmul.f32.gmra.mxu0 %v11113_v55  ;;  %v1440_v19 = vld [vmem:[%s10853_s5 + $0x3d8] sm:$0xff] }
 0x602   :  { %v3368_v47 = vadd.f32 %v3367_v31, %v3255_v22  ;;  %v3596_v2 = vpop.f32.mrf.mxu1  ;;  %4290 = vmatpush.msrb.mxu0 %v1440_v19  ;;  %v1649_v19 = vld [vmem:[%s10853_s5 + $0xa60] sm:$0xff] }
 0x603   :  { %5360 = vst [vmem:[%s10857_s7 + $0xc78] sm:$0xff] %v3594_v4  ;;  %4178 = vmatpush.msrb.mxu3 %v1649_v19 }
 0x604   :  { %5359 = vst [vmem:[%s10857_s7 + $0xc70] sm:$0xff] %v3368_v47  ;;  %3660 = vmatmul.f32.gmra.mxu2 %v11101_v25  ;;  %3773 = vmatmul.f32.gmra.mxu3 %v11115_v52 }
 0x605   :  { %3999 = vmatmul.f32.gmra.mxu1 %v11115_v52 }
 0x606   :  { %v3483_v22 = vpop.f32.mrf.mxu0 }
 0x607   :  { %v3484_v40 = vadd.f32 %v3483_v22, %v8825_v5  ;;  %v3257_v50 = vpop.f32.mrf.mxu2  ;;  %v3370_v4 = vpop.f32.mrf.mxu3  ;;  %v11116_v22 = vld [vmem:[#allocation28_spill] sm:$0xff] }
 0x608   :  { %v3258_v27 = vadd.f32 %v3257_v50, %v8835_v63 }
 0x609   :  { %v3597_v60 = vadd.f32 %v3596_v2, %v3484_v40  ;;  %3886 = vmatmul.f32.gmra.mxu0 %v11101_v25  ;;  %v1411_v2 = vld [vmem:[%s10853_s5 + $0x2f0] sm:$0xff]  ;;  %v1650_v40 = vld [vmem:[%s10853_s5 + $0xa68] sm:$0xff] }
 0x60a   :  { %v3371_v31 = vadd.f32 %v3370_v4, %v3258_v27  ;;  %v3599_v47 = vpop.f32.mrf.mxu1  ;;  %4066 = vmatpush.msrb.mxu2 %v1411_v2  ;;  %4404 = vmatpush.msrb.mxu1 %v1650_v40  ;;  %v11117_v2 = vld [vmem:[#allocation30_spill] sm:$0xff] }
 0x60b   :  { %5374 = vst [vmem:[%s10857_s7 + $0xce8] sm:$0xff] %v3597_v60 }
 0x60c   :  { %5373 = vst [vmem:[%s10857_s7 + $0xce0] sm:$0xff] %v3371_v31  ;;  %3663 = vmatmul.f32.gmra.mxu2 %v11089_v20  ;;  %3776 = vmatmul.f32.gmra.mxu3 %v11116_v22 }
 0x60d   :  { %4002 = vmatmul.f32.gmra.mxu1 %v11116_v22 }
 0x60e   :  { %v3486_v50 = vpop.f32.mrf.mxu0 }
 0x60f   :  { %v3487_v4 = vadd.f32 %v3486_v50, %v8825_v5  ;;  %v3260_v27 = vpop.f32.mrf.mxu2  ;;  %v3373_v60 = vpop.f32.mrf.mxu3 }
 0x610   :  { %v3261_v31 = vadd.f32 %v3260_v27, %v8835_v63 }
 0x611   :  { %v3600_v52 = vadd.f32 %v3599_v47, %v3487_v4  ;;  %3889 = vmatmul.f32.gmra.mxu0 %v11089_v20  ;;  %v1426_v47 = vld [vmem:[%s10853_s5 + $0x368] sm:$0xff] }
 0x612   :  { %v3374_v19 = vadd.f32 %v3373_v60, %v3261_v31  ;;  %v3602_v22 = vpop.f32.mrf.mxu1  ;;  %4291 = vmatpush.msrb.mxu0 %v1426_v47  ;;  %v1766_v60 = vld [vmem:[%s10856_s6 + $0x8] sm:$0x3f] }
 0x613   :  { %5388 = vst [vmem:[%s10857_s7 + $0xd58] sm:$0xff] %v3600_v52  ;;  %v9408_v47 = vperm.slane %v1766_v60, 1 }
 0x614   :  { %5387 = vst [vmem:[%s10857_s7 + $0xd50] sm:$0xff] %v3374_v19  ;;  %3666 = vmatmul.f32.gmra.mxu2 %v11077_v39  ;;  %3779 = vmatmul.f32.gmra.mxu3 %v11117_v2 }
 0x615   :  { %4005 = vmatmul.f32.gmra.mxu1 %v11117_v2 }
 0x616   :  { %v3489_v40 = vpop.f32.mrf.mxu0 }
 0x617   :  { %v3490_v50 = vadd.f32 %v3489_v40, %v8825_v5  ;;  %v3263_v4 = vpop.f32.mrf.mxu2  ;;  %v3376_v52 = vpop.f32.mrf.mxu3  ;;  %v1635_v5 = vld [vmem:[%s10853_s5 + $0x9f0] sm:$0xff]  ;;  %v1397_v40 = vld [vmem:[%s10853_s5 + $0x280] sm:$0xff] }
 0x618   :  { %v3264_v27 = vadd.f32 %v3263_v4, %v8835_v63  ;;  %v11118_v63 = vld [vmem:[#allocation32_spill] sm:$0xff]  ;;  %4179 = vmatpush.msrb.mxu3 %v1635_v5  ;;  %4067 = vmatpush.msrb.mxu2 %v1397_v40 }
 0x619   :  { %v3603_v31 = vadd.f32 %v3602_v22, %v3490_v50  ;;  %3892 = vmatmul.f32.gmra.mxu0 %v11077_v39  ;;  %v9418_v22 = vperm.slane %v1766_v60, 0  ;;  %v1636_v50 = vld [vmem:[%s10853_s5 + $0x9f8] sm:$0xff] }
 0x61a   :  { %v3377_v19 = vadd.f32 %v3376_v52, %v3264_v27  ;;  %v3961_v20 = vpop.f32.mrf.mxu1  ;;  %4405 = vmatpush.msrb.mxu1 %v1636_v50 }
 0x61b   :  { %5402 = vst [vmem:[%s10857_s7 + $0xdc8] sm:$0xff] %v3603_v31 }
 0x61c   :  { %5401 = vst [vmem:[%s10857_s7 + $0xdc0] sm:$0xff] %v3377_v19  ;;  %3669 = vmatmul.f32.gmra.mxu2 %v6929_v61  ;;  %3782 = vmatmul.f32.gmra.mxu3 %v11118_v63 }
 0x61d   :  { %4008 = vmatmul.f32.gmra.mxu1 %v11118_v63 }
 0x61e   :  { %v3848_v4 = vpop.f32.mrf.mxu0 }
 0x61f   :  { %v3849_v52 = vadd.f32 %v3848_v4, %v9408_v47  ;;  %v3622_v27 = vpop.f32.mrf.mxu2  ;;  %v3735_v31 = vpop.f32.mrf.mxu3 }
 0x620   :  { %v3623_v60 = vadd.f32 %v3622_v27, %v9418_v22 }
 0x621   :  { %v3962_v19 = vadd.f32 %v3961_v20, %v3849_v52  ;;  %3895 = vmatmul.f32.gmra.mxu0 %v6929_v61  ;;  %v1412_v20 = vld [vmem:[%s10853_s5 + $0x2f8] sm:$0xff] }
 0x622   :  { %v3736_v5 = vadd.f32 %v3735_v31, %v3623_v60  ;;  %v3964_v63 = vpop.f32.mrf.mxu1  ;;  %4292 = vmatpush.msrb.mxu0 %v1412_v20  ;;  %v1622_v20 = vld [vmem:[%s10853_s5 + $0x988] sm:$0xff] }
 0x623   :  { %4970 = vst [vmem:[%s10857_s7 + $0x48] sm:$0xff] %v3962_v19  ;;  %4406 = vmatpush.msrb.mxu1 %v1622_v20 }
 0x624   :  { %4969 = vst [vmem:[%s10857_s7 + $0x40] sm:$0xff] %v3736_v5  ;;  %3672 = vmatmul.f32.gmra.mxu2 %v6958_v54  ;;  %3785 = vmatmul.f32.gmra.mxu3 %v6955_v17  ;;  %v1621_v5 = vld [vmem:[%s10853_s5 + $0x980] sm:$0xff] }
 0x625   :  { %4011 = vmatmul.f32.gmra.mxu1 %v6955_v17  ;;  %4180 = vmatpush.msrb.mxu3 %v1621_v5 }
 0x626   :  { %v3851_v40 = vpop.f32.mrf.mxu0 }
 0x627   :  { %v3852_v50 = vadd.f32 %v3851_v40, %v9408_v47  ;;  %v3625_v4 = vpop.f32.mrf.mxu2  ;;  %v3738_v52 = vpop.f32.mrf.mxu3 }
 0x628   :  { %v3626_v27 = vadd.f32 %v3625_v4, %v9418_v22 }
 0x629   :  { %v3965_v31 = vadd.f32 %v3964_v63, %v3852_v50  ;;  %3898 = vmatmul.f32.gmra.mxu0 %v6958_v54  ;;  %v1383_v63 = vld [vmem:[%s10853_s5 + $0x210] sm:$0xff] }
 0x62a   :  { %v3739_v60 = vadd.f32 %v3738_v52, %v3626_v27  ;;  %v3967_v19 = vpop.f32.mrf.mxu1  ;;  %4068 = vmatpush.msrb.mxu2 %v1383_v63 }
 0x62b   :  { %4984 = vst [vmem:[%s10857_s7 + $0xb8] sm:$0xff] %v3965_v31 }
 0x62c   :  { %4983 = vst [vmem:[%s10857_s7 + $0xb0] sm:$0xff] %v3739_v60  ;;  %3675 = vmatmul.f32.gmra.mxu2 %v6983_v44  ;;  %3788 = vmatmul.f32.gmra.mxu3 %v6980_v8 }
 0x62d   :  { %4014 = vmatmul.f32.gmra.mxu1 %v6980_v8 }
 0x62e   :  { %v3854_v40 = vpop.f32.mrf.mxu0 }
 0x62f   :  { %v3855_v50 = vadd.f32 %v3854_v40, %v9408_v47  ;;  %v3628_v4 = vpop.f32.mrf.mxu2  ;;  %v3741_v52 = vpop.f32.mrf.mxu3 }
 0x630   :  { %v3629_v27 = vadd.f32 %v3628_v4, %v9418_v22 }
 0x631   :  { %v3968_v31 = vadd.f32 %v3967_v19, %v3855_v50  ;;  %3901 = vmatmul.f32.gmra.mxu0 %v6983_v44  ;;  %v1398_v19 = vld [vmem:[%s10853_s5 + $0x288] sm:$0xff] }
 0x632   :  { %v3742_v60 = vadd.f32 %v3741_v52, %v3629_v27  ;;  %v3970_v5 = vpop.f32.mrf.mxu1  ;;  %4293 = vmatpush.msrb.mxu0 %v1398_v19  ;;  %v1608_v19 = vld [vmem:[%s10853_s5 + $0x918] sm:$0xff] }
 0x633   :  { %4998 = vst [vmem:[%s10857_s7 + $0x128] sm:$0xff] %v3968_v31  ;;  %4407 = vmatpush.msrb.mxu1 %v1608_v19 }
 0x634   :  { %4997 = vst [vmem:[%s10857_s7 + $0x120] sm:$0xff] %v3742_v60  ;;  %3678 = vmatmul.f32.gmra.mxu2 %v7014_v37  ;;  %3791 = vmatmul.f32.gmra.mxu3 %v7011_v38  ;;  %v1607_v60 = vld [vmem:[%s10853_s5 + $0x910] sm:$0xff] }
 0x635   :  { %4017 = vmatmul.f32.gmra.mxu1 %v7011_v38  ;;  %4181 = vmatpush.msrb.mxu3 %v1607_v60 }
 0x636   :  { %v3857_v63 = vpop.f32.mrf.mxu0 }
 0x637   :  { %v3858_v20 = vadd.f32 %v3857_v63, %v9408_v47  ;;  %v3631_v40 = vpop.f32.mrf.mxu2  ;;  %v3744_v50 = vpop.f32.mrf.mxu3 }
 0x638   :  { %v3632_v4 = vadd.f32 %v3631_v40, %v9418_v22 }
 0x639   :  { %v3971_v52 = vadd.f32 %v3970_v5, %v3858_v20  ;;  %3904 = vmatmul.f32.gmra.mxu0 %v7014_v37  ;;  %v1369_v5 = vld [vmem:[%s10853_s5 + $0x1a0] sm:$0xff] }
 0x63a   :  { %v3745_v27 = vadd.f32 %v3744_v50, %v3632_v4  ;;  %v3973_v31 = vpop.f32.mrf.mxu1  ;;  %4069 = vmatpush.msrb.mxu2 %v1369_v5 }
 0x63b   :  { %5012 = vst [vmem:[%s10857_s7 + $0x198] sm:$0xff] %v3971_v52 }
 0x63c   :  { %5011 = vst [vmem:[%s10857_s7 + $0x190] sm:$0xff] %v3745_v27  ;;  %3681 = vmatmul.f32.gmra.mxu2 %v7039_v12  ;;  %3794 = vmatmul.f32.gmra.mxu3 %v7036_v13 }
 0x63d   :  { %4020 = vmatmul.f32.gmra.mxu1 %v7036_v13 }
 0x63e   :  { %v3860_v63 = vpop.f32.mrf.mxu0 }
 0x63f   :  { %v3861_v20 = vadd.f32 %v3860_v63, %v9408_v47  ;;  %v3634_v40 = vpop.f32.mrf.mxu2  ;;  %v3747_v50 = vpop.f32.mrf.mxu3 }
 0x640   :  { %v3635_v4 = vadd.f32 %v3634_v40, %v9418_v22 }
 0x641   :  { %v3974_v52 = vadd.f32 %v3973_v31, %v3861_v20  ;;  %3907 = vmatmul.f32.gmra.mxu0 %v7039_v12  ;;  %v1384_v31 = vld [vmem:[%s10853_s5 + $0x218] sm:$0xff] }
 0x642   :  { %v3748_v27 = vadd.f32 %v3747_v50, %v3635_v4  ;;  %v3976_v60 = vpop.f32.mrf.mxu1  ;;  %4294 = vmatpush.msrb.mxu0 %v1384_v31  ;;  %v1594_v31 = vld [vmem:[%s10853_s5 + $0x8a8] sm:$0xff] }
 0x643   :  { %5026 = vst [vmem:[%s10857_s7 + $0x208] sm:$0xff] %v3974_v52  ;;  %4408 = vmatpush.msrb.mxu1 %v1594_v31 }
 0x644   :  { %5025 = vst [vmem:[%s10857_s7 + $0x200] sm:$0xff] %v3748_v27  ;;  %3684 = vmatmul.f32.gmra.mxu2 %v7070_v18  ;;  %3797 = vmatmul.f32.gmra.mxu3 %v7067_v7  ;;  %v1593_v27 = vld [vmem:[%s10853_s5 + $0x8a0] sm:$0xff] }
 0x645   :  { %4023 = vmatmul.f32.gmra.mxu1 %v7067_v7  ;;  %4182 = vmatpush.msrb.mxu3 %v1593_v27 }
 0x646   :  { %v3863_v5 = vpop.f32.mrf.mxu0 }
 0x647   :  { %v3864_v19 = vadd.f32 %v3863_v5, %v9408_v47  ;;  %v3637_v63 = vpop.f32.mrf.mxu2  ;;  %v3750_v20 = vpop.f32.mrf.mxu3 }
 0x648   :  { %v3638_v40 = vadd.f32 %v3637_v63, %v9418_v22 }
 0x649   :  { %v3977_v50 = vadd.f32 %v3976_v60, %v3864_v19  ;;  %3910 = vmatmul.f32.gmra.mxu0 %v7070_v18  ;;  %v1355_v60 = vld [vmem:[%s10853_s5 + $0x130] sm:$0xff] }
 0x64a   :  { %v3751_v4 = vadd.f32 %v3750_v20, %v3638_v40  ;;  %v3979_v52 = vpop.f32.mrf.mxu1  ;;  %4070 = vmatpush.msrb.mxu2 %v1355_v60 }
 0x64b   :  { %5040 = vst [vmem:[%s10857_s7 + $0x278] sm:$0xff] %v3977_v50 }
 0x64c   :  { %5039 = vst [vmem:[%s10857_s7 + $0x270] sm:$0xff] %v3751_v4  ;;  %3687 = vmatmul.f32.gmra.mxu2 %v7095_v24  ;;  %3800 = vmatmul.f32.gmra.mxu3 %v7092_v36 }
 0x64d   :  { %4026 = vmatmul.f32.gmra.mxu1 %v7092_v36 }
 0x64e   :  { %v3866_v5 = vpop.f32.mrf.mxu0 }
 0x64f   :  { %v3867_v19 = vadd.f32 %v3866_v5, %v9408_v47  ;;  %v3640_v63 = vpop.f32.mrf.mxu2  ;;  %v3753_v20 = vpop.f32.mrf.mxu3 }
 0x650   :  { %v3641_v40 = vadd.f32 %v3640_v63, %v9418_v22 }
 0x651   :  { %v3980_v50 = vadd.f32 %v3979_v52, %v3867_v19  ;;  %3913 = vmatmul.f32.gmra.mxu0 %v7095_v24  ;;  %v1370_v52 = vld [vmem:[%s10853_s5 + $0x1a8] sm:$0xff] }
 0x652   :  { %v3754_v4 = vadd.f32 %v3753_v20, %v3641_v40  ;;  %v3982_v27 = vpop.f32.mrf.mxu1  ;;  %4295 = vmatpush.msrb.mxu0 %v1370_v52  ;;  %v1580_v52 = vld [vmem:[%s10853_s5 + $0x838] sm:$0xff] }
 0x653   :  { %5054 = vst [vmem:[%s10857_s7 + $0x2e8] sm:$0xff] %v3980_v50  ;;  %4409 = vmatpush.msrb.mxu1 %v1580_v52 }
 0x654   :  { %5053 = vst [vmem:[%s10857_s7 + $0x2e0] sm:$0xff] %v3754_v4  ;;  %3690 = vmatmul.f32.gmra.mxu2 %v7126_v14  ;;  %3803 = vmatmul.f32.gmra.mxu3 %v7123_v48  ;;  %v1579_v4 = vld [vmem:[%s10853_s5 + $0x830] sm:$0xff] }
 0x655   :  { %4029 = vmatmul.f32.gmra.mxu1 %v7123_v48  ;;  %4183 = vmatpush.msrb.mxu3 %v1579_v4 }
 0x656   :  { %v3869_v60 = vpop.f32.mrf.mxu0 }
 0x657   :  { %v3870_v31 = vadd.f32 %v3869_v60, %v9408_v47  ;;  %v3643_v5 = vpop.f32.mrf.mxu2  ;;  %v3756_v19 = vpop.f32.mrf.mxu3 }
 0x658   :  { %v3644_v63 = vadd.f32 %v3643_v5, %v9418_v22 }
 0x659   :  { %v3983_v20 = vadd.f32 %v3982_v27, %v3870_v31  ;;  %3916 = vmatmul.f32.gmra.mxu0 %v7126_v14  ;;  %v1341_v27 = vld [vmem:[%s10853_s5 + $0xc0] sm:$0xff] }
 0x65a   :  { %v3757_v40 = vadd.f32 %v3756_v19, %v3644_v63  ;;  %v3985_v50 = vpop.f32.mrf.mxu1  ;;  %4071 = vmatpush.msrb.mxu2 %v1341_v27 }
 0x65b   :  { %5068 = vst [vmem:[%s10857_s7 + $0x358] sm:$0xff] %v3983_v20 }
 0x65c   :  { %5067 = vst [vmem:[%s10857_s7 + $0x350] sm:$0xff] %v3757_v40  ;;  %3693 = vmatmul.f32.gmra.mxu2 %v7151_v9  ;;  %3806 = vmatmul.f32.gmra.mxu3 %v7148_v49 }
 0x65d   :  { %4032 = vmatmul.f32.gmra.mxu1 %v7148_v49 }
 0x65e   :  { %v3872_v60 = vpop.f32.mrf.mxu0 }
 0x65f   :  { %v3873_v31 = vadd.f32 %v3872_v60, %v9408_v47  ;;  %v3646_v5 = vpop.f32.mrf.mxu2  ;;  %v3759_v19 = vpop.f32.mrf.mxu3 }
 0x660   :  { %v3647_v63 = vadd.f32 %v3646_v5, %v9418_v22 }
 0x661   :  { %v3986_v20 = vadd.f32 %v3985_v50, %v3873_v31  ;;  %3919 = vmatmul.f32.gmra.mxu0 %v7151_v9  ;;  %v1356_v50 = vld [vmem:[%s10853_s5 + $0x138] sm:$0xff] }
 0x662   :  { %v3760_v40 = vadd.f32 %v3759_v19, %v3647_v63  ;;  %v3988_v4 = vpop.f32.mrf.mxu1  ;;  %4296 = vmatpush.msrb.mxu0 %v1356_v50  ;;  %v1566_v50 = vld [vmem:[%s10853_s5 + $0x7c8] sm:$0xff] }
 0x663   :  { %5082 = vst [vmem:[%s10857_s7 + $0x3c8] sm:$0xff] %v3986_v20  ;;  %4410 = vmatpush.msrb.mxu1 %v1566_v50  ;;  %v11120_v50 = vld [vmem:[#allocation39_spill] sm:$0xff] }
 0x664   :  { %5081 = vst [vmem:[%s10857_s7 + $0x3c0] sm:$0xff] %v3760_v40  ;;  %3696 = vmatmul.f32.gmra.mxu2 %v7182_v26  ;;  %3809 = vmatmul.f32.gmra.mxu3 %v7179_v1  ;;  %v1565_v40 = vld [vmem:[%s10853_s5 + $0x7c0] sm:$0xff] }
 0x665   :  { %4035 = vmatmul.f32.gmra.mxu1 %v7179_v1  ;;  %4184 = vmatpush.msrb.mxu3 %v1565_v40 }
 0x666   :  { %v3875_v27 = vpop.f32.mrf.mxu0 }
 0x667   :  { %v3876_v52 = vadd.f32 %v3875_v27, %v9408_v47  ;;  %v3649_v60 = vpop.f32.mrf.mxu2  ;;  %v3762_v31 = vpop.f32.mrf.mxu3 }
 0x668   :  { %v3650_v5 = vadd.f32 %v3649_v60, %v9418_v22 }
 0x669   :  { %v3989_v19 = vadd.f32 %v3988_v4, %v3876_v52  ;;  %3922 = vmatmul.f32.gmra.mxu0 %v7182_v26  ;;  %v1327_v4 = vld [vmem:[%s10853_s5 + $0x50] sm:$0xff] }
 0x66a   :  { %v3763_v63 = vadd.f32 %v3762_v31, %v3650_v5  ;;  %v3991_v20 = vpop.f32.mrf.mxu1  ;;  %4072 = vmatpush.msrb.mxu2 %v1327_v4  ;;  %v11119_v4 = vld [vmem:[#allocation40_spill] sm:$0xff] }
 0x66b   :  { %5096 = vst [vmem:[%s10857_s7 + $0x438] sm:$0xff] %v3989_v19 }
 0x66c   :  { %5095 = vst [vmem:[%s10857_s7 + $0x430] sm:$0xff] %v3763_v63  ;;  %3699 = vmatmul.f32.gmra.mxu2 %v7207_v32  ;;  %3812 = vmatmul.f32.gmra.mxu3 %v7204_v10 }
 0x66d   :  { %4038 = vmatmul.f32.gmra.mxu1 %v7204_v10 }
 0x66e   :  { %v3878_v27 = vpop.f32.mrf.mxu0 }
 0x66f   :  { %v3879_v52 = vadd.f32 %v3878_v27, %v9408_v47  ;;  %v3652_v60 = vpop.f32.mrf.mxu2  ;;  %v3765_v31 = vpop.f32.mrf.mxu3 }
 0x670   :  { %v3653_v5 = vadd.f32 %v3652_v60, %v9418_v22 }
 0x671   :  { %v3992_v19 = vadd.f32 %v3991_v20, %v3879_v52  ;;  %3925 = vmatmul.f32.gmra.mxu0 %v7207_v32  ;;  %v1342_v20 = vld [vmem:[%s10853_s5 + $0xc8] sm:$0xff] }
 0x672   :  { %v3766_v63 = vadd.f32 %v3765_v31, %v3653_v5  ;;  %v3994_v40 = vpop.f32.mrf.mxu1  ;;  %4297 = vmatpush.msrb.mxu0 %v1342_v20  ;;  %v1551_v20 = vld [vmem:[%s10853_s5 + $0x750] sm:$0xff] }
 0x673   :  { %5110 = vst [vmem:[%s10857_s7 + $0x4a8] sm:$0xff] %v3992_v19  ;;  %4185 = vmatpush.msrb.mxu3 %v1551_v20 }
 0x674   :  { %5109 = vst [vmem:[%s10857_s7 + $0x4a0] sm:$0xff] %v3766_v63  ;;  %3702 = vmatmul.f32.gmra.mxu2 %v11119_v4  ;;  %3815 = vmatmul.f32.gmra.mxu3 %v11120_v50 }
 0x675   :  { %4041 = vmatmul.f32.gmra.mxu1 %v11120_v50  ;;  %v1328_v50 = vld [vmem:[%s10853_s5 + $0x58] sm:$0xff] }
 0x676   :  { %v3881_v27 = vpop.f32.mrf.mxu0  ;;  %4298 = vmatpush.msrb.mxu0 %v1328_v50 }
 0x677   :  { %v3882_v52 = vadd.f32 %v3881_v27, %v9408_v47  ;;  %v3655_v60 = vpop.f32.mrf.mxu2  ;;  %v3768_v31 = vpop.f32.mrf.mxu3  ;;  %v1552_v27 = vld [vmem:[%s10853_s5 + $0x758] sm:$0xff] }
 0x678   :  { %v3656_v5 = vadd.f32 %v3655_v60, %v9418_v22  ;;  %4411 = vmatpush.msrb.mxu1 %v1552_v27 }
 0x679   :  { %v3995_v19 = vadd.f32 %v3994_v40, %v3882_v52  ;;  %3928 = vmatmul.f32.gmra.mxu0 %v11119_v4  ;;  %v11121_v40 = vld [vmem:[#allocation41_spill] sm:$0xff]  ;;  %v1539_v52 = vld [vmem:[%s10853_s5 + $0x6f0] sm:$0xff] }
 0x67a   :  { %v3769_v63 = vadd.f32 %v3768_v31, %v3656_v5  ;;  %v3997_v10 = vpop.f32.mrf.mxu1  ;;  %4509 = vmatpush.msra.mxu2 %v1539_v52 }
 0x67b   :  { %5124 = vst [vmem:[%s10857_s7 + $0x518] sm:$0xff] %v3995_v19 }
 0x67c   :  { %5123 = vst [vmem:[%s10857_s7 + $0x510] sm:$0xff] %v3769_v63  ;;  %3705 = vmatmul.f32.gmra.mxu2 %v7263_v16  ;;  %3818 = vmatmul.f32.gmra.mxu3 %v11121_v40 }
 0x67d   :  { %4044 = vmatmul.f32.gmra.mxu1 %v11121_v40 }
 0x67e   :  { %v3884_v60 = vpop.f32.mrf.mxu0 }
 0x67f   :  { %v3885_v31 = vadd.f32 %v3884_v60, %v9408_v47  ;;  %v3658_v5 = vpop.f32.mrf.mxu2  ;;  %v3771_v19 = vpop.f32.mrf.mxu3 }
 0x680   :  { %v3659_v63 = vadd.f32 %v3658_v5, %v9418_v22 }
 0x681   :  { %v3998_v4 = vadd.f32 %v3997_v10, %v3885_v31  ;;  %3931 = vmatmul.f32.gmra.mxu0 %v7263_v16 }
 0x682   :  { %v3772_v20 = vadd.f32 %v3771_v19, %v3659_v63  ;;  %v4000_v40 = vpop.f32.mrf.mxu1  ;;  %v1763_v19 = vld [vmem:[%s10853_s5 + $0xdf0] sm:$0xff]  ;;  %v1764_v63 = vld [vmem:[%s10853_s5 + $0xdf8] sm:$0xff] }
 0x683   :  { %5138 = vst [vmem:[%s10857_s7 + $0x588] sm:$0xff] %v3998_v4  ;;  %4622 = vmatpush.msra.mxu3 %v1763_v19  ;;  %4848 = vmatpush.msra.mxu1 %v1764_v63 }
 0x684   :  { %5137 = vst [vmem:[%s10857_s7 + $0x580] sm:$0xff] %v3772_v20  ;;  %3708 = vmatmul.f32.gmra.mxu2 %v7297_v35  ;;  %3821 = vmatmul.f32.gmra.mxu3 %v7294_v45 }
 0x685   :  { %4047 = vmatmul.f32.gmra.mxu1 %v7294_v45 }
 0x686   :  { %v3887_v10 = vpop.f32.mrf.mxu0 }
 0x687   :  { %v3888_v27 = vadd.f32 %v3887_v10, %v9408_v47  ;;  %v3661_v52 = vpop.f32.mrf.mxu2  ;;  %v3774_v60 = vpop.f32.mrf.mxu3 }
 0x688   :  { %v3662_v50 = vadd.f32 %v3661_v52, %v9418_v22 }
 0x689   :  { %v4001_v31 = vadd.f32 %v4000_v40, %v3888_v27  ;;  %3934 = vmatmul.f32.gmra.mxu0 %v7297_v35  ;;  %v1525_v40 = vld [vmem:[%s10853_s5 + $0x680] sm:$0xff] }
 0x68a   :  { %v3775_v4 = vadd.f32 %v3774_v60, %v3662_v50  ;;  %v4003_v5 = vpop.f32.mrf.mxu1  ;;  %4510 = vmatpush.msra.mxu2 %v1525_v40 }
 0x68b   :  { %5152 = vst [vmem:[%s10857_s7 + $0x5f8] sm:$0xff] %v4001_v31 }
 0x68c   :  { %5151 = vst [vmem:[%s10857_s7 + $0x5f0] sm:$0xff] %v3775_v4  ;;  %3711 = vmatmul.f32.gmra.mxu2 %v7319_v43  ;;  %3824 = vmatmul.f32.gmra.mxu3 %v7316_v59 }
 0x68d   :  { %4050 = vmatmul.f32.gmra.mxu1 %v7316_v59 }
 0x68e   :  { %v3890_v20 = vpop.f32.mrf.mxu0 }
 0x68f   :  { %v3891_v10 = vadd.f32 %v3890_v20, %v9408_v47  ;;  %v3664_v27 = vpop.f32.mrf.mxu2  ;;  %v3777_v52 = vpop.f32.mrf.mxu3 }
 0x690   :  { %v3665_v60 = vadd.f32 %v3664_v27, %v9418_v22 }
 0x691   :  { %v4004_v50 = vadd.f32 %v4003_v5, %v3891_v10  ;;  %3937 = vmatmul.f32.gmra.mxu0 %v7319_v43  ;;  %v9693_v5 = vld [vmem:[%s10853_s5 + $0x6f8] sm:$0xff] }
 0x692   :  { %v3778_v31 = vadd.f32 %v3777_v52, %v3665_v60  ;;  %v4006_v4 = vpop.f32.mrf.mxu1  ;;  %4735 = vmatpush.msra.mxu0 %v9693_v5 }
 0x693   :  { %5166 = vst [vmem:[%s10857_s7 + $0x668] sm:$0xff] %v4004_v50  ;;  %v1749_v50 = vld [vmem:[%s10853_s5 + $0xd80] sm:$0xff] }
 0x694   :  { %5165 = vst [vmem:[%s10857_s7 + $0x660] sm:$0xff] %v3778_v31  ;;  %3714 = vmatmul.f32.gmra.mxu2 %v7348_v21  ;;  %3827 = vmatmul.f32.gmra.mxu3 %v7345_v41  ;;  %v1511_v31 = vld [vmem:[%s10853_s5 + $0x610] sm:$0xff] }
 0x695   :  { %4053 = vmatmul.f32.gmra.mxu1 %v7345_v41  ;;  %4623 = vmatpush.msra.mxu3 %v1749_v50 }
 0x696   :  { %v3893_v19 = vpop.f32.mrf.mxu0  ;;  %4511 = vmatpush.msra.mxu2 %v1511_v31 }
 0x697   :  { %v3894_v40 = vadd.f32 %v3893_v19, %v9408_v47  ;;  %v3667_v63 = vpop.f32.mrf.mxu2  ;;  %v3780_v20 = vpop.f32.mrf.mxu3 }
 0x698   :  { %v3668_v10 = vadd.f32 %v3667_v63, %v9418_v22 }
 0x699   :  { %v4007_v27 = vadd.f32 %v4006_v4, %v3894_v40  ;;  %3940 = vmatmul.f32.gmra.mxu0 %v7348_v21  ;;  %v1750_v4 = vld [vmem:[%s10853_s5 + $0xd88] sm:$0xff] }
 0x69a   :  { %v3781_v52 = vadd.f32 %v3780_v20, %v3668_v10  ;;  %v4009_v60 = vpop.f32.mrf.mxu1  ;;  %4849 = vmatpush.msra.mxu1 %v1750_v4 }
 0x69b   :  { %5180 = vst [vmem:[%s10857_s7 + $0x6d8] sm:$0xff] %v4007_v27 }
 0x69c   :  { %5179 = vst [vmem:[%s10857_s7 + $0x6d0] sm:$0xff] %v3781_v52  ;;  %4073 = vmatmul.f32.vlgmr.msrb.gmra.mxu2 %v6496_v56  ;;  %4186 = vmatmul.f32.vlgmr.msrb.gmra.mxu3 %v6493_v0 }
 0x69d   :  { %4412 = vmatmul.f32.vlgmr.msrb.gmra.mxu1 %v6493_v0 }
 0x69e   :  { %v3896_v19 = vpop.f32.mrf.mxu0 }
 0x69f   :  { %v3897_v40 = vadd.f32 %v3896_v19, %v9408_v47  ;;  %v3670_v63 = vpop.f32.mrf.mxu2  ;;  %v3783_v20 = vpop.f32.mrf.mxu3 }
 0x6a0   :  { %v3671_v10 = vadd.f32 %v3670_v63, %v9418_v22 }
 0x6a1   :  { %v4010_v27 = vadd.f32 %v4009_v60, %v3897_v40  ;;  %4299 = vmatmul.f32.vlgmr.msrb.gmra.mxu0 %v6496_v56  ;;  %v9732_v60 = vld [vmem:[%s10853_s5 + $0x688] sm:$0xff] }
 0x6a2   :  { %v3784_v52 = vadd.f32 %v3783_v20, %v3671_v10  ;;  %v4012_v50 = vpop.f32.mrf.mxu1  ;;  %4736 = vmatpush.msra.mxu0 %v9732_v60 }
 0x6a3   :  { %5194 = vst [vmem:[%s10857_s7 + $0x748] sm:$0xff] %v4010_v27 }
 0x6a4   :  { %5193 = vst [vmem:[%s10857_s7 + $0x740] sm:$0xff] %v3784_v52  ;;  %4076 = vmatmul.f32.gmra.mxu2 %v11049_v30  ;;  %4189 = vmatmul.f32.gmra.mxu3 %v11050_v34  ;;  %v1735_v52 = vld [vmem:[%s10853_s5 + $0xd10] sm:$0xff] }
 0x6a5   :  { %4415 = vmatmul.f32.gmra.mxu1 %v11050_v34  ;;  %4624 = vmatpush.msra.mxu3 %v1735_v52 }
 0x6a6   :  { %v3899_v31 = vpop.f32.mrf.mxu0 }
 0x6a7   :  { %v3900_v4 = vadd.f32 %v3899_v31, %v9408_v47  ;;  %v3673_v19 = vpop.f32.mrf.mxu2  ;;  %v3786_v40 = vpop.f32.mrf.mxu3  ;;  %v1736_v31 = vld [vmem:[%s10853_s5 + $0xd18] sm:$0xff] }
 0x6a8   :  { %v3674_v63 = vadd.f32 %v3673_v19, %v9418_v22  ;;  %4850 = vmatpush.msra.mxu1 %v1736_v31 }
 0x6a9   :  { %v4013_v20 = vadd.f32 %v4012_v50, %v3900_v4  ;;  %4302 = vmatmul.f32.gmra.mxu0 %v11049_v30  ;;  %v1497_v50 = vld [vmem:[%s10853_s5 + $0x5a0] sm:$0xff] }
 0x6aa   :  { %v3787_v10 = vadd.f32 %v3786_v40, %v3674_v63  ;;  %v4015_v27 = vpop.f32.mrf.mxu1  ;;  %4512 = vmatpush.msra.mxu2 %v1497_v50 }
 0x6ab   :  { %5208 = vst [vmem:[%s10857_s7 + $0x7b8] sm:$0xff] %v4013_v20 }
 0x6ac   :  { %5207 = vst [vmem:[%s10857_s7 + $0x7b0] sm:$0xff] %v3787_v10  ;;  %4079 = vmatmul.f32.gmra.mxu2 %v11051_v46  ;;  %4192 = vmatmul.f32.gmra.mxu3 %v11052_v6 }
 0x6ad   :  { %4418 = vmatmul.f32.gmra.mxu1 %v11052_v6 }
 0x6ae   :  { %v3902_v4 = vpop.f32.mrf.mxu0 }
 0x6af   :  { %v3903_v19 = vadd.f32 %v3902_v4, %v9408_v47  ;;  %v3676_v40 = vpop.f32.mrf.mxu2  ;;  %v3789_v63 = vpop.f32.mrf.mxu3 }
 0x6b0   :  { %v3677_v20 = vadd.f32 %v3676_v40, %v9418_v22 }
 0x6b1   :  { %v4016_v10 = vadd.f32 %v4015_v27, %v3903_v19  ;;  %4305 = vmatmul.f32.gmra.mxu0 %v11051_v46  ;;  %v9771_v27 = vld [vmem:[%s10853_s5 + $0x618] sm:$0xff] }
 0x6b2   :  { %v3790_v52 = vadd.f32 %v3789_v63, %v3677_v20  ;;  %v4018_v6 = vpop.f32.mrf.mxu1  ;;  %4737 = vmatpush.msra.mxu0 %v9771_v27 }
 0x6b3   :  { %5222 = vst [vmem:[%s10857_s7 + $0x828] sm:$0xff] %v4016_v10 }
 0x6b4   :  { %5221 = vst [vmem:[%s10857_s7 + $0x820] sm:$0xff] %v3790_v52  ;;  %4082 = vmatmul.f32.gmra.mxu2 %v11053_v23  ;;  %4195 = vmatmul.f32.gmra.mxu3 %v11054_v28  ;;  %v1721_v52 = vld [vmem:[%s10853_s5 + $0xca0] sm:$0xff] }
 0x6b5   :  { %4421 = vmatmul.f32.gmra.mxu1 %v11054_v28  ;;  %4625 = vmatpush.msra.mxu3 %v1721_v52 }
 0x6b6   :  { %v3905_v50 = vpop.f32.mrf.mxu0 }
 0x6b7   :  { %v3906_v31 = vadd.f32 %v3905_v50, %v9408_v47  ;;  %v3679_v4 = vpop.f32.mrf.mxu2  ;;  %v3792_v19 = vpop.f32.mrf.mxu3  ;;  %v1722_v50 = vld [vmem:[%s10853_s5 + $0xca8] sm:$0xff] }
 0x6b8   :  { %v3680_v40 = vadd.f32 %v3679_v4, %v9418_v22  ;;  %4851 = vmatpush.msra.mxu1 %v1722_v50 }
 0x6b9   :  { %v4019_v63 = vadd.f32 %v4018_v6, %v3906_v31  ;;  %4308 = vmatmul.f32.gmra.mxu0 %v11053_v23  ;;  %v1483_v6 = vld [vmem:[%s10853_s5 + $0x530] sm:$0xff] }
 0x6ba   :  { %v3793_v20 = vadd.f32 %v3792_v19, %v3680_v40  ;;  %v4021_v10 = vpop.f32.mrf.mxu1  ;;  %4513 = vmatpush.msra.mxu2 %v1483_v6 }
 0x6bb   :  { %5236 = vst [vmem:[%s10857_s7 + $0x898] sm:$0xff] %v4019_v63 }
 0x6bc   :  { %5235 = vst [vmem:[%s10857_s7 + $0x890] sm:$0xff] %v3793_v20  ;;  %4085 = vmatmul.f32.gmra.mxu2 %v11055_v3  ;;  %4198 = vmatmul.f32.gmra.mxu3 %v11056_v57 }
 0x6bd   :  { %4424 = vmatmul.f32.gmra.mxu1 %v11056_v57 }
 0x6be   :  { %v3908_v31 = vpop.f32.mrf.mxu0 }
 0x6bf   :  { %v3909_v4 = vadd.f32 %v3908_v31, %v9408_v47  ;;  %v3682_v19 = vpop.f32.mrf.mxu2  ;;  %v3795_v40 = vpop.f32.mrf.mxu3 }
 0x6c0   :  { %v3683_v63 = vadd.f32 %v3682_v19, %v9418_v22 }
 0x6c1   :  { %v4022_v20 = vadd.f32 %v4021_v10, %v3909_v4  ;;  %4311 = vmatmul.f32.gmra.mxu0 %v11055_v3  ;;  %v9810_v10 = vld [vmem:[%s10853_s5 + $0x5a8] sm:$0xff] }
 0x6c2   :  { %v3796_v52 = vadd.f32 %v3795_v40, %v3683_v63  ;;  %v4024_v57 = vpop.f32.mrf.mxu1  ;;  %4738 = vmatpush.msra.mxu0 %v9810_v10 }
 0x6c3   :  { %5250 = vst [vmem:[%s10857_s7 + $0x908] sm:$0xff] %v4022_v20 }
 0x6c4   :  { %5249 = vst [vmem:[%s10857_s7 + $0x900] sm:$0xff] %v3796_v52  ;;  %4088 = vmatmul.f32.gmra.mxu2 %v11057_v42  ;;  %4201 = vmatmul.f32.gmra.mxu3 %v11058_v58  ;;  %v1707_v52 = vld [vmem:[%s10853_s5 + $0xc30] sm:$0xff] }
 0x6c5   :  { %4427 = vmatmul.f32.gmra.mxu1 %v11058_v58  ;;  %4626 = vmatpush.msra.mxu3 %v1707_v52 }
 0x6c6   :  { %v3911_v6 = vpop.f32.mrf.mxu0 }
 0x6c7   :  { %v3912_v50 = vadd.f32 %v3911_v6, %v9408_v47  ;;  %v3685_v31 = vpop.f32.mrf.mxu2  ;;  %v3798_v4 = vpop.f32.mrf.mxu3  ;;  %v1708_v6 = vld [vmem:[%s10853_s5 + $0xc38] sm:$0xff] }
 0x6c8   :  { %v3686_v19 = vadd.f32 %v3685_v31, %v9418_v22  ;;  %4852 = vmatpush.msra.mxu1 %v1708_v6 }
 0x6c9   :  { %v4025_v40 = vadd.f32 %v4024_v57, %v3912_v50  ;;  %4314 = vmatmul.f32.gmra.mxu0 %v11057_v42  ;;  %v1469_v57 = vld [vmem:[%s10853_s5 + $0x4c0] sm:$0xff] }
 0x6ca   :  { %v3799_v63 = vadd.f32 %v3798_v4, %v3686_v19  ;;  %v4027_v20 = vpop.f32.mrf.mxu1  ;;  %4514 = vmatpush.msra.mxu2 %v1469_v57 }
 0x6cb   :  { %5264 = vst [vmem:[%s10857_s7 + $0x978] sm:$0xff] %v4025_v40 }
 0x6cc   :  { %5263 = vst [vmem:[%s10857_s7 + $0x970] sm:$0xff] %v3799_v63  ;;  %4091 = vmatmul.f32.gmra.mxu2 %v11059_v15  ;;  %4204 = vmatmul.f32.gmra.mxu3 %v11060_v62 }
 0x6cd   :  { %4430 = vmatmul.f32.gmra.mxu1 %v11060_v62 }
 0x6ce   :  { %v3914_v50 = vpop.f32.mrf.mxu0 }
 0x6cf   :  { %v3915_v31 = vadd.f32 %v3914_v50, %v9408_v47  ;;  %v3688_v4 = vpop.f32.mrf.mxu2  ;;  %v3801_v19 = vpop.f32.mrf.mxu3 }
 0x6d0   :  { %v3689_v40 = vadd.f32 %v3688_v4, %v9418_v22 }
 0x6d1   :  { %v4028_v63 = vadd.f32 %v4027_v20, %v3915_v31  ;;  %4317 = vmatmul.f32.gmra.mxu0 %v11059_v15  ;;  %v9849_v20 = vld [vmem:[%s10853_s5 + $0x538] sm:$0xff] }
 0x6d2   :  { %v3802_v52 = vadd.f32 %v3801_v19, %v3689_v40  ;;  %v4030_v62 = vpop.f32.mrf.mxu1  ;;  %4739 = vmatpush.msra.mxu0 %v9849_v20 }
 0x6d3   :  { %5278 = vst [vmem:[%s10857_s7 + $0x9e8] sm:$0xff] %v4028_v63 }
 0x6d4   :  { %5277 = vst [vmem:[%s10857_s7 + $0x9e0] sm:$0xff] %v3802_v52  ;;  %4094 = vmatmul.f32.gmra.mxu2 %v11061_v53  ;;  %4207 = vmatmul.f32.gmra.mxu3 %v11062_v29  ;;  %v1693_v52 = vld [vmem:[%s10853_s5 + $0xbc0] sm:$0xff] }
 0x6d5   :  { %4433 = vmatmul.f32.gmra.mxu1 %v11062_v29  ;;  %4627 = vmatpush.msra.mxu3 %v1693_v52 }
 0x6d6   :  { %v3917_v57 = vpop.f32.mrf.mxu0 }
 0x6d7   :  { %v3918_v6 = vadd.f32 %v3917_v57, %v9408_v47  ;;  %v3691_v50 = vpop.f32.mrf.mxu2  ;;  %v3804_v31 = vpop.f32.mrf.mxu3  ;;  %v1694_v57 = vld [vmem:[%s10853_s5 + $0xbc8] sm:$0xff] }
 0x6d8   :  { %v3692_v4 = vadd.f32 %v3691_v50, %v9418_v22  ;;  %4853 = vmatpush.msra.mxu1 %v1694_v57 }
 0x6d9   :  { %v4031_v19 = vadd.f32 %v4030_v62, %v3918_v6  ;;  %4320 = vmatmul.f32.gmra.mxu0 %v11061_v53  ;;  %v1455_v62 = vld [vmem:[%s10853_s5 + $0x450] sm:$0xff] }
 0x6da   :  { %v3805_v40 = vadd.f32 %v3804_v31, %v3692_v4  ;;  %v4033_v63 = vpop.f32.mrf.mxu1  ;;  %4515 = vmatpush.msra.mxu2 %v1455_v62  ;;  %v11122_v62 = vld [vmem:[#allocation18_spill] sm:$0xff] }
 0x6db   :  { %5292 = vst [vmem:[%s10857_s7 + $0xa58] sm:$0xff] %v4031_v19 }
 0x6dc   :  { %5291 = vst [vmem:[%s10857_s7 + $0xa50] sm:$0xff] %v3805_v40  ;;  %4097 = vmatmul.f32.gmra.mxu2 %v11063_v51  ;;  %4210 = vmatmul.f32.gmra.mxu3 %v11064_v33 }
 0x6dd   :  { %4436 = vmatmul.f32.gmra.mxu1 %v11064_v33 }
 0x6de   :  { %v3920_v6 = vpop.f32.mrf.mxu0 }
 0x6df   :  { %v3921_v50 = vadd.f32 %v3920_v6, %v9408_v47  ;;  %v3694_v31 = vpop.f32.mrf.mxu2  ;;  %v3807_v4 = vpop.f32.mrf.mxu3 }
 0x6e0   :  { %v3695_v19 = vadd.f32 %v3694_v31, %v9418_v22 }
 0x6e1   :  { %v4034_v40 = vadd.f32 %v4033_v63, %v3921_v50  ;;  %4323 = vmatmul.f32.gmra.mxu0 %v11063_v51  ;;  %v9888_v63 = vld [vmem:[%s10853_s5 + $0x4c8] sm:$0xff] }
 0x6e2   :  { %v3808_v52 = vadd.f32 %v3807_v4, %v3695_v19  ;;  %v4036_v33 = vpop.f32.mrf.mxu1  ;;  %4740 = vmatpush.msra.mxu0 %v9888_v63 }
 0x6e3   :  { %5306 = vst [vmem:[%s10857_s7 + $0xac8] sm:$0xff] %v4034_v40 }
 0x6e4   :  { %5305 = vst [vmem:[%s10857_s7 + $0xac0] sm:$0xff] %v3808_v52  ;;  %4100 = vmatmul.f32.gmra.mxu2 %v11065_v11  ;;  %4213 = vmatmul.f32.gmra.mxu3 %v11122_v62 }
 0x6e5   :  { %4439 = vmatmul.f32.gmra.mxu1 %v11122_v62  ;;  %v1679_v62 = vld [vmem:[%s10853_s5 + $0xb50] sm:$0xff] }
 0x6e6   :  { %v3923_v57 = vpop.f32.mrf.mxu0  ;;  %4628 = vmatpush.msra.mxu3 %v1679_v62 }
 0x6e7   :  { %v3924_v6 = vadd.f32 %v3923_v57, %v9408_v47  ;;  %v3697_v50 = vpop.f32.mrf.mxu2  ;;  %v3810_v31 = vpop.f32.mrf.mxu3  ;;  %v11123_v57 = vld [vmem:[#allocation21_spill] sm:$0xff] }
 0x6e8   :  { %v3698_v4 = vadd.f32 %v3697_v50, %v9418_v22  ;;  %v11124_v50 = vld [vmem:[#allocation20_spill] sm:$0xff] }
 0x6e9   :  { %v4037_v19 = vadd.f32 %v4036_v33, %v3924_v6  ;;  %4326 = vmatmul.f32.gmra.mxu0 %v11065_v11  ;;  %v1441_v33 = vld [vmem:[%s10853_s5 + $0x3e0] sm:$0xff]  ;;  %v1680_v6 = vld [vmem:[%s10853_s5 + $0xb58] sm:$0xff] }
 0x6ea   :  { %v3811_v40 = vadd.f32 %v3810_v31, %v3698_v4  ;;  %v4039_v52 = vpop.f32.mrf.mxu1  ;;  %4516 = vmatpush.msra.mxu2 %v1441_v33  ;;  %4854 = vmatpush.msra.mxu1 %v1680_v6  ;;  %v11125_v33 = vld [vmem:[#allocation23_spill] sm:$0xff]  ;;  %v11126_v6 = vld [vmem:[#allocation22_spill] sm:$0xff] }
 0x6eb   :  { %5320 = vst [vmem:[%s10857_s7 + $0xb38] sm:$0xff] %v4037_v19 }
 0x6ec   :  { %5319 = vst [vmem:[%s10857_s7 + $0xb30] sm:$0xff] %v3811_v40  ;;  %4103 = vmatmul.f32.gmra.mxu2 %v11123_v57  ;;  %4216 = vmatmul.f32.gmra.mxu3 %v11124_v50 }
 0x6ed   :  { %4442 = vmatmul.f32.gmra.mxu1 %v11124_v50 }
 0x6ee   :  { %v3926_v31 = vpop.f32.mrf.mxu0 }
 0x6ef   :  { %v3927_v4 = vadd.f32 %v3926_v31, %v9408_v47  ;;  %v3700_v19 = vpop.f32.mrf.mxu2  ;;  %v3813_v40 = vpop.f32.mrf.mxu3 }
 0x6f0   :  { %v3701_v11 = vadd.f32 %v3700_v19, %v9418_v22 }
 0x6f1   :  { %v4040_v51 = vadd.f32 %v4039_v52, %v3927_v4  ;;  %4329 = vmatmul.f32.gmra.mxu0 %v11123_v57  ;;  %v9927_v52 = vld [vmem:[%s10853_s5 + $0x458] sm:$0xff] }
 0x6f2   :  { %v3814_v62 = vadd.f32 %v3813_v40, %v3701_v11  ;;  %v4042_v50 = vpop.f32.mrf.mxu1  ;;  %4741 = vmatpush.msra.mxu0 %v9927_v52 }
 0x6f3   :  { %5334 = vst [vmem:[%s10857_s7 + $0xba8] sm:$0xff] %v4040_v51 }
 0x6f4   :  { %5333 = vst [vmem:[%s10857_s7 + $0xba0] sm:$0xff] %v3814_v62  ;;  %4106 = vmatmul.f32.gmra.mxu2 %v11125_v33  ;;  %4219 = vmatmul.f32.gmra.mxu3 %v11126_v6 }
 0x6f5   :  { %4445 = vmatmul.f32.gmra.mxu1 %v11126_v6  ;;  %v1665_v6 = vld [vmem:[%s10853_s5 + $0xae0] sm:$0xff] }
 0x6f6   :  { %v3929_v11 = vpop.f32.mrf.mxu0  ;;  %4629 = vmatpush.msra.mxu3 %v1665_v6 }
 0x6f7   :  { %v3930_v51 = vadd.f32 %v3929_v11, %v9408_v47  ;;  %v3703_v31 = vpop.f32.mrf.mxu2  ;;  %v3816_v4 = vpop.f32.mrf.mxu3  ;;  %v11127_v11 = vld [vmem:[#allocation24_spill] sm:$0xff] }
 0x6f8   :  { %v3704_v19 = vadd.f32 %v3703_v31, %v9418_v22 }
 0x6f9   :  { %v4043_v40 = vadd.f32 %v4042_v50, %v3930_v51  ;;  %4332 = vmatmul.f32.gmra.mxu0 %v11125_v33  ;;  %v1427_v50 = vld [vmem:[%s10853_s5 + $0x370] sm:$0xff]  ;;  %v1666_v51 = vld [vmem:[%s10853_s5 + $0xae8] sm:$0xff] }
 0x6fa   :  { %v3817_v62 = vadd.f32 %v3816_v4, %v3704_v19  ;;  %v4045_v57 = vpop.f32.mrf.mxu1  ;;  %4517 = vmatpush.msra.mxu2 %v1427_v50  ;;  %4855 = vmatpush.msra.mxu1 %v1666_v51  ;;  %v11128_v50 = vld [vmem:[#allocation26_spill] sm:$0xff] }
 0x6fb   :  { %5348 = vst [vmem:[%s10857_s7 + $0xc18] sm:$0xff] %v4043_v40 }
 0x6fc   :  { %5347 = vst [vmem:[%s10857_s7 + $0xc10] sm:$0xff] %v3817_v62  ;;  %4109 = vmatmul.f32.gmra.mxu2 %v11113_v55  ;;  %4222 = vmatmul.f32.gmra.mxu3 %v11127_v11 }
 0x6fd   :  { %4448 = vmatmul.f32.gmra.mxu1 %v11127_v11 }
 0x6fe   :  { %v3932_v31 = vpop.f32.mrf.mxu0 }
 0x6ff   :  { %v3933_v4 = vadd.f32 %v3932_v31, %v9408_v47  ;;  %v3706_v19 = vpop.f32.mrf.mxu2  ;;  %v3819_v40 = vpop.f32.mrf.mxu3 }
 0x700   :  { %v3707_v62 = vadd.f32 %v3706_v19, %v9418_v22 }
 0x701   :  { %v4046_v33 = vadd.f32 %v4045_v57, %v3933_v4  ;;  %4335 = vmatmul.f32.gmra.mxu0 %v11113_v55  ;;  %v9966_v57 = vld [vmem:[%s10853_s5 + $0x3e8] sm:$0xff] }
 0x702   :  { %v3820_v6 = vadd.f32 %v3819_v40, %v3707_v62  ;;  %v4048_v11 = vpop.f32.mrf.mxu1  ;;  %4742 = vmatpush.msra.mxu0 %v9966_v57 }
 0x703   :  { %5362 = vst [vmem:[%s10857_s7 + $0xc88] sm:$0xff] %v4046_v33 }
 0x704   :  { %5361 = vst [vmem:[%s10857_s7 + $0xc80] sm:$0xff] %v3820_v6  ;;  %4112 = vmatmul.f32.gmra.mxu2 %v11101_v25  ;;  %4225 = vmatmul.f32.gmra.mxu3 %v11128_v50 }
 0x705   :  { %4451 = vmatmul.f32.gmra.mxu1 %v11128_v50  ;;  %v1651_v50 = vld [vmem:[%s10853_s5 + $0xa70] sm:$0xff] }
 0x706   :  { %v3935_v51 = vpop.f32.mrf.mxu0  ;;  %4630 = vmatpush.msra.mxu3 %v1651_v50 }
 0x707   :  { %v3936_v33 = vadd.f32 %v3935_v51, %v9408_v47  ;;  %v3709_v31 = vpop.f32.mrf.mxu2  ;;  %v3822_v4 = vpop.f32.mrf.mxu3  ;;  %v11129_v51 = vld [vmem:[#allocation29_spill] sm:$0xff] }
 0x708   :  { %v3710_v19 = vadd.f32 %v3709_v31, %v9418_v22  ;;  %v11130_v31 = vld [vmem:[#allocation28_spill] sm:$0xff] }
 0x709   :  { %v4049_v40 = vadd.f32 %v4048_v11, %v3936_v33  ;;  %4338 = vmatmul.f32.gmra.mxu0 %v11101_v25  ;;  %v1413_v11 = vld [vmem:[%s10853_s5 + $0x300] sm:$0xff]  ;;  %v1652_v33 = vld [vmem:[%s10853_s5 + $0xa78] sm:$0xff] }
 0x70a   :  { %v3823_v62 = vadd.f32 %v3822_v4, %v3710_v19  ;;  %v4051_v6 = vpop.f32.mrf.mxu1  ;;  %4518 = vmatpush.msra.mxu2 %v1413_v11  ;;  %4856 = vmatpush.msra.mxu1 %v1652_v33 }
 0x70b   :  { %5376 = vst [vmem:[%s10857_s7 + $0xcf8] sm:$0xff] %v4049_v40 }
 0x70c   :  { %5375 = vst [vmem:[%s10857_s7 + $0xcf0] sm:$0xff] %v3823_v62  ;;  %4115 = vmatmul.f32.gmra.mxu2 %v11129_v51  ;;  %4228 = vmatmul.f32.gmra.mxu3 %v11130_v31 }
 0x70d   :  { %4454 = vmatmul.f32.gmra.mxu1 %v11130_v31 }
 0x70e   :  { %v3938_v4 = vpop.f32.mrf.mxu0 }
 0x70f   :  { %v3939_v19 = vadd.f32 %v3938_v4, %v9408_v47  ;;  %v3712_v40 = vpop.f32.mrf.mxu2  ;;  %v3825_v62 = vpop.f32.mrf.mxu3 }
 0x710   :  { %v3713_v25 = vadd.f32 %v3712_v40, %v9418_v22 }
 0x711   :  { %v4052_v55 = vadd.f32 %v4051_v6, %v3939_v19  ;;  %4341 = vmatmul.f32.gmra.mxu0 %v11129_v51  ;;  %v10005_v6 = vld [vmem:[%s10853_s5 + $0x378] sm:$0xff] }
 0x712   :  { %v3826_v50 = vadd.f32 %v3825_v62, %v3713_v25  ;;  %v4054_v31 = vpop.f32.mrf.mxu1  ;;  %4743 = vmatpush.msra.mxu0 %v10005_v6 }
 0x713   :  { %5390 = vst [vmem:[%s10857_s7 + $0xd68] sm:$0xff] %v4052_v55 }
 0x714   :  { %5389 = vst [vmem:[%s10857_s7 + $0xd60] sm:$0xff] %v3826_v50  ;;  %4118 = vmatmul.f32.gmra.mxu2 %v11077_v39  ;;  %4231 = vmatmul.f32.gmra.mxu3 %v11117_v2  ;;  %v5520_v50 = vld [vmem:[%s10856_s6 + $0x8] sm:$0x3f] }
 0x715   :  { %4457 = vmatmul.f32.gmra.mxu1 %v11117_v2  ;;  %v10018_v2 = vperm.slane %v5520_v50, 3 }
 0x716   :  { %v3941_v25 = vpop.f32.mrf.mxu0 }
 0x717   :  { %v3942_v55 = vadd.f32 %v3941_v25, %v9408_v47  ;;  %v3715_v11 = vpop.f32.mrf.mxu2  ;;  %v3828_v33 = vpop.f32.mrf.mxu3  ;;  %v1637_v47 = vld [vmem:[%s10853_s5 + $0xa00] sm:$0xff]  ;;  %v1399_v25 = vld [vmem:[%s10853_s5 + $0x290] sm:$0xff] }
 0x718   :  { %v3716_v4 = vadd.f32 %v3715_v11, %v9418_v22  ;;  %v11131_v22 = vld [vmem:[#allocation32_spill] sm:$0xff]  ;;  %4631 = vmatpush.msra.mxu3 %v1637_v47  ;;  %4519 = vmatpush.msra.mxu2 %v1399_v25 }
 0x719   :  { %v4055_v19 = vadd.f32 %v4054_v31, %v3942_v55  ;;  %4344 = vmatmul.f32.gmra.mxu0 %v11077_v39  ;;  %v10028_v31 = vperm.slane %v5520_v50, 2  ;;  %v1638_v55 = vld [vmem:[%s10853_s5 + $0xa08] sm:$0xff] }
 0x71a   :  { %v3829_v40 = vadd.f32 %v3828_v33, %v3716_v4  ;;  %v4413_v62 = vpop.f32.mrf.mxu1  ;;  %4857 = vmatpush.msra.mxu1 %v1638_v55 }
 0x71b   :  { %5404 = vst [vmem:[%s10857_s7 + $0xdd8] sm:$0xff] %v4055_v19 }
 0x71c   :  { %5403 = vst [vmem:[%s10857_s7 + $0xdd0] sm:$0xff] %v3829_v40  ;;  %4121 = vmatmul.f32.gmra.mxu2 %v6929_v61  ;;  %4234 = vmatmul.f32.gmra.mxu3 %v11131_v22 }
 0x71d   :  { %4460 = vmatmul.f32.gmra.mxu1 %v11131_v22 }
 0x71e   :  { %v4300_v11 = vpop.f32.mrf.mxu0 }
 0x71f   :  { %v4301_v33 = vadd.f32 %v4300_v11, %v10018_v2  ;;  %v4074_v4 = vpop.f32.mrf.mxu2  ;;  %v4187_v19 = vpop.f32.mrf.mxu3 }
 0x720   :  { %v4075_v40 = vadd.f32 %v4074_v4, %v10028_v31 }
 0x721   :  { %v4414_v50 = vadd.f32 %v4413_v62, %v4301_v33  ;;  %4347 = vmatmul.f32.gmra.mxu0 %v6929_v61  ;;  %v10051_v62 = vld [vmem:[%s10853_s5 + $0x308] sm:$0xff] }
 0x722   :  { %v4188_v47 = vadd.f32 %v4187_v19, %v4075_v40  ;;  %v4416_v22 = vpop.f32.mrf.mxu1  ;;  %4744 = vmatpush.msra.mxu0 %v10051_v62 }
 0x723   :  { %4972 = vst [vmem:[%s10857_s7 + $0x58] sm:$0xff] %v4414_v50 }
 0x724   :  { %4971 = vst [vmem:[%s10857_s7 + $0x50] sm:$0xff] %v4188_v47  ;;  %4124 = vmatmul.f32.gmra.mxu2 %v6958_v54  ;;  %4237 = vmatmul.f32.gmra.mxu3 %v6955_v17  ;;  %v1623_v47 = vld [vmem:[%s10853_s5 + $0x990] sm:$0xff] }
 0x725   :  { %4463 = vmatmul.f32.gmra.mxu1 %v6955_v17  ;;  %4632 = vmatpush.msra.mxu3 %v1623_v47 }
 0x726   :  { %v4303_v25 = vpop.f32.mrf.mxu0 }
 0x727   :  { %v4304_v55 = vadd.f32 %v4303_v25, %v10018_v2  ;;  %v4077_v11 = vpop.f32.mrf.mxu2  ;;  %v4190_v33 = vpop.f32.mrf.mxu3  ;;  %v1624_v25 = vld [vmem:[%s10853_s5 + $0x998] sm:$0xff] }
 0x728   :  { %v4078_v4 = vadd.f32 %v4077_v11, %v10028_v31  ;;  %4858 = vmatpush.msra.mxu1 %v1624_v25 }
 0x729   :  { %v4417_v19 = vadd.f32 %v4416_v22, %v4304_v55  ;;  %4350 = vmatmul.f32.gmra.mxu0 %v6958_v54  ;;  %v1385_v22 = vld [vmem:[%s10853_s5 + $0x220] sm:$0xff] }
 0x72a   :  { %v4191_v40 = vadd.f32 %v4190_v33, %v4078_v4  ;;  %v4419_v50 = vpop.f32.mrf.mxu1  ;;  %4520 = vmatpush.msra.mxu2 %v1385_v22 }
 0x72b   :  { %4986 = vst [vmem:[%s10857_s7 + $0xc8] sm:$0xff] %v4417_v19 }
 0x72c   :  { %4985 = vst [vmem:[%s10857_s7 + $0xc0] sm:$0xff] %v4191_v40  ;;  %4127 = vmatmul.f32.gmra.mxu2 %v6983_v44  ;;  %4240 = vmatmul.f32.gmra.mxu3 %v6980_v8 }
 0x72d   :  { %4466 = vmatmul.f32.gmra.mxu1 %v6980_v8 }
 0x72e   :  { %v4306_v55 = vpop.f32.mrf.mxu0 }
 0x72f   :  { %v4307_v11 = vadd.f32 %v4306_v55, %v10018_v2  ;;  %v4080_v33 = vpop.f32.mrf.mxu2  ;;  %v4193_v4 = vpop.f32.mrf.mxu3 }
 0x730   :  { %v4081_v19 = vadd.f32 %v4080_v33, %v10028_v31 }
 0x731   :  { %v4420_v40 = vadd.f32 %v4419_v50, %v4307_v11  ;;  %4353 = vmatmul.f32.gmra.mxu0 %v6983_v44  ;;  %v10090_v50 = vld [vmem:[%s10853_s5 + $0x298] sm:$0xff] }
 0x732   :  { %v4194_v47 = vadd.f32 %v4193_v4, %v4081_v19  ;;  %v4422_v8 = vpop.f32.mrf.mxu1  ;;  %4745 = vmatpush.msra.mxu0 %v10090_v50 }
 0x733   :  { %5000 = vst [vmem:[%s10857_s7 + $0x138] sm:$0xff] %v4420_v40 }
 0x734   :  { %4999 = vst [vmem:[%s10857_s7 + $0x130] sm:$0xff] %v4194_v47  ;;  %4130 = vmatmul.f32.gmra.mxu2 %v7014_v37  ;;  %4243 = vmatmul.f32.gmra.mxu3 %v7011_v38  ;;  %v1609_v47 = vld [vmem:[%s10853_s5 + $0x920] sm:$0xff] }
 0x735   :  { %4469 = vmatmul.f32.gmra.mxu1 %v7011_v38  ;;  %4633 = vmatpush.msra.mxu3 %v1609_v47 }
 0x736   :  { %v4309_v22 = vpop.f32.mrf.mxu0 }
 0x737   :  { %v4310_v25 = vadd.f32 %v4309_v22, %v10018_v2  ;;  %v4083_v55 = vpop.f32.mrf.mxu2  ;;  %v4196_v11 = vpop.f32.mrf.mxu3  ;;  %v1610_v22 = vld [vmem:[%s10853_s5 + $0x928] sm:$0xff] }
 0x738   :  { %v4084_v33 = vadd.f32 %v4083_v55, %v10028_v31  ;;  %4859 = vmatpush.msra.mxu1 %v1610_v22 }
 0x739   :  { %v4423_v4 = vadd.f32 %v4422_v8, %v4310_v25  ;;  %4356 = vmatmul.f32.gmra.mxu0 %v7014_v37  ;;  %v1371_v8 = vld [vmem:[%s10853_s5 + $0x1b0] sm:$0xff] }
 0x73a   :  { %v4197_v19 = vadd.f32 %v4196_v11, %v4084_v33  ;;  %v4425_v40 = vpop.f32.mrf.mxu1  ;;  %4521 = vmatpush.msra.mxu2 %v1371_v8 }
 0x73b   :  { %5014 = vst [vmem:[%s10857_s7 + $0x1a8] sm:$0xff] %v4423_v4 }
 0x73c   :  { %5013 = vst [vmem:[%s10857_s7 + $0x1a0] sm:$0xff] %v4197_v19  ;;  %4133 = vmatmul.f32.gmra.mxu2 %v7039_v12  ;;  %4246 = vmatmul.f32.gmra.mxu3 %v7036_v13 }
 0x73d   :  { %4472 = vmatmul.f32.gmra.mxu1 %v7036_v13 }
 0x73e   :  { %v4312_v25 = vpop.f32.mrf.mxu0 }
 0x73f   :  { %v4313_v55 = vadd.f32 %v4312_v25, %v10018_v2  ;;  %v4086_v11 = vpop.f32.mrf.mxu2  ;;  %v4199_v33 = vpop.f32.mrf.mxu3 }
 0x740   :  { %v4087_v4 = vadd.f32 %v4086_v11, %v10028_v31 }
 0x741   :  { %v4426_v19 = vadd.f32 %v4425_v40, %v4313_v55  ;;  %4359 = vmatmul.f32.gmra.mxu0 %v7039_v12  ;;  %v10129_v40 = vld [vmem:[%s10853_s5 + $0x228] sm:$0xff] }
 0x742   :  { %v4200_v47 = vadd.f32 %v4199_v33, %v4087_v4  ;;  %v4428_v13 = vpop.f32.mrf.mxu1  ;;  %4746 = vmatpush.msra.mxu0 %v10129_v40 }
 0x743   :  { %5028 = vst [vmem:[%s10857_s7 + $0x218] sm:$0xff] %v4426_v19 }
 0x744   :  { %5027 = vst [vmem:[%s10857_s7 + $0x210] sm:$0xff] %v4200_v47  ;;  %4136 = vmatmul.f32.gmra.mxu2 %v7070_v18  ;;  %4249 = vmatmul.f32.gmra.mxu3 %v7067_v7  ;;  %v1595_v47 = vld [vmem:[%s10853_s5 + $0x8b0] sm:$0xff] }
 0x745   :  { %4475 = vmatmul.f32.gmra.mxu1 %v7067_v7  ;;  %4634 = vmatpush.msra.mxu3 %v1595_v47 }
 0x746   :  { %v4315_v8 = vpop.f32.mrf.mxu0 }
 0x747   :  { %v4316_v22 = vadd.f32 %v4315_v8, %v10018_v2  ;;  %v4089_v25 = vpop.f32.mrf.mxu2  ;;  %v4202_v55 = vpop.f32.mrf.mxu3  ;;  %v1596_v8 = vld [vmem:[%s10853_s5 + $0x8b8] sm:$0xff] }
 0x748   :  { %v4090_v11 = vadd.f32 %v4089_v25, %v10028_v31  ;;  %4860 = vmatpush.msra.mxu1 %v1596_v8 }
 0x749   :  { %v4429_v33 = vadd.f32 %v4428_v13, %v4316_v22  ;;  %4362 = vmatmul.f32.gmra.mxu0 %v7070_v18  ;;  %v1357_v13 = vld [vmem:[%s10853_s5 + $0x140] sm:$0xff] }
 0x74a   :  { %v4203_v4 = vadd.f32 %v4202_v55, %v4090_v11  ;;  %v4431_v19 = vpop.f32.mrf.mxu1  ;;  %4522 = vmatpush.msra.mxu2 %v1357_v13 }
 0x74b   :  { %5042 = vst [vmem:[%s10857_s7 + $0x288] sm:$0xff] %v4429_v33 }
 0x74c   :  { %5041 = vst [vmem:[%s10857_s7 + $0x280] sm:$0xff] %v4203_v4  ;;  %4139 = vmatmul.f32.gmra.mxu2 %v7095_v24  ;;  %4252 = vmatmul.f32.gmra.mxu3 %v7092_v36 }
 0x74d   :  { %4478 = vmatmul.f32.gmra.mxu1 %v7092_v36 }
 0x74e   :  { %v4318_v22 = vpop.f32.mrf.mxu0 }
 0x74f   :  { %v4319_v25 = vadd.f32 %v4318_v22, %v10018_v2  ;;  %v4092_v55 = vpop.f32.mrf.mxu2  ;;  %v4205_v11 = vpop.f32.mrf.mxu3 }
 0x750   :  { %v4093_v33 = vadd.f32 %v4092_v55, %v10028_v31 }
 0x751   :  { %v4432_v4 = vadd.f32 %v4431_v19, %v4319_v25  ;;  %4365 = vmatmul.f32.gmra.mxu0 %v7095_v24  ;;  %v10168_v19 = vld [vmem:[%s10853_s5 + $0x1b8] sm:$0xff] }
 0x752   :  { %v4206_v47 = vadd.f32 %v4205_v11, %v4093_v33  ;;  %v4434_v36 = vpop.f32.mrf.mxu1  ;;  %4747 = vmatpush.msra.mxu0 %v10168_v19 }
 0x753   :  { %5056 = vst [vmem:[%s10857_s7 + $0x2f8] sm:$0xff] %v4432_v4 }
 0x754   :  { %5055 = vst [vmem:[%s10857_s7 + $0x2f0] sm:$0xff] %v4206_v47  ;;  %4142 = vmatmul.f32.gmra.mxu2 %v7126_v14  ;;  %4255 = vmatmul.f32.gmra.mxu3 %v7123_v48  ;;  %v1581_v47 = vld [vmem:[%s10853_s5 + $0x840] sm:$0xff] }
 0x755   :  { %4481 = vmatmul.f32.gmra.mxu1 %v7123_v48  ;;  %4635 = vmatpush.msra.mxu3 %v1581_v47 }
 0x756   :  { %v4321_v13 = vpop.f32.mrf.mxu0 }
 0x757   :  { %v4322_v8 = vadd.f32 %v4321_v13, %v10018_v2  ;;  %v4095_v22 = vpop.f32.mrf.mxu2  ;;  %v4208_v25 = vpop.f32.mrf.mxu3  ;;  %v1582_v13 = vld [vmem:[%s10853_s5 + $0x848] sm:$0xff] }
 0x758   :  { %v4096_v55 = vadd.f32 %v4095_v22, %v10028_v31  ;;  %4861 = vmatpush.msra.mxu1 %v1582_v13 }
 0x759   :  { %v4435_v11 = vadd.f32 %v4434_v36, %v4322_v8  ;;  %4368 = vmatmul.f32.gmra.mxu0 %v7126_v14  ;;  %v1343_v36 = vld [vmem:[%s10853_s5 + $0xd0] sm:$0xff] }
 0x75a   :  { %v4209_v33 = vadd.f32 %v4208_v25, %v4096_v55  ;;  %v4437_v4 = vpop.f32.mrf.mxu1  ;;  %4523 = vmatpush.msra.mxu2 %v1343_v36 }
 0x75b   :  { %5070 = vst [vmem:[%s10857_s7 + $0x368] sm:$0xff] %v4435_v11 }
 0x75c   :  { %5069 = vst [vmem:[%s10857_s7 + $0x360] sm:$0xff] %v4209_v33  ;;  %4145 = vmatmul.f32.gmra.mxu2 %v7151_v9  ;;  %4258 = vmatmul.f32.gmra.mxu3 %v7148_v49 }
 0x75d   :  { %4484 = vmatmul.f32.gmra.mxu1 %v7148_v49 }
 0x75e   :  { %v4324_v8 = vpop.f32.mrf.mxu0 }
 0x75f   :  { %v4325_v22 = vadd.f32 %v4324_v8, %v10018_v2  ;;  %v4098_v25 = vpop.f32.mrf.mxu2  ;;  %v4211_v55 = vpop.f32.mrf.mxu3 }
 0x760   :  { %v4099_v11 = vadd.f32 %v4098_v25, %v10028_v31 }
 0x761   :  { %v4438_v33 = vadd.f32 %v4437_v4, %v4325_v22  ;;  %4371 = vmatmul.f32.gmra.mxu0 %v7151_v9  ;;  %v10207_v4 = vld [vmem:[%s10853_s5 + $0x148] sm:$0xff] }
 0x762   :  { %v4212_v47 = vadd.f32 %v4211_v55, %v4099_v11  ;;  %v4440_v49 = vpop.f32.mrf.mxu1  ;;  %4748 = vmatpush.msra.mxu0 %v10207_v4 }
 0x763   :  { %5084 = vst [vmem:[%s10857_s7 + $0x3d8] sm:$0xff] %v4438_v33 }
 0x764   :  { %5083 = vst [vmem:[%s10857_s7 + $0x3d0] sm:$0xff] %v4212_v47  ;;  %4148 = vmatmul.f32.gmra.mxu2 %v7182_v26  ;;  %4261 = vmatmul.f32.gmra.mxu3 %v7179_v1  ;;  %v1567_v47 = vld [vmem:[%s10853_s5 + $0x7d0] sm:$0xff] }
 0x765   :  { %4487 = vmatmul.f32.gmra.mxu1 %v7179_v1  ;;  %4636 = vmatpush.msra.mxu3 %v1567_v47 }
 0x766   :  { %v4327_v36 = vpop.f32.mrf.mxu0 }
 0x767   :  { %v4328_v13 = vadd.f32 %v4327_v36, %v10018_v2  ;;  %v4101_v8 = vpop.f32.mrf.mxu2  ;;  %v4214_v22 = vpop.f32.mrf.mxu3  ;;  %v11132_v36 = vld [vmem:[#allocation38_spill] sm:$0xff] }
 0x768   :  { %v4102_v25 = vadd.f32 %v4101_v8, %v10028_v31 }
 0x769   :  { %v4441_v55 = vadd.f32 %v4440_v49, %v4328_v13  ;;  %4374 = vmatmul.f32.gmra.mxu0 %v7182_v26  ;;  %v1329_v49 = vld [vmem:[%s10853_s5 + $0x60] sm:$0xff]  ;;  %v1568_v13 = vld [vmem:[%s10853_s5 + $0x7d8] sm:$0xff] }
 0x76a   :  { %v4215_v11 = vadd.f32 %v4214_v22, %v4102_v25  ;;  %v4443_v33 = vpop.f32.mrf.mxu1  ;;  %4524 = vmatpush.msra.mxu2 %v1329_v49  ;;  %4862 = vmatpush.msra.mxu1 %v1568_v13  ;;  %v11134_v49 = vld [vmem:[#allocation39_spill] sm:$0xff] }
 0x76b   :  { %5098 = vst [vmem:[%s10857_s7 + $0x448] sm:$0xff] %v4441_v55 }
 0x76c   :  { %5097 = vst [vmem:[%s10857_s7 + $0x440] sm:$0xff] %v4215_v11  ;;  %4151 = vmatmul.f32.gmra.mxu2 %v7207_v32  ;;  %4264 = vmatmul.f32.gmra.mxu3 %v11132_v36 }
 0x76d   :  { %4490 = vmatmul.f32.gmra.mxu1 %v11132_v36  ;;  %5501 = vmatpush.msrb.mxu2 %v9693_v5  ;;  %v11133_v5 = vld [vmem:[#allocation40_spill] sm:$0xff] }
 0x76e   :  { %v4330_v8 = vpop.f32.mrf.mxu0 }
 0x76f   :  { %v4331_v22 = vadd.f32 %v4330_v8, %v10018_v2  ;;  %v4104_v25 = vpop.f32.mrf.mxu2  ;;  %v4217_v55 = vpop.f32.mrf.mxu3  ;;  %5502 = vmatpush.msrb.mxu2 %v9732_v60  ;;  %v10249_v60 = vld [vmem:[%s10853_s5 + $0xd8] sm:$0xff] }
 0x770   :  { %v4105_v11 = vadd.f32 %v4104_v25, %v10028_v31  ;;  %4749 = vmatpush.msra.mxu0 %v10249_v60 }
 0x771   :  { %v4444_v47 = vadd.f32 %v4443_v33, %v4331_v22  ;;  %4377 = vmatmul.f32.gmra.mxu0 %v7207_v32  ;;  %5503 = vmatpush.msrb.mxu2 %v9771_v27 }
 0x772   :  { %v4218_v36 = vadd.f32 %v4217_v55, %v4105_v11  ;;  %v4446_v1 = vpop.f32.mrf.mxu1  ;;  %v1554_v11 = vld [vmem:[%s10853_s5 + $0x768] sm:$0xff] }
 0x773   :  { %5112 = vst [vmem:[%s10857_s7 + $0x4b8] sm:$0xff] %v4444_v47  ;;  %5504 = vmatpush.msrb.mxu2 %v9810_v10  ;;  %v1553_v10 = vld [vmem:[%s10853_s5 + $0x760] sm:$0xff]  ;;  %4863 = vmatpush.msra.mxu1 %v1554_v11 }
 0x774   :  { %5111 = vst [vmem:[%s10857_s7 + $0x4b0] sm:$0xff] %v4218_v36  ;;  %4154 = vmatmul.f32.gmra.mxu2 %v11133_v5  ;;  %4267 = vmatmul.f32.gmra.mxu3 %v11134_v49 }
 0x775   :  { %4493 = vmatmul.f32.gmra.mxu1 %v11134_v49  ;;  %5505 = vmatpush.msrb.mxu2 %v9849_v20 }
 0x776   :  { %v4333_v33 = vpop.f32.mrf.mxu0  ;;  %4637 = vmatpush.msra.mxu3 %v1553_v10 }
 0x777   :  { %v4334_v27 = vadd.f32 %v4333_v33, %v10018_v2  ;;  %v4107_v13 = vpop.f32.mrf.mxu2  ;;  %v4220_v36 = vpop.f32.mrf.mxu3  ;;  %5506 = vmatpush.msrb.mxu2 %v9888_v63 }
 0x778   :  { %v4108_v8 = vadd.f32 %v4107_v13, %v10028_v31  ;;  %v1330_v13 = vld [vmem:[%s10853_s5 + $0x68] sm:$0xff] }
 0x779   :  { %v4447_v22 = vadd.f32 %v4446_v1, %v4334_v27  ;;  %4380 = vmatmul.f32.gmra.mxu0 %v11133_v5  ;;  %v11135_v1 = vld [vmem:[#allocation41_spill] sm:$0xff]  ;;  %5507 = vmatpush.msrb.mxu2 %v9927_v52 }
 0x77a   :  { %v4221_v25 = vadd.f32 %v4220_v36, %v4108_v8  ;;  %v4449_v55 = vpop.f32.mrf.mxu1  ;;  %4750 = vmatpush.msra.mxu0 %v1330_v13 }
 0x77b   :  { %5126 = vst [vmem:[%s10857_s7 + $0x528] sm:$0xff] %v4447_v22  ;;  %5508 = vmatpush.msrb.mxu2 %v9966_v57 }
 0x77c   :  { %5125 = vst [vmem:[%s10857_s7 + $0x520] sm:$0xff] %v4221_v25  ;;  %4157 = vmatmul.f32.gmra.mxu2 %v7263_v16  ;;  %4270 = vmatmul.f32.gmra.mxu3 %v11135_v1 }
 0x77d   :  { %4496 = vmatmul.f32.gmra.mxu1 %v11135_v1  ;;  %5509 = vmatpush.msrb.mxu2 %v10005_v6 }
 0x77e   :  { %v4336_v20 = vpop.f32.mrf.mxu0 }
 0x77f   :  { %v4337_v63 = vadd.f32 %v4336_v20, %v10018_v2  ;;  %v4110_v47 = vpop.f32.mrf.mxu2  ;;  %v4223_v33 = vpop.f32.mrf.mxu3  ;;  %5510 = vmatpush.msrb.mxu2 %v10051_v62 }
 0x780   :  { %v4111_v27 = vadd.f32 %v4110_v47, %v10028_v31 }
 0x781   :  { %v4450_v36 = vadd.f32 %v4449_v55, %v4337_v63  ;;  %4383 = vmatmul.f32.gmra.mxu0 %v7263_v16  ;;  %5511 = vmatpush.msrb.mxu2 %v10090_v50 }
 0x782   :  { %v4224_v8 = vadd.f32 %v4223_v33, %v4111_v27  ;;  %v4452_v22 = vpop.f32.mrf.mxu1 }
 0x783   :  { %5140 = vst [vmem:[%s10857_s7 + $0x598] sm:$0xff] %v4450_v36  ;;  %5512 = vmatpush.msrb.mxu2 %v10129_v40 }
 0x784   :  { %5139 = vst [vmem:[%s10857_s7 + $0x590] sm:$0xff] %v4224_v8  ;;  %4160 = vmatmul.f32.gmra.mxu2 %v7297_v35  ;;  %4273 = vmatmul.f32.gmra.mxu3 %v7294_v45 }
 0x785   :  { %4499 = vmatmul.f32.gmra.mxu1 %v7294_v45  ;;  %5513 = vmatpush.msrb.mxu2 %v10168_v19 }
 0x786   :  { %v4339_v52 = vpop.f32.mrf.mxu0 }
 0x787   :  { %v4340_v57 = vadd.f32 %v4339_v52, %v10018_v2  ;;  %v4113_v6 = vpop.f32.mrf.mxu2  ;;  %v4226_v25 = vpop.f32.mrf.mxu3  ;;  %5514 = vmatpush.msrb.mxu2 %v10207_v4 }
 0x788   :  { %v4114_v55 = vadd.f32 %v4113_v6, %v10028_v31 }
 0x789   :  { %v4453_v10 = vadd.f32 %v4452_v22, %v4340_v57  ;;  %4386 = vmatmul.f32.gmra.mxu0 %v7297_v35  ;;  %5515 = vmatpush.msrb.mxu2 %v10249_v60 }
 0x78a   :  { %v4227_v11 = vadd.f32 %v4226_v25, %v4114_v55  ;;  %v4455_v20 = vpop.f32.mrf.mxu1 }
 0x78b   :  { %5154 = vst [vmem:[%s10857_s7 + $0x608] sm:$0xff] %v4453_v10  ;;  %5516 = vmatpush.msrb.mxu2 %v1330_v13 }
 0x78c   :  { %5153 = vst [vmem:[%s10857_s7 + $0x600] sm:$0xff] %v4227_v11  ;;  %4163 = vmatmul.f32.gmra.mxu2 %v7319_v43  ;;  %4276 = vmatmul.f32.gmra.mxu3 %v7316_v59 }
 0x78d   :  { %4502 = vmatmul.f32.gmra.mxu1 %v7316_v59 }
 0x78e   :  { %v4342_v62 = vpop.f32.mrf.mxu0 }
 0x78f   :  { %v4343_v50 = vadd.f32 %v4342_v62, %v10018_v2  ;;  %v4116_v40 = vpop.f32.mrf.mxu2  ;;  %v4229_v63 = vpop.f32.mrf.mxu3 }
 0x790   :  { %v4117_v19 = vadd.f32 %v4116_v40, %v10028_v31 }
 0x791   :  { %v4456_v47 = vadd.f32 %v4455_v20, %v4343_v50  ;;  %4389 = vmatmul.f32.gmra.mxu0 %v7319_v43 }
 0x792   :  { %v4230_v33 = vadd.f32 %v4229_v63, %v4117_v19  ;;  %v4458_v27 = vpop.f32.mrf.mxu1 }
 0x793   :  { %5168 = vst [vmem:[%s10857_s7 + $0x678] sm:$0xff] %v4456_v47 }
 0x794   :  { %5167 = vst [vmem:[%s10857_s7 + $0x670] sm:$0xff] %v4230_v33  ;;  %4166 = vmatmul.f32.gmra.mxu2 %v7348_v21  ;;  %4279 = vmatmul.f32.gmra.mxu3 %v7345_v41 }
 0x795   :  { %4505 = vmatmul.f32.gmra.mxu1 %v7345_v41 }
 0x796   :  { %v4345_v4 = vpop.f32.mrf.mxu0 }
 0x797   :  { %v4346_v60 = vadd.f32 %v4345_v4, %v10018_v2  ;;  %v4119_v13 = vpop.f32.mrf.mxu2  ;;  %v4232_v36 = vpop.f32.mrf.mxu3 }
 0x798   :  { %v4120_v8 = vadd.f32 %v4119_v13, %v10028_v31 }
 0x799   :  { %v4459_v22 = vadd.f32 %v4458_v27, %v4346_v60  ;;  %4392 = vmatmul.f32.gmra.mxu0 %v7348_v21 }
 0x79a   :  { %v4233_v52 = vadd.f32 %v4232_v36, %v4120_v8  ;;  %v4461_v57 = vpop.f32.mrf.mxu1 }
 0x79b   :  { %5182 = vst [vmem:[%s10857_s7 + $0x6e8] sm:$0xff] %v4459_v22 }
 0x79c   :  { %5181 = vst [vmem:[%s10857_s7 + $0x6e0] sm:$0xff] %v4233_v52  ;;  %4525 = vmatmul.f32.vlgmr.msra.gmra.mxu2 %v6496_v56  ;;  %4638 = vmatmul.f32.vlgmr.msra.gmra.mxu3 %v6493_v0 }
 0x79d   :  { %4864 = vmatmul.f32.vlgmr.msra.gmra.mxu1 %v6493_v0 }
 0x79e   :  { %v4348_v6 = vpop.f32.mrf.mxu0 }
 0x79f   :  { %v4349_v25 = vadd.f32 %v4348_v6, %v10018_v2  ;;  %v4122_v55 = vpop.f32.mrf.mxu2  ;;  %v4235_v10 = vpop.f32.mrf.mxu3 }
 0x7a0   :  { %v4123_v11 = vadd.f32 %v4122_v55, %v10028_v31 }
 0x7a1   :  { %v4462_v20 = vadd.f32 %v4461_v57, %v4349_v25  ;;  %4751 = vmatmul.f32.vlgmr.msra.gmra.mxu0 %v6496_v56 }
 0x7a2   :  { %v4236_v62 = vadd.f32 %v4235_v10, %v4123_v11  ;;  %v4464_v50 = vpop.f32.mrf.mxu1 }
 0x7a3   :  { %5196 = vst [vmem:[%s10857_s7 + $0x758] sm:$0xff] %v4462_v20 }
 0x7a4   :  { %5195 = vst [vmem:[%s10857_s7 + $0x750] sm:$0xff] %v4236_v62  ;;  %4528 = vmatmul.f32.gmra.mxu2 %v11049_v30  ;;  %4641 = vmatmul.f32.gmra.mxu3 %v11050_v34 }
 0x7a5   :  { %4867 = vmatmul.f32.gmra.mxu1 %v11050_v34  ;;  %v11136_v34 = vld [vmem:[#allocation4_spill] sm:$0xff] }
 0x7a6   :  { %v4351_v0 = vpop.f32.mrf.mxu0 }
 0x7a7   :  { %v4352_v40 = vadd.f32 %v4351_v0, %v10018_v2  ;;  %v4125_v56 = vpop.f32.mrf.mxu2  ;;  %v4238_v63 = vpop.f32.mrf.mxu3 }
 0x7a8   :  { %v4126_v19 = vadd.f32 %v4125_v56, %v10028_v31 }
 0x7a9   :  { %v4465_v47 = vadd.f32 %v4464_v50, %v4352_v40  ;;  %4754 = vmatmul.f32.gmra.mxu0 %v11049_v30 }
 0x7aa   :  { %v4239_v33 = vadd.f32 %v4238_v63, %v4126_v19  ;;  %v4467_v27 = vpop.f32.mrf.mxu1 }
 0x7ab   :  { %5210 = vst [vmem:[%s10857_s7 + $0x7c8] sm:$0xff] %v4465_v47 }
 0x7ac   :  { %5209 = vst [vmem:[%s10857_s7 + $0x7c0] sm:$0xff] %v4239_v33  ;;  %4531 = vmatmul.f32.gmra.mxu2 %v11051_v46  ;;  %4644 = vmatmul.f32.gmra.mxu3 %v11136_v34 }
 0x7ad   :  { %4870 = vmatmul.f32.gmra.mxu1 %v11136_v34 }
 0x7ae   :  { %v4354_v4 = vpop.f32.mrf.mxu0 }
 0x7af   :  { %v4355_v60 = vadd.f32 %v4354_v4, %v10018_v2  ;;  %v4128_v30 = vpop.f32.mrf.mxu2  ;;  %v4241_v13 = vpop.f32.mrf.mxu3 }
 0x7b0   :  { %v4129_v36 = vadd.f32 %v4128_v30, %v10028_v31 }
 0x7b1   :  { %v4468_v8 = vadd.f32 %v4467_v27, %v4355_v60  ;;  %4757 = vmatmul.f32.gmra.mxu0 %v11051_v46 }
 0x7b2   :  { %v4242_v22 = vadd.f32 %v4241_v13, %v4129_v36  ;;  %v4470_v52 = vpop.f32.mrf.mxu1 }
 0x7b3   :  { %5224 = vst [vmem:[%s10857_s7 + $0x838] sm:$0xff] %v4468_v8 }
 0x7b4   :  { %5223 = vst [vmem:[%s10857_s7 + $0x830] sm:$0xff] %v4242_v22  ;;  %4534 = vmatmul.f32.gmra.mxu2 %v11053_v23  ;;  %4647 = vmatmul.f32.gmra.mxu3 %v11054_v28 }
 0x7b5   :  { %4873 = vmatmul.f32.gmra.mxu1 %v11054_v28  ;;  %v11137_v28 = vld [vmem:[#allocation8_spill] sm:$0xff] }
 0x7b6   :  { %v4357_v57 = vpop.f32.mrf.mxu0 }
 0x7b7   :  { %v4358_v6 = vadd.f32 %v4357_v57, %v10018_v2  ;;  %v4131_v46 = vpop.f32.mrf.mxu2  ;;  %v4244_v25 = vpop.f32.mrf.mxu3 }
 0x7b8   :  { %v4132_v55 = vadd.f32 %v4131_v46, %v10028_v31 }
 0x7b9   :  { %v4471_v10 = vadd.f32 %v4470_v52, %v4358_v6  ;;  %4760 = vmatmul.f32.gmra.mxu0 %v11053_v23 }
 0x7ba   :  { %v4245_v11 = vadd.f32 %v4244_v25, %v4132_v55  ;;  %v4473_v20 = vpop.f32.mrf.mxu1 }
 0x7bb   :  { %5238 = vst [vmem:[%s10857_s7 + $0x8a8] sm:$0xff] %v4471_v10 }
 0x7bc   :  { %5237 = vst [vmem:[%s10857_s7 + $0x8a0] sm:$0xff] %v4245_v11  ;;  %4537 = vmatmul.f32.gmra.mxu2 %v11055_v3  ;;  %4650 = vmatmul.f32.gmra.mxu3 %v11137_v28 }
 0x7bd   :  { %4876 = vmatmul.f32.gmra.mxu1 %v11137_v28 }
 0x7be   :  { %v4360_v62 = vpop.f32.mrf.mxu0 }
 0x7bf   :  { %v4361_v50 = vadd.f32 %v4360_v62, %v10018_v2  ;;  %v4134_v23 = vpop.f32.mrf.mxu2  ;;  %v4247_v0 = vpop.f32.mrf.mxu3  ;;  %v11140_v62 = vld [vmem:[#allocation16_spill] sm:$0xff] }
 0x7c0   :  { %v4135_v40 = vadd.f32 %v4134_v23, %v10028_v31 }
 0x7c1   :  { %v4474_v56 = vadd.f32 %v4473_v20, %v4361_v50  ;;  %4763 = vmatmul.f32.gmra.mxu0 %v11055_v3 }
 0x7c2   :  { %v4248_v63 = vadd.f32 %v4247_v0, %v4135_v40  ;;  %v4476_v19 = vpop.f32.mrf.mxu1 }
 0x7c3   :  { %5252 = vst [vmem:[%s10857_s7 + $0x918] sm:$0xff] %v4474_v56 }
 0x7c4   :  { %5251 = vst [vmem:[%s10857_s7 + $0x910] sm:$0xff] %v4248_v63  ;;  %4540 = vmatmul.f32.gmra.mxu2 %v11057_v42  ;;  %4653 = vmatmul.f32.gmra.mxu3 %v11058_v58 }
 0x7c5   :  { %4879 = vmatmul.f32.gmra.mxu1 %v11058_v58  ;;  %v11138_v58 = vld [vmem:[#allocation12_spill] sm:$0xff] }
 0x7c6   :  { %v4363_v47 = vpop.f32.mrf.mxu0 }
 0x7c7   :  { %v4364_v33 = vadd.f32 %v4363_v47, %v10018_v2  ;;  %v4137_v3 = vpop.f32.mrf.mxu2  ;;  %v4250_v27 = vpop.f32.mrf.mxu3  ;;  %v11141_v47 = vld [vmem:[#allocation19_spill] sm:$0xff] }
 0x7c8   :  { %v4138_v34 = vadd.f32 %v4137_v3, %v10028_v31 }
 0x7c9   :  { %v4477_v4 = vadd.f32 %v4476_v19, %v4364_v33  ;;  %4766 = vmatmul.f32.gmra.mxu0 %v11057_v42  ;;  %v11142_v33 = vld [vmem:[#allocation18_spill] sm:$0xff] }
 0x7ca   :  { %v4251_v60 = vadd.f32 %v4250_v27, %v4138_v34  ;;  %v4479_v30 = vpop.f32.mrf.mxu1 }
 0x7cb   :  { %5266 = vst [vmem:[%s10857_s7 + $0x988] sm:$0xff] %v4477_v4 }
 0x7cc   :  { %5265 = vst [vmem:[%s10857_s7 + $0x980] sm:$0xff] %v4251_v60  ;;  %4543 = vmatmul.f32.gmra.mxu2 %v11059_v15  ;;  %4656 = vmatmul.f32.gmra.mxu3 %v11138_v58 }
 0x7cd   :  { %4882 = vmatmul.f32.gmra.mxu1 %v11138_v58 }
 0x7ce   :  { %v4366_v13 = vpop.f32.mrf.mxu0 }
 0x7cf   :  { %v4367_v36 = vadd.f32 %v4366_v13, %v10018_v2  ;;  %v4140_v42 = vpop.f32.mrf.mxu2  ;;  %v4253_v8 = vpop.f32.mrf.mxu3 }
 0x7d0   :  { %v4141_v22 = vadd.f32 %v4140_v42, %v10028_v31  ;;  %v11144_v42 = vld [vmem:[#allocation20_spill] sm:$0xff] }
 0x7d1   :  { %v4480_v52 = vadd.f32 %v4479_v30, %v4367_v36  ;;  %4769 = vmatmul.f32.gmra.mxu0 %v11059_v15  ;;  %v11143_v36 = vld [vmem:[#allocation21_spill] sm:$0xff] }
 0x7d2   :  { %v4254_v57 = vadd.f32 %v4253_v8, %v4141_v22  ;;  %v4482_v6 = vpop.f32.mrf.mxu1 }
 0x7d3   :  { %5280 = vst [vmem:[%s10857_s7 + $0x9f8] sm:$0xff] %v4480_v52 }
 0x7d4   :  { %5279 = vst [vmem:[%s10857_s7 + $0x9f0] sm:$0xff] %v4254_v57  ;;  %4546 = vmatmul.f32.gmra.mxu2 %v11061_v53  ;;  %4659 = vmatmul.f32.gmra.mxu3 %v11062_v29 }
 0x7d5   :  { %4885 = vmatmul.f32.gmra.mxu1 %v11062_v29  ;;  %v11139_v29 = vld [vmem:[#allocation17_spill] sm:$0xff] }
 0x7d6   :  { %v4369_v46 = vpop.f32.mrf.mxu0 }
 0x7d7   :  { %v4370_v25 = vadd.f32 %v4369_v46, %v10018_v2  ;;  %v4143_v15 = vpop.f32.mrf.mxu2  ;;  %v4256_v55 = vpop.f32.mrf.mxu3 }
 0x7d8   :  { %v4144_v10 = vadd.f32 %v4143_v15, %v10028_v31 }
 0x7d9   :  { %v4483_v11 = vadd.f32 %v4482_v6, %v4370_v25  ;;  %4772 = vmatmul.f32.gmra.mxu0 %v11061_v53 }
 0x7da   :  { %v4257_v20 = vadd.f32 %v4256_v55, %v4144_v10  ;;  %v4485_v28 = vpop.f32.mrf.mxu1  ;;  %v11145_v55 = vld [vmem:[#allocation23_spill] sm:$0xff]  ;;  %v11146_v10 = vld [vmem:[#allocation22_spill] sm:$0xff] }
 0x7db   :  { %5294 = vst [vmem:[%s10857_s7 + $0xa68] sm:$0xff] %v4483_v11 }
 0x7dc   :  { %5293 = vst [vmem:[%s10857_s7 + $0xa60] sm:$0xff] %v4257_v20  ;;  %4549 = vmatmul.f32.gmra.mxu2 %v11139_v29  ;;  %4662 = vmatmul.f32.gmra.mxu3 %v11140_v62 }
 0x7dd   :  { %4888 = vmatmul.f32.gmra.mxu1 %v11140_v62 }
 0x7de   :  { %v4372_v50 = vpop.f32.mrf.mxu0 }
 0x7df   :  { %v4373_v23 = vadd.f32 %v4372_v50, %v10018_v2  ;;  %v4146_v53 = vpop.f32.mrf.mxu2  ;;  %v4259_v0 = vpop.f32.mrf.mxu3 }
 0x7e0   :  { %v4147_v40 = vadd.f32 %v4146_v53, %v10028_v31 }
 0x7e1   :  { %v4486_v56 = vadd.f32 %v4485_v28, %v4373_v23  ;;  %4775 = vmatmul.f32.gmra.mxu0 %v11139_v29 }
 0x7e2   :  { %v4260_v63 = vadd.f32 %v4259_v0, %v4147_v40  ;;  %v4488_v19 = vpop.f32.mrf.mxu1  ;;  %v11147_v0 = vld [vmem:[#allocation25_spill] sm:$0xff]  ;;  %v11148_v40 = vld [vmem:[#allocation24_spill] sm:$0xff] }
 0x7e3   :  { %5308 = vst [vmem:[%s10857_s7 + $0xad8] sm:$0xff] %v4486_v56 }
 0x7e4   :  { %5307 = vst [vmem:[%s10857_s7 + $0xad0] sm:$0xff] %v4260_v63  ;;  %4552 = vmatmul.f32.gmra.mxu2 %v11141_v47  ;;  %4665 = vmatmul.f32.gmra.mxu3 %v11142_v33 }
 0x7e5   :  { %4891 = vmatmul.f32.gmra.mxu1 %v11142_v33 }
 0x7e6   :  { %v4375_v3 = vpop.f32.mrf.mxu0 }
 0x7e7   :  { %v4376_v27 = vadd.f32 %v4375_v3, %v10018_v2  ;;  %v4149_v34 = vpop.f32.mrf.mxu2  ;;  %v4262_v4 = vpop.f32.mrf.mxu3 }
 0x7e8   :  { %v4150_v60 = vadd.f32 %v4149_v34, %v10028_v31 }
 0x7e9   :  { %v4489_v30 = vadd.f32 %v4488_v19, %v4376_v27  ;;  %4778 = vmatmul.f32.gmra.mxu0 %v11141_v47 }
 0x7ea   :  { %v4263_v58 = vadd.f32 %v4262_v4, %v4150_v60  ;;  %v4491_v13 = vpop.f32.mrf.mxu1  ;;  %v11149_v4 = vld [vmem:[#allocation27_spill] sm:$0xff]  ;;  %v11150_v60 = vld [vmem:[#allocation26_spill] sm:$0xff] }
 0x7eb   :  { %5322 = vst [vmem:[%s10857_s7 + $0xb48] sm:$0xff] %v4489_v30 }
 0x7ec   :  { %5321 = vst [vmem:[%s10857_s7 + $0xb40] sm:$0xff] %v4263_v58  ;;  %4555 = vmatmul.f32.gmra.mxu2 %v11143_v36  ;;  %4668 = vmatmul.f32.gmra.mxu3 %v11144_v42 }
 0x7ed   :  { %4894 = vmatmul.f32.gmra.mxu1 %v11144_v42 }
 0x7ee   :  { %v4378_v8 = vpop.f32.mrf.mxu0 }
 0x7ef   :  { %v4379_v22 = vadd.f32 %v4378_v8, %v10018_v2  ;;  %v4152_v52 = vpop.f32.mrf.mxu2  ;;  %v4265_v57 = vpop.f32.mrf.mxu3 }
 0x7f0   :  { %v4153_v6 = vadd.f32 %v4152_v52, %v10028_v31 }
 0x7f1   :  { %v4492_v46 = vadd.f32 %v4491_v13, %v4379_v22  ;;  %4781 = vmatmul.f32.gmra.mxu0 %v11143_v36 }
 0x7f2   :  { %v4266_v25 = vadd.f32 %v4265_v57, %v4153_v6  ;;  %v4494_v15 = vpop.f32.mrf.mxu1  ;;  %v11151_v57 = vld [vmem:[#allocation28_spill] sm:$0xff] }
 0x7f3   :  { %5336 = vst [vmem:[%s10857_s7 + $0xbb8] sm:$0xff] %v4492_v46 }
 0x7f4   :  { %5335 = vst [vmem:[%s10857_s7 + $0xbb0] sm:$0xff] %v4266_v25  ;;  %4558 = vmatmul.f32.gmra.mxu2 %v11145_v55  ;;  %4671 = vmatmul.f32.gmra.mxu3 %v11146_v10 }
 0x7f5   :  { %4897 = vmatmul.f32.gmra.mxu1 %v11146_v10 }
 0x7f6   :  { %v4381_v11 = vpop.f32.mrf.mxu0 }
 0x7f7   :  { %v4382_v20 = vadd.f32 %v4381_v11, %v10018_v2  ;;  %v4155_v28 = vpop.f32.mrf.mxu2  ;;  %v4268_v29 = vpop.f32.mrf.mxu3 }
 0x7f8   :  { %v4156_v62 = vadd.f32 %v4155_v28, %v10028_v31  ;;  %v11152_v28 = vld [vmem:[#allocation30_spill] sm:$0xff] }
 0x7f9   :  { %v4495_v50 = vadd.f32 %v4494_v15, %v4382_v20  ;;  %4784 = vmatmul.f32.gmra.mxu0 %v11145_v55 }
 0x7fa   :  { %v4269_v23 = vadd.f32 %v4268_v29, %v4156_v62  ;;  %v4497_v53 = vpop.f32.mrf.mxu1 }
 0x7fb   :  { %5350 = vst [vmem:[%s10857_s7 + $0xc28] sm:$0xff] %v4495_v50 }
 0x7fc   :  { %5349 = vst [vmem:[%s10857_s7 + $0xc20] sm:$0xff] %v4269_v23  ;;  %4561 = vmatmul.f32.gmra.mxu2 %v11147_v0  ;;  %4674 = vmatmul.f32.gmra.mxu3 %v11148_v40 }
 0x7fd   :  { %4900 = vmatmul.f32.gmra.mxu1 %v11148_v40 }
 0x7fe   :  { %v4384_v56 = vpop.f32.mrf.mxu0 }
 0x7ff   :  { %v4385_v63 = vadd.f32 %v4384_v56, %v10018_v2  ;;  %v4158_v19 = vpop.f32.mrf.mxu2  ;;  %v4271_v47 = vpop.f32.mrf.mxu3  ;;  %v5521_v56 = vld [vmem:[%s10856_s6 + $0x8] sm:$0x3f] }
 0x800   :  { %v4159_v33 = vadd.f32 %v4158_v19, %v10028_v31 }
 0x801   :  { %v4498_v3 = vadd.f32 %v4497_v53, %v4385_v63  ;;  %4787 = vmatmul.f32.gmra.mxu0 %v11147_v0  ;;  %v10523_v63 = vperm.slane %v5521_v56, 5 }
 0x802   :  { %v4272_v27 = vadd.f32 %v4271_v47, %v4159_v33  ;;  %v4500_v34 = vpop.f32.mrf.mxu1 }
 0x803   :  { %5364 = vst [vmem:[%s10857_s7 + $0xc98] sm:$0xff] %v4498_v3 }
 0x804   :  { %5363 = vst [vmem:[%s10857_s7 + $0xc90] sm:$0xff] %v4272_v27  ;;  %4564 = vmatmul.f32.gmra.mxu2 %v11149_v4  ;;  %4677 = vmatmul.f32.gmra.mxu3 %v11150_v60 }
 0x805   :  { %4903 = vmatmul.f32.gmra.mxu1 %v11150_v60 }
 0x806   :  { %v4387_v30 = vpop.f32.mrf.mxu0 }
 0x807   :  { %v4388_v58 = vadd.f32 %v4387_v30, %v10018_v2  ;;  %v4161_v13 = vpop.f32.mrf.mxu2  ;;  %v4274_v36 = vpop.f32.mrf.mxu3 }
 0x808   :  { %v4162_v42 = vadd.f32 %v4161_v13, %v10028_v31 }
 0x809   :  { %v4501_v8 = vadd.f32 %v4500_v34, %v4388_v58  ;;  %4790 = vmatmul.f32.gmra.mxu0 %v11149_v4 }
 0x80a   :  { %v4275_v22 = vadd.f32 %v4274_v36, %v4162_v42  ;;  %v4503_v52 = vpop.f32.mrf.mxu1 }
 0x80b   :  { %5378 = vst [vmem:[%s10857_s7 + $0xd08] sm:$0xff] %v4501_v8 }
 0x80c   :  { %5377 = vst [vmem:[%s10857_s7 + $0xd00] sm:$0xff] %v4275_v22  ;;  %4567 = vmatmul.f32.gmra.mxu2 %v11129_v51  ;;  %4680 = vmatmul.f32.gmra.mxu3 %v11151_v57 }
 0x80d   :  { %4906 = vmatmul.f32.gmra.mxu1 %v11151_v57 }
 0x80e   :  { %v4390_v6 = vpop.f32.mrf.mxu0 }
 0x80f   :  { %v4391_v46 = vadd.f32 %v4390_v6, %v10018_v2  ;;  %v4164_v25 = vpop.f32.mrf.mxu2  ;;  %v4277_v15 = vpop.f32.mrf.mxu3 }
 0x810   :  { %v4165_v55 = vadd.f32 %v4164_v25, %v10028_v31 }
 0x811   :  { %v4504_v10 = vadd.f32 %v4503_v52, %v4391_v46  ;;  %4793 = vmatmul.f32.gmra.mxu0 %v11129_v51 }
 0x812   :  { %v4278_v11 = vadd.f32 %v4277_v15, %v4165_v55  ;;  %v4506_v20 = vpop.f32.mrf.mxu1 }
 0x813   :  { %5392 = vst [vmem:[%s10857_s7 + $0xd78] sm:$0xff] %v4504_v10 }
 0x814   :  { %5391 = vst [vmem:[%s10857_s7 + $0xd70] sm:$0xff] %v4278_v11  ;;  %4570 = vmatmul.f32.gmra.mxu2 %v11077_v39  ;;  %4683 = vmatmul.f32.gmra.mxu3 %v11152_v28 }
 0x815   :  { %4909 = vmatmul.f32.gmra.mxu1 %v11152_v28 }
 0x816   :  { %v4393_v29 = vpop.f32.mrf.mxu0 }
 0x817   :  { %v4394_v62 = vadd.f32 %v4393_v29, %v10018_v2  ;;  %v4167_v51 = vpop.f32.mrf.mxu2  ;;  %v4280_v50 = vpop.f32.mrf.mxu3  ;;  %v11153_v2 = vld [vmem:[#allocation32_spill] sm:$0xff] }
 0x818   :  { %v4168_v23 = vadd.f32 %v4167_v51, %v10028_v31 }
 0x819   :  { %v4507_v53 = vadd.f32 %v4506_v20, %v4394_v62  ;;  %4796 = vmatmul.f32.gmra.mxu0 %v11077_v39  ;;  %v10530_v39 = vperm.slane %v5521_v56, 4 }
 0x81a   :  { %v4281_v0 = vadd.f32 %v4280_v50, %v4168_v23  ;;  %v4865_v40 = vpop.f32.mrf.mxu1 }
 0x81b   :  { %5406 = vst [vmem:[%s10857_s7 + $0xde8] sm:$0xff] %v4507_v53 }
 0x81c   :  { %5405 = vst [vmem:[%s10857_s7 + $0xde0] sm:$0xff] %v4281_v0  ;;  %4573 = vmatmul.f32.gmra.mxu2 %v6929_v61  ;;  %4686 = vmatmul.f32.gmra.mxu3 %v11153_v2 }
 0x81d   :  { %4912 = vmatmul.f32.gmra.mxu1 %v11153_v2 }
 0x81e   :  { %v4752_v31 = vpop.f32.mrf.mxu0 }
 0x81f   :  { %v4753_v19 = vadd.f32 %v4752_v31, %v10523_v63  ;;  %v4526_v47 = vpop.f32.mrf.mxu2  ;;  %v4639_v33 = vpop.f32.mrf.mxu3 }
 0x820   :  { %v4527_v3 = vadd.f32 %v4526_v47, %v10530_v39 }
 0x821   :  { %v4866_v27 = vadd.f32 %v4865_v40, %v4753_v19  ;;  %4799 = vmatmul.f32.gmra.mxu0 %v6929_v61 }
 0x822   :  { %v4640_v34 = vadd.f32 %v4639_v33, %v4527_v3  ;;  %v4868_v4 = vpop.f32.mrf.mxu1 }
 0x823   :  { %4974 = vst [vmem:[%s10857_s7 + $0x68] sm:$0xff] %v4866_v27 }
 0x824   :  { %4973 = vst [vmem:[%s10857_s7 + $0x60] sm:$0xff] %v4640_v34  ;;  %4576 = vmatmul.f32.gmra.mxu2 %v6958_v54  ;;  %4689 = vmatmul.f32.gmra.mxu3 %v6955_v17 }
 0x825   :  { %4915 = vmatmul.f32.gmra.mxu1 %v6955_v17  ;;  %v11154_v17 = vld [vmem:[#allocation33_spill] sm:$0xff] }
 0x826   :  { %v4755_v60 = vpop.f32.mrf.mxu0 }
 0x827   :  { %v4756_v30 = vadd.f32 %v4755_v60, %v10523_v63  ;;  %v4529_v61 = vpop.f32.mrf.mxu2  ;;  %v4642_v58 = vpop.f32.mrf.mxu3 }
 0x828   :  { %v4530_v13 = vadd.f32 %v4529_v61, %v10530_v39 }
 0x829   :  { %v4869_v36 = vadd.f32 %v4868_v4, %v4756_v30  ;;  %4802 = vmatmul.f32.gmra.mxu0 %v6958_v54 }
 0x82a   :  { %v4643_v42 = vadd.f32 %v4642_v58, %v4530_v13  ;;  %v4871_v8 = vpop.f32.mrf.mxu1 }
 0x82b   :  { %4988 = vst [vmem:[%s10857_s7 + $0xd8] sm:$0xff] %v4869_v36 }
 0x82c   :  { %4987 = vst [vmem:[%s10857_s7 + $0xd0] sm:$0xff] %v4643_v42  ;;  %4579 = vmatmul.f32.gmra.mxu2 %v6983_v44  ;;  %4692 = vmatmul.f32.gmra.mxu3 %v11154_v17 }
 0x82d   :  { %4918 = vmatmul.f32.gmra.mxu1 %v11154_v17 }
 0x82e   :  { %v4758_v22 = vpop.f32.mrf.mxu0 }
 0x82f   :  { %v4759_v52 = vadd.f32 %v4758_v22, %v10523_v63  ;;  %v4532_v54 = vpop.f32.mrf.mxu2  ;;  %v4645_v57 = vpop.f32.mrf.mxu3 }
 0x830   :  { %v4533_v6 = vadd.f32 %v4532_v54, %v10530_v39 }
 0x831   :  { %v4872_v46 = vadd.f32 %v4871_v8, %v4759_v52  ;;  %4805 = vmatmul.f32.gmra.mxu0 %v6983_v44 }
 0x832   :  { %v4646_v25 = vadd.f32 %v4645_v57, %v4533_v6  ;;  %v4874_v15 = vpop.f32.mrf.mxu1 }
 0x833   :  { %5002 = vst [vmem:[%s10857_s7 + $0x148] sm:$0xff] %v4872_v46 }
 0x834   :  { %5001 = vst [vmem:[%s10857_s7 + $0x140] sm:$0xff] %v4646_v25  ;;  %4582 = vmatmul.f32.gmra.mxu2 %v7014_v37  ;;  %4695 = vmatmul.f32.gmra.mxu3 %v7011_v38 }
 0x835   :  { %4921 = vmatmul.f32.gmra.mxu1 %v7011_v38  ;;  %v11155_v38 = vld [vmem:[#allocation34_spill] sm:$0xff] }
 0x836   :  { %v4761_v55 = vpop.f32.mrf.mxu0 }
 0x837   :  { %v4762_v10 = vadd.f32 %v4761_v55, %v10523_v63  ;;  %v4535_v44 = vpop.f32.mrf.mxu2  ;;  %v4648_v11 = vpop.f32.mrf.mxu3 }
 0x838   :  { %v4536_v20 = vadd.f32 %v4535_v44, %v10530_v39  ;;  %v11158_v44 = vld [vmem:[#allocation37_spill] sm:$0xff] }
 0x839   :  { %v4875_v28 = vadd.f32 %v4874_v15, %v4762_v10  ;;  %4808 = vmatmul.f32.gmra.mxu0 %v7014_v37 }
 0x83a   :  { %v4649_v29 = vadd.f32 %v4648_v11, %v4536_v20  ;;  %v4877_v62 = vpop.f32.mrf.mxu1 }
 0x83b   :  { %5016 = vst [vmem:[%s10857_s7 + $0x1b8] sm:$0xff] %v4875_v28 }
 0x83c   :  { %5015 = vst [vmem:[%s10857_s7 + $0x1b0] sm:$0xff] %v4649_v29  ;;  %4585 = vmatmul.f32.gmra.mxu2 %v7039_v12  ;;  %4698 = vmatmul.f32.gmra.mxu3 %v11155_v38 }
 0x83d   :  { %4924 = vmatmul.f32.gmra.mxu1 %v11155_v38 }
 0x83e   :  { %v4764_v51 = vpop.f32.mrf.mxu0 }
 0x83f   :  { %v4765_v50 = vadd.f32 %v4764_v51, %v10523_v63  ;;  %v4538_v37 = vpop.f32.mrf.mxu2  ;;  %v4651_v23 = vpop.f32.mrf.mxu3 }
 0x840   :  { %v4539_v53 = vadd.f32 %v4538_v37, %v10530_v39 }
 0x841   :  { %v4878_v0 = vadd.f32 %v4877_v62, %v4765_v50  ;;  %4811 = vmatmul.f32.gmra.mxu0 %v7039_v12  ;;  %v11159_v50 = vld [vmem:[#allocation38_spill] sm:$0xff] }
 0x842   :  { %v4652_v40 = vadd.f32 %v4651_v23, %v4539_v53  ;;  %v4880_v56 = vpop.f32.mrf.mxu1 }
 0x843   :  { %5030 = vst [vmem:[%s10857_s7 + $0x228] sm:$0xff] %v4878_v0 }
 0x844   :  { %5029 = vst [vmem:[%s10857_s7 + $0x220] sm:$0xff] %v4652_v40  ;;  %4588 = vmatmul.f32.gmra.mxu2 %v7070_v18  ;;  %4701 = vmatmul.f32.gmra.mxu3 %v7067_v7 }
 0x845   :  { %4927 = vmatmul.f32.gmra.mxu1 %v7067_v7  ;;  %v11156_v7 = vld [vmem:[#allocation35_spill] sm:$0xff] }
 0x846   :  { %v4767_v2 = vpop.f32.mrf.mxu0 }
 0x847   :  { %v4768_v31 = vadd.f32 %v4767_v2, %v10523_v63  ;;  %v4541_v12 = vpop.f32.mrf.mxu2  ;;  %v4654_v19 = vpop.f32.mrf.mxu3 }
 0x848   :  { %v4542_v47 = vadd.f32 %v4541_v12, %v10530_v39 }
 0x849   :  { %v4881_v33 = vadd.f32 %v4880_v56, %v4768_v31  ;;  %4814 = vmatmul.f32.gmra.mxu0 %v7070_v18 }
 0x84a   :  { %v4655_v3 = vadd.f32 %v4654_v19, %v4542_v47  ;;  %v4883_v27 = vpop.f32.mrf.mxu1 }
 0x84b   :  { %5044 = vst [vmem:[%s10857_s7 + $0x298] sm:$0xff] %v4881_v33 }
 0x84c   :  { %5043 = vst [vmem:[%s10857_s7 + $0x290] sm:$0xff] %v4655_v3  ;;  %4591 = vmatmul.f32.gmra.mxu2 %v7095_v24  ;;  %4704 = vmatmul.f32.gmra.mxu3 %v11156_v7 }
 0x84d   :  { %4930 = vmatmul.f32.gmra.mxu1 %v11156_v7 }
 0x84e   :  { %v4770_v34 = vpop.f32.mrf.mxu0 }
 0x84f   :  { %v4771_v4 = vadd.f32 %v4770_v34, %v10523_v63  ;;  %v4544_v18 = vpop.f32.mrf.mxu2  ;;  %v4657_v60 = vpop.f32.mrf.mxu3 }
 0x850   :  { %v4545_v30 = vadd.f32 %v4544_v18, %v10530_v39 }
 0x851   :  { %v4884_v61 = vadd.f32 %v4883_v27, %v4771_v4  ;;  %4817 = vmatmul.f32.gmra.mxu0 %v7095_v24 }
 0x852   :  { %v4658_v58 = vadd.f32 %v4657_v60, %v4545_v30  ;;  %v4886_v13 = vpop.f32.mrf.mxu1 }
 0x853   :  { %5058 = vst [vmem:[%s10857_s7 + $0x308] sm:$0xff] %v4884_v61 }
 0x854   :  { %5057 = vst [vmem:[%s10857_s7 + $0x300] sm:$0xff] %v4658_v58  ;;  %4594 = vmatmul.f32.gmra.mxu2 %v7126_v14  ;;  %4707 = vmatmul.f32.gmra.mxu3 %v7123_v48 }
 0x855   :  { %4933 = vmatmul.f32.gmra.mxu1 %v7123_v48  ;;  %v11157_v48 = vld [vmem:[#allocation36_spill] sm:$0xff] }
 0x856   :  { %v4773_v36 = vpop.f32.mrf.mxu0 }
 0x857   :  { %v4774_v42 = vadd.f32 %v4773_v36, %v10523_v63  ;;  %v4547_v24 = vpop.f32.mrf.mxu2  ;;  %v4660_v8 = vpop.f32.mrf.mxu3 }
 0x858   :  { %v4548_v17 = vadd.f32 %v4547_v24, %v10530_v39 }
 0x859   :  { %v4887_v22 = vadd.f32 %v4886_v13, %v4774_v42  ;;  %4820 = vmatmul.f32.gmra.mxu0 %v7126_v14 }
 0x85a   :  { %v4661_v52 = vadd.f32 %v4660_v8, %v4548_v17  ;;  %v4889_v54 = vpop.f32.mrf.mxu1 }
 0x85b   :  { %5072 = vst [vmem:[%s10857_s7 + $0x378] sm:$0xff] %v4887_v22 }
 0x85c   :  { %5071 = vst [vmem:[%s10857_s7 + $0x370] sm:$0xff] %v4661_v52  ;;  %4597 = vmatmul.f32.gmra.mxu2 %v7151_v9  ;;  %4710 = vmatmul.f32.gmra.mxu3 %v11157_v48 }
 0x85d   :  { %4936 = vmatmul.f32.gmra.mxu1 %v11157_v48 }
 0x85e   :  { %v4776_v57 = vpop.f32.mrf.mxu0 }
 0x85f   :  { %v4777_v6 = vadd.f32 %v4776_v57, %v10523_v63  ;;  %v4550_v14 = vpop.f32.mrf.mxu2  ;;  %v4663_v46 = vpop.f32.mrf.mxu3 }
 0x860   :  { %v4551_v25 = vadd.f32 %v4550_v14, %v10530_v39 }
 0x861   :  { %v4890_v15 = vadd.f32 %v4889_v54, %v4777_v6  ;;  %4823 = vmatmul.f32.gmra.mxu0 %v7151_v9 }
 0x862   :  { %v4664_v55 = vadd.f32 %v4663_v46, %v4551_v25  ;;  %v4892_v10 = vpop.f32.mrf.mxu1 }
 0x863   :  { %5086 = vst [vmem:[%s10857_s7 + $0x3e8] sm:$0xff] %v4890_v15 }
 0x864   :  { %5085 = vst [vmem:[%s10857_s7 + $0x3e0] sm:$0xff] %v4664_v55  ;;  %4600 = vmatmul.f32.gmra.mxu2 %v7182_v26  ;;  %4713 = vmatmul.f32.gmra.mxu3 %v11158_v44 }
 0x865   :  { %4939 = vmatmul.f32.gmra.mxu1 %v11158_v44 }
 0x866   :  { %v4779_v11 = vpop.f32.mrf.mxu0 }
 0x867   :  { %v4780_v20 = vadd.f32 %v4779_v11, %v10523_v63  ;;  %v4553_v9 = vpop.f32.mrf.mxu2  ;;  %v4666_v28 = vpop.f32.mrf.mxu3 }
 0x868   :  { %v4554_v29 = vadd.f32 %v4553_v9, %v10530_v39 }
 0x869   :  { %v4893_v62 = vadd.f32 %v4892_v10, %v4780_v20  ;;  %4826 = vmatmul.f32.gmra.mxu0 %v7182_v26 }
 0x86a   :  { %v4667_v38 = vadd.f32 %v4666_v28, %v4554_v29  ;;  %v4895_v51 = vpop.f32.mrf.mxu1 }
 0x86b   :  { %5100 = vst [vmem:[%s10857_s7 + $0x458] sm:$0xff] %v4893_v62 }
 0x86c   :  { %5099 = vst [vmem:[%s10857_s7 + $0x450] sm:$0xff] %v4667_v38  ;;  %4603 = vmatmul.f32.gmra.mxu2 %v7207_v32  ;;  %4716 = vmatmul.f32.gmra.mxu3 %v11159_v50 }
 0x86d   :  { %4942 = vmatmul.f32.gmra.mxu1 %v11159_v50 }
 0x86e   :  { %v4782_v37 = vpop.f32.mrf.mxu0 }
 0x86f   :  { %v4783_v23 = vadd.f32 %v4782_v37, %v10523_v63  ;;  %v4556_v26 = vpop.f32.mrf.mxu2  ;;  %v4669_v53 = vpop.f32.mrf.mxu3 }
 0x870   :  { %v4557_v0 = vadd.f32 %v4556_v26, %v10530_v39 }
 0x871   :  { %v4896_v40 = vadd.f32 %v4895_v51, %v4783_v23  ;;  %4829 = vmatmul.f32.gmra.mxu0 %v7207_v32 }
 0x872   :  { %v4670_v56 = vadd.f32 %v4669_v53, %v4557_v0  ;;  %v4898_v2 = vpop.f32.mrf.mxu1 }
 0x873   :  { %5114 = vst [vmem:[%s10857_s7 + $0x4c8] sm:$0xff] %v4896_v40 }
 0x874   :  { %5113 = vst [vmem:[%s10857_s7 + $0x4c0] sm:$0xff] %v4670_v56  ;;  %4606 = vmatmul.f32.gmra.mxu2 %v11133_v5  ;;  %4719 = vmatmul.f32.gmra.mxu3 %v11134_v49 }
 0x875   :  { %4945 = vmatmul.f32.gmra.mxu1 %v11134_v49 }
 0x876   :  { %v4785_v31 = vpop.f32.mrf.mxu0 }
 0x877   :  { %v4786_v12 = vadd.f32 %v4785_v31, %v10523_v63  ;;  %v4559_v32 = vpop.f32.mrf.mxu2  ;;  %v4672_v19 = vpop.f32.mrf.mxu3 }
 0x878   :  { %v4560_v47 = vadd.f32 %v4559_v32, %v10530_v39 }
 0x879   :  { %v4899_v33 = vadd.f32 %v4898_v2, %v4786_v12  ;;  %4832 = vmatmul.f32.gmra.mxu0 %v11133_v5 }
 0x87a   :  { %v4673_v3 = vadd.f32 %v4672_v19, %v4560_v47  ;;  %v4901_v27 = vpop.f32.mrf.mxu1 }
 0x87b   :  { %5128 = vst [vmem:[%s10857_s7 + $0x538] sm:$0xff] %v4899_v33 }
 0x87c   :  { %5127 = vst [vmem:[%s10857_s7 + $0x530] sm:$0xff] %v4673_v3  ;;  %4609 = vmatmul.f32.gmra.mxu2 %v7263_v16  ;;  %4722 = vmatmul.f32.gmra.mxu3 %v11135_v1 }
 0x87d   :  { %4948 = vmatmul.f32.gmra.mxu1 %v11135_v1 }
 0x87e   :  { %v4788_v49 = vpop.f32.mrf.mxu0 }
 0x87f   :  { %v4789_v7 = vadd.f32 %v4788_v49, %v10523_v63  ;;  %v4562_v5 = vpop.f32.mrf.mxu2  ;;  %v4675_v34 = vpop.f32.mrf.mxu3 }
 0x880   :  { %v4563_v4 = vadd.f32 %v4562_v5, %v10530_v39 }
 0x881   :  { %v4902_v18 = vadd.f32 %v4901_v27, %v4789_v7  ;;  %4835 = vmatmul.f32.gmra.mxu0 %v7263_v16 }
 0x882   :  { %v4676_v60 = vadd.f32 %v4675_v34, %v4563_v4  ;;  %v4904_v30 = vpop.f32.mrf.mxu1 }
 0x883   :  { %5142 = vst [vmem:[%s10857_s7 + $0x5a8] sm:$0xff] %v4902_v18 }
 0x884   :  { %5141 = vst [vmem:[%s10857_s7 + $0x5a0] sm:$0xff] %v4676_v60  ;;  %4612 = vmatmul.f32.gmra.mxu2 %v7297_v35  ;;  %4725 = vmatmul.f32.gmra.mxu3 %v7294_v45 }
 0x885   :  { %4951 = vmatmul.f32.gmra.mxu1 %v7294_v45 }
 0x886   :  { %v4791_v1 = vpop.f32.mrf.mxu0 }
 0x887   :  { %v4792_v61 = vadd.f32 %v4791_v1, %v10523_v63  ;;  %v4565_v16 = vpop.f32.mrf.mxu2  ;;  %v4678_v58 = vpop.f32.mrf.mxu3 }
 0x888   :  { %v4566_v13 = vadd.f32 %v4565_v16, %v10530_v39 }
 0x889   :  { %v4905_v36 = vadd.f32 %v4904_v30, %v4792_v61  ;;  %4838 = vmatmul.f32.gmra.mxu0 %v7297_v35 }
 0x88a   :  { %v4679_v42 = vadd.f32 %v4678_v58, %v4566_v13  ;;  %v4907_v24 = vpop.f32.mrf.mxu1 }
 0x88b   :  { %5156 = vst [vmem:[%s10857_s7 + $0x618] sm:$0xff] %v4905_v36 }
 0x88c   :  { %5155 = vst [vmem:[%s10857_s7 + $0x610] sm:$0xff] %v4679_v42  ;;  %4615 = vmatmul.f32.gmra.mxu2 %v7319_v43  ;;  %4728 = vmatmul.f32.gmra.mxu3 %v7316_v59 }
 0x88d   :  { %4954 = vmatmul.f32.gmra.mxu1 %v7316_v59 }
 0x88e   :  { %v4794_v45 = vpop.f32.mrf.mxu0 }
 0x88f   :  { %v4795_v8 = vadd.f32 %v4794_v45, %v10523_v63  ;;  %v4568_v35 = vpop.f32.mrf.mxu2  ;;  %v4681_v17 = vpop.f32.mrf.mxu3 }
 0x890   :  { %v4569_v22 = vadd.f32 %v4568_v35, %v10530_v39 }
 0x891   :  { %v4908_v52 = vadd.f32 %v4907_v24, %v4795_v8  ;;  %4841 = vmatmul.f32.gmra.mxu0 %v7319_v43 }
 0x892   :  { %v4682_v54 = vadd.f32 %v4681_v17, %v4569_v22  ;;  %v4910_v48 = vpop.f32.mrf.mxu1 }
 0x893   :  { %5170 = vst [vmem:[%s10857_s7 + $0x688] sm:$0xff] %v4908_v52 }
 0x894   :  { %5169 = vst [vmem:[%s10857_s7 + $0x680] sm:$0xff] %v4682_v54  ;;  %4618 = vmatmul.f32.gmra.mxu2 %v7348_v21  ;;  %4731 = vmatmul.f32.gmra.mxu3 %v7345_v41 }
 0x895   :  { %4957 = vmatmul.f32.gmra.mxu1 %v7345_v41 }
 0x896   :  { %v4797_v59 = vpop.f32.mrf.mxu0 }
 0x897   :  { %v4798_v57 = vadd.f32 %v4797_v59, %v10523_v63  ;;  %v4571_v43 = vpop.f32.mrf.mxu2  ;;  %v4684_v6 = vpop.f32.mrf.mxu3 }
 0x898   :  { %v4572_v14 = vadd.f32 %v4571_v43, %v10530_v39 }
 0x899   :  { %v4911_v46 = vadd.f32 %v4910_v48, %v4798_v57 }
 0x89a   :  { %v4685_v25 = vadd.f32 %v4684_v6, %v4572_v14  ;;  %v4913_v15 = vpop.f32.mrf.mxu1 }
 0x89b   :  { %5184 = vst [vmem:[%s10857_s7 + $0x6f8] sm:$0xff] %v4911_v46 }
 0x89c   :  { %5183 = vst [vmem:[%s10857_s7 + $0x6f0] sm:$0xff] %v4685_v25  ;;  %4844 = vmatmul.f32.vlgmr.msrb.gmra.mxu2 %v7348_v21 }
 0x89e   :  { %v4800_v41 = vpop.f32.mrf.mxu0 }
 0x89f   :  { %v4801_v55 = vadd.f32 %v4800_v41, %v10523_v63  ;;  %v4574_v10 = vpop.f32.mrf.mxu2  ;;  %v4687_v44 = vpop.f32.mrf.mxu3 }
 0x8a0   :  { %v4575_v11 = vadd.f32 %v4574_v10, %v10530_v39 }
 0x8a1   :  { %v4914_v20 = vadd.f32 %v4913_v15, %v4801_v55 }
 0x8a2   :  { %v4688_v9 = vadd.f32 %v4687_v44, %v4575_v11  ;;  %v4916_v28 = vpop.f32.mrf.mxu1 }
 0x8a3   :  { %5198 = vst [vmem:[%s10857_s7 + $0x768] sm:$0xff] %v4914_v20 }
 0x8a4   :  { %5197 = vst [vmem:[%s10857_s7 + $0x760] sm:$0xff] %v4688_v9 }
 0x8a6   :  { %v4803_v29 = vpop.f32.mrf.mxu0 }
 0x8a7   :  { %v4804_v21 = vadd.f32 %v4803_v29, %v10523_v63  ;;  %v4577_v62 = vpop.f32.mrf.mxu2  ;;  %v4690_v38 = vpop.f32.mrf.mxu3 }
 0x8a8   :  { %v4578_v51 = vadd.f32 %v4577_v62, %v10530_v39 }
 0x8a9   :  { %v4917_v50 = vadd.f32 %v4916_v28, %v4804_v21 }
 0x8aa   :  { %v4691_v37 = vadd.f32 %v4690_v38, %v4578_v51  ;;  %v4919_v23 = vpop.f32.mrf.mxu1 }
 0x8ab   :  { %5212 = vst [vmem:[%s10857_s7 + $0x7d8] sm:$0xff] %v4917_v50 }
 0x8ac   :  { %5211 = vst [vmem:[%s10857_s7 + $0x7d0] sm:$0xff] %v4691_v37 }
 0x8ae   :  { %v4806_v26 = vpop.f32.mrf.mxu0 }
 0x8af   :  { %v4807_v53 = vadd.f32 %v4806_v26, %v10523_v63  ;;  %v4580_v0 = vpop.f32.mrf.mxu2  ;;  %v4693_v40 = vpop.f32.mrf.mxu3 }
 0x8b0   :  { %v4581_v56 = vadd.f32 %v4580_v0, %v10530_v39 }
 0x8b1   :  { %v4920_v2 = vadd.f32 %v4919_v23, %v4807_v53 }
 0x8b2   :  { %v4694_v31 = vadd.f32 %v4693_v40, %v4581_v56  ;;  %v4922_v12 = vpop.f32.mrf.mxu1 }
 0x8b3   :  { %5226 = vst [vmem:[%s10857_s7 + $0x848] sm:$0xff] %v4920_v2 }
 0x8b4   :  { %5225 = vst [vmem:[%s10857_s7 + $0x840] sm:$0xff] %v4694_v31 }
 0x8b6   :  { %v4809_v32 = vpop.f32.mrf.mxu0 }
 0x8b7   :  { %v4810_v19 = vadd.f32 %v4809_v32, %v10523_v63  ;;  %v4583_v47 = vpop.f32.mrf.mxu2  ;;  %v4696_v33 = vpop.f32.mrf.mxu3 }
 0x8b8   :  { %v4584_v3 = vadd.f32 %v4583_v47, %v10530_v39 }
 0x8b9   :  { %v4923_v27 = vadd.f32 %v4922_v12, %v4810_v19 }
 0x8ba   :  { %v4697_v49 = vadd.f32 %v4696_v33, %v4584_v3  ;;  %v4925_v7 = vpop.f32.mrf.mxu1 }
 0x8bb   :  { %5240 = vst [vmem:[%s10857_s7 + $0x8b8] sm:$0xff] %v4923_v27 }
 0x8bc   :  { %5239 = vst [vmem:[%s10857_s7 + $0x8b0] sm:$0xff] %v4697_v49 }
 0x8be   :  { %v4812_v5 = vpop.f32.mrf.mxu0 }
 0x8bf   :  { %v4813_v34 = vadd.f32 %v4812_v5, %v10523_v63  ;;  %v4586_v4 = vpop.f32.mrf.mxu2  ;;  %v4699_v18 = vpop.f32.mrf.mxu3 }
 0x8c0   :  { %v4587_v60 = vadd.f32 %v4586_v4, %v10530_v39 }
 0x8c1   :  { %v4926_v30 = vadd.f32 %v4925_v7, %v4813_v34 }
 0x8c2   :  { %v4700_v1 = vadd.f32 %v4699_v18, %v4587_v60  ;;  %v4928_v61 = vpop.f32.mrf.mxu1 }
 0x8c3   :  { %5254 = vst [vmem:[%s10857_s7 + $0x928] sm:$0xff] %v4926_v30 }
 0x8c4   :  { %5253 = vst [vmem:[%s10857_s7 + $0x920] sm:$0xff] %v4700_v1 }
 0x8c6   :  { %v4815_v16 = vpop.f32.mrf.mxu0 }
 0x8c7   :  { %v4816_v58 = vadd.f32 %v4815_v16, %v10523_v63  ;;  %v4589_v13 = vpop.f32.mrf.mxu2  ;;  %v4702_v36 = vpop.f32.mrf.mxu3 }
 0x8c8   :  { %v4590_v42 = vadd.f32 %v4589_v13, %v10530_v39 }
 0x8c9   :  { %v4929_v24 = vadd.f32 %v4928_v61, %v4816_v58 }
 0x8ca   :  { %v4703_v45 = vadd.f32 %v4702_v36, %v4590_v42  ;;  %v4931_v8 = vpop.f32.mrf.mxu1 }
 0x8cb   :  { %5268 = vst [vmem:[%s10857_s7 + $0x998] sm:$0xff] %v4929_v24 }
 0x8cc   :  { %5267 = vst [vmem:[%s10857_s7 + $0x990] sm:$0xff] %v4703_v45 }
 0x8ce   :  { %v4818_v35 = vpop.f32.mrf.mxu0 }
 0x8cf   :  { %v4819_v17 = vadd.f32 %v4818_v35, %v10523_v63  ;;  %v4592_v22 = vpop.f32.mrf.mxu2  ;;  %v4705_v52 = vpop.f32.mrf.mxu3 }
 0x8d0   :  { %v4593_v54 = vadd.f32 %v4592_v22, %v10530_v39 }
 0x8d1   :  { %v4932_v48 = vadd.f32 %v4931_v8, %v4819_v17 }
 0x8d2   :  { %v4706_v59 = vadd.f32 %v4705_v52, %v4593_v54  ;;  %v4934_v57 = vpop.f32.mrf.mxu1 }
 0x8d3   :  { %5282 = vst [vmem:[%s10857_s7 + $0xa08] sm:$0xff] %v4932_v48 }
 0x8d4   :  { %5281 = vst [vmem:[%s10857_s7 + $0xa00] sm:$0xff] %v4706_v59 }
 0x8d6   :  { %v4821_v43 = vpop.f32.mrf.mxu0 }
 0x8d7   :  { %v4822_v6 = vadd.f32 %v4821_v43, %v10523_v63  ;;  %v4595_v14 = vpop.f32.mrf.mxu2  ;;  %v4708_v46 = vpop.f32.mrf.mxu3 }
 0x8d8   :  { %v4596_v25 = vadd.f32 %v4595_v14, %v10530_v39 }
 0x8d9   :  { %v4935_v15 = vadd.f32 %v4934_v57, %v4822_v6 }
 0x8da   :  { %v4709_v41 = vadd.f32 %v4708_v46, %v4596_v25  ;;  %v4937_v55 = vpop.f32.mrf.mxu1 }
 0x8db   :  { %5296 = vst [vmem:[%s10857_s7 + $0xa78] sm:$0xff] %v4935_v15 }
 0x8dc   :  { %5295 = vst [vmem:[%s10857_s7 + $0xa70] sm:$0xff] %v4709_v41 }
 0x8de   :  { %v4824_v10 = vpop.f32.mrf.mxu0 }
 0x8df   :  { %v4825_v44 = vadd.f32 %v4824_v10, %v10523_v63  ;;  %v4598_v11 = vpop.f32.mrf.mxu2  ;;  %v4711_v20 = vpop.f32.mrf.mxu3 }
 0x8e0   :  { %v4599_v9 = vadd.f32 %v4598_v11, %v10530_v39 }
 0x8e1   :  { %v4938_v28 = vadd.f32 %v4937_v55, %v4825_v44 }
 0x8e2   :  { %v4712_v29 = vadd.f32 %v4711_v20, %v4599_v9  ;;  %v4940_v21 = vpop.f32.mrf.mxu1 }
 0x8e3   :  { %5310 = vst [vmem:[%s10857_s7 + $0xae8] sm:$0xff] %v4938_v28 }
 0x8e4   :  { %5309 = vst [vmem:[%s10857_s7 + $0xae0] sm:$0xff] %v4712_v29 }
 0x8e6   :  { %v4827_v62 = vpop.f32.mrf.mxu0 }
 0x8e7   :  { %v4828_v38 = vadd.f32 %v4827_v62, %v10523_v63  ;;  %v4601_v51 = vpop.f32.mrf.mxu2  ;;  %v4714_v50 = vpop.f32.mrf.mxu3 }
 0x8e8   :  { %v4602_v37 = vadd.f32 %v4601_v51, %v10530_v39 }
 0x8e9   :  { %v4941_v23 = vadd.f32 %v4940_v21, %v4828_v38 }
 0x8ea   :  { %v4715_v26 = vadd.f32 %v4714_v50, %v4602_v37  ;;  %v4943_v53 = vpop.f32.mrf.mxu1 }
 0x8eb   :  { %5324 = vst [vmem:[%s10857_s7 + $0xb58] sm:$0xff] %v4941_v23 }
 0x8ec   :  { %5323 = vst [vmem:[%s10857_s7 + $0xb50] sm:$0xff] %v4715_v26 }
 0x8ee   :  { %v4830_v0 = vpop.f32.mrf.mxu0 }
 0x8ef   :  { %v4831_v40 = vadd.f32 %v4830_v0, %v10523_v63  ;;  %v4604_v56 = vpop.f32.mrf.mxu2  ;;  %v4717_v2 = vpop.f32.mrf.mxu3 }
 0x8f0   :  { %v4605_v31 = vadd.f32 %v4604_v56, %v10530_v39 }
 0x8f1   :  { %v4944_v12 = vadd.f32 %v4943_v53, %v4831_v40 }
 0x8f2   :  { %v4718_v32 = vadd.f32 %v4717_v2, %v4605_v31  ;;  %v4946_v19 = vpop.f32.mrf.mxu1 }
 0x8f3   :  { %5338 = vst [vmem:[%s10857_s7 + $0xbc8] sm:$0xff] %v4944_v12 }
 0x8f4   :  { %5337 = vst [vmem:[%s10857_s7 + $0xbc0] sm:$0xff] %v4718_v32 }
 0x8f6   :  { %v4833_v47 = vpop.f32.mrf.mxu0 }
 0x8f7   :  { %v4834_v33 = vadd.f32 %v4833_v47, %v10523_v63  ;;  %v4607_v3 = vpop.f32.mrf.mxu2  ;;  %v4720_v27 = vpop.f32.mrf.mxu3 }
 0x8f8   :  { %v4608_v49 = vadd.f32 %v4607_v3, %v10530_v39 }
 0x8f9   :  { %v4947_v7 = vadd.f32 %v4946_v19, %v4834_v33 }
 0x8fa   :  { %v4721_v5 = vadd.f32 %v4720_v27, %v4608_v49  ;;  %v4949_v34 = vpop.f32.mrf.mxu1 }
 0x8fb   :  { %5352 = vst [vmem:[%s10857_s7 + $0xc38] sm:$0xff] %v4947_v7 }
 0x8fc   :  { %5351 = vst [vmem:[%s10857_s7 + $0xc30] sm:$0xff] %v4721_v5 }
 0x8fe   :  { %v4836_v4 = vpop.f32.mrf.mxu0 }
 0x8ff   :  { %v4837_v18 = vadd.f32 %v4836_v4, %v10523_v63  ;;  %v4610_v60 = vpop.f32.mrf.mxu2  ;;  %v4723_v30 = vpop.f32.mrf.mxu3 }
 0x900   :  { %v4611_v1 = vadd.f32 %v4610_v60, %v10530_v39 }
 0x901   :  { %v4950_v61 = vadd.f32 %v4949_v34, %v4837_v18 }
 0x902   :  { %v4724_v16 = vadd.f32 %v4723_v30, %v4611_v1  ;;  %v4952_v58 = vpop.f32.mrf.mxu1 }
 0x903   :  { %5366 = vst [vmem:[%s10857_s7 + $0xca8] sm:$0xff] %v4950_v61 }
 0x904   :  { %5365 = vst [vmem:[%s10857_s7 + $0xca0] sm:$0xff] %v4724_v16 }
 0x906   :  { %v4839_v13 = vpop.f32.mrf.mxu0 }
 0x907   :  { %v4840_v36 = vadd.f32 %v4839_v13, %v10523_v63  ;;  %v4613_v42 = vpop.f32.mrf.mxu2  ;;  %v4726_v24 = vpop.f32.mrf.mxu3 }
 0x908   :  { %v4614_v45 = vadd.f32 %v4613_v42, %v10530_v39 }
 0x909   :  { %v4953_v8 = vadd.f32 %v4952_v58, %v4840_v36 }
 0x90a   :  { %v4727_v35 = vadd.f32 %v4726_v24, %v4614_v45  ;;  %v4955_v48 = vpop.f32.mrf.mxu1 }
 0x90b   :  { %5380 = vst [vmem:[%s10857_s7 + $0xd18] sm:$0xff] %v4953_v8 }
 0x90c   :  { %5379 = vst [vmem:[%s10857_s7 + $0xd10] sm:$0xff] %v4727_v35 }
 0x90e   :  { %v4842_v17 = vpop.f32.mrf.mxu0 }
 0x90f   :  { %v4843_v22 = vadd.f32 %v4842_v17, %v10523_v63  ;;  %v4616_v52 = vpop.f32.mrf.mxu2  ;;  %v4729_v54 = vpop.f32.mrf.mxu3 }
 0x910   :  { %v4617_v59 = vadd.f32 %v4616_v52, %v10530_v39 }
 0x911   :  { %v4956_v57 = vadd.f32 %v4955_v48, %v4843_v22 }
 0x912   :  { %v4730_v43 = vadd.f32 %v4729_v54, %v4617_v59  ;;  %v4958_v55 = vpop.f32.mrf.mxu1 }
 0x913   :  { %5394 = vst [vmem:[%s10857_s7 + $0xd88] sm:$0xff] %v4956_v57 }
 0x914   :  { %5393 = vst [vmem:[%s10857_s7 + $0xd80] sm:$0xff] %v4730_v43 }
 0x917   :  { %v4619_v6 = vpop.f32.mrf.mxu2  ;;  %v4732_v46 = vpop.f32.mrf.mxu3 }
 0x918   :  { %v4620_v14 = vadd.f32 %v4619_v6, %v10530_v39 }
 0x91a   :  { %v4733_v25 = vadd.f32 %v4732_v46, %v4620_v14 }
 0x91c   :  { %5407 = vst [vmem:[%s10857_s7 + $0xdf0] sm:$0xff] %v4733_v25 }
 0x91f   :  { %v4845_v15 = vpop.f32.mrf.mxu2 }
 0x920   :  { %v4846_v41 = vadd.f32 %v4845_v15, %v10523_v63 }
 0x922   :  { %v4959_v10 = vadd.f32 %v4958_v55, %v4846_v41 }
 0x924   :  { %5408 = vst [vmem:[%s10857_s7 + $0xdf8] sm:$0xff] %v4959_v10 }

</bundles_post_ra>
